<compile_context>
chip_gen: v7x
topology: tpu7x:2x2x1
jax: 0.10.0
libtpu: 0.0.40
codegen_flags: <defaults>
</compile_context>

<pallas_src>
import functools

import jax
import jax.numpy as jnp
from jax.experimental import pallas as pl
from jax.experimental.pallas import tpu as pltpu

CP = 128  # lane width / zero-padded channel count


# ----------------------------------------------------------------------------
# Fused forward kernel (one grid step = `bt` images)
# ----------------------------------------------------------------------------
def _fused_forward_kernel(x_ref, w1_ref, b1_ref, w2_ref, b2_ref, w3_ref,
                          b3_ref, w4_ref, b4_ref, out_ref,
                          y1_ref, x2_ref, y2_ref, f_ref, *, bt):
    # x_ref : (bt, 784, 16)   conv1 im2col (9 taps + 7 zero lanes) per pixel
    # w1_ref: (16, 128)        conv1 weight (tap, out-ch), zero padded
    # b1_ref: (1, 128)         conv1 bias
    # w2_ref: (9, 128, 128)    conv2 weight (tap, in-ch, out-ch), zero padded
    # b2_ref: (1, 128)         conv2 bias
    # w3_ref: (6272, 128)      linear1 weight, rows = p*128 + c (flatten folded)
    # b3_ref: (1, 128)         linear1 bias
    # w4_ref: (128, 128)       linear2 weight (in, out), zero padded
    # b4_ref: (1, 128)         linear2 bias
    # out_ref: (1, bt, 128)    logits (cols >= 10 are zero)
    # scratch:
    #   y1_ref: (784, 128)     conv1+ReLU activation of the current image
    #   x2_ref: (256, 128)     zero-padded 16x16 flattened conv2 input
    #   y2_ref: (224, 128)     conv2+ReLU activation (222 valid rows)
    #   f_ref : (bt, 6272)     flat activation feeding linear1
    f32 = jnp.float32
    w1 = w1_ref[...]
    b1 = b1_ref[...]
    b2 = b2_ref[...]

    # Zero conv2's padding ring once per step; interior rows are fully
    # overwritten per image and the ring is never touched by interior stores.
    x2_ref[...] = jnp.zeros_like(x2_ref)

    for b in range(bt):
        # ---- conv1 (3x3, pad 1) + bias + ReLU: one im2col matmul ----
        y1_ref[...] = jnp.maximum(
            jnp.dot(x_ref[b], w1, preferred_element_type=f32) + b1, 0.0)

        # ---- maxpool1 (2x2 / stride 2) -> conv2's padded flattened input ----
        for ho in range(14):
            r0 = (2 * ho) * 28
            r1 = (2 * ho + 1) * 28
            p00 = y1_ref[pl.ds(r0, 14, stride=2), :]
            p01 = y1_ref[pl.ds(r0 + 1, 14, stride=2), :]
            p10 = y1_ref[pl.ds(r1, 14, stride=2), :]
            p11 = y1_ref[pl.ds(r1 + 1, 14, stride=2), :]
            pooled = jnp.maximum(jnp.maximum(p00, p01), jnp.maximum(p10, p11))
            x2_ref[pl.ds((ho + 1) * 16 + 1, 14), :] = pooled

        # ---- conv2 (3x3, pad 1): 9 shift-matmuls accumulated in vregs ----
        # Padded image row r = h*16 + w; tap (kh, kw) is row offset kh*16 + kw.
        # Output rows with (r mod 16) >= 14 are wrap-around garbage: finite,
        # never read by the pooling below (see file-top invariant).
        acc = None
        for t in range(9):
            kh, kw = divmod(t, 3)
            patch = x2_ref[pl.ds(kh * 16 + kw, 222), :]
            contrib = jnp.dot(patch, w2_ref[t], preferred_element_type=f32)
            acc = contrib if acc is None else acc + contrib
        y2_ref[pl.ds(0, 222), :] = jnp.maximum(acc + b2, 0.0)   # single store

        # ---- maxpool2 (2x2 / stride 2) -> wide flat activation row ----
        # Flat layout per image: lanes [p*128, (p+1)*128) hold the 128 padded
        # channels of pooled position p = ho*7 + wo (flatten folded into w3).
        for ho in range(7):
            r0 = (2 * ho) * 16
            r1 = (2 * ho + 1) * 16
            p00 = y2_ref[pl.ds(r0, 7, stride=2), :]
            p01 = y2_ref[pl.ds(r0 + 1, 7, stride=2), :]
            p10 = y2_ref[pl.ds(r1, 7, stride=2), :]
            p11 = y2_ref[pl.ds(r1 + 1, 7, stride=2), :]
            pooled = jnp.maximum(jnp.maximum(p00, p01), jnp.maximum(p10, p11))
            for wo in range(7):
                pcol = (ho * 7 + wo) * CP
                f_ref[pl.ds(b, 1), pl.ds(pcol, CP)] = pooled[wo:wo + 1, :]

    # ---- linear1 + ReLU, then linear2 (batched over the bt images) ----
    h = jnp.dot(f_ref[...], w3_ref[...], preferred_element_type=f32) + b3_ref[...]
    h = jnp.maximum(h, 0.0)
    logits = jnp.dot(h, w4_ref[...], preferred_element_type=f32) + b4_ref[...]
    out_ref[0] = logits.astype(out_ref.dtype)


# ----------------------------------------------------------------------------
# Wrapper
# ----------------------------------------------------------------------------
def _batch_tiling(B):
    """Images per grid step (bt) and number of steps (g).

    Keeps >= 2 grid steps whenever possible (feeds both v7x TensorCores) and
    bt up to 8 to amortize the ~0.35 us per-grid-step overhead.
    """
    if B >= 16:
        bt = 8
    elif B >= 8:
        bt = 4
    elif B >= 4:
        bt = 2
    else:
        bt = 1
    g = -(-B // bt)
    return bt, g


def _im2col_conv1(x_nchw, b_pad):
    """(B,1,28,28) -> (b_pad, 784, 16): 9 conv1 taps (+7 zero lanes) per pixel."""
    B = x_nchw.shape[0]
    x = x_nchw.reshape(B, 28, 28)
    if b_pad > B:
        x = jnp.pad(x, ((0, b_pad - B), (0, 0), (0, 0)))
    xp = jnp.pad(x, ((0, 0), (1, 1), (1, 1)))
    taps = [xp[:, kh:kh + 28, kw:kw + 28] for kh in range(3) for kw in range(3)]
    xim = jnp.stack(taps, axis=-1)                        # (b_pad, 28, 28, 9)
    xim = jnp.pad(xim, ((0, 0), (0, 0), (0, 0), (0, 7)))  # (b_pad, 28, 28, 16)
    return xim.reshape(b_pad, 28 * 28, 16)


@jax.jit
def convnet_forward(x_nchw, p):
    B, C, H, W = x_nchw.shape
    assert (C, H, W) == (1, 28, 28), "ConvNet expects (B, 1, 28, 28) inputs"
    bt, g = _batch_tiling(B)
    b_pad = bt * g
    xim = _im2col_conv1(x_nchw, b_pad)

    kernel = functools.partial(_fused_forward_kernel, bt=bt)
    out = pl.pallas_call(
        kernel,
        out_shape=jax.ShapeDtypeStruct((g, bt, CP), jnp.float32),
        grid=(g,),
        in_specs=[
            pl.BlockSpec((bt, 784, 16), lambda i: (i, 0, 0)),   # im2col input
            pl.BlockSpec((16, CP), lambda i: (0, 0)),           # conv1 w
            pl.BlockSpec((1, CP), lambda i: (0, 0)),            # conv1 b
            pl.BlockSpec((9, CP, CP), lambda i: (0, 0, 0)),     # conv2 w
            pl.BlockSpec((1, CP), lambda i: (0, 0)),            # conv2 b
            pl.BlockSpec((49 * CP, CP), lambda i: (0, 0)),      # linear1 w
            pl.BlockSpec((1, CP), lambda i: (0, 0)),            # linear1 b
            pl.BlockSpec((CP, CP), lambda i: (0, 0)),           # linear2 w
            pl.BlockSpec((1, CP), lambda i: (0, 0)),            # linear2 b
        ],
        out_specs=pl.BlockSpec((1, bt, CP), lambda i: (i, 0, 0)),
        scratch_shapes=[
            pltpu.VMEM((784, CP), jnp.float32),   # conv1 activation
            pltpu.VMEM((256, CP), jnp.float32),   # padded conv2 input
            pltpu.VMEM((224, CP), jnp.float32),   # conv2 activation
            pltpu.VMEM((bt, 49 * CP), jnp.float32),  # flat activation
        ],
        compiler_params=pltpu.CompilerParams(
            dimension_semantics=("parallel",),
            vmem_limit_bytes=40 * 1024 * 1024),
    )(xim, p["w1"], p["b1"], p["w2"], p["b2"],
      p["w3"], p["b3"], p["w4"], p["b4"])

    return out.reshape(b_pad, CP)[:B, :10]


# ----------------------------------------------------------------------------
# Parameters: PyTorch-shaped init + one-time repack into kernel layouts
# ----------------------------------------------------------------------------
def init_params(key):
    """Deterministic PyTorch-shaped parameters (uniform +-1/sqrt(fan_in))."""
    ks = jax.random.split(key, 8)

    def u(k, shape, fan_in):
        bound = 1.0 / jnp.sqrt(float(fan_in))
        return jax.random.uniform(k, shape, jnp.float32, -bound, bound)

    return {
        "conv1_w": u(ks[0], (32, 1, 3, 3), 1 * 3 * 3),
        "conv1_b": u(ks[1], (32,), 1 * 3 * 3),
        "conv2_w": u(ks[2], (64, 32, 3, 3), 32 * 3 * 3),
        "conv2_b": u(ks[3], (64,), 32 * 3 * 3),
        "lin1_w": u(ks[4], (128, 7 * 7 * 64), 7 * 7 * 64),
        "lin1_b": u(ks[5], (128,), 7 * 7 * 64),
        "lin2_w": u(ks[6], (10, 128), 128),
        "lin2_b": u(ks[7], (10,), 128),
    }


def prepare_params(p):
    """One-time repack of PyTorch-shaped params into kernel-friendly layouts."""
    # conv1: (32,1,3,3) -> (16,128): rows = tap (kh*3+kw) + 7 zero, cols = out.
    w1 = jnp.pad(p["conv1_w"].reshape(32, 9).T, ((0, 7), (0, CP - 32)))
    b1 = jnp.pad(p["conv1_b"], (0, CP - 32)).reshape(1, CP)

    # conv2: (64,32,3,3) -> (9,128,128): [tap, in-ch (pad 96), out-ch (pad 64)].
    w2 = jnp.transpose(p["conv2_w"], (2, 3, 1, 0)).reshape(9, 32, 64)
    w2 = jnp.pad(w2, ((0, 0), (0, CP - 32), (0, CP - 64)))
    b2 = jnp.pad(p["conv2_b"], (0, CP - 64)).reshape(1, CP)

    # linear1: fold the NCHW flatten (index c*49 + p) into a (p*128 + c, out)
    # weight so the kernel's lane-blocked flat activation feeds it directly.
    w3 = p["lin1_w"].reshape(128, 64, 49)             # (out, c, p)
    w3 = jnp.transpose(w3, (2, 1, 0))                 # (p, c, out)
    w3 = jnp.pad(w3, ((0, 0), (0, CP - 64), (0, 0)))  # (49, 128, 128)
    w3 = w3.reshape(49 * CP, 128)
    b3 = p["lin1_b"].reshape(1, 128)

    # linear2: (10,128) -> (128,128) with zero-padded output columns.
    w4 = jnp.pad(p["lin2_w"].T, ((0, 0), (0, CP - 10)))
    b4 = jnp.pad(p["lin2_b"], (0, CP - 10)).reshape(1, CP)

    return {"w1": w1, "b1": b1, "w2": w2, "b2": b2,
            "w3": w3, "b3": b3, "w4": w4, "b4": b4}


# ----------------------------------------------------------------------------
# Pure-JAX reference for verification
# ----------------------------------------------------------------------------
def reference_forward(x_nchw, params):
    hi = jax.lax.Precision.HIGHEST

    def conv(x, w, b):
        y = jax.lax.conv_general_dilated(
            x, w, (1, 1), ((1, 1), (1, 1)),
            dimension_numbers=("NCHW", "OIHW", "NCHW"), precision=hi)
        return jnp.maximum(y + b[None, :, None, None], 0.0)

    def pool(x):
        return jax.lax.reduce_window(
            x, -jnp.inf, jax.lax.max, (1, 1, 2, 2), (1, 1, 2, 2), "VALID")

    y = pool(conv(x_nchw, params["conv1_w"], params["conv1_b"]))
    y = pool(conv(y, params["conv2_w"], params["conv2_b"]))
    flat = y.reshape(y.shape[0], -1)
    h = jnp.maximum(
        jnp.dot(flat, params["lin1_w"].T, precision=hi) + params["lin1_b"], 0.0)
    return jnp.dot(h, params["lin2_w"].T, precision=hi) + params["lin2_b"]


if __name__ == "__main__":
    key = jax.random.PRNGKey(0)
    kx, kp = jax.random.split(key)

    # 28x28 single-channel input is required by the module (linear1 = 7*7*64).
    x = jax.random.normal(kx, (2, 1, 28, 28), dtype=jnp.float32)
    params = init_params(kp)
    prepped = prepare_params(params)

    logits = jax.block_until_ready(convnet_forward(x, prepped))

    assert logits.shape == (2, 10)
    assert bool(jnp.all(jnp.isfinite(logits)))
    ref = reference_forward(x, params)
    max_err = jnp.max(jnp.abs(logits - ref))
    assert jnp.allclose(logits, ref, atol=1e-2, rtol=1e-2), (
        f"mismatch: max abs err {max_err}")

    print("KERNEL_OK")
</pallas_src>

<mosaic_0001>
module attributes {stable_mosaic.version = 11 : i64} {
  func.func @_fused_forward_kernel(%arg0: i32, %arg1: memref<1x784x16xf32, #tpu.memory_space<vmem>>, %arg2: memref<16x128xf32, #tpu.memory_space<vmem>>, %arg3: memref<1x128xf32, #tpu.memory_space<vmem>>, %arg4: memref<9x128x128xf32, #tpu.memory_space<vmem>>, %arg5: memref<1x128xf32, #tpu.memory_space<vmem>>, %arg6: memref<6272x128xf32, #tpu.memory_space<vmem>>, %arg7: memref<1x128xf32, #tpu.memory_space<vmem>>, %arg8: memref<128x128xf32, #tpu.memory_space<vmem>>, %arg9: memref<1x128xf32, #tpu.memory_space<vmem>>, %arg10: memref<1x1x128xf32, #tpu.memory_space<vmem>>, %arg11: memref<784x128xf32, #tpu.memory_space<vmem>>, %arg12: memref<256x128xf32, #tpu.memory_space<vmem>>, %arg13: memref<224x128xf32, #tpu.memory_space<vmem>>, %arg14: memref<1x6272xf32, #tpu.memory_space<vmem>>) attributes {dimension_semantics = [#tpu.dimension_semantics<parallel>], iteration_bounds = array<i64: 2>, scalar_prefetch = 0 : i64, scratch_operands = 4 : i64, tpu.core_type = #tpu.core_type<tc>, window_params = [{transform_indices = @transform_0, window_bounds = array<i64: 1, 784, 16>}, {pipeline_mode = #tpu.pipeline_mode<synchronous>, transform_indices = @transform_1, window_bounds = array<i64: 16, 128>}, {pipeline_mode = #tpu.pipeline_mode<synchronous>, transform_indices = @transform_2, window_bounds = array<i64: 1, 128>}, {pipeline_mode = #tpu.pipeline_mode<synchronous>, transform_indices = @transform_3, window_bounds = array<i64: 9, 128, 128>}, {pipeline_mode = #tpu.pipeline_mode<synchronous>, transform_indices = @transform_4, window_bounds = array<i64: 1, 128>}, {pipeline_mode = #tpu.pipeline_mode<synchronous>, transform_indices = @transform_5, window_bounds = array<i64: 6272, 128>}, {pipeline_mode = #tpu.pipeline_mode<synchronous>, transform_indices = @transform_6, window_bounds = array<i64: 1, 128>}, {pipeline_mode = #tpu.pipeline_mode<synchronous>, transform_indices = @transform_7, window_bounds = array<i64: 128, 128>}, {pipeline_mode = #tpu.pipeline_mode<synchronous>, transform_indices = @transform_8, window_bounds = array<i64: 1, 128>}, {transform_indices = @transform_9, window_bounds = array<i64: 1, 1, 128>}]} {
    %c0 = arith.constant 0 : index
    %c0_0 = arith.constant 0 : index
    %0 = vector.load %arg2[%c0, %c0_0] : memref<16x128xf32, #tpu.memory_space<vmem>>, vector<16x128xf32>
    %c0_1 = arith.constant 0 : index
    %c0_2 = arith.constant 0 : index
    %1 = vector.load %arg3[%c0_1, %c0_2] : memref<1x128xf32, #tpu.memory_space<vmem>>, vector<1x128xf32>
    %c0_3 = arith.constant 0 : index
    %c0_4 = arith.constant 0 : index
    %2 = vector.load %arg5[%c0_3, %c0_4] : memref<1x128xf32, #tpu.memory_space<vmem>>, vector<1x128xf32>
    %cst = arith.constant 0.000000e+00 : f32
    %3 = vector.broadcast %cst : f32 to vector<256x128xf32>
    %c0_5 = arith.constant 0 : index
    %c0_6 = arith.constant 0 : index
    %4 = vector.load %arg12[%c0_5, %c0_6] : memref<256x128xf32, #tpu.memory_space<vmem>>, vector<256x128xf32>
    tpu.vector_store %arg12[%c0_5, %c0_6], %3 {strides = array<i32>} : memref<256x128xf32, #tpu.memory_space<vmem>>, vector<256x128xf32>,
    %c0_7 = arith.constant 0 : index
    %c0_8 = arith.constant 0 : index
    %c0_9 = arith.constant 0 : index
    %5 = vector.load %arg1[%c0_7, %c0_8, %c0_9] : memref<1x784x16xf32, #tpu.memory_space<vmem>>, vector<1x784x16xf32>
    %6 = vector.shape_cast %5 : vector<1x784x16xf32> to vector<784x16xf32>
    %cst_10 = arith.constant dense<0.000000e+00> : vector<784x128xf32>
    %7 = tpu.matmul %6, %0, %cst_10 {dimension_numbers = #tpu.dot_dimension_numbers<[1], [0], [0], [1], [0, 0, 1, 1], [], []>} : vector<784x16xf32>, vector<16x128xf32>, vector<784x128xf32> -> vector<784x128xf32>
    %8 = vector.broadcast %1 : vector<1x128xf32> to vector<784x128xf32>
    %9 = arith.addf %7, %8 : vector<784x128xf32>
    %cst_11 = arith.constant 0.000000e+00 : f32
    %10 = vector.broadcast %cst_11 : f32 to vector<784x128xf32>
    %11 = arith.maximumf %9, %10 : vector<784x128xf32>
    %c0_12 = arith.constant 0 : index
    %c0_13 = arith.constant 0 : index
    %12 = vector.load %arg11[%c0_12, %c0_13] : memref<784x128xf32, #tpu.memory_space<vmem>>, vector<784x128xf32>
    tpu.vector_store %arg11[%c0_12, %c0_13], %11 {strides = array<i32>} : memref<784x128xf32, #tpu.memory_space<vmem>>, vector<784x128xf32>,
    %c0_14 = arith.constant 0 : index
    %c0_15 = arith.constant 0 : index
    %13 = tpu.strided_load %arg11[%c0_14, %c0_15] {strides = array<i32: 2, 1>} : memref<784x128xf32, #tpu.memory_space<vmem>>, vector<14x128xf32>
    %c1 = arith.constant 1 : index
    %c0_16 = arith.constant 0 : index
    %14 = tpu.strided_load %arg11[%c1, %c0_16] {strides = array<i32: 2, 1>} : memref<784x128xf32, #tpu.memory_space<vmem>>, vector<14x128xf32>
    %c28 = arith.constant 28 : index
    %c0_17 = arith.constant 0 : index
    %15 = tpu.strided_load %arg11[%c28, %c0_17] {strides = array<i32: 2, 1>} : memref<784x128xf32, #tpu.memory_space<vmem>>, vector<14x128xf32>
    %c29 = arith.constant 29 : index
    %c0_18 = arith.constant 0 : index
    %16 = tpu.strided_load %arg11[%c29, %c0_18] {strides = array<i32: 2, 1>} : memref<784x128xf32, #tpu.memory_space<vmem>>, vector<14x128xf32>
    %17 = arith.maximumf %13, %14 : vector<14x128xf32>
    %18 = arith.maximumf %15, %16 : vector<14x128xf32>
    %19 = arith.maximumf %17, %18 : vector<14x128xf32>
    %c17 = arith.constant 17 : index
    %c0_19 = arith.constant 0 : index
    %20 = vector.load %arg12[%c17, %c0_19] : memref<256x128xf32, #tpu.memory_space<vmem>>, vector<14x128xf32>
    tpu.vector_store %arg12[%c17, %c0_19], %19 {strides = array<i32>} : memref<256x128xf32, #tpu.memory_space<vmem>>, vector<14x128xf32>,
    %c56 = arith.constant 56 : index
    %c0_20 = arith.constant 0 : index
    %21 = tpu.strided_load %arg11[%c56, %c0_20] {strides = array<i32: 2, 1>} : memref<784x128xf32, #tpu.memory_space<vmem>>, vector<14x128xf32>
    %c57 = arith.constant 57 : index
    %c0_21 = arith.constant 0 : index
    %22 = tpu.strided_load %arg11[%c57, %c0_21] {strides = array<i32: 2, 1>} : memref<784x128xf32, #tpu.memory_space<vmem>>, vector<14x128xf32>
    %c84 = arith.constant 84 : index
    %c0_22 = arith.constant 0 : index
    %23 = tpu.strided_load %arg11[%c84, %c0_22] {strides = array<i32: 2, 1>} : memref<784x128xf32, #tpu.memory_space<vmem>>, vector<14x128xf32>
    %c85 = arith.constant 85 : index
    %c0_23 = arith.constant 0 : index
    %24 = tpu.strided_load %arg11[%c85, %c0_23] {strides = array<i32: 2, 1>} : memref<784x128xf32, #tpu.memory_space<vmem>>, vector<14x128xf32>
    %25 = arith.maximumf %21, %22 : vector<14x128xf32>
    %26 = arith.maximumf %23, %24 : vector<14x128xf32>
    %27 = arith.maximumf %25, %26 : vector<14x128xf32>
    %c33 = arith.constant 33 : index
    %c0_24 = arith.constant 0 : index
    %28 = vector.load %arg12[%c33, %c0_24] : memref<256x128xf32, #tpu.memory_space<vmem>>, vector<14x128xf32>
    tpu.vector_store %arg12[%c33, %c0_24], %27 {strides = array<i32>} : memref<256x128xf32, #tpu.memory_space<vmem>>, vector<14x128xf32>,
    %c112 = arith.constant 112 : index
    %c0_25 = arith.constant 0 : index
    %29 = tpu.strided_load %arg11[%c112, %c0_25] {strides = array<i32: 2, 1>} : memref<784x128xf32, #tpu.memory_space<vmem>>, vector<14x128xf32>
    %c113 = arith.constant 113 : index
    %c0_26 = arith.constant 0 : index
    %30 = tpu.strided_load %arg11[%c113, %c0_26] {strides = array<i32: 2, 1>} : memref<784x128xf32, #tpu.memory_space<vmem>>, vector<14x128xf32>
    %c140 = arith.constant 140 : index
    %c0_27 = arith.constant 0 : index
    %31 = tpu.strided_load %arg11[%c140, %c0_27] {strides = array<i32: 2, 1>} : memref<784x128xf32, #tpu.memory_space<vmem>>, vector<14x128xf32>
    %c141 = arith.constant 141 : index
    %c0_28 = arith.constant 0 : index
    %32 = tpu.strided_load %arg11[%c141, %c0_28] {strides = array<i32: 2, 1>} : memref<784x128xf32, #tpu.memory_space<vmem>>, vector<14x128xf32>
    %33 = arith.maximumf %29, %30 : vector<14x128xf32>
    %34 = arith.maximumf %31, %32 : vector<14x128xf32>
    %35 = arith.maximumf %33, %34 : vector<14x128xf32>
    %c49 = arith.constant 49 : index
    %c0_29 = arith.constant 0 : index
    %36 = vector.load %arg12[%c49, %c0_29] : memref<256x128xf32, #tpu.memory_space<vmem>>, vector<14x128xf32>
    tpu.vector_store %arg12[%c49, %c0_29], %35 {strides = array<i32>} : memref<256x128xf32, #tpu.memory_space<vmem>>, vector<14x128xf32>,
    %c168 = arith.constant 168 : index
    %c0_30 = arith.constant 0 : index
    %37 = tpu.strided_load %arg11[%c168, %c0_30] {strides = array<i32: 2, 1>} : memref<784x128xf32, #tpu.memory_space<vmem>>, vector<14x128xf32>
    %c169 = arith.constant 169 : index
    %c0_31 = arith.constant 0 : index
    %38 = tpu.strided_load %arg11[%c169, %c0_31] {strides = array<i32: 2, 1>} : memref<784x128xf32, #tpu.memory_space<vmem>>, vector<14x128xf32>
    %c196 = arith.constant 196 : index
    %c0_32 = arith.constant 0 : index
    %39 = tpu.strided_load %arg11[%c196, %c0_32] {strides = array<i32: 2, 1>} : memref<784x128xf32, #tpu.memory_space<vmem>>, vector<14x128xf32>
    %c197 = arith.constant 197 : index
    %c0_33 = arith.constant 0 : index
    %40 = tpu.strided_load %arg11[%c197, %c0_33] {strides = array<i32: 2, 1>} : memref<784x128xf32, #tpu.memory_space<vmem>>, vector<14x128xf32>
    %41 = arith.maximumf %37, %38 : vector<14x128xf32>
    %42 = arith.maximumf %39, %40 : vector<14x128xf32>
    %43 = arith.maximumf %41, %42 : vector<14x128xf32>
    %c65 = arith.constant 65 : index
    %c0_34 = arith.constant 0 : index
    %44 = vector.load %arg12[%c65, %c0_34] : memref<256x128xf32, #tpu.memory_space<vmem>>, vector<14x128xf32>
    tpu.vector_store %arg12[%c65, %c0_34], %43 {strides = array<i32>} : memref<256x128xf32, #tpu.memory_space<vmem>>, vector<14x128xf32>,
    %c224 = arith.constant 224 : index
    %c0_35 = arith.constant 0 : index
    %45 = tpu.strided_load %arg11[%c224, %c0_35] {strides = array<i32: 2, 1>} : memref<784x128xf32, #tpu.memory_space<vmem>>, vector<14x128xf32>
    %c225 = arith.constant 225 : index
    %c0_36 = arith.constant 0 : index
    %46 = tpu.strided_load %arg11[%c225, %c0_36] {strides = array<i32: 2, 1>} : memref<784x128xf32, #tpu.memory_space<vmem>>, vector<14x128xf32>
    %c252 = arith.constant 252 : index
    %c0_37 = arith.constant 0 : index
    %47 = tpu.strided_load %arg11[%c252, %c0_37] {strides = array<i32: 2, 1>} : memref<784x128xf32, #tpu.memory_space<vmem>>, vector<14x128xf32>
    %c253 = arith.constant 253 : index
    %c0_38 = arith.constant 0 : index
    %48 = tpu.strided_load %arg11[%c253, %c0_38] {strides = array<i32: 2, 1>} : memref<784x128xf32, #tpu.memory_space<vmem>>, vector<14x128xf32>
    %49 = arith.maximumf %45, %46 : vector<14x128xf32>
    %50 = arith.maximumf %47, %48 : vector<14x128xf32>
    %51 = arith.maximumf %49, %50 : vector<14x128xf32>
    %c81 = arith.constant 81 : index
    %c0_39 = arith.constant 0 : index
    %52 = vector.load %arg12[%c81, %c0_39] : memref<256x128xf32, #tpu.memory_space<vmem>>, vector<14x128xf32>
    tpu.vector_store %arg12[%c81, %c0_39], %51 {strides = array<i32>} : memref<256x128xf32, #tpu.memory_space<vmem>>, vector<14x128xf32>,
    %c280 = arith.constant 280 : index
    %c0_40 = arith.constant 0 : index
    %53 = tpu.strided_load %arg11[%c280, %c0_40] {strides = array<i32: 2, 1>} : memref<784x128xf32, #tpu.memory_space<vmem>>, vector<14x128xf32>
    %c281 = arith.constant 281 : index
    %c0_41 = arith.constant 0 : index
    %54 = tpu.strided_load %arg11[%c281, %c0_41] {strides = array<i32: 2, 1>} : memref<784x128xf32, #tpu.memory_space<vmem>>, vector<14x128xf32>
    %c308 = arith.constant 308 : index
    %c0_42 = arith.constant 0 : index
    %55 = tpu.strided_load %arg11[%c308, %c0_42] {strides = array<i32: 2, 1>} : memref<784x128xf32, #tpu.memory_space<vmem>>, vector<14x128xf32>
    %c309 = arith.constant 309 : index
    %c0_43 = arith.constant 0 : index
    %56 = tpu.strided_load %arg11[%c309, %c0_43] {strides = array<i32: 2, 1>} : memref<784x128xf32, #tpu.memory_space<vmem>>, vector<14x128xf32>
    %57 = arith.maximumf %53, %54 : vector<14x128xf32>
    %58 = arith.maximumf %55, %56 : vector<14x128xf32>
    %59 = arith.maximumf %57, %58 : vector<14x128xf32>
    %c97 = arith.constant 97 : index
    %c0_44 = arith.constant 0 : index
    %60 = vector.load %arg12[%c97, %c0_44] : memref<256x128xf32, #tpu.memory_space<vmem>>, vector<14x128xf32>
    tpu.vector_store %arg12[%c97, %c0_44], %59 {strides = array<i32>} : memref<256x128xf32, #tpu.memory_space<vmem>>, vector<14x128xf32>,
    %c336 = arith.constant 336 : index
    %c0_45 = arith.constant 0 : index
    %61 = tpu.strided_load %arg11[%c336, %c0_45] {strides = array<i32: 2, 1>} : memref<784x128xf32, #tpu.memory_space<vmem>>, vector<14x128xf32>
    %c337 = arith.constant 337 : index
    %c0_46 = arith.constant 0 : index
    %62 = tpu.strided_load %arg11[%c337, %c0_46] {strides = array<i32: 2, 1>} : memref<784x128xf32, #tpu.memory_space<vmem>>, vector<14x128xf32>
    %c364 = arith.constant 364 : index
    %c0_47 = arith.constant 0 : index
    %63 = tpu.strided_load %arg11[%c364, %c0_47] {strides = array<i32: 2, 1>} : memref<784x128xf32, #tpu.memory_space<vmem>>, vector<14x128xf32>
    %c365 = arith.constant 365 : index
    %c0_48 = arith.constant 0 : index
    %64 = tpu.strided_load %arg11[%c365, %c0_48] {strides = array<i32: 2, 1>} : memref<784x128xf32, #tpu.memory_space<vmem>>, vector<14x128xf32>
    %65 = arith.maximumf %61, %62 : vector<14x128xf32>
    %66 = arith.maximumf %63, %64 : vector<14x128xf32>
    %67 = arith.maximumf %65, %66 : vector<14x128xf32>
    %c113_49 = arith.constant 113 : index
    %c0_50 = arith.constant 0 : index
    %68 = vector.load %arg12[%c113_49, %c0_50] : memref<256x128xf32, #tpu.memory_space<vmem>>, vector<14x128xf32>
    tpu.vector_store %arg12[%c113_49, %c0_50], %67 {strides = array<i32>} : memref<256x128xf32, #tpu.memory_space<vmem>>, vector<14x128xf32>,
    %c392 = arith.constant 392 : index
    %c0_51 = arith.constant 0 : index
    %69 = tpu.strided_load %arg11[%c392, %c0_51] {strides = array<i32: 2, 1>} : memref<784x128xf32, #tpu.memory_space<vmem>>, vector<14x128xf32>
    %c393 = arith.constant 393 : index
    %c0_52 = arith.constant 0 : index
    %70 = tpu.strided_load %arg11[%c393, %c0_52] {strides = array<i32: 2, 1>} : memref<784x128xf32, #tpu.memory_space<vmem>>, vector<14x128xf32>
    %c420 = arith.constant 420 : index
    %c0_53 = arith.constant 0 : index
    %71 = tpu.strided_load %arg11[%c420, %c0_53] {strides = array<i32: 2, 1>} : memref<784x128xf32, #tpu.memory_space<vmem>>, vector<14x128xf32>
    %c421 = arith.constant 421 : index
    %c0_54 = arith.constant 0 : index
    %72 = tpu.strided_load %arg11[%c421, %c0_54] {strides = array<i32: 2, 1>} : memref<784x128xf32, #tpu.memory_space<vmem>>, vector<14x128xf32>
    %73 = arith.maximumf %69, %70 : vector<14x128xf32>
    %74 = arith.maximumf %71, %72 : vector<14x128xf32>
    %75 = arith.maximumf %73, %74 : vector<14x128xf32>
    %c129 = arith.constant 129 : index
    %c0_55 = arith.constant 0 : index
    %76 = vector.load %arg12[%c129, %c0_55] : memref<256x128xf32, #tpu.memory_space<vmem>>, vector<14x128xf32>
    tpu.vector_store %arg12[%c129, %c0_55], %75 {strides = array<i32>} : memref<256x128xf32, #tpu.memory_space<vmem>>, vector<14x128xf32>,
    %c448 = arith.constant 448 : index
    %c0_56 = arith.constant 0 : index
    %77 = tpu.strided_load %arg11[%c448, %c0_56] {strides = array<i32: 2, 1>} : memref<784x128xf32, #tpu.memory_space<vmem>>, vector<14x128xf32>
    %c449 = arith.constant 449 : index
    %c0_57 = arith.constant 0 : index
    %78 = tpu.strided_load %arg11[%c449, %c0_57] {strides = array<i32: 2, 1>} : memref<784x128xf32, #tpu.memory_space<vmem>>, vector<14x128xf32>
    %c476 = arith.constant 476 : index
    %c0_58 = arith.constant 0 : index
    %79 = tpu.strided_load %arg11[%c476, %c0_58] {strides = array<i32: 2, 1>} : memref<784x128xf32, #tpu.memory_space<vmem>>, vector<14x128xf32>
    %c477 = arith.constant 477 : index
    %c0_59 = arith.constant 0 : index
    %80 = tpu.strided_load %arg11[%c477, %c0_59] {strides = array<i32: 2, 1>} : memref<784x128xf32, #tpu.memory_space<vmem>>, vector<14x128xf32>
    %81 = arith.maximumf %77, %78 : vector<14x128xf32>
    %82 = arith.maximumf %79, %80 : vector<14x128xf32>
    %83 = arith.maximumf %81, %82 : vector<14x128xf32>
    %c145 = arith.constant 145 : index
    %c0_60 = arith.constant 0 : index
    %84 = vector.load %arg12[%c145, %c0_60] : memref<256x128xf32, #tpu.memory_space<vmem>>, vector<14x128xf32>
    tpu.vector_store %arg12[%c145, %c0_60], %83 {strides = array<i32>} : memref<256x128xf32, #tpu.memory_space<vmem>>, vector<14x128xf32>,
    %c504 = arith.constant 504 : index
    %c0_61 = arith.constant 0 : index
    %85 = tpu.strided_load %arg11[%c504, %c0_61] {strides = array<i32: 2, 1>} : memref<784x128xf32, #tpu.memory_space<vmem>>, vector<14x128xf32>
    %c505 = arith.constant 505 : index
    %c0_62 = arith.constant 0 : index
    %86 = tpu.strided_load %arg11[%c505, %c0_62] {strides = array<i32: 2, 1>} : memref<784x128xf32, #tpu.memory_space<vmem>>, vector<14x128xf32>
    %c532 = arith.constant 532 : index
    %c0_63 = arith.constant 0 : index
    %87 = tpu.strided_load %arg11[%c532, %c0_63] {strides = array<i32: 2, 1>} : memref<784x128xf32, #tpu.memory_space<vmem>>, vector<14x128xf32>
    %c533 = arith.constant 533 : index
    %c0_64 = arith.constant 0 : index
    %88 = tpu.strided_load %arg11[%c533, %c0_64] {strides = array<i32: 2, 1>} : memref<784x128xf32, #tpu.memory_space<vmem>>, vector<14x128xf32>
    %89 = arith.maximumf %85, %86 : vector<14x128xf32>
    %90 = arith.maximumf %87, %88 : vector<14x128xf32>
    %91 = arith.maximumf %89, %90 : vector<14x128xf32>
    %c161 = arith.constant 161 : index
    %c0_65 = arith.constant 0 : index
    %92 = vector.load %arg12[%c161, %c0_65] : memref<256x128xf32, #tpu.memory_space<vmem>>, vector<14x128xf32>
    tpu.vector_store %arg12[%c161, %c0_65], %91 {strides = array<i32>} : memref<256x128xf32, #tpu.memory_space<vmem>>, vector<14x128xf32>,
    %c560 = arith.constant 560 : index
    %c0_66 = arith.constant 0 : index
    %93 = tpu.strided_load %arg11[%c560, %c0_66] {strides = array<i32: 2, 1>} : memref<784x128xf32, #tpu.memory_space<vmem>>, vector<14x128xf32>
    %c561 = arith.constant 561 : index
    %c0_67 = arith.constant 0 : index
    %94 = tpu.strided_load %arg11[%c561, %c0_67] {strides = array<i32: 2, 1>} : memref<784x128xf32, #tpu.memory_space<vmem>>, vector<14x128xf32>
    %c588 = arith.constant 588 : index
    %c0_68 = arith.constant 0 : index
    %95 = tpu.strided_load %arg11[%c588, %c0_68] {strides = array<i32: 2, 1>} : memref<784x128xf32, #tpu.memory_space<vmem>>, vector<14x128xf32>
    %c589 = arith.constant 589 : index
    %c0_69 = arith.constant 0 : index
    %96 = tpu.strided_load %arg11[%c589, %c0_69] {strides = array<i32: 2, 1>} : memref<784x128xf32, #tpu.memory_space<vmem>>, vector<14x128xf32>
    %97 = arith.maximumf %93, %94 : vector<14x128xf32>
    %98 = arith.maximumf %95, %96 : vector<14x128xf32>
    %99 = arith.maximumf %97, %98 : vector<14x128xf32>
    %c177 = arith.constant 177 : index
    %c0_70 = arith.constant 0 : index
    %100 = vector.load %arg12[%c177, %c0_70] : memref<256x128xf32, #tpu.memory_space<vmem>>, vector<14x128xf32>
    tpu.vector_store %arg12[%c177, %c0_70], %99 {strides = array<i32>} : memref<256x128xf32, #tpu.memory_space<vmem>>, vector<14x128xf32>,
    %c616 = arith.constant 616 : index
    %c0_71 = arith.constant 0 : index
    %101 = tpu.strided_load %arg11[%c616, %c0_71] {strides = array<i32: 2, 1>} : memref<784x128xf32, #tpu.memory_space<vmem>>, vector<14x128xf32>
    %c617 = arith.constant 617 : index
    %c0_72 = arith.constant 0 : index
    %102 = tpu.strided_load %arg11[%c617, %c0_72] {strides = array<i32: 2, 1>} : memref<784x128xf32, #tpu.memory_space<vmem>>, vector<14x128xf32>
    %c644 = arith.constant 644 : index
    %c0_73 = arith.constant 0 : index
    %103 = tpu.strided_load %arg11[%c644, %c0_73] {strides = array<i32: 2, 1>} : memref<784x128xf32, #tpu.memory_space<vmem>>, vector<14x128xf32>
    %c645 = arith.constant 645 : index
    %c0_74 = arith.constant 0 : index
    %104 = tpu.strided_load %arg11[%c645, %c0_74] {strides = array<i32: 2, 1>} : memref<784x128xf32, #tpu.memory_space<vmem>>, vector<14x128xf32>
    %105 = arith.maximumf %101, %102 : vector<14x128xf32>
    %106 = arith.maximumf %103, %104 : vector<14x128xf32>
    %107 = arith.maximumf %105, %106 : vector<14x128xf32>
    %c193 = arith.constant 193 : index
    %c0_75 = arith.constant 0 : index
    %108 = vector.load %arg12[%c193, %c0_75] : memref<256x128xf32, #tpu.memory_space<vmem>>, vector<14x128xf32>
    tpu.vector_store %arg12[%c193, %c0_75], %107 {strides = array<i32>} : memref<256x128xf32, #tpu.memory_space<vmem>>, vector<14x128xf32>,
    %c672 = arith.constant 672 : index
    %c0_76 = arith.constant 0 : index
    %109 = tpu.strided_load %arg11[%c672, %c0_76] {strides = array<i32: 2, 1>} : memref<784x128xf32, #tpu.memory_space<vmem>>, vector<14x128xf32>
    %c673 = arith.constant 673 : index
    %c0_77 = arith.constant 0 : index
    %110 = tpu.strided_load %arg11[%c673, %c0_77] {strides = array<i32: 2, 1>} : memref<784x128xf32, #tpu.memory_space<vmem>>, vector<14x128xf32>
    %c700 = arith.constant 700 : index
    %c0_78 = arith.constant 0 : index
    %111 = tpu.strided_load %arg11[%c700, %c0_78] {strides = array<i32: 2, 1>} : memref<784x128xf32, #tpu.memory_space<vmem>>, vector<14x128xf32>
    %c701 = arith.constant 701 : index
    %c0_79 = arith.constant 0 : index
    %112 = tpu.strided_load %arg11[%c701, %c0_79] {strides = array<i32: 2, 1>} : memref<784x128xf32, #tpu.memory_space<vmem>>, vector<14x128xf32>
    %113 = arith.maximumf %109, %110 : vector<14x128xf32>
    %114 = arith.maximumf %111, %112 : vector<14x128xf32>
    %115 = arith.maximumf %113, %114 : vector<14x128xf32>
    %c209 = arith.constant 209 : index
    %c0_80 = arith.constant 0 : index
    %116 = vector.load %arg12[%c209, %c0_80] : memref<256x128xf32, #tpu.memory_space<vmem>>, vector<14x128xf32>
    tpu.vector_store %arg12[%c209, %c0_80], %115 {strides = array<i32>} : memref<256x128xf32, #tpu.memory_space<vmem>>, vector<14x128xf32>,
    %c728 = arith.constant 728 : index
    %c0_81 = arith.constant 0 : index
    %117 = tpu.strided_load %arg11[%c728, %c0_81] {strides = array<i32: 2, 1>} : memref<784x128xf32, #tpu.memory_space<vmem>>, vector<14x128xf32>
    %c729 = arith.constant 729 : index
    %c0_82 = arith.constant 0 : index
    %118 = tpu.strided_load %arg11[%c729, %c0_82] {strides = array<i32: 2, 1>} : memref<784x128xf32, #tpu.memory_space<vmem>>, vector<14x128xf32>
    %c756 = arith.constant 756 : index
    %c0_83 = arith.constant 0 : index
    %119 = tpu.strided_load %arg11[%c756, %c0_83] {strides = array<i32: 2, 1>} : memref<784x128xf32, #tpu.memory_space<vmem>>, vector<14x128xf32>
    %c757 = arith.constant 757 : index
    %c0_84 = arith.constant 0 : index
    %120 = tpu.strided_load %arg11[%c757, %c0_84] {strides = array<i32: 2, 1>} : memref<784x128xf32, #tpu.memory_space<vmem>>, vector<14x128xf32>
    %121 = arith.maximumf %117, %118 : vector<14x128xf32>
    %122 = arith.maximumf %119, %120 : vector<14x128xf32>
    %123 = arith.maximumf %121, %122 : vector<14x128xf32>
    %c225_85 = arith.constant 225 : index
    %c0_86 = arith.constant 0 : index
    %124 = vector.load %arg12[%c225_85, %c0_86] : memref<256x128xf32, #tpu.memory_space<vmem>>, vector<14x128xf32>
    tpu.vector_store %arg12[%c225_85, %c0_86], %123 {strides = array<i32>} : memref<256x128xf32, #tpu.memory_space<vmem>>, vector<14x128xf32>,
    %c0_87 = arith.constant 0 : index
    %c0_88 = arith.constant 0 : index
    %125 = vector.load %arg12[%c0_87, %c0_88] : memref<256x128xf32, #tpu.memory_space<vmem>>, vector<222x128xf32>
    %c0_89 = arith.constant 0 : index
    %c0_90 = arith.constant 0 : index
    %c0_91 = arith.constant 0 : index
    %126 = vector.load %arg4[%c0_89, %c0_90, %c0_91] : memref<9x128x128xf32, #tpu.memory_space<vmem>>, vector<1x128x128xf32>
    %127 = vector.shape_cast %126 : vector<1x128x128xf32> to vector<128x128xf32>
    %cst_92 = arith.constant dense<0.000000e+00> : vector<222x128xf32>
    %128 = tpu.matmul %125, %127, %cst_92 {dimension_numbers = #tpu.dot_dimension_numbers<[1], [0], [0], [1], [0, 0, 1, 1], [], []>} : vector<222x128xf32>, vector<128x128xf32>, vector<222x128xf32> -> vector<222x128xf32>
    %c1_93 = arith.constant 1 : index
    %c0_94 = arith.constant 0 : index
    %129 = vector.load %arg12[%c1_93, %c0_94] : memref<256x128xf32, #tpu.memory_space<vmem>>, vector<222x128xf32>
    %c1_95 = arith.constant 1 : index
    %c0_96 = arith.constant 0 : index
    %c0_97 = arith.constant 0 : index
    %130 = vector.load %arg4[%c1_95, %c0_96, %c0_97] : memref<9x128x128xf32, #tpu.memory_space<vmem>>, vector<1x128x128xf32>
    %131 = vector.shape_cast %130 : vector<1x128x128xf32> to vector<128x128xf32>
    %cst_98 = arith.constant dense<0.000000e+00> : vector<222x128xf32>
    %132 = tpu.matmul %129, %131, %cst_98 {dimension_numbers = #tpu.dot_dimension_numbers<[1], [0], [0], [1], [0, 0, 1, 1], [], []>} : vector<222x128xf32>, vector<128x128xf32>, vector<222x128xf32> -> vector<222x128xf32>
    %133 = arith.addf %128, %132 : vector<222x128xf32>
    %c2 = arith.constant 2 : index
    %c0_99 = arith.constant 0 : index
    %134 = vector.load %arg12[%c2, %c0_99] : memref<256x128xf32, #tpu.memory_space<vmem>>, vector<222x128xf32>
    %c2_100 = arith.constant 2 : index
    %c0_101 = arith.constant 0 : index
    %c0_102 = arith.constant 0 : index
    %135 = vector.load %arg4[%c2_100, %c0_101, %c0_102] : memref<9x128x128xf32, #tpu.memory_space<vmem>>, vector<1x128x128xf32>
    %136 = vector.shape_cast %135 : vector<1x128x128xf32> to vector<128x128xf32>
    %cst_103 = arith.constant dense<0.000000e+00> : vector<222x128xf32>
    %137 = tpu.matmul %134, %136, %cst_103 {dimension_numbers = #tpu.dot_dimension_numbers<[1], [0], [0], [1], [0, 0, 1, 1], [], []>} : vector<222x128xf32>, vector<128x128xf32>, vector<222x128xf32> -> vector<222x128xf32>
    %138 = arith.addf %133, %137 : vector<222x128xf32>
    %c16 = arith.constant 16 : index
    %c0_104 = arith.constant 0 : index
    %139 = vector.load %arg12[%c16, %c0_104] : memref<256x128xf32, #tpu.memory_space<vmem>>, vector<222x128xf32>
    %c3 = arith.constant 3 : index
    %c0_105 = arith.constant 0 : index
    %c0_106 = arith.constant 0 : index
    %140 = vector.load %arg4[%c3, %c0_105, %c0_106] : memref<9x128x128xf32, #tpu.memory_space<vmem>>, vector<1x128x128xf32>
    %141 = vector.shape_cast %140 : vector<1x128x128xf32> to vector<128x128xf32>
    %cst_107 = arith.constant dense<0.000000e+00> : vector<222x128xf32>
    %142 = tpu.matmul %139, %141, %cst_107 {dimension_numbers = #tpu.dot_dimension_numbers<[1], [0], [0], [1], [0, 0, 1, 1], [], []>} : vector<222x128xf32>, vector<128x128xf32>, vector<222x128xf32> -> vector<222x128xf32>
    %143 = arith.addf %138, %142 : vector<222x128xf32>
    %c17_108 = arith.constant 17 : index
    %c0_109 = arith.constant 0 : index
    %144 = vector.load %arg12[%c17_108, %c0_109] : memref<256x128xf32, #tpu.memory_space<vmem>>, vector<222x128xf32>
    %c4 = arith.constant 4 : index
    %c0_110 = arith.constant 0 : index
    %c0_111 = arith.constant 0 : index
    %145 = vector.load %arg4[%c4, %c0_110, %c0_111] : memref<9x128x128xf32, #tpu.memory_space<vmem>>, vector<1x128x128xf32>
    %146 = vector.shape_cast %145 : vector<1x128x128xf32> to vector<128x128xf32>
    %cst_112 = arith.constant dense<0.000000e+00> : vector<222x128xf32>
    %147 = tpu.matmul %144, %146, %cst_112 {dimension_numbers = #tpu.dot_dimension_numbers<[1], [0], [0], [1], [0, 0, 1, 1], [], []>} : vector<222x128xf32>, vector<128x128xf32>, vector<222x128xf32> -> vector<222x128xf32>
    %148 = arith.addf %143, %147 : vector<222x128xf32>
    %c18 = arith.constant 18 : index
    %c0_113 = arith.constant 0 : index
    %149 = vector.load %arg12[%c18, %c0_113] : memref<256x128xf32, #tpu.memory_space<vmem>>, vector<222x128xf32>
    %c5 = arith.constant 5 : index
    %c0_114 = arith.constant 0 : index
    %c0_115 = arith.constant 0 : index
    %150 = vector.load %arg4[%c5, %c0_114, %c0_115] : memref<9x128x128xf32, #tpu.memory_space<vmem>>, vector<1x128x128xf32>
    %151 = vector.shape_cast %150 : vector<1x128x128xf32> to vector<128x128xf32>
    %cst_116 = arith.constant dense<0.000000e+00> : vector<222x128xf32>
    %152 = tpu.matmul %149, %151, %cst_116 {dimension_numbers = #tpu.dot_dimension_numbers<[1], [0], [0], [1], [0, 0, 1, 1], [], []>} : vector<222x128xf32>, vector<128x128xf32>, vector<222x128xf32> -> vector<222x128xf32>
    %153 = arith.addf %148, %152 : vector<222x128xf32>
    %c32 = arith.constant 32 : index
    %c0_117 = arith.constant 0 : index
    %154 = vector.load %arg12[%c32, %c0_117] : memref<256x128xf32, #tpu.memory_space<vmem>>, vector<222x128xf32>
    %c6 = arith.constant 6 : index
    %c0_118 = arith.constant 0 : index
    %c0_119 = arith.constant 0 : index
    %155 = vector.load %arg4[%c6, %c0_118, %c0_119] : memref<9x128x128xf32, #tpu.memory_space<vmem>>, vector<1x128x128xf32>
    %156 = vector.shape_cast %155 : vector<1x128x128xf32> to vector<128x128xf32>
    %cst_120 = arith.constant dense<0.000000e+00> : vector<222x128xf32>
    %157 = tpu.matmul %154, %156, %cst_120 {dimension_numbers = #tpu.dot_dimension_numbers<[1], [0], [0], [1], [0, 0, 1, 1], [], []>} : vector<222x128xf32>, vector<128x128xf32>, vector<222x128xf32> -> vector<222x128xf32>
    %158 = arith.addf %153, %157 : vector<222x128xf32>
    %c33_121 = arith.constant 33 : index
    %c0_122 = arith.constant 0 : index
    %159 = vector.load %arg12[%c33_121, %c0_122] : memref<256x128xf32, #tpu.memory_space<vmem>>, vector<222x128xf32>
    %c7 = arith.constant 7 : index
    %c0_123 = arith.constant 0 : index
    %c0_124 = arith.constant 0 : index
    %160 = vector.load %arg4[%c7, %c0_123, %c0_124] : memref<9x128x128xf32, #tpu.memory_space<vmem>>, vector<1x128x128xf32>
    %161 = vector.shape_cast %160 : vector<1x128x128xf32> to vector<128x128xf32>
    %cst_125 = arith.constant dense<0.000000e+00> : vector<222x128xf32>
    %162 = tpu.matmul %159, %161, %cst_125 {dimension_numbers = #tpu.dot_dimension_numbers<[1], [0], [0], [1], [0, 0, 1, 1], [], []>} : vector<222x128xf32>, vector<128x128xf32>, vector<222x128xf32> -> vector<222x128xf32>
    %163 = arith.addf %158, %162 : vector<222x128xf32>
    %c34 = arith.constant 34 : index
    %c0_126 = arith.constant 0 : index
    %164 = vector.load %arg12[%c34, %c0_126] : memref<256x128xf32, #tpu.memory_space<vmem>>, vector<222x128xf32>
    %c8 = arith.constant 8 : index
    %c0_127 = arith.constant 0 : index
    %c0_128 = arith.constant 0 : index
    %165 = vector.load %arg4[%c8, %c0_127, %c0_128] : memref<9x128x128xf32, #tpu.memory_space<vmem>>, vector<1x128x128xf32>
    %166 = vector.shape_cast %165 : vector<1x128x128xf32> to vector<128x128xf32>
    %cst_129 = arith.constant dense<0.000000e+00> : vector<222x128xf32>
    %167 = tpu.matmul %164, %166, %cst_129 {dimension_numbers = #tpu.dot_dimension_numbers<[1], [0], [0], [1], [0, 0, 1, 1], [], []>} : vector<222x128xf32>, vector<128x128xf32>, vector<222x128xf32> -> vector<222x128xf32>
    %168 = arith.addf %163, %167 : vector<222x128xf32>
    %169 = vector.broadcast %2 : vector<1x128xf32> to vector<222x128xf32>
    %170 = arith.addf %168, %169 : vector<222x128xf32>
    %cst_130 = arith.constant 0.000000e+00 : f32
    %171 = vector.broadcast %cst_130 : f32 to vector<222x128xf32>
    %172 = arith.maximumf %170, %171 : vector<222x128xf32>
    %c0_131 = arith.constant 0 : index
    %c0_132 = arith.constant 0 : index
    %173 = vector.load %arg13[%c0_131, %c0_132] : memref<224x128xf32, #tpu.memory_space<vmem>>, vector<222x128xf32>
    tpu.vector_store %arg13[%c0_131, %c0_132], %172 {strides = array<i32>} : memref<224x128xf32, #tpu.memory_space<vmem>>, vector<222x128xf32>,
    %c0_133 = arith.constant 0 : index
    %c0_134 = arith.constant 0 : index
    %174 = tpu.strided_load %arg13[%c0_133, %c0_134] {strides = array<i32: 2, 1>} : memref<224x128xf32, #tpu.memory_space<vmem>>, vector<7x128xf32>
    %c1_135 = arith.constant 1 : index
    %c0_136 = arith.constant 0 : index
    %175 = tpu.strided_load %arg13[%c1_135, %c0_136] {strides = array<i32: 2, 1>} : memref<224x128xf32, #tpu.memory_space<vmem>>, vector<7x128xf32>
    %c16_137 = arith.constant 16 : index
    %c0_138 = arith.constant 0 : index
    %176 = tpu.strided_load %arg13[%c16_137, %c0_138] {strides = array<i32: 2, 1>} : memref<224x128xf32, #tpu.memory_space<vmem>>, vector<7x128xf32>
    %c17_139 = arith.constant 17 : index
    %c0_140 = arith.constant 0 : index
    %177 = tpu.strided_load %arg13[%c17_139, %c0_140] {strides = array<i32: 2, 1>} : memref<224x128xf32, #tpu.memory_space<vmem>>, vector<7x128xf32>
    %178 = arith.maximumf %174, %175 : vector<7x128xf32>
    %179 = arith.maximumf %176, %177 : vector<7x128xf32>
    %180 = arith.maximumf %178, %179 : vector<7x128xf32>
    %181 = vector.extract_strided_slice %180 {offsets = [0, 0], sizes = [1, 128], strides = [1, 1]} : vector<7x128xf32> to vector<1x128xf32>
    %c0_141 = arith.constant 0 : index
    %c0_142 = arith.constant 0 : index
    %182 = vector.load %arg14[%c0_141, %c0_142] : memref<1x6272xf32, #tpu.memory_space<vmem>>, vector<1x128xf32>
    tpu.vector_store %arg14[%c0_141, %c0_142], %181 {strides = array<i32>} : memref<1x6272xf32, #tpu.memory_space<vmem>>, vector<1x128xf32>,
    %183 = vector.extract_strided_slice %180 {offsets = [1, 0], sizes = [1, 128], strides = [1, 1]} : vector<7x128xf32> to vector<1x128xf32>
    %c0_143 = arith.constant 0 : index
    %c128 = arith.constant 128 : index
    %184 = vector.load %arg14[%c0_143, %c128] : memref<1x6272xf32, #tpu.memory_space<vmem>>, vector<1x128xf32>
    tpu.vector_store %arg14[%c0_143, %c128], %183 {strides = array<i32>} : memref<1x6272xf32, #tpu.memory_space<vmem>>, vector<1x128xf32>,
    %185 = vector.extract_strided_slice %180 {offsets = [2, 0], sizes = [1, 128], strides = [1, 1]} : vector<7x128xf32> to vector<1x128xf32>
    %c0_144 = arith.constant 0 : index
    %c256 = arith.constant 256 : index
    %186 = vector.load %arg14[%c0_144, %c256] : memref<1x6272xf32, #tpu.memory_space<vmem>>, vector<1x128xf32>
    tpu.vector_store %arg14[%c0_144, %c256], %185 {strides = array<i32>} : memref<1x6272xf32, #tpu.memory_space<vmem>>, vector<1x128xf32>,
    %187 = vector.extract_strided_slice %180 {offsets = [3, 0], sizes = [1, 128], strides = [1, 1]} : vector<7x128xf32> to vector<1x128xf32>
    %c0_145 = arith.constant 0 : index
    %c384 = arith.constant 384 : index
    %188 = vector.load %arg14[%c0_145, %c384] : memref<1x6272xf32, #tpu.memory_space<vmem>>, vector<1x128xf32>
    tpu.vector_store %arg14[%c0_145, %c384], %187 {strides = array<i32>} : memref<1x6272xf32, #tpu.memory_space<vmem>>, vector<1x128xf32>,
    %189 = vector.extract_strided_slice %180 {offsets = [4, 0], sizes = [1, 128], strides = [1, 1]} : vector<7x128xf32> to vector<1x128xf32>
    %c0_146 = arith.constant 0 : index
    %c512 = arith.constant 512 : index
    %190 = vector.load %arg14[%c0_146, %c512] : memref<1x6272xf32, #tpu.memory_space<vmem>>, vector<1x128xf32>
    tpu.vector_store %arg14[%c0_146, %c512], %189 {strides = array<i32>} : memref<1x6272xf32, #tpu.memory_space<vmem>>, vector<1x128xf32>,
    %191 = vector.extract_strided_slice %180 {offsets = [5, 0], sizes = [1, 128], strides = [1, 1]} : vector<7x128xf32> to vector<1x128xf32>
    %c0_147 = arith.constant 0 : index
    %c640 = arith.constant 640 : index
    %192 = vector.load %arg14[%c0_147, %c640] : memref<1x6272xf32, #tpu.memory_space<vmem>>, vector<1x128xf32>
    tpu.vector_store %arg14[%c0_147, %c640], %191 {strides = array<i32>} : memref<1x6272xf32, #tpu.memory_space<vmem>>, vector<1x128xf32>,
    %193 = vector.extract_strided_slice %180 {offsets = [6, 0], sizes = [1, 128], strides = [1, 1]} : vector<7x128xf32> to vector<1x128xf32>
    %c0_148 = arith.constant 0 : index
    %c768 = arith.constant 768 : index
    %194 = vector.load %arg14[%c0_148, %c768] : memref<1x6272xf32, #tpu.memory_space<vmem>>, vector<1x128xf32>
    tpu.vector_store %arg14[%c0_148, %c768], %193 {strides = array<i32>} : memref<1x6272xf32, #tpu.memory_space<vmem>>, vector<1x128xf32>,
    %c32_149 = arith.constant 32 : index
    %c0_150 = arith.constant 0 : index
    %195 = tpu.strided_load %arg13[%c32_149, %c0_150] {strides = array<i32: 2, 1>} : memref<224x128xf32, #tpu.memory_space<vmem>>, vector<7x128xf32>
    %c33_151 = arith.constant 33 : index
    %c0_152 = arith.constant 0 : index
    %196 = tpu.strided_load %arg13[%c33_151, %c0_152] {strides = array<i32: 2, 1>} : memref<224x128xf32, #tpu.memory_space<vmem>>, vector<7x128xf32>
    %c48 = arith.constant 48 : index
    %c0_153 = arith.constant 0 : index
    %197 = tpu.strided_load %arg13[%c48, %c0_153] {strides = array<i32: 2, 1>} : memref<224x128xf32, #tpu.memory_space<vmem>>, vector<7x128xf32>
    %c49_154 = arith.constant 49 : index
    %c0_155 = arith.constant 0 : index
    %198 = tpu.strided_load %arg13[%c49_154, %c0_155] {strides = array<i32: 2, 1>} : memref<224x128xf32, #tpu.memory_space<vmem>>, vector<7x128xf32>
    %199 = arith.maximumf %195, %196 : vector<7x128xf32>
    %200 = arith.maximumf %197, %198 : vector<7x128xf32>
    %201 = arith.maximumf %199, %200 : vector<7x128xf32>
    %202 = vector.extract_strided_slice %201 {offsets = [0, 0], sizes = [1, 128], strides = [1, 1]} : vector<7x128xf32> to vector<1x128xf32>
    %c0_156 = arith.constant 0 : index
    %c896 = arith.constant 896 : index
    %203 = vector.load %arg14[%c0_156, %c896] : memref<1x6272xf32, #tpu.memory_space<vmem>>, vector<1x128xf32>
    tpu.vector_store %arg14[%c0_156, %c896], %202 {strides = array<i32>} : memref<1x6272xf32, #tpu.memory_space<vmem>>, vector<1x128xf32>,
    %204 = vector.extract_strided_slice %201 {offsets = [1, 0], sizes = [1, 128], strides = [1, 1]} : vector<7x128xf32> to vector<1x128xf32>
    %c0_157 = arith.constant 0 : index
    %c1024 = arith.constant 1024 : index
    %205 = vector.load %arg14[%c0_157, %c1024] : memref<1x6272xf32, #tpu.memory_space<vmem>>, vector<1x128xf32>
    tpu.vector_store %arg14[%c0_157, %c1024], %204 {strides = array<i32>} : memref<1x6272xf32, #tpu.memory_space<vmem>>, vector<1x128xf32>,
    %206 = vector.extract_strided_slice %201 {offsets = [2, 0], sizes = [1, 128], strides = [1, 1]} : vector<7x128xf32> to vector<1x128xf32>
    %c0_158 = arith.constant 0 : index
    %c1152 = arith.constant 1152 : index
    %207 = vector.load %arg14[%c0_158, %c1152] : memref<1x6272xf32, #tpu.memory_space<vmem>>, vector<1x128xf32>
    tpu.vector_store %arg14[%c0_158, %c1152], %206 {strides = array<i32>} : memref<1x6272xf32, #tpu.memory_space<vmem>>, vector<1x128xf32>,
    %208 = vector.extract_strided_slice %201 {offsets = [3, 0], sizes = [1, 128], strides = [1, 1]} : vector<7x128xf32> to vector<1x128xf32>
    %c0_159 = arith.constant 0 : index
    %c1280 = arith.constant 1280 : index
    %209 = vector.load %arg14[%c0_159, %c1280] : memref<1x6272xf32, #tpu.memory_space<vmem>>, vector<1x128xf32>
    tpu.vector_store %arg14[%c0_159, %c1280], %208 {strides = array<i32>} : memref<1x6272xf32, #tpu.memory_space<vmem>>, vector<1x128xf32>,
    %210 = vector.extract_strided_slice %201 {offsets = [4, 0], sizes = [1, 128], strides = [1, 1]} : vector<7x128xf32> to vector<1x128xf32>
    %c0_160 = arith.constant 0 : index
    %c1408 = arith.constant 1408 : index
    %211 = vector.load %arg14[%c0_160, %c1408] : memref<1x6272xf32, #tpu.memory_space<vmem>>, vector<1x128xf32>
    tpu.vector_store %arg14[%c0_160, %c1408], %210 {strides = array<i32>} : memref<1x6272xf32, #tpu.memory_space<vmem>>, vector<1x128xf32>,
    %212 = vector.extract_strided_slice %201 {offsets = [5, 0], sizes = [1, 128], strides = [1, 1]} : vector<7x128xf32> to vector<1x128xf32>
    %c0_161 = arith.constant 0 : index
    %c1536 = arith.constant 1536 : index
    %213 = vector.load %arg14[%c0_161, %c1536] : memref<1x6272xf32, #tpu.memory_space<vmem>>, vector<1x128xf32>
    tpu.vector_store %arg14[%c0_161, %c1536], %212 {strides = array<i32>} : memref<1x6272xf32, #tpu.memory_space<vmem>>, vector<1x128xf32>,
    %214 = vector.extract_strided_slice %201 {offsets = [6, 0], sizes = [1, 128], strides = [1, 1]} : vector<7x128xf32> to vector<1x128xf32>
    %c0_162 = arith.constant 0 : index
    %c1664 = arith.constant 1664 : index
    %215 = vector.load %arg14[%c0_162, %c1664] : memref<1x6272xf32, #tpu.memory_space<vmem>>, vector<1x128xf32>
    tpu.vector_store %arg14[%c0_162, %c1664], %214 {strides = array<i32>} : memref<1x6272xf32, #tpu.memory_space<vmem>>, vector<1x128xf32>,
    %c64 = arith.constant 64 : index
    %c0_163 = arith.constant 0 : index
    %216 = tpu.strided_load %arg13[%c64, %c0_163] {strides = array<i32: 2, 1>} : memref<224x128xf32, #tpu.memory_space<vmem>>, vector<7x128xf32>
    %c65_164 = arith.constant 65 : index
    %c0_165 = arith.constant 0 : index
    %217 = tpu.strided_load %arg13[%c65_164, %c0_165] {strides = array<i32: 2, 1>} : memref<224x128xf32, #tpu.memory_space<vmem>>, vector<7x128xf32>
    %c80 = arith.constant 80 : index
    %c0_166 = arith.constant 0 : index
    %218 = tpu.strided_load %arg13[%c80, %c0_166] {strides = array<i32: 2, 1>} : memref<224x128xf32, #tpu.memory_space<vmem>>, vector<7x128xf32>
    %c81_167 = arith.constant 81 : index
    %c0_168 = arith.constant 0 : index
    %219 = tpu.strided_load %arg13[%c81_167, %c0_168] {strides = array<i32: 2, 1>} : memref<224x128xf32, #tpu.memory_space<vmem>>, vector<7x128xf32>
    %220 = arith.maximumf %216, %217 : vector<7x128xf32>
    %221 = arith.maximumf %218, %219 : vector<7x128xf32>
    %222 = arith.maximumf %220, %221 : vector<7x128xf32>
    %223 = vector.extract_strided_slice %222 {offsets = [0, 0], sizes = [1, 128], strides = [1, 1]} : vector<7x128xf32> to vector<1x128xf32>
    %c0_169 = arith.constant 0 : index
    %c1792 = arith.constant 1792 : index
    %224 = vector.load %arg14[%c0_169, %c1792] : memref<1x6272xf32, #tpu.memory_space<vmem>>, vector<1x128xf32>
    tpu.vector_store %arg14[%c0_169, %c1792], %223 {strides = array<i32>} : memref<1x6272xf32, #tpu.memory_space<vmem>>, vector<1x128xf32>,
    %225 = vector.extract_strided_slice %222 {offsets = [1, 0], sizes = [1, 128], strides = [1, 1]} : vector<7x128xf32> to vector<1x128xf32>
    %c0_170 = arith.constant 0 : index
    %c1920 = arith.constant 1920 : index
    %226 = vector.load %arg14[%c0_170, %c1920] : memref<1x6272xf32, #tpu.memory_space<vmem>>, vector<1x128xf32>
    tpu.vector_store %arg14[%c0_170, %c1920], %225 {strides = array<i32>} : memref<1x6272xf32, #tpu.memory_space<vmem>>, vector<1x128xf32>,
    %227 = vector.extract_strided_slice %222 {offsets = [2, 0], sizes = [1, 128], strides = [1, 1]} : vector<7x128xf32> to vector<1x128xf32>
    %c0_171 = arith.constant 0 : index
    %c2048 = arith.constant 2048 : index
    %228 = vector.load %arg14[%c0_171, %c2048] : memref<1x6272xf32, #tpu.memory_space<vmem>>, vector<1x128xf32>
    tpu.vector_store %arg14[%c0_171, %c2048], %227 {strides = array<i32>} : memref<1x6272xf32, #tpu.memory_space<vmem>>, vector<1x128xf32>,
    %229 = vector.extract_strided_slice %222 {offsets = [3, 0], sizes = [1, 128], strides = [1, 1]} : vector<7x128xf32> to vector<1x128xf32>
    %c0_172 = arith.constant 0 : index
    %c2176 = arith.constant 2176 : index
    %230 = vector.load %arg14[%c0_172, %c2176] : memref<1x6272xf32, #tpu.memory_space<vmem>>, vector<1x128xf32>
    tpu.vector_store %arg14[%c0_172, %c2176], %229 {strides = array<i32>} : memref<1x6272xf32, #tpu.memory_space<vmem>>, vector<1x128xf32>,
    %231 = vector.extract_strided_slice %222 {offsets = [4, 0], sizes = [1, 128], strides = [1, 1]} : vector<7x128xf32> to vector<1x128xf32>
    %c0_173 = arith.constant 0 : index
    %c2304 = arith.constant 2304 : index
    %232 = vector.load %arg14[%c0_173, %c2304] : memref<1x6272xf32, #tpu.memory_space<vmem>>, vector<1x128xf32>
    tpu.vector_store %arg14[%c0_173, %c2304], %231 {strides = array<i32>} : memref<1x6272xf32, #tpu.memory_space<vmem>>, vector<1x128xf32>,
    %233 = vector.extract_strided_slice %222 {offsets = [5, 0], sizes = [1, 128], strides = [1, 1]} : vector<7x128xf32> to vector<1x128xf32>
    %c0_174 = arith.constant 0 : index
    %c2432 = arith.constant 2432 : index
    %234 = vector.load %arg14[%c0_174, %c2432] : memref<1x6272xf32, #tpu.memory_space<vmem>>, vector<1x128xf32>
    tpu.vector_store %arg14[%c0_174, %c2432], %233 {strides = array<i32>} : memref<1x6272xf32, #tpu.memory_space<vmem>>, vector<1x128xf32>,
    %235 = vector.extract_strided_slice %222 {offsets = [6, 0], sizes = [1, 128], strides = [1, 1]} : vector<7x128xf32> to vector<1x128xf32>
    %c0_175 = arith.constant 0 : index
    %c2560 = arith.constant 2560 : index
    %236 = vector.load %arg14[%c0_175, %c2560] : memref<1x6272xf32, #tpu.memory_space<vmem>>, vector<1x128xf32>
    tpu.vector_store %arg14[%c0_175, %c2560], %235 {strides = array<i32>} : memref<1x6272xf32, #tpu.memory_space<vmem>>, vector<1x128xf32>,
    %c96 = arith.constant 96 : index
    %c0_176 = arith.constant 0 : index
    %237 = tpu.strided_load %arg13[%c96, %c0_176] {strides = array<i32: 2, 1>} : memref<224x128xf32, #tpu.memory_space<vmem>>, vector<7x128xf32>
    %c97_177 = arith.constant 97 : index
    %c0_178 = arith.constant 0 : index
    %238 = tpu.strided_load %arg13[%c97_177, %c0_178] {strides = array<i32: 2, 1>} : memref<224x128xf32, #tpu.memory_space<vmem>>, vector<7x128xf32>
    %c112_179 = arith.constant 112 : index
    %c0_180 = arith.constant 0 : index
    %239 = tpu.strided_load %arg13[%c112_179, %c0_180] {strides = array<i32: 2, 1>} : memref<224x128xf32, #tpu.memory_space<vmem>>, vector<7x128xf32>
    %c113_181 = arith.constant 113 : index
    %c0_182 = arith.constant 0 : index
    %240 = tpu.strided_load %arg13[%c113_181, %c0_182] {strides = array<i32: 2, 1>} : memref<224x128xf32, #tpu.memory_space<vmem>>, vector<7x128xf32>
    %241 = arith.maximumf %237, %238 : vector<7x128xf32>
    %242 = arith.maximumf %239, %240 : vector<7x128xf32>
    %243 = arith.maximumf %241, %242 : vector<7x128xf32>
    %244 = vector.extract_strided_slice %243 {offsets = [0, 0], sizes = [1, 128], strides = [1, 1]} : vector<7x128xf32> to vector<1x128xf32>
    %c0_183 = arith.constant 0 : index
    %c2688 = arith.constant 2688 : index
    %245 = vector.load %arg14[%c0_183, %c2688] : memref<1x6272xf32, #tpu.memory_space<vmem>>, vector<1x128xf32>
    tpu.vector_store %arg14[%c0_183, %c2688], %244 {strides = array<i32>} : memref<1x6272xf32, #tpu.memory_space<vmem>>, vector<1x128xf32>,
    %246 = vector.extract_strided_slice %243 {offsets = [1, 0], sizes = [1, 128], strides = [1, 1]} : vector<7x128xf32> to vector<1x128xf32>
    %c0_184 = arith.constant 0 : index
    %c2816 = arith.constant 2816 : index
    %247 = vector.load %arg14[%c0_184, %c2816] : memref<1x6272xf32, #tpu.memory_space<vmem>>, vector<1x128xf32>
    tpu.vector_store %arg14[%c0_184, %c2816], %246 {strides = array<i32>} : memref<1x6272xf32, #tpu.memory_space<vmem>>, vector<1x128xf32>,
    %248 = vector.extract_strided_slice %243 {offsets = [2, 0], sizes = [1, 128], strides = [1, 1]} : vector<7x128xf32> to vector<1x128xf32>
    %c0_185 = arith.constant 0 : index
    %c2944 = arith.constant 2944 : index
    %249 = vector.load %arg14[%c0_185, %c2944] : memref<1x6272xf32, #tpu.memory_space<vmem>>, vector<1x128xf32>
    tpu.vector_store %arg14[%c0_185, %c2944], %248 {strides = array<i32>} : memref<1x6272xf32, #tpu.memory_space<vmem>>, vector<1x128xf32>,
    %250 = vector.extract_strided_slice %243 {offsets = [3, 0], sizes = [1, 128], strides = [1, 1]} : vector<7x128xf32> to vector<1x128xf32>
    %c0_186 = arith.constant 0 : index
    %c3072 = arith.constant 3072 : index
    %251 = vector.load %arg14[%c0_186, %c3072] : memref<1x6272xf32, #tpu.memory_space<vmem>>, vector<1x128xf32>
    tpu.vector_store %arg14[%c0_186, %c3072], %250 {strides = array<i32>} : memref<1x6272xf32, #tpu.memory_space<vmem>>, vector<1x128xf32>,
    %252 = vector.extract_strided_slice %243 {offsets = [4, 0], sizes = [1, 128], strides = [1, 1]} : vector<7x128xf32> to vector<1x128xf32>
    %c0_187 = arith.constant 0 : index
    %c3200 = arith.constant 3200 : index
    %253 = vector.load %arg14[%c0_187, %c3200] : memref<1x6272xf32, #tpu.memory_space<vmem>>, vector<1x128xf32>
    tpu.vector_store %arg14[%c0_187, %c3200], %252 {strides = array<i32>} : memref<1x6272xf32, #tpu.memory_space<vmem>>, vector<1x128xf32>,
    %254 = vector.extract_strided_slice %243 {offsets = [5, 0], sizes = [1, 128], strides = [1, 1]} : vector<7x128xf32> to vector<1x128xf32>
    %c0_188 = arith.constant 0 : index
    %c3328 = arith.constant 3328 : index
    %255 = vector.load %arg14[%c0_188, %c3328] : memref<1x6272xf32, #tpu.memory_space<vmem>>, vector<1x128xf32>
    tpu.vector_store %arg14[%c0_188, %c3328], %254 {strides = array<i32>} : memref<1x6272xf32, #tpu.memory_space<vmem>>, vector<1x128xf32>,
    %256 = vector.extract_strided_slice %243 {offsets = [6, 0], sizes = [1, 128], strides = [1, 1]} : vector<7x128xf32> to vector<1x128xf32>
    %c0_189 = arith.constant 0 : index
    %c3456 = arith.constant 3456 : index
    %257 = vector.load %arg14[%c0_189, %c3456] : memref<1x6272xf32, #tpu.memory_space<vmem>>, vector<1x128xf32>
    tpu.vector_store %arg14[%c0_189, %c3456], %256 {strides = array<i32>} : memref<1x6272xf32, #tpu.memory_space<vmem>>, vector<1x128xf32>,
    %c128_190 = arith.constant 128 : index
    %c0_191 = arith.constant 0 : index
    %258 = tpu.strided_load %arg13[%c128_190, %c0_191] {strides = array<i32: 2, 1>} : memref<224x128xf32, #tpu.memory_space<vmem>>, vector<7x128xf32>
    %c129_192 = arith.constant 129 : index
    %c0_193 = arith.constant 0 : index
    %259 = tpu.strided_load %arg13[%c129_192, %c0_193] {strides = array<i32: 2, 1>} : memref<224x128xf32, #tpu.memory_space<vmem>>, vector<7x128xf32>
    %c144 = arith.constant 144 : index
    %c0_194 = arith.constant 0 : index
    %260 = tpu.strided_load %arg13[%c144, %c0_194] {strides = array<i32: 2, 1>} : memref<224x128xf32, #tpu.memory_space<vmem>>, vector<7x128xf32>
    %c145_195 = arith.constant 145 : index
    %c0_196 = arith.constant 0 : index
    %261 = tpu.strided_load %arg13[%c145_195, %c0_196] {strides = array<i32: 2, 1>} : memref<224x128xf32, #tpu.memory_space<vmem>>, vector<7x128xf32>
    %262 = arith.maximumf %258, %259 : vector<7x128xf32>
    %263 = arith.maximumf %260, %261 : vector<7x128xf32>
    %264 = arith.maximumf %262, %263 : vector<7x128xf32>
    %265 = vector.extract_strided_slice %264 {offsets = [0, 0], sizes = [1, 128], strides = [1, 1]} : vector<7x128xf32> to vector<1x128xf32>
    %c0_197 = arith.constant 0 : index
    %c3584 = arith.constant 3584 : index
    %266 = vector.load %arg14[%c0_197, %c3584] : memref<1x6272xf32, #tpu.memory_space<vmem>>, vector<1x128xf32>
    tpu.vector_store %arg14[%c0_197, %c3584], %265 {strides = array<i32>} : memref<1x6272xf32, #tpu.memory_space<vmem>>, vector<1x128xf32>,
    %267 = vector.extract_strided_slice %264 {offsets = [1, 0], sizes = [1, 128], strides = [1, 1]} : vector<7x128xf32> to vector<1x128xf32>
    %c0_198 = arith.constant 0 : index
    %c3712 = arith.constant 3712 : index
    %268 = vector.load %arg14[%c0_198, %c3712] : memref<1x6272xf32, #tpu.memory_space<vmem>>, vector<1x128xf32>
    tpu.vector_store %arg14[%c0_198, %c3712], %267 {strides = array<i32>} : memref<1x6272xf32, #tpu.memory_space<vmem>>, vector<1x128xf32>,
    %269 = vector.extract_strided_slice %264 {offsets = [2, 0], sizes = [1, 128], strides = [1, 1]} : vector<7x128xf32> to vector<1x128xf32>
    %c0_199 = arith.constant 0 : index
    %c3840 = arith.constant 3840 : index
    %270 = vector.load %arg14[%c0_199, %c3840] : memref<1x6272xf32, #tpu.memory_space<vmem>>, vector<1x128xf32>
    tpu.vector_store %arg14[%c0_199, %c3840], %269 {strides = array<i32>} : memref<1x6272xf32, #tpu.memory_space<vmem>>, vector<1x128xf32>,
    %271 = vector.extract_strided_slice %264 {offsets = [3, 0], sizes = [1, 128], strides = [1, 1]} : vector<7x128xf32> to vector<1x128xf32>
    %c0_200 = arith.constant 0 : index
    %c3968 = arith.constant 3968 : index
    %272 = vector.load %arg14[%c0_200, %c3968] : memref<1x6272xf32, #tpu.memory_space<vmem>>, vector<1x128xf32>
    tpu.vector_store %arg14[%c0_200, %c3968], %271 {strides = array<i32>} : memref<1x6272xf32, #tpu.memory_space<vmem>>, vector<1x128xf32>,
    %273 = vector.extract_strided_slice %264 {offsets = [4, 0], sizes = [1, 128], strides = [1, 1]} : vector<7x128xf32> to vector<1x128xf32>
    %c0_201 = arith.constant 0 : index
    %c4096 = arith.constant 4096 : index
    %274 = vector.load %arg14[%c0_201, %c4096] : memref<1x6272xf32, #tpu.memory_space<vmem>>, vector<1x128xf32>
    tpu.vector_store %arg14[%c0_201, %c4096], %273 {strides = array<i32>} : memref<1x6272xf32, #tpu.memory_space<vmem>>, vector<1x128xf32>,
    %275 = vector.extract_strided_slice %264 {offsets = [5, 0], sizes = [1, 128], strides = [1, 1]} : vector<7x128xf32> to vector<1x128xf32>
    %c0_202 = arith.constant 0 : index
    %c4224 = arith.constant 4224 : index
    %276 = vector.load %arg14[%c0_202, %c4224] : memref<1x6272xf32, #tpu.memory_space<vmem>>, vector<1x128xf32>
    tpu.vector_store %arg14[%c0_202, %c4224], %275 {strides = array<i32>} : memref<1x6272xf32, #tpu.memory_space<vmem>>, vector<1x128xf32>,
    %277 = vector.extract_strided_slice %264 {offsets = [6, 0], sizes = [1, 128], strides = [1, 1]} : vector<7x128xf32> to vector<1x128xf32>
    %c0_203 = arith.constant 0 : index
    %c4352 = arith.constant 4352 : index
    %278 = vector.load %arg14[%c0_203, %c4352] : memref<1x6272xf32, #tpu.memory_space<vmem>>, vector<1x128xf32>
    tpu.vector_store %arg14[%c0_203, %c4352], %277 {strides = array<i32>} : memref<1x6272xf32, #tpu.memory_space<vmem>>, vector<1x128xf32>,
    %c160 = arith.constant 160 : index
    %c0_204 = arith.constant 0 : index
    %279 = tpu.strided_load %arg13[%c160, %c0_204] {strides = array<i32: 2, 1>} : memref<224x128xf32, #tpu.memory_space<vmem>>, vector<7x128xf32>
    %c161_205 = arith.constant 161 : index
    %c0_206 = arith.constant 0 : index
    %280 = tpu.strided_load %arg13[%c161_205, %c0_206] {strides = array<i32: 2, 1>} : memref<224x128xf32, #tpu.memory_space<vmem>>, vector<7x128xf32>
    %c176 = arith.constant 176 : index
    %c0_207 = arith.constant 0 : index
    %281 = tpu.strided_load %arg13[%c176, %c0_207] {strides = array<i32: 2, 1>} : memref<224x128xf32, #tpu.memory_space<vmem>>, vector<7x128xf32>
    %c177_208 = arith.constant 177 : index
    %c0_209 = arith.constant 0 : index
    %282 = tpu.strided_load %arg13[%c177_208, %c0_209] {strides = array<i32: 2, 1>} : memref<224x128xf32, #tpu.memory_space<vmem>>, vector<7x128xf32>
    %283 = arith.maximumf %279, %280 : vector<7x128xf32>
    %284 = arith.maximumf %281, %282 : vector<7x128xf32>
    %285 = arith.maximumf %283, %284 : vector<7x128xf32>
    %286 = vector.extract_strided_slice %285 {offsets = [0, 0], sizes = [1, 128], strides = [1, 1]} : vector<7x128xf32> to vector<1x128xf32>
    %c0_210 = arith.constant 0 : index
    %c4480 = arith.constant 4480 : index
    %287 = vector.load %arg14[%c0_210, %c4480] : memref<1x6272xf32, #tpu.memory_space<vmem>>, vector<1x128xf32>
    tpu.vector_store %arg14[%c0_210, %c4480], %286 {strides = array<i32>} : memref<1x6272xf32, #tpu.memory_space<vmem>>, vector<1x128xf32>,
    %288 = vector.extract_strided_slice %285 {offsets = [1, 0], sizes = [1, 128], strides = [1, 1]} : vector<7x128xf32> to vector<1x128xf32>
    %c0_211 = arith.constant 0 : index
    %c4608 = arith.constant 4608 : index
    %289 = vector.load %arg14[%c0_211, %c4608] : memref<1x6272xf32, #tpu.memory_space<vmem>>, vector<1x128xf32>
    tpu.vector_store %arg14[%c0_211, %c4608], %288 {strides = array<i32>} : memref<1x6272xf32, #tpu.memory_space<vmem>>, vector<1x128xf32>,
    %290 = vector.extract_strided_slice %285 {offsets = [2, 0], sizes = [1, 128], strides = [1, 1]} : vector<7x128xf32> to vector<1x128xf32>
    %c0_212 = arith.constant 0 : index
    %c4736 = arith.constant 4736 : index
    %291 = vector.load %arg14[%c0_212, %c4736] : memref<1x6272xf32, #tpu.memory_space<vmem>>, vector<1x128xf32>
    tpu.vector_store %arg14[%c0_212, %c4736], %290 {strides = array<i32>} : memref<1x6272xf32, #tpu.memory_space<vmem>>, vector<1x128xf32>,
    %292 = vector.extract_strided_slice %285 {offsets = [3, 0], sizes = [1, 128], strides = [1, 1]} : vector<7x128xf32> to vector<1x128xf32>
    %c0_213 = arith.constant 0 : index
    %c4864 = arith.constant 4864 : index
    %293 = vector.load %arg14[%c0_213, %c4864] : memref<1x6272xf32, #tpu.memory_space<vmem>>, vector<1x128xf32>
    tpu.vector_store %arg14[%c0_213, %c4864], %292 {strides = array<i32>} : memref<1x6272xf32, #tpu.memory_space<vmem>>, vector<1x128xf32>,
    %294 = vector.extract_strided_slice %285 {offsets = [4, 0], sizes = [1, 128], strides = [1, 1]} : vector<7x128xf32> to vector<1x128xf32>
    %c0_214 = arith.constant 0 : index
    %c4992 = arith.constant 4992 : index
    %295 = vector.load %arg14[%c0_214, %c4992] : memref<1x6272xf32, #tpu.memory_space<vmem>>, vector<1x128xf32>
    tpu.vector_store %arg14[%c0_214, %c4992], %294 {strides = array<i32>} : memref<1x6272xf32, #tpu.memory_space<vmem>>, vector<1x128xf32>,
    %296 = vector.extract_strided_slice %285 {offsets = [5, 0], sizes = [1, 128], strides = [1, 1]} : vector<7x128xf32> to vector<1x128xf32>
    %c0_215 = arith.constant 0 : index
    %c5120 = arith.constant 5120 : index
    %297 = vector.load %arg14[%c0_215, %c5120] : memref<1x6272xf32, #tpu.memory_space<vmem>>, vector<1x128xf32>
    tpu.vector_store %arg14[%c0_215, %c5120], %296 {strides = array<i32>} : memref<1x6272xf32, #tpu.memory_space<vmem>>, vector<1x128xf32>,
    %298 = vector.extract_strided_slice %285 {offsets = [6, 0], sizes = [1, 128], strides = [1, 1]} : vector<7x128xf32> to vector<1x128xf32>
    %c0_216 = arith.constant 0 : index
    %c5248 = arith.constant 5248 : index
    %299 = vector.load %arg14[%c0_216, %c5248] : memref<1x6272xf32, #tpu.memory_space<vmem>>, vector<1x128xf32>
    tpu.vector_store %arg14[%c0_216, %c5248], %298 {strides = array<i32>} : memref<1x6272xf32, #tpu.memory_space<vmem>>, vector<1x128xf32>,
    %c192 = arith.constant 192 : index
    %c0_217 = arith.constant 0 : index
    %300 = tpu.strided_load %arg13[%c192, %c0_217] {strides = array<i32: 2, 1>} : memref<224x128xf32, #tpu.memory_space<vmem>>, vector<7x128xf32>
    %c193_218 = arith.constant 193 : index
    %c0_219 = arith.constant 0 : index
    %301 = tpu.strided_load %arg13[%c193_218, %c0_219] {strides = array<i32: 2, 1>} : memref<224x128xf32, #tpu.memory_space<vmem>>, vector<7x128xf32>
    %c208 = arith.constant 208 : index
    %c0_220 = arith.constant 0 : index
    %302 = tpu.strided_load %arg13[%c208, %c0_220] {strides = array<i32: 2, 1>} : memref<224x128xf32, #tpu.memory_space<vmem>>, vector<7x128xf32>
    %c209_221 = arith.constant 209 : index
    %c0_222 = arith.constant 0 : index
    %303 = tpu.strided_load %arg13[%c209_221, %c0_222] {strides = array<i32: 2, 1>} : memref<224x128xf32, #tpu.memory_space<vmem>>, vector<7x128xf32>
    %304 = arith.maximumf %300, %301 : vector<7x128xf32>
    %305 = arith.maximumf %302, %303 : vector<7x128xf32>
    %306 = arith.maximumf %304, %305 : vector<7x128xf32>
    %307 = vector.extract_strided_slice %306 {offsets = [0, 0], sizes = [1, 128], strides = [1, 1]} : vector<7x128xf32> to vector<1x128xf32>
    %c0_223 = arith.constant 0 : index
    %c5376 = arith.constant 5376 : index
    %308 = vector.load %arg14[%c0_223, %c5376] : memref<1x6272xf32, #tpu.memory_space<vmem>>, vector<1x128xf32>
    tpu.vector_store %arg14[%c0_223, %c5376], %307 {strides = array<i32>} : memref<1x6272xf32, #tpu.memory_space<vmem>>, vector<1x128xf32>,
    %309 = vector.extract_strided_slice %306 {offsets = [1, 0], sizes = [1, 128], strides = [1, 1]} : vector<7x128xf32> to vector<1x128xf32>
    %c0_224 = arith.constant 0 : index
    %c5504 = arith.constant 5504 : index
    %310 = vector.load %arg14[%c0_224, %c5504] : memref<1x6272xf32, #tpu.memory_space<vmem>>, vector<1x128xf32>
    tpu.vector_store %arg14[%c0_224, %c5504], %309 {strides = array<i32>} : memref<1x6272xf32, #tpu.memory_space<vmem>>, vector<1x128xf32>,
    %311 = vector.extract_strided_slice %306 {offsets = [2, 0], sizes = [1, 128], strides = [1, 1]} : vector<7x128xf32> to vector<1x128xf32>
    %c0_225 = arith.constant 0 : index
    %c5632 = arith.constant 5632 : index
    %312 = vector.load %arg14[%c0_225, %c5632] : memref<1x6272xf32, #tpu.memory_space<vmem>>, vector<1x128xf32>
    tpu.vector_store %arg14[%c0_225, %c5632], %311 {strides = array<i32>} : memref<1x6272xf32, #tpu.memory_space<vmem>>, vector<1x128xf32>,
    %313 = vector.extract_strided_slice %306 {offsets = [3, 0], sizes = [1, 128], strides = [1, 1]} : vector<7x128xf32> to vector<1x128xf32>
    %c0_226 = arith.constant 0 : index
    %c5760 = arith.constant 5760 : index
    %314 = vector.load %arg14[%c0_226, %c5760] : memref<1x6272xf32, #tpu.memory_space<vmem>>, vector<1x128xf32>
    tpu.vector_store %arg14[%c0_226, %c5760], %313 {strides = array<i32>} : memref<1x6272xf32, #tpu.memory_space<vmem>>, vector<1x128xf32>,
    %315 = vector.extract_strided_slice %306 {offsets = [4, 0], sizes = [1, 128], strides = [1, 1]} : vector<7x128xf32> to vector<1x128xf32>
    %c0_227 = arith.constant 0 : index
    %c5888 = arith.constant 5888 : index
    %316 = vector.load %arg14[%c0_227, %c5888] : memref<1x6272xf32, #tpu.memory_space<vmem>>, vector<1x128xf32>
    tpu.vector_store %arg14[%c0_227, %c5888], %315 {strides = array<i32>} : memref<1x6272xf32, #tpu.memory_space<vmem>>, vector<1x128xf32>,
    %317 = vector.extract_strided_slice %306 {offsets = [5, 0], sizes = [1, 128], strides = [1, 1]} : vector<7x128xf32> to vector<1x128xf32>
    %c0_228 = arith.constant 0 : index
    %c6016 = arith.constant 6016 : index
    %318 = vector.load %arg14[%c0_228, %c6016] : memref<1x6272xf32, #tpu.memory_space<vmem>>, vector<1x128xf32>
    tpu.vector_store %arg14[%c0_228, %c6016], %317 {strides = array<i32>} : memref<1x6272xf32, #tpu.memory_space<vmem>>, vector<1x128xf32>,
    %319 = vector.extract_strided_slice %306 {offsets = [6, 0], sizes = [1, 128], strides = [1, 1]} : vector<7x128xf32> to vector<1x128xf32>
    %c0_229 = arith.constant 0 : index
    %c6144 = arith.constant 6144 : index
    %320 = vector.load %arg14[%c0_229, %c6144] : memref<1x6272xf32, #tpu.memory_space<vmem>>, vector<1x128xf32>
    tpu.vector_store %arg14[%c0_229, %c6144], %319 {strides = array<i32>} : memref<1x6272xf32, #tpu.memory_space<vmem>>, vector<1x128xf32>,
    %c0_230 = arith.constant 0 : index
    %c0_231 = arith.constant 0 : index
    %321 = vector.load %arg14[%c0_230, %c0_231] : memref<1x6272xf32, #tpu.memory_space<vmem>>, vector<1x6272xf32>
    %c0_232 = arith.constant 0 : index
    %c0_233 = arith.constant 0 : index
    %322 = vector.load %arg6[%c0_232, %c0_233] : memref<6272x128xf32, #tpu.memory_space<vmem>>, vector<6272x128xf32>
    %cst_234 = arith.constant dense<0.000000e+00> : vector<1x128xf32>
    %323 = tpu.matmul %321, %322, %cst_234 {dimension_numbers = #tpu.dot_dimension_numbers<[1], [0], [0], [1], [0, 0, 1, 1], [], []>} : vector<1x6272xf32>, vector<6272x128xf32>, vector<1x128xf32> -> vector<1x128xf32>
    %c0_235 = arith.constant 0 : index
    %c0_236 = arith.constant 0 : index
    %324 = vector.load %arg7[%c0_235, %c0_236] : memref<1x128xf32, #tpu.memory_space<vmem>>, vector<1x128xf32>
    %325 = arith.addf %323, %324 : vector<1x128xf32>
    %cst_237 = arith.constant 0.000000e+00 : f32
    %326 = vector.broadcast %cst_237 : f32 to vector<1x128xf32>
    %327 = arith.maximumf %325, %326 : vector<1x128xf32>
    %c0_238 = arith.constant 0 : index
    %c0_239 = arith.constant 0 : index
    %328 = vector.load %arg8[%c0_238, %c0_239] : memref<128x128xf32, #tpu.memory_space<vmem>>, vector<128x128xf32>
    %cst_240 = arith.constant dense<0.000000e+00> : vector<1x128xf32>
    %329 = tpu.matmul %327, %328, %cst_240 {dimension_numbers = #tpu.dot_dimension_numbers<[1], [0], [0], [1], [0, 0, 1, 1], [], []>} : vector<1x128xf32>, vector<128x128xf32>, vector<1x128xf32> -> vector<1x128xf32>
    %c0_241 = arith.constant 0 : index
    %c0_242 = arith.constant 0 : index
    %330 = vector.load %arg9[%c0_241, %c0_242] : memref<1x128xf32, #tpu.memory_space<vmem>>, vector<1x128xf32>
    %331 = arith.addf %329, %330 : vector<1x128xf32>
    %c0_243 = arith.constant 0 : index
    %c0_244 = arith.constant 0 : index
    %c0_245 = arith.constant 0 : index
    %332 = vector.load %arg10[%c0_243, %c0_244, %c0_245] : memref<1x1x128xf32, #tpu.memory_space<vmem>>, vector<1x1x128xf32>
    %333 = vector.shape_cast %332 : vector<1x1x128xf32> to vector<1x128xf32>
    %334 = vector.shape_cast %331 : vector<1x128xf32> to vector<1x1x128xf32>
    tpu.vector_store %arg10[%c0_243, %c0_244, %c0_245], %334 {strides = array<i32>} : memref<1x1x128xf32, #tpu.memory_space<vmem>>, vector<1x1x128xf32>,
    return
  }
  func.func @transform_0(%arg0: i32) -> (i32, i32, i32) {
    %c0_i32 = arith.constant 0 : i32
    %c0_i32_0 = arith.constant 0 : i32
    %c0_i32_1 = arith.constant 0 : i32
    return %arg0, %c0_i32, %c0_i32_0 : i32, i32, i32
  }
  func.func @transform_1(%arg0: i32) -> (i32, i32) {
    %c0_i32 = arith.constant 0 : i32
    %c0_i32_0 = arith.constant 0 : i32
    %c0_i32_1 = arith.constant 0 : i32
    return %c0_i32, %c0_i32_0 : i32, i32
  }
  func.func @transform_2(%arg0: i32) -> (i32, i32) {
    %c0_i32 = arith.constant 0 : i32
    %c0_i32_0 = arith.constant 0 : i32
    %c0_i32_1 = arith.constant 0 : i32
    return %c0_i32, %c0_i32_0 : i32, i32
  }
  func.func @transform_3(%arg0: i32) -> (i32, i32, i32) {
    %c0_i32 = arith.constant 0 : i32
    %c0_i32_0 = arith.constant 0 : i32
    %c0_i32_1 = arith.constant 0 : i32
    %c0_i32_2 = arith.constant 0 : i32
    return %c0_i32, %c0_i32_0, %c0_i32_1 : i32, i32, i32
  }
  func.func @transform_4(%arg0: i32) -> (i32, i32) {
    %c0_i32 = arith.constant 0 : i32
    %c0_i32_0 = arith.constant 0 : i32
    %c0_i32_1 = arith.constant 0 : i32
    return %c0_i32, %c0_i32_0 : i32, i32
  }
  func.func @transform_5(%arg0: i32) -> (i32, i32) {
    %c0_i32 = arith.constant 0 : i32
    %c0_i32_0 = arith.constant 0 : i32
    %c0_i32_1 = arith.constant 0 : i32
    return %c0_i32, %c0_i32_0 : i32, i32
  }
  func.func @transform_6(%arg0: i32) -> (i32, i32) {
    %c0_i32 = arith.constant 0 : i32
    %c0_i32_0 = arith.constant 0 : i32
    %c0_i32_1 = arith.constant 0 : i32
    return %c0_i32, %c0_i32_0 : i32, i32
  }
  func.func @transform_7(%arg0: i32) -> (i32, i32) {
    %c0_i32 = arith.constant 0 : i32
    %c0_i32_0 = arith.constant 0 : i32
    %c0_i32_1 = arith.constant 0 : i32
    return %c0_i32, %c0_i32_0 : i32, i32
  }
  func.func @transform_8(%arg0: i32) -> (i32, i32) {
    %c0_i32 = arith.constant 0 : i32
    %c0_i32_0 = arith.constant 0 : i32
    %c0_i32_1 = arith.constant 0 : i32
    return %c0_i32, %c0_i32_0 : i32, i32
  }
  func.func @transform_9(%arg0: i32) -> (i32, i32, i32) {
    %c0_i32 = arith.constant 0 : i32
    %c0_i32_0 = arith.constant 0 : i32
    %c0_i32_1 = arith.constant 0 : i32
    return %arg0, %c0_i32, %c0_i32_0 : i32, i32, i32
  }
}

</mosaic_0001>

<bundles_post_ra>
// kernel: convnet_forward.1
= control target key start
LH: loop header
LB: loop body
LE: loop exit
PB: predicated region body
PF: predicated region fallthrough
CT: control target
= control target key end

     0   :  { %14 = vsyncpa [#allocation7], 0  ;;  %s15537_s0 = inlined_call_operand.vmem [shape: f32[2,784,16], index: 0, kind: input, shape index: {}]   ;;  %s15538_s1 = inlined_call_operand.vmem [shape: f32[16,128], index: 1, kind: input, shape index: {}]   ;;  %s15539_s2 = inlined_call_operand.vmem [shape: f32[1,128], index: 2, kind: input, shape index: {}]   ;;  %s15540_s3 = inlined_call_operand.hbm [shape: f32[9,128,128], index: 3, kind: input, shape index: {}]   ;;  %s15541_s4 = inlined_call_operand.vmem [shape: f32[1,128], index: 4, kind: input, shape index: {}]   ;;  %s15542_s5 = inlined_call_operand.vmem [shape: f32[6272,128], index: 5, kind: input, shape index: {}]   ;;  %s15543_s6 = inlined_call_operand.vmem [shape: f32[1,128], index: 6, kind: input, shape index: {}]   ;;  %s15544_s7 = inlined_call_operand.vmem [shape: f32[128,128], index: 7, kind: input, shape index: {}]   ;;  %s15545_s8 = inlined_call_operand.vmem [shape: f32[1,128], index: 8, kind: input, shape index: {}]   ;;  %s15546_s9 = inlined_call_operand.hbm [shape: f32[2,1,128], index: 9, kind: output, shape index: {}]  }
   0x1   :  { %15 = vsyncpa [#allocation8], 0 }
   0x2   :  { %17 = vsyncpa [#allocation8 + $0x1], 0  ;;  %s11795_s30 = smov 0   ;;  %s11797_s10 = smov 0  }
   0x3   :  { %s11799_s11 = smov 0   ;;  %s11801_s12 = smov 0  }
   0x4 LB: > { %s11816_s13 = sadd.s32 4294967295, %s11735_s12   ;;  %s7878_s14 = sadd.s32 4294967294, %s11735_s12   ;;  %s11735_s12 = sphi %s11801_s12, %s15612_s12   ;;  %s11731_s11 = sphi %s11799_s11, %s15611_s11   ;;  %s11727_s10 = sphi %s11797_s10, %s15610_s10   ;;  %s11723_s30 = sphi %s11795_s30, %s15609_s30  }
   0x5   : > { %s11820_s15 = sadd.s32 1, %s11735_s12   ;;  %s224_s16 = sadd.s32 1, %s11731_s11 }
   0x6   : > { %s221_s17 = ssub.s32 %s11735_s12, %s11820_s15  ;;  %p234_p0 = scmp.ne.s32.totalorder %s11731_s11, %s11727_s10 }
   0x7   : > { %p222_p1 = scmp.eq.s32.totalorder %s221_s17, 0  ;;  %p235_p2 = scmp.eq.s32.totalorder %s11816_s13, 1 }
   0x8   : > { %p240_p3 = scmp.ne.s32.totalorder %s11727_s10, %s11723_s30  ;;  %p241_p4 = scmp.eq.s32.totalorder %s7878_s14, 1 }
   0x9   : > { %s11831_s18 = scalar_select %p222_p1, %s11731_s11, %s224_s16  }
   0xa   : > { %p11833_p5 = por %p235_p2, %p234_p0  ;;  %p11837_p6 = por %p241_p4, %p240_p3 }
   0xb   : > { %p7879_p7 = scmp.ge.s32.totalorder %s11735_s12, 1  ;;  %p248_p8 = scmp.lt.s32.totalorder %s11735_s12, 3 }
   0xc   : > { %s15566_s19 = scalar_select %p11833_p5, 1, 0 }
   0xd   : > { %s15567_s20 = scalar_select %p11837_p6, 1, 0 }
   0xe   : > { %p15547_p9 = scmp.eq.s32.totalorder %s11816_s13, 0  ;;  %p11844_p10 = pnand %p7879_p7, %p248_p8 }
   0xf   : > { %s11737_s22 = smov [#allocation6]   ;;  %s11641_s27 = scalar_lea.hbm %s15540_s3, 18432 }
  0x10   : > { %s15568_s21 = scalar_select %p11844_p10, 1, 0 }
  0x11   : > { %s266_s23 = sshll.u32 %s11737_s22, 4  ;;  %p11585_p11 = pneg %p11844_p10  ;;  %s267_s23 = int_to_ptr.vmem [resolvable:$true] %s266_s23 }
  0x12   : > { %p11642_p13 = scmp.ne.s32.totalorder %s15540_s3, %s11641_s27  ;;  %p11648_p3 = scmp.lt.u32.totalorder %s11641_s27, %s15540_s3 }
  0x13   : > { %p11852_p12 = pnand %p15547_p9, %p11585_p11 }
  0x15   : > { %p11643_p0 = pneg %p11852_p12 }
  0x17   : > { %p11644_p1 = pnand %p11643_p0, %p11642_p13 }
  0x19   : > { %p11645_p2 = pneg %p11644_p1 }
  0x1b   : > { %p11650_p4 = pnand %p11648_p3, %p11645_p2 }
  0x1d   : > { %11653 = shalt.err (!%p11650_p4)
}
  0x1e   : > { %s11654_s17 = scalar_lea.vmem %s267_s23, 18432  ;;  %p11662_p9 = scmp.lt.s32.totalorder %s267_s23, %s267_s23 }
  0x1f   : > { %p11655_p7 = scmp.ne.s32.totalorder %s267_s23, %s11654_s17  ;;  %p11663_p6 = scmp.lt.s32.totalorder %s11654_s17, %s11654_s17 }
  0x21   : > { %p11657_p8 = pnand %p11655_p7, %p11643_p0  ;;  %p11664_p5 = por %p11663_p6, %p11662_p9 }
  0x23   : > { %p11658_p11 = pneg %p11657_p8 }
  0x25   : > { %p11665_p10 = pnand %p11664_p5, %p11658_p11 }
  0x27   : > { %11668 = shalt.err (!%p11665_p10)
}
  0x28   : > { %s11738_s22 = smov 128   ;;  %s11739_s25 = smov 8  }
  0x29   : > { %11588 = dma.hbm_to_vmem [thread:$0]  (!%p11852_p12), %s15540_s3, 18432, %s267_s23, [#allocation7], %s11738_s22, %s11738_s22, %s11739_s25  }
  0x2a   : > { %p15570_p13 = scmp.ne.s32.totalorder %s15568_s21, 0 }
  0x2c   : > { %305 = sbr.rel (%p15570_p13) target bundleno = 2118 (0x846), region = 56 }
  0x33   : > { %p15571_p1 = scmp.eq.s32.totalorder %s11816_s13, 0 }
  0x35   : > { %11714 = dma.done.wait (%p15571_p1), [#allocation7], 18432   ;;  %p15572_p0 = pmov %p15571_p1 }
  0x36   : > { %p340_p5 = scmp.lt.s32.totalorder %s11816_s13, 1  ;;  %vm485_vm0 = vcmask 130048   ;;  %v345_v0 = vld [vmem:[%s15538_s1] sm:$0xff]  ;;  %v346_v1 = vld [vmem:[%s15538_s1 + $0x8] sm:$0xff]  ;;  %v1941_v48 = vld [vmem:[#allocation6 + $0x90] sm:$0xff]  ;;  %vm11743_vm2 = vmmov 0  }
  0x37   : > { %11716 = vsyncadd (%p15572_p0), [#allocation7], 4294948864  ;;  %v10246_v3 = vpack.c.bf16 %v346_v1, %v345_v0  ;;  %v1939_v43 = vld [vmem:[#allocation6 + $0x80] sm:$0xff]  ;;  %v1940_v44 = vld [vmem:[#allocation6 + $0x88] sm:$0xff]  ;;  %s338_s25 = sand.u32 1, %s11727_s10   ;;  %p15607_p9 = scmp.ne.s32.totalorder %s15566_s19, 0 }
  0x38   : > { %s341_s27 = scalar_select %p340_p5, %s11816_s13, 1  ;;  %v10250_v46 = vpack.c.bf16 %v1940_v44, %v1939_v43  ;;  %v1942_v49 = vld [vmem:[#allocation6 + $0x98] sm:$0xff]  ;;  %v1943_v53 = vld [vmem:[#allocation6 + $0xa0] sm:$0xff]  ;;  %v1944_v54 = vld [vmem:[#allocation6 + $0xa8] sm:$0xff] }
  0x39   : > { %10247 = vmatprep.subr.bf16.mxu0 %v10246_v3  ;;  %v10254_v51 = vpack.c.bf16 %v1942_v49, %v1941_v48  ;;  %v10258_v56 = vpack.c.bf16 %v1944_v54, %v1943_v53  ;;  %v1945_v58 = vld [vmem:[#allocation6 + $0xb0] sm:$0xff]  ;;  %v1946_v59 = vld [vmem:[#allocation6 + $0xb8] sm:$0xff]  ;;  %v1947_v0 = vld [vmem:[#allocation6 + $0xc0] sm:$0xff]  ;;  %s7799_s21 = scalar_lea.sflag [#allocation8], %s338_s25 }
  0x3a   : > { %s11578_s29 = smul.u32 784, %s341_s27  ;;  %10249 = vmatpush3.bf16.msra.mxu0 %v10246_v3  ;;  %10251 = vmatprep.subr.bf16.mxu1 %v10250_v46  ;;  %v10262_v61 = vpack.c.bf16 %v1946_v59, %v1945_v58  ;;  %v1948_v1 = vld [vmem:[#allocation6 + $0xc8] sm:$0xff]  ;;  %s7986_s27 = sshll.u32 %s11816_s13, 4 }
  0x3b   : > { %10253 = vmatpush3.bf16.msra.mxu1 %v10250_v46  ;;  %s15495_s23 = scalar_lea.hbm %s15546_s9, %s7986_s27  ;;  %s11744_s13 = smov [#allocation9]  }
  0x3c   : > { %s11883_s16 = scalar_lea.vmem %s15537_s0, %s11578_s29  ;;  %10255 = vmatprep.subr.bf16.mxu1 %v10254_v51  ;;  %s339_s29 = scalar_lea.vmem [#allocation9], %s338_s25 }
  0x3d   : > { %v381_v2 = vld [vmem:[%s11883_s16] sm:$0xff]  ;;  %v382_v4 = vld [vmem:[%s11883_s16 + $0x8] sm:$0xff]  ;;  %v383_v5 = vld [vmem:[%s11883_s16 + $0x10] sm:$0xff]  ;;  %s7811_s24 = sshll.u32 %s339_s29, 4  ;;  %s11673_s22 = sshll.u32 %s11744_s13, 4  ;;  %s15497_s24 = int_to_ptr.vmem [resolvable:$true] %s7811_s24  ;;  %s11674_s22 = int_to_ptr.vmem [resolvable:$false] %s11673_s22 }
  0x3e   : > { %9363 = vmatprep.mubr.msk.f32.mxu0 %vm485_vm0, %v381_v2  ;;  %v384_v6 = vld [vmem:[%s11883_s16 + $0x18] sm:$0xff]  ;;  %v385_v7 = vld [vmem:[%s11883_s16 + $0x20] sm:$0xff]  ;;  %v386_v8 = vld [vmem:[%s11883_s16 + $0x28] sm:$0xff]  ;;  %v10266_v2 = vpack.c.bf16 %v1948_v1, %v1947_v0  ;;  %s11669_s17 = scalar_lea.vmem %s15497_s24, 16  ;;  %s11675_s26 = scalar_lea.vmem %s11674_s22, 32 }
  0x3f   : > { %9364 = vmatmul.mubr.msk.f32.vlgmr.msra.gmra.mrb[0].mxu0 %vm485_vm0, %v382_v4  ;;  %v387_v9 = vld [vmem:[%s11883_s16 + $0x30] sm:$0xff]  ;;  %v388_v10 = vld [vmem:[%s11883_s16 + $0x38] sm:$0xff]  ;;  %v389_v11 = vld [vmem:[%s11883_s16 + $0x40] sm:$0xff]  ;;  %10257 = vmatpush3.bf16.msra.mxu1 %v10254_v51  ;;  %p11670_p6 = scmp.ne.s32.totalorder %s15497_s24, %s11669_s17  ;;  %p11676_p2 = scmp.lt.s32.totalorder %s15497_s24, %s11674_s22 }
  0x40   : > { %9366 = vmatprep.mubr.msk.f32.mxu0 %vm485_vm0, %v383_v5  ;;  %v390_v12 = vld [vmem:[%s11883_s16 + $0x48] sm:$0xff]  ;;  %v391_v13 = vld [vmem:[%s11883_s16 + $0x50] sm:$0xff]  ;;  %v392_v14 = vld [vmem:[%s11883_s16 + $0x58] sm:$0xff]  ;;  %10259 = vmatprep.subr.bf16.mxu1 %v10258_v56  ;;  %p11677_p3 = scmp.lt.s32.totalorder %s11675_s26, %s11669_s17 }
  0x41   : > { %v393_v15 = vld [vmem:[%s11883_s16 + $0x60] sm:$0xff]  ;;  %v394_v16 = vld [vmem:[%s11883_s16 + $0x68] sm:$0xff]  ;;  %v395_v17 = vld [vmem:[%s11883_s16 + $0x70] sm:$0xff]  ;;  %p11671_p10 = pnand %p11670_p6, %p15607_p9 }
  0x42   : > { %v396_v18 = vld [vmem:[%s11883_s16 + $0x78] sm:$0xff]  ;;  %v397_v19 = vld [vmem:[%s11883_s16 + $0x80] sm:$0xff]  ;;  %v398_v20 = vld [vmem:[%s11883_s16 + $0x88] sm:$0xff]  ;;  %p11678_p4 = por %p11677_p3, %p11676_p2 }
  0x43   : > { %9367 = vmatmul.mubr.msk.f32.gmra.mrb[2].mxu0 %vm485_vm0, %v384_v6  ;;  %v399_v21 = vld [vmem:[%s11883_s16 + $0x90] sm:$0xff]  ;;  %v400_v22 = vld [vmem:[%s11883_s16 + $0x98] sm:$0xff]  ;;  %v401_v23 = vld [vmem:[%s11883_s16 + $0xa0] sm:$0xff]  ;;  %10261 = vmatpush3.bf16.msra.mxu1 %v10258_v56  ;;  %p11672_p12 = pneg %p11671_p10 }
  0x44   : > { %9369 = vmatprep.mubr.msk.f32.mxu0 %vm485_vm0, %v385_v7  ;;  %v402_v24 = vld [vmem:[%s11883_s16 + $0xa8] sm:$0xff]  ;;  %v403_v25 = vld [vmem:[%s11883_s16 + $0xb0] sm:$0xff]  ;;  %v404_v26 = vld [vmem:[%s11883_s16 + $0xb8] sm:$0xff]  ;;  %10263 = vmatprep.subr.bf16.mxu1 %v10262_v61 }
  0x45   : > { %v405_v27 = vld [vmem:[%s11883_s16 + $0xc0] sm:$0xff]  ;;  %v406_v28 = vld [vmem:[%s11883_s16 + $0xc8] sm:$0xff]  ;;  %v407_v29 = vld [vmem:[%s11883_s16 + $0xd0] sm:$0xff]  ;;  %p11679_p7 = pnand %p11678_p4, %p11672_p12 }
  0x46   : > { %v408_v30 = vld [vmem:[%s11883_s16 + $0xd8] sm:$0xff]  ;;  %v409_v31 = vld [vmem:[%s11883_s16 + $0xe0] sm:$0xff]  ;;  %v410_v32 = vld [vmem:[%s11883_s16 + $0xe8] sm:$0xff] }
  0x47   : > { %9370 = vmatmul.mubr.msk.f32.gmra.mrb[4].mxu0 %vm485_vm0, %v386_v8  ;;  %v411_v33 = vld [vmem:[%s11883_s16 + $0xf0] sm:$0xff]  ;;  %v412_v34 = vld [vmem:[%s11883_s16 + $0xf8] sm:$0xff]  ;;  %v413_v35 = vld [vmem:[%s11883_s16 + $0x100] sm:$0xff]  ;;  %10265 = vmatpush3.bf16.msra.mxu1 %v10262_v61 }
  0x48   : > { %9372 = vmatprep.mubr.msk.f32.mxu0 %vm485_vm0, %v387_v9  ;;  %v414_v36 = vld [vmem:[%s11883_s16 + $0x108] sm:$0xff]  ;;  %v415_v37 = vld [vmem:[%s11883_s16 + $0x110] sm:$0xff]  ;;  %v416_v38 = vld [vmem:[%s11883_s16 + $0x118] sm:$0xff]  ;;  %10267 = vmatprep.subr.bf16.mxu1 %v10266_v2 }
  0x49   : > { %v417_v39 = vld [vmem:[%s11883_s16 + $0x120] sm:$0xff]  ;;  %v418_v40 = vld [vmem:[%s11883_s16 + $0x128] sm:$0xff]  ;;  %v419_v41 = vld [vmem:[%s11883_s16 + $0x130] sm:$0xff] }
  0x4a   : > { %v420_v42 = vld [vmem:[%s11883_s16 + $0x138] sm:$0xff]  ;;  %v421_v45 = vld [vmem:[%s11883_s16 + $0x140] sm:$0xff]  ;;  %v422_v47 = vld [vmem:[%s11883_s16 + $0x148] sm:$0xff] }
  0x4b   : > { %9373 = vmatmul.mubr.msk.f32.gmra.mrb[6].mxu0 %vm485_vm0, %v388_v10  ;;  %v423_v50 = vld [vmem:[%s11883_s16 + $0x150] sm:$0xff]  ;;  %v424_v52 = vld [vmem:[%s11883_s16 + $0x158] sm:$0xff]  ;;  %v425_v55 = vld [vmem:[%s11883_s16 + $0x160] sm:$0xff]  ;;  %10269 = vmatpush3.bf16.msra.mxu1 %v10266_v2 }
  0x4c   : > { %9375 = vmatprep.mubr.msk.f32.mxu0 %vm485_vm0, %v389_v11  ;;  %v426_v57 = vld [vmem:[%s11883_s16 + $0x168] sm:$0xff]  ;;  %v427_v60 = vld [vmem:[%s11883_s16 + $0x170] sm:$0xff]  ;;  %v428_v62 = vld [vmem:[%s11883_s16 + $0x178] sm:$0xff] }
  0x4d   : > { %v429_v63 = vld [vmem:[%s11883_s16 + $0x180] sm:$0xff]  ;;  %v430_v3 = vld [vmem:[%s11883_s16 + $0x188] sm:$0xff]  ;;  %v431_v4 = vld [vmem:[%s11883_s16 + $0x190] sm:$0xff] }
  0x4e   : > { %v1949_v5 = vld [vmem:[#allocation6 + $0xd0] sm:$0xff]  ;;  %v1950_v6 = vld [vmem:[#allocation6 + $0xd8] sm:$0xff]  ;;  %v1951_v10 = vld [vmem:[#allocation6 + $0xe0] sm:$0xff] }
  0x4f   : > { %9376 = vmatmul.mubr.msk.f32.gmra.mrb[8].mxu0 %vm485_vm0, %v390_v12  ;;  %v10270_v7 = vpack.c.bf16 %v1950_v6, %v1949_v5  ;;  %v432_v8 = vld [vmem:[%s11883_s16 + $0x198] sm:$0xff]  ;;  %v433_v9 = vld [vmem:[%s11883_s16 + $0x1a0] sm:$0xff]  ;;  %v1952_v11 = vld [vmem:[#allocation6 + $0xe8] sm:$0xff] }
  0x50   : > { %9378 = vmatprep.mubr.msk.f32.mxu0 %vm485_vm0, %v391_v13  ;;  %v10274_v12 = vpack.c.bf16 %v1952_v11, %v1951_v10  ;;  %v434_v13 = vld [vmem:[%s11883_s16 + $0x1a8] sm:$0xff]  ;;  %v459_v44 = vld [vmem:[%s11883_s16 + $0x270] sm:$0xff]  ;;  %v461_v46 = vld [vmem:[%s11883_s16 + $0x280] sm:$0xff] }
  0x51   : > { %10271 = vmatprep.subr.bf16.mxu1 %v10270_v7  ;;  %v458_v43 = vld [vmem:[%s11883_s16 + $0x268] sm:$0xff]  ;;  %v463_v48 = vld [vmem:[%s11883_s16 + $0x290] sm:$0xff]  ;;  %v464_v49 = vld [vmem:[%s11883_s16 + $0x298] sm:$0xff] }
  0x52   : > { %10273 = vmatpush3.bf16.msra.mxu1 %v10270_v7  ;;  %v466_v51 = vld [vmem:[%s11883_s16 + $0x2a8] sm:$0xff]  ;;  %v468_v53 = vld [vmem:[%s11883_s16 + $0x2b8] sm:$0xff]  ;;  %v469_v54 = vld [vmem:[%s11883_s16 + $0x2c0] sm:$0xff] }
  0x53   : > { %9379 = vmatmul.mubr.msk.f32.gmra.mrb[10].mxu0 %vm485_vm0, %v392_v14  ;;  %v11740_v14 = vmov 0.0   ;;  %10275 = vmatprep.subr.bf16.mxu1 %v10274_v12  ;;  %v471_v56 = vld [vmem:[%s11883_s16 + $0x2d0] sm:$0xff]  ;;  %v473_v58 = vld [vmem:[%s11883_s16 + $0x2e0] sm:$0xff]  ;;  %v474_v59 = vld [vmem:[%s11883_s16 + $0x2e8] sm:$0xff] }
  0x54   : > { %9381 = vmatprep.mubr.msk.f32.mxu0 %vm485_vm0, %v393_v15  ;;  %349 = vst [vmem:[#allocation3] sm:$0xff] %v11740_v14  ;;  %350 = vst [vmem:[#allocation3 + $0x8] sm:$0xff] %v11740_v14  ;;  %v435_v15 = vld [vmem:[%s11883_s16 + $0x1b0] sm:$0xff]  ;;  %v476_v61 = vld [vmem:[%s11883_s16 + $0x2f8] sm:$0xff] }
  0x55   : > { %351 = vst [vmem:[#allocation3 + $0x10] sm:$0xff] %v11740_v14  ;;  %352 = vst [vmem:[#allocation3 + $0x18] sm:$0xff] %v11740_v14  ;;  %v12090_v0 = vld [vmem:[%s15539_s2] ss:$0 sm:$0xff] }
  0x56   : > { %353 = vst [vmem:[#allocation3 + $0x20] sm:$0xff] %v11740_v14  ;;  %354 = vst [vmem:[#allocation3 + $0x28] sm:$0xff] %v11740_v14  ;;  %10277 = vmatpush3.bf16.msra.mxu1 %v10274_v12 }
  0x57   : > { %9382 = vmatmul.mubr.msk.f32.gmra.mrb[12].mxu0 %vm485_vm0, %v394_v16  ;;  %355 = vst [vmem:[#allocation3 + $0x30] sm:$0xff] %v11740_v14  ;;  %356 = vst [vmem:[#allocation3 + $0x38] sm:$0xff] %v11740_v14  ;;  %v1953_v16 = vld [vmem:[#allocation6 + $0xf0] sm:$0xff] }
  0x58   : > { %9384 = vmatprep.mubr.msk.f32.mxu0 %vm485_vm0, %v395_v17  ;;  %357 = vst [vmem:[#allocation3 + $0x40] sm:$0xff] %v11740_v14  ;;  %358 = vst [vmem:[#allocation3 + $0x48] sm:$0xff] %v11740_v14  ;;  %v1954_v17 = vld [vmem:[#allocation6 + $0xf8] sm:$0xff] }
  0x59   : > { %359 = vst [vmem:[#allocation3 + $0x50] sm:$0xff] %v11740_v14  ;;  %360 = vst [vmem:[#allocation3 + $0x58] sm:$0xff] %v11740_v14 }
  0x5a   : > { %361 = vst [vmem:[#allocation3 + $0x60] sm:$0xff] %v11740_v14  ;;  %362 = vst [vmem:[#allocation3 + $0x68] sm:$0xff] %v11740_v14 }
  0x5b   : > { %9385 = vmatmul.mubr.msk.f32.gmra.mrb[14].mxu0 %vm485_vm0, %v396_v18  ;;  %363 = vst [vmem:[#allocation3 + $0x70] sm:$0xff] %v11740_v14  ;;  %364 = vst [vmem:[#allocation3 + $0x78] sm:$0xff] %v11740_v14  ;;  %v10278_v18 = vpack.c.bf16 %v1954_v17, %v1953_v16 }
  0x5c   : > { %9387 = vmatprep.mubr.msk.f32.mxu0 %vm485_vm0, %v397_v19  ;;  %365 = vst [vmem:[#allocation3 + $0x80] sm:$0xff] %v11740_v14  ;;  %366 = vst [vmem:[#allocation3 + $0x88] sm:$0xff] %v11740_v14  ;;  %v436_v19 = vld [vmem:[%s11883_s16 + $0x1b8] sm:$0xff] }
  0x5d   : > { %367 = vst [vmem:[#allocation3 + $0x90] sm:$0xff] %v11740_v14  ;;  %368 = vst [vmem:[#allocation3 + $0x98] sm:$0xff] %v11740_v14  ;;  %10279 = vmatprep.subr.bf16.mxu1 %v10278_v18 }
  0x5e   : > { %369 = vst [vmem:[#allocation3 + $0xa0] sm:$0xff] %v11740_v14  ;;  %370 = vst [vmem:[#allocation3 + $0xa8] sm:$0xff] %v11740_v14  ;;  %10281 = vmatpush3.bf16.msra.mxu1 %v10278_v18 }
  0x5f   : > { %9388 = vmatmul.mubr.msk.f32.gmra.mrb[16].mxu0 %vm485_vm0, %v398_v20  ;;  %371 = vst [vmem:[#allocation3 + $0xb0] sm:$0xff] %v11740_v14  ;;  %372 = vst [vmem:[#allocation3 + $0xb8] sm:$0xff] %v11740_v14  ;;  %v437_v20 = vld [vmem:[%s11883_s16 + $0x1c0] sm:$0xff] }
  0x60   : > { %9390 = vmatprep.mubr.msk.f32.mxu0 %vm485_vm0, %v399_v21  ;;  %373 = vst [vmem:[#allocation3 + $0xc0] sm:$0xff] %v11740_v14  ;;  %374 = vst [vmem:[#allocation3 + $0xc8] sm:$0xff] %v11740_v14  ;;  %v1910_v21 = vld [vmem:[#allocation3 + $0x1] sm:$0xff] }
  0x61   : > { %375 = vst [vmem:[#allocation3 + $0xd0] sm:$0xff] %v11740_v14  ;;  %376 = vst [vmem:[#allocation3 + $0xd8] sm:$0xff] %v11740_v14  ;;  %9542 = vmatprep.mubr.f32.mxu1 %v1910_v21 }
  0x62   : > { %377 = vst [vmem:[#allocation3 + $0xe0] sm:$0xff] %v11740_v14  ;;  %378 = vst [vmem:[#allocation3 + $0xe8] sm:$0xff] %v11740_v14 }
  0x63   : > { %9391 = vmatmul.mubr.msk.f32.gmra.mrb[18].mxu0 %vm485_vm0, %v400_v22  ;;  %379 = vst [vmem:[#allocation3 + $0xf0] sm:$0xff] %v11740_v14  ;;  %380 = vst [vmem:[#allocation3 + $0xf8] sm:$0xff] %v11740_v14  ;;  %v438_v22 = vld [vmem:[%s11883_s16 + $0x1c8] sm:$0xff] }
  0x64   : > { %9393 = vmatprep.mubr.msk.f32.mxu0 %vm485_vm0, %v401_v23  ;;  %v1911_v23 = vld [vmem:[#allocation3 + $0x9] sm:$0xff] }
  0x65   : > { %9543 = vmatmul.mubr.f32.vlgmr.msra.gmra.mrb[0].mxu1 %v1911_v23 }
  0x67   : > { %9394 = vmatmul.mubr.msk.f32.gmra.mrb[20].mxu0 %vm485_vm0, %v402_v24  ;;  %v439_v24 = vld [vmem:[%s11883_s16 + $0x1d0] sm:$0xff] }
  0x68   : > { %9396 = vmatprep.mubr.msk.f32.mxu0 %vm485_vm0, %v403_v25  ;;  %v440_v25 = vld [vmem:[%s11883_s16 + $0x1d8] sm:$0xff] }
  0x6b   : > { %9397 = vmatmul.mubr.msk.f32.gmra.mrb[22].mxu0 %vm485_vm0, %v404_v26  ;;  %v441_v26 = vld [vmem:[%s11883_s16 + $0x1e0] sm:$0xff] }
  0x6c   : > { %9399 = vmatprep.mubr.msk.f32.mxu0 %vm485_vm0, %v405_v27  ;;  %v442_v27 = vld [vmem:[%s11883_s16 + $0x1e8] sm:$0xff] }
  0x6f   : > { %9400 = vmatmul.mubr.msk.f32.gmra.mrb[24].mxu0 %vm485_vm0, %v406_v28  ;;  %v443_v28 = vld [vmem:[%s11883_s16 + $0x1f0] sm:$0xff] }
  0x70   : > { %9402 = vmatprep.mubr.msk.f32.mxu0 %vm485_vm0, %v407_v29  ;;  %v444_v29 = vld [vmem:[%s11883_s16 + $0x1f8] sm:$0xff] }
  0x73   : > { %9403 = vmatmul.mubr.msk.f32.gmra.mrb[26].mxu0 %vm485_vm0, %v408_v30  ;;  %v445_v30 = vld [vmem:[%s11883_s16 + $0x200] sm:$0xff] }
  0x74   : > { %9405 = vmatprep.mubr.msk.f32.mxu0 %vm485_vm0, %v409_v31  ;;  %v446_v31 = vld [vmem:[%s11883_s16 + $0x208] sm:$0xff] }
  0x77   : > { %9406 = vmatmul.mubr.msk.f32.gmra.mrb[28].mxu0 %vm485_vm0, %v410_v32  ;;  %v447_v32 = vld [vmem:[%s11883_s16 + $0x210] sm:$0xff] }
  0x78   : > { %9408 = vmatprep.mubr.msk.f32.mxu0 %vm485_vm0, %v411_v33  ;;  %v448_v33 = vld [vmem:[%s11883_s16 + $0x218] sm:$0xff] }
  0x7b   : > { %9409 = vmatmul.mubr.msk.f32.gmra.mrb[30].mxu0 %vm485_vm0, %v412_v34  ;;  %v449_v34 = vld [vmem:[%s11883_s16 + $0x220] sm:$0xff] }
  0x7c   : > { %9411 = vmatprep.mubr.msk.f32.mxu0 %vm485_vm0, %v413_v35  ;;  %v450_v35 = vld [vmem:[%s11883_s16 + $0x228] sm:$0xff] }
  0x7f   : > { %9412 = vmatmul.mubr.msk.f32.gmra.mrb[32].mxu0 %vm485_vm0, %v414_v36  ;;  %v451_v36 = vld [vmem:[%s11883_s16 + $0x230] sm:$0xff] }
  0x80   : > { %9414 = vmatprep.mubr.msk.f32.mxu0 %vm485_vm0, %v415_v37  ;;  %v452_v37 = vld [vmem:[%s11883_s16 + $0x238] sm:$0xff] }
  0x83   : > { %9415 = vmatmul.mubr.msk.f32.gmra.mrb[34].mxu0 %vm485_vm0, %v416_v38  ;;  %v453_v38 = vld [vmem:[%s11883_s16 + $0x240] sm:$0xff] }
  0x84   : > { %9417 = vmatprep.mubr.msk.f32.mxu0 %vm485_vm0, %v417_v39  ;;  %v454_v39 = vld [vmem:[%s11883_s16 + $0x248] sm:$0xff] }
  0x87   : > { %9418 = vmatmul.mubr.msk.f32.gmra.mrb[36].mxu0 %vm485_vm0, %v418_v40  ;;  %v455_v40 = vld [vmem:[%s11883_s16 + $0x250] sm:$0xff] }
  0x88   : > { %9420 = vmatprep.mubr.msk.f32.mxu0 %vm485_vm0, %v419_v41  ;;  %v456_v41 = vld [vmem:[%s11883_s16 + $0x258] sm:$0xff] }
  0x8b   : > { %9421 = vmatmul.mubr.msk.f32.gmra.mrb[38].mxu0 %vm485_vm0, %v420_v42  ;;  %v457_v42 = vld [vmem:[%s11883_s16 + $0x260] sm:$0xff] }
  0x8c   : > { %9423 = vmatprep.mubr.msk.f32.mxu0 %vm485_vm0, %v421_v45  ;;  %v460_v45 = vld [vmem:[%s11883_s16 + $0x278] sm:$0xff] }
  0x8f   : > { %9424 = vmatmul.mubr.msk.f32.gmra.mrb[40].mxu0 %vm485_vm0, %v422_v47  ;;  %v462_v47 = vld [vmem:[%s11883_s16 + $0x288] sm:$0xff] }
  0x90   : > { %9426 = vmatprep.mubr.msk.f32.mxu0 %vm485_vm0, %v423_v50  ;;  %v465_v50 = vld [vmem:[%s11883_s16 + $0x2a0] sm:$0xff] }
  0x93   : > { %9427 = vmatmul.mubr.msk.f32.gmra.mrb[42].mxu0 %vm485_vm0, %v424_v52  ;;  %v467_v52 = vld [vmem:[%s11883_s16 + $0x2b0] sm:$0xff] }
  0x94   : > { %9429 = vmatprep.mubr.msk.f32.mxu0 %vm485_vm0, %v425_v55  ;;  %v470_v55 = vld [vmem:[%s11883_s16 + $0x2c8] sm:$0xff] }
  0x97   : > { %9430 = vmatmul.mubr.msk.f32.gmra.mrb[44].mxu0 %vm485_vm0, %v426_v57  ;;  %v472_v57 = vld [vmem:[%s11883_s16 + $0x2d8] sm:$0xff] }
  0x98   : > { %9432 = vmatprep.mubr.msk.f32.mxu0 %vm485_vm0, %v427_v60  ;;  %v475_v60 = vld [vmem:[%s11883_s16 + $0x2f0] sm:$0xff] }
  0x9b   : > { %9433 = vmatmul.mubr.msk.f32.gmra.mrb[46].mxu0 %vm485_vm0, %v428_v62  ;;  %v477_v62 = vld [vmem:[%s11883_s16 + $0x300] sm:$0xff] }
  0x9c   : > { %9435 = vmatprep.mubr.msk.f32.mxu0 %vm485_vm0, %v429_v63  ;;  %v478_v63 = vld [vmem:[%s11883_s16 + $0x308] sm:$0xff] }
  0x9f   : > { %9436 = vmatmul.mubr.msk.f32.gmra.mrb[48].mxu0 %vm485_vm0, %v430_v3 }
  0xa0   : > { %9438 = vmatprep.mubr.msk.f32.mxu0 %vm485_vm0, %v431_v4 }
  0xa3   : > { %9439 = vmatmul.mubr.msk.f32.gmra.mrb[50].mxu0 %vm485_vm0, %v432_v8 }
  0xa4   : > { %9441 = vmatprep.mubr.msk.f32.mxu0 %vm485_vm0, %v433_v9 }
  0xa7   : > { %9442 = vmatmul.mubr.msk.f32.gmra.mrb[52].mxu0 %vm485_vm0, %v434_v13 }
  0xa8   : > { %9444 = vmatprep.mubr.msk.f32.mxu0 %vm485_vm0, %v435_v15 }
  0xab   : > { %9445 = vmatmul.mubr.msk.f32.gmra.mrb[54].mxu0 %vm485_vm0, %v436_v19 }
  0xac   : > { %9447 = vmatprep.mubr.msk.f32.mxu0 %vm485_vm0, %v437_v20 }
  0xaf   : > { %9448 = vmatmul.mubr.msk.f32.gmra.mrb[56].mxu0 %vm485_vm0, %v438_v22 }
  0xb0   : > { %9450 = vmatprep.mubr.msk.f32.mxu0 %vm485_vm0, %v439_v24 }
  0xb3   : > { %9451 = vmatmul.mubr.msk.f32.gmra.mrb[58].mxu0 %vm485_vm0, %v440_v25 }
  0xb4   : > { %9453 = vmatprep.mubr.msk.f32.mxu0 %vm485_vm0, %v441_v26 }
  0xb7   : > { %9454 = vmatmul.mubr.msk.f32.gmra.mrb[60].mxu0 %vm485_vm0, %v442_v27 }
  0xb8   : > { %9456 = vmatprep.mubr.msk.f32.mxu0 %vm485_vm0, %v443_v28 }
  0xbb   : > { %9457 = vmatmul.mubr.msk.f32.gmra.mrb[62].mxu0 %vm485_vm0, %v444_v29 }
  0xbc   : > { %9459 = vmatprep.mubr.msk.f32.mxu0 %vm485_vm0, %v445_v30 }
  0xbf   : > { %9460 = vmatmul.mubr.msk.f32.gmra.mrb[64].mxu0 %vm485_vm0, %v446_v31 }
  0xc0   : > { %9462 = vmatprep.mubr.msk.f32.mxu0 %vm485_vm0, %v447_v32 }
  0xc3   : > { %9463 = vmatmul.mubr.msk.f32.gmra.mrb[66].mxu0 %vm485_vm0, %v448_v33 }
  0xc4   : > { %9465 = vmatprep.mubr.msk.f32.mxu0 %vm485_vm0, %v449_v34 }
  0xc7   : > { %9466 = vmatmul.mubr.msk.f32.gmra.mrb[68].mxu0 %vm485_vm0, %v450_v35 }
  0xc8   : > { %9468 = vmatprep.mubr.msk.f32.mxu0 %vm485_vm0, %v451_v36 }
  0xcb   : > { %9469 = vmatmul.mubr.msk.f32.gmra.mrb[70].mxu0 %vm485_vm0, %v452_v37 }
  0xcc   : > { %9471 = vmatprep.mubr.msk.f32.mxu0 %vm485_vm0, %v453_v38 }
  0xcf   : > { %9472 = vmatmul.mubr.msk.f32.gmra.mrb[72].mxu0 %vm485_vm0, %v454_v39 }
  0xd0   : > { %9474 = vmatprep.mubr.msk.f32.mxu0 %vm485_vm0, %v455_v40 }
  0xd3   : > { %9475 = vmatmul.mubr.msk.f32.gmra.mrb[74].mxu0 %vm485_vm0, %v456_v41 }
  0xd4   : > { %9477 = vmatprep.mubr.msk.f32.mxu0 %vm485_vm0, %v457_v42 }
  0xd7   : > { %9478 = vmatmul.mubr.msk.f32.gmra.mrb[76].mxu0 %vm485_vm0, %v458_v43 }
  0xd8   : > { %9480 = vmatprep.mubr.msk.f32.mxu0 %vm485_vm0, %v459_v44 }
  0xdb   : > { %9481 = vmatmul.mubr.msk.f32.gmra.mrb[78].mxu0 %vm485_vm0, %v460_v45 }
  0xdc   : > { %9483 = vmatprep.mubr.msk.f32.mxu0 %vm485_vm0, %v461_v46 }
  0xdf   : > { %9484 = vmatmul.mubr.msk.f32.gmra.mrb[80].mxu0 %vm485_vm0, %v462_v47 }
  0xe0   : > { %9486 = vmatprep.mubr.msk.f32.mxu0 %vm485_vm0, %v463_v48 }
  0xe3   : > { %9487 = vmatmul.mubr.msk.f32.gmra.mrb[82].mxu0 %vm485_vm0, %v464_v49 }
  0xe4   : > { %9489 = vmatprep.mubr.msk.f32.mxu0 %vm485_vm0, %v465_v50 }
  0xe7   : > { %9490 = vmatmul.mubr.msk.f32.gmra.mrb[84].mxu0 %vm485_vm0, %v466_v51 }
  0xe8   : > { %9492 = vmatprep.mubr.msk.f32.mxu0 %vm485_vm0, %v467_v52 }
  0xeb   : > { %9493 = vmatmul.mubr.msk.f32.gmra.mrb[86].mxu0 %vm485_vm0, %v468_v53 }
  0xec   : > { %9495 = vmatprep.mubr.msk.f32.mxu0 %vm485_vm0, %v469_v54 }
  0xef   : > { %9496 = vmatmul.mubr.msk.f32.gmra.mrb[88].mxu0 %vm485_vm0, %v470_v55 }
  0xf0   : > { %9498 = vmatprep.mubr.msk.f32.mxu0 %vm485_vm0, %v471_v56 }
  0xf3   : > { %9499 = vmatmul.mubr.msk.f32.gmra.mrb[90].mxu0 %vm485_vm0, %v472_v57 }
  0xf4   : > { %9501 = vmatprep.mubr.msk.f32.mxu0 %vm485_vm0, %v473_v58 }
  0xf7   : > { %9502 = vmatmul.mubr.msk.f32.gmra.mrb[92].mxu0 %vm485_vm0, %v474_v59 }
  0xf8   : > { %9504 = vmatprep.mubr.msk.f32.mxu0 %vm485_vm0, %v475_v60 }
  0xfb   : > { %9505 = vmatmul.mubr.msk.f32.gmra.mrb[94].mxu0 %vm485_vm0, %v476_v61 }
  0xfc   : > { %9507 = vmatprep.mubr.msk.f32.mxu0 %vm485_vm0, %v477_v62 }
  0xff   : > { %9508 = vmatmul.mubr.msk.f32.gmra.mrb[96].mxu0 %vm485_vm0, %v478_v63 }
 0x112   : > { %v9365_v1 = vpop.f32.mrb[0].mxu0 }
 0x113   : > { %v852_v2 = vadd.f32 %v9365_v1, %v12090_v0  ;;  %v846_v3 = vpop.f32.mrb[1].mxu0 }
 0x114   : > { %v847_v4 = vadd.f32 %v12090_v0, %v846_v3 }
 0x115   : > { %v1336_v5 = vmax.f32 %v852_v2, 0.0 }
 0x116   : > { %v1335_v6 = vmax.f32 %v847_v4, 0.0  ;;  %v9368_v7 = vpop.f32.mrb[2].mxu0 }
 0x117   : > { %1434 = vst [vmem:[#allocation2 + $0x8] sm:$0xff] %v1336_v5  ;;  %v862_v8 = vadd.f32 %v9368_v7, %v12090_v0  ;;  %v856_v9 = vpop.f32.mrb[3].mxu0 }
 0x118   : > { %1433 = vst [vmem:[#allocation2] sm:$0xff] %v1335_v6  ;;  %v857_v10 = vadd.f32 %v12090_v0, %v856_v9 }
 0x119   : > { %v1338_v11 = vmax.f32 %v862_v8, 0.0 }
 0x11a   : > { %v1337_v12 = vmax.f32 %v857_v10, 0.0  ;;  %v9371_v13 = vpop.f32.mrb[4].mxu0 }
 0x11b   : > { %1436 = vst [vmem:[#allocation2 + $0x18] sm:$0xff] %v1338_v11  ;;  %v872_v14 = vadd.f32 %v9371_v13, %v12090_v0  ;;  %v866_v15 = vpop.f32.mrb[5].mxu0 }
 0x11c   : > { %1435 = vst [vmem:[#allocation2 + $0x10] sm:$0xff] %v1337_v12  ;;  %v867_v16 = vadd.f32 %v12090_v0, %v866_v15 }
 0x11d   : > { %v1340_v17 = vmax.f32 %v872_v14, 0.0 }
 0x11e   : > { %v1339_v18 = vmax.f32 %v867_v16, 0.0  ;;  %v9374_v19 = vpop.f32.mrb[6].mxu0 }
 0x11f   : > { %1438 = vst [vmem:[#allocation2 + $0x28] sm:$0xff] %v1340_v17  ;;  %v882_v20 = vadd.f32 %v9374_v19, %v12090_v0  ;;  %v876_v21 = vpop.f32.mrb[7].mxu0  ;;  %v1531_v28 = vld [vmem:[#allocation2] ss:$2 sm:$0xff]  ;;  %v1535_v29 = vld [vmem:[#allocation2 + $0x1] ss:$2 sm:$0xff] }
 0x120   : > { %1437 = vst [vmem:[#allocation2 + $0x20] sm:$0xff] %v1339_v18  ;;  %v877_v22 = vadd.f32 %v12090_v0, %v876_v21  ;;  %v1546_v38 = vmax.f32 %v1531_v28, %v1535_v29 }
 0x121   : > { %v1342_v23 = vmax.f32 %v882_v20, 0.0 }
 0x122   : > { %v1341_v24 = vmax.f32 %v877_v22, 0.0  ;;  %v9377_v25 = vpop.f32.mrb[8].mxu0 }
 0x123   : > { %1440 = vst [vmem:[#allocation2 + $0x38] sm:$0xff] %v1342_v23  ;;  %v892_v26 = vadd.f32 %v9377_v25, %v12090_v0  ;;  %v886_v27 = vpop.f32.mrb[9].mxu0  ;;  %v1533_v39 = vld [vmem:[#allocation2 + $0x10] ss:$2 sm:$0x3f] }
 0x124   : > { %1439 = vst [vmem:[#allocation2 + $0x30] sm:$0xff] %v1341_v24  ;;  %v887_v31 = vadd.f32 %v12090_v0, %v886_v27  ;;  %v1537_v42 = vld [vmem:[#allocation2 + $0x11] ss:$2 sm:$0x3f] }
 0x125   : > { %v1344_v30 = vmax.f32 %v892_v26, 0.0  ;;  %v1547_v50 = vmax.f32 %v1533_v39, %v1537_v42 }
 0x126   : > { %v9380_v32 = vpop.f32.mrb[10].mxu0  ;;  %v1343_v35 = vmax.f32 %v887_v31, 0.0  ;;  %v1894_v31 = vld [vmem:[#allocation6] sm:$0xff] }
 0x127   : > { %v1539_v33 = vld [vmem:[#allocation2 + $0x1c] ss:$2 sm:$0xff]  ;;  %v1543_v34 = vld [vmem:[#allocation2 + $0x1d] ss:$2 sm:$0xff]  ;;  %1442 = vst [vmem:[#allocation2 + $0x48] sm:$0xff] %v1344_v30  ;;  %v902_v36 = vadd.f32 %v9380_v32, %v12090_v0  ;;  %v896_v37 = vpop.f32.mrb[11].mxu0 }
 0x128   : > { %v1548_v40 = vmax.f32 %v1539_v33, %v1543_v34  ;;  %v897_v41 = vadd.f32 %v12090_v0, %v896_v37  ;;  %1441 = vst [vmem:[#allocation2 + $0x40] sm:$0xff] %v1343_v35  ;;  %v1895_v32 = vld [vmem:[#allocation6 + $0x8] sm:$0xff]  ;;  %v1896_v33 = vld [vmem:[#allocation6 + $0x10] sm:$0xff] }
 0x129   : > { %v1346_v43 = vmax.f32 %v902_v36, 0.0  ;;  %v10282_v35 = vpack.c.bf16 %v1895_v32, %v1894_v31  ;;  %v1897_v36 = vld [vmem:[#allocation6 + $0x18] sm:$0xff] }
 0x12a   : > { %v1550_v44 = vmax.f32 %v1546_v38, %v1548_v40  ;;  %v1345_v45 = vmax.f32 %v897_v41, 0.0  ;;  %v9383_v46 = vpop.f32.mrb[12].mxu0  ;;  %v10286_v39 = vpack.c.bf16 %v1897_v36, %v1896_v33  ;;  %v1903_v36 = vld [vmem:[#allocation6 + $0x48] sm:$0xff] }
 0x12b   : > { %v1541_v47 = vld [vmem:[#allocation2 + $0x2c] ss:$2 sm:$0x3f]  ;;  %v1545_v48 = vld [vmem:[#allocation2 + $0x2d] ss:$2 sm:$0x3f]  ;;  %v912_v49 = vadd.f32 %v9383_v46, %v12090_v0  ;;  %10283 = vmatprep.subr.bf16.mxu1 %v10282_v35 }
 0x12c   : > { %1444 = vst [vmem:[#allocation2 + $0x58] sm:$0xff] %v1346_v43  ;;  %v1549_v51 = vmax.f32 %v1541_v47, %v1545_v48  ;;  %1443 = vst [vmem:[#allocation2 + $0x50] sm:$0xff] %v1345_v45  ;;  %v906_v52 = vpop.f32.mrb[13].mxu0  ;;  %9545 = vmatprep.mubr.f32.mxu1 %v1550_v44  ;;  %10285 = vmatpush3.bf16.msra.mxu1 %v10282_v35  ;;  %v1902_v35 = vld [vmem:[#allocation6 + $0x40] sm:$0xff] }
 0x12d   : > { %1552 = vst [vmem:[#allocation3 + $0x11] sm:$0xff] %v1550_v44  ;;  %v1348_v53 = vmax.f32 %v912_v49, 0.0  ;;  %v907_v54 = vadd.f32 %v12090_v0, %v906_v52  ;;  %10287 = vmatprep.subr.bf16.mxu1 %v10286_v39 }
 0x12e   : > { %v1551_v55 = vmax.f32 %v1547_v50, %v1549_v51  ;;  %v9386_v56 = vpop.f32.mrb[14].mxu0 }
 0x12f   : > { %1446 = vst [vmem:[#allocation2 + $0x68] sm:$0xff] %v1348_v53  ;;  %v1347_v57 = vmax.f32 %v907_v54, 0.0  ;;  %v922_v58 = vadd.f32 %v9386_v56, %v12090_v0  ;;  %v916_v59 = vpop.f32.mrb[15].mxu0  ;;  %v1555_v3 = vld [vmem:[#allocation2 + $0x38] ss:$2 sm:$0xff] }
 0x130   : > { %v917_v60 = vadd.f32 %v12090_v0, %v916_v59  ;;  %1553 = vst [vmem:[#allocation3 + $0x19] sm:$0x3f] %v1551_v55  ;;  %v1559_v6 = vld [vmem:[#allocation2 + $0x39] ss:$2 sm:$0xff]  ;;  %10289 = vmatpush3.bf16.msra.mxu1 %v10286_v39 }
 0x131   : > { %1445 = vst [vmem:[#allocation2 + $0x60] sm:$0xff] %v1347_v57  ;;  %v1350_v61 = vmax.f32 %v922_v58, 0.0  ;;  %v1570_v17 = vmax.f32 %v1555_v3, %v1559_v6 }
 0x132   : > { %v1349_v62 = vmax.f32 %v917_v60, 0.0  ;;  %v9389_v63 = vpop.f32.mrb[16].mxu0 }
 0x133   : > { %1448 = vst [vmem:[#allocation2 + $0x78] sm:$0xff] %v1350_v61  ;;  %v932_v1 = vadd.f32 %v9389_v63, %v12090_v0  ;;  %v926_v2 = vpop.f32.mrb[17].mxu0  ;;  %v1557_v7 = vld [vmem:[#allocation2 + $0x48] ss:$2 sm:$0x3f] }
 0x134   : > { %1447 = vst [vmem:[#allocation2 + $0x70] sm:$0xff] %v1349_v62  ;;  %v927_v5 = vadd.f32 %v12090_v0, %v926_v2  ;;  %v1561_v9 = vld [vmem:[#allocation2 + $0x49] ss:$2 sm:$0x3f] }
 0x135   : > { %v1352_v4 = vmax.f32 %v932_v1, 0.0  ;;  %v1571_v21 = vmax.f32 %v1557_v7, %v1561_v9  ;;  %v1898_v9 = vld [vmem:[#allocation6 + $0x20] sm:$0xff] }
 0x136   : > { %v9392_v8 = vpop.f32.mrb[18].mxu0  ;;  %v1351_v10 = vmax.f32 %v927_v5, 0.0 }
 0x137   : > { %1450 = vst [vmem:[#allocation2 + $0x88] sm:$0xff] %v1352_v4  ;;  %v942_v11 = vadd.f32 %v9392_v8, %v12090_v0  ;;  %v936_v12 = vpop.f32.mrb[19].mxu0  ;;  %v1913_v13 = vld [vmem:[#allocation3 + $0x19] sm:$0xff] }
 0x138   : > { %v1563_v14 = vld [vmem:[#allocation2 + $0x54] ss:$2 sm:$0xff]  ;;  %v1565_v15 = vld [vmem:[#allocation2 + $0x64] ss:$2 sm:$0x3f]  ;;  %v937_v16 = vadd.f32 %v12090_v0, %v936_v12  ;;  %9546 = vmatmul.mubr.f32.gmra.mrb[2].mxu1 %v1913_v13  ;;  %1449 = vst [vmem:[#allocation2 + $0x80] sm:$0xff] %v1351_v10 }
 0x139   : > { %v1567_v18 = vld [vmem:[#allocation2 + $0x55] ss:$2 sm:$0xff]  ;;  %v1569_v19 = vld [vmem:[#allocation2 + $0x65] ss:$2 sm:$0x3f]  ;;  %v1354_v20 = vmax.f32 %v942_v11, 0.0 }
 0x13a   : > { %v1572_v22 = vmax.f32 %v1563_v14, %v1567_v18  ;;  %v1573_v23 = vmax.f32 %v1565_v15, %v1569_v19  ;;  %v1353_v24 = vmax.f32 %v937_v16, 0.0  ;;  %v9395_v25 = vpop.f32.mrb[20].mxu0  ;;  %v1899_v10 = vld [vmem:[#allocation6 + $0x28] sm:$0xff]  ;;  %v1901_v18 = vld [vmem:[#allocation6 + $0x38] sm:$0xff] }
 0x13b   : > { %1452 = vst [vmem:[#allocation2 + $0x98] sm:$0xff] %v1354_v20  ;;  %v952_v26 = vadd.f32 %v9395_v25, %v12090_v0  ;;  %v946_v27 = vpop.f32.mrb[21].mxu0  ;;  %v1579_v43 = vld [vmem:[#allocation2 + $0x70] ss:$2 sm:$0xff]  ;;  %v1583_v44 = vld [vmem:[#allocation2 + $0x71] ss:$2 sm:$0xff]  ;;  %v10290_v14 = vpack.c.bf16 %v1899_v10, %v1898_v9 }
 0x13c   : > { %v1574_v28 = vmax.f32 %v1570_v17, %v1572_v22  ;;  %v1575_v29 = vmax.f32 %v1571_v21, %v1573_v23  ;;  %1451 = vst [vmem:[#allocation2 + $0x90] sm:$0xff] %v1353_v24  ;;  %v947_v30 = vadd.f32 %v12090_v0, %v946_v27  ;;  %v1594_v52 = vmax.f32 %v1579_v43, %v1583_v44  ;;  %v1900_v17 = vld [vmem:[#allocation6 + $0x30] sm:$0xff] }
 0x13d   : > { %v1356_v34 = vmax.f32 %v952_v26, 0.0  ;;  %10291 = vmatprep.subr.bf16.mxu1 %v10290_v14  ;;  %v10294_v21 = vpack.c.bf16 %v1901_v18, %v1900_v17  ;;  %v1909_v18 = vld [vmem:[#allocation6 + $0x78] sm:$0xff] }
 0x13e   : > { %1576 = vst [vmem:[#allocation3 + $0x21] sm:$0xff] %v1574_v28  ;;  %1577 = vst [vmem:[#allocation3 + $0x29] sm:$0x3f] %v1575_v29  ;;  %v1355_v37 = vmax.f32 %v947_v30, 0.0  ;;  %v9398_v38 = vpop.f32.mrb[22].mxu0  ;;  %9548 = vmatprep.mubr.f32.mxu1 %v1574_v28  ;;  %10293 = vmatpush3.bf16.msra.mxu1 %v10290_v14 }
 0x13f   : > { %1454 = vst [vmem:[#allocation2 + $0xa8] sm:$0xff] %v1356_v34  ;;  %v962_v40 = vadd.f32 %v9398_v38, %v12090_v0  ;;  %v956_v41 = vpop.f32.mrb[23].mxu0  ;;  %v1581_v53 = vld [vmem:[#allocation2 + $0x80] ss:$2 sm:$0x3f]  ;;  %10295 = vmatprep.subr.bf16.mxu1 %v10294_v21 }
 0x140   : > { %1453 = vst [vmem:[#allocation2 + $0xa0] sm:$0xff] %v1355_v37  ;;  %v957_v42 = vadd.f32 %v12090_v0, %v956_v41  ;;  %v1585_v56 = vld [vmem:[#allocation2 + $0x81] ss:$2 sm:$0x3f] }
 0x141   : > { %v1358_v45 = vmax.f32 %v962_v40, 0.0  ;;  %v1595_v2 = vmax.f32 %v1581_v53, %v1585_v56  ;;  %v10298_v40 = vpack.c.bf16 %v1903_v36, %v1902_v35  ;;  %v1905_v56 = vld [vmem:[#allocation6 + $0x58] sm:$0xff]  ;;  %v2394_v36 = vld [vmem:[#allocation6 + $0x100] sm:$0xff] }
 0x142   : > { %v1357_v46 = vmax.f32 %v957_v42, 0.0  ;;  %v9401_v47 = vpop.f32.mrb[24].mxu0  ;;  %10297 = vmatpush3.bf16.msra.mxu1 %v10294_v21 }
 0x143   : > { %v1587_v48 = vld [vmem:[#allocation2 + $0x8c] ss:$2 sm:$0xff]  ;;  %v1591_v49 = vld [vmem:[#allocation2 + $0x8d] ss:$2 sm:$0xff]  ;;  %1456 = vst [vmem:[#allocation2 + $0xb8] sm:$0xff] %v1358_v45  ;;  %v972_v50 = vadd.f32 %v9401_v47, %v12090_v0  ;;  %v966_v51 = vpop.f32.mrb[25].mxu0  ;;  %10299 = vmatprep.subr.bf16.mxu1 %v10298_v40 }
 0x144   : > { %v1596_v54 = vmax.f32 %v1587_v48, %v1591_v49  ;;  %1455 = vst [vmem:[#allocation2 + $0xb0] sm:$0xff] %v1357_v46  ;;  %v967_v55 = vadd.f32 %v12090_v0, %v966_v51 }
 0x145   : > { %v1360_v57 = vmax.f32 %v972_v50, 0.0  ;;  %v1915_v58 = vld [vmem:[#allocation3 + $0x29] sm:$0xff] }
 0x146   : > { %v1598_v59 = vmax.f32 %v1594_v52, %v1596_v54  ;;  %v1359_v60 = vmax.f32 %v967_v55, 0.0  ;;  %9549 = vmatmul.mubr.f32.gmra.mrb[4].mxu1 %v1915_v58  ;;  %v9404_v61 = vpop.f32.mrb[26].mxu0  ;;  %v1904_v52 = vld [vmem:[#allocation6 + $0x50] sm:$0xff] }
 0x147   : > { %v1589_v62 = vld [vmem:[#allocation2 + $0x9c] ss:$2 sm:$0x3f]  ;;  %v1593_v63 = vld [vmem:[#allocation2 + $0x9d] ss:$2 sm:$0x3f]  ;;  %v982_v1 = vadd.f32 %v9404_v61, %v12090_v0  ;;  %10301 = vmatpush3.bf16.msra.mxu1 %v10298_v40  ;;  %v10302_v58 = vpack.c.bf16 %v1905_v56, %v1904_v52 }
 0x148   : > { %1458 = vst [vmem:[#allocation2 + $0xc8] sm:$0xff] %v1360_v57  ;;  %1600 = vst [vmem:[#allocation3 + $0x31] sm:$0xff] %v1598_v59  ;;  %v1597_v3 = vmax.f32 %v1589_v62, %v1593_v63  ;;  %v976_v4 = vpop.f32.mrb[27].mxu0  ;;  %9551 = vmatprep.mubr.f32.mxu1 %v1598_v59  ;;  %v1906_v63 = vld [vmem:[#allocation6 + $0x60] sm:$0xff] }
 0x149   : > { %1457 = vst [vmem:[#allocation2 + $0xc0] sm:$0xff] %v1359_v60  ;;  %v1362_v5 = vmax.f32 %v982_v1, 0.0  ;;  %v977_v6 = vadd.f32 %v12090_v0, %v976_v4  ;;  %10303 = vmatprep.subr.bf16.mxu1 %v10302_v58  ;;  %v1907_v1 = vld [vmem:[#allocation6 + $0x68] sm:$0xff] }
 0x14a   : > { %v1599_v7 = vmax.f32 %v1595_v2, %v1597_v3  ;;  %v9407_v8 = vpop.f32.mrb[28].mxu0  ;;  %v10306_v3 = vpack.c.bf16 %v1907_v1, %v1906_v63 }
 0x14b   : > { %1460 = vst [vmem:[#allocation2 + $0xd8] sm:$0xff] %v1362_v5  ;;  %v1361_v11 = vmax.f32 %v977_v6, 0.0  ;;  %v992_v12 = vadd.f32 %v9407_v8, %v12090_v0  ;;  %v986_v13 = vpop.f32.mrb[29].mxu0  ;;  %v1603_v24 = vld [vmem:[#allocation2 + $0xa8] ss:$2 sm:$0xff]  ;;  %10305 = vmatpush3.bf16.msra.mxu1 %v10302_v58 }
 0x14c   : > { %1601 = vst [vmem:[#allocation3 + $0x39] sm:$0x3f] %v1599_v7  ;;  %v987_v15 = vadd.f32 %v12090_v0, %v986_v13  ;;  %v1607_v28 = vld [vmem:[#allocation2 + $0xa9] ss:$2 sm:$0xff]  ;;  %10307 = vmatprep.subr.bf16.mxu1 %v10306_v3 }
 0x14d   : > { %1459 = vst [vmem:[#allocation2 + $0xd0] sm:$0xff] %v1361_v11  ;;  %v1364_v16 = vmax.f32 %v992_v12, 0.0  ;;  %v1618_v41 = vmax.f32 %v1603_v24, %v1607_v28  ;;  %v1908_v13 = vld [vmem:[#allocation6 + $0x70] sm:$0xff] }
 0x14e   : > { %v1363_v19 = vmax.f32 %v987_v15, 0.0  ;;  %v9410_v20 = vpop.f32.mrb[30].mxu0 }
 0x14f   : > { %1462 = vst [vmem:[#allocation2 + $0xe8] sm:$0xff] %v1364_v16  ;;  %v1002_v22 = vadd.f32 %v9410_v20, %v12090_v0  ;;  %v996_v23 = vpop.f32.mrb[31].mxu0  ;;  %10309 = vmatpush3.bf16.msra.mxu1 %v10306_v3 }
 0x150   : > { %1461 = vst [vmem:[#allocation2 + $0xe0] sm:$0xff] %v1363_v19  ;;  %v1605_v25 = vld [vmem:[#allocation2 + $0xb8] ss:$2 sm:$0x3f]  ;;  %v997_v27 = vadd.f32 %v12090_v0, %v996_v23 }
 0x151   : > { %v1366_v26 = vmax.f32 %v1002_v22, 0.0  ;;  %v1609_v29 = vld [vmem:[#allocation2 + $0xb9] ss:$2 sm:$0x3f]  ;;  %v10310_v22 = vpack.c.bf16 %v1909_v18, %v1908_v13 }
 0x152   : > { %v9413_v30 = vpop.f32.mrb[32].mxu0  ;;  %v1365_v31 = vmax.f32 %v997_v27, 0.0  ;;  %v1619_v45 = vmax.f32 %v1605_v25, %v1609_v29 }
 0x153   : > { %1464 = vst [vmem:[#allocation2 + $0xf8] sm:$0xff] %v1366_v26  ;;  %v1012_v32 = vadd.f32 %v9413_v30, %v12090_v0  ;;  %v1006_v33 = vpop.f32.mrb[33].mxu0  ;;  %v1917_v34 = vld [vmem:[#allocation3 + $0x39] sm:$0xff]  ;;  %10311 = vmatprep.subr.bf16.mxu1 %v10310_v22 }
 0x154   : > { %v1611_v37 = vld [vmem:[#allocation2 + $0xc4] ss:$2 sm:$0xff]  ;;  %v1613_v38 = vld [vmem:[#allocation2 + $0xd4] ss:$2 sm:$0x3f]  ;;  %v1007_v39 = vadd.f32 %v12090_v0, %v1006_v33  ;;  %9552 = vmatmul.mubr.f32.gmra.mrb[6].mxu1 %v1917_v34  ;;  %1463 = vst [vmem:[#allocation2 + $0xf0] sm:$0xff] %v1365_v31 }
 0x155   : > { %v1615_v42 = vld [vmem:[#allocation2 + $0xc5] ss:$2 sm:$0xff]  ;;  %v1617_v43 = vld [vmem:[#allocation2 + $0xd5] ss:$2 sm:$0x3f]  ;;  %v1368_v44 = vmax.f32 %v1012_v32, 0.0  ;;  %10313 = vmatpush3.bf16.msra.mxu1 %v10310_v22 }
 0x156   : > { %v1620_v46 = vmax.f32 %v1611_v37, %v1615_v42  ;;  %v1621_v47 = vmax.f32 %v1613_v38, %v1617_v43  ;;  %v1367_v48 = vmax.f32 %v1007_v39, 0.0  ;;  %v9416_v49 = vpop.f32.mrb[34].mxu0  ;;  %v2395_v37 = vld [vmem:[#allocation6 + $0x108] sm:$0xff] }
 0x157   : > { %1466 = vst [vmem:[#allocation2 + $0x108] sm:$0xff] %v1368_v44  ;;  %v1022_v50 = vadd.f32 %v9416_v49, %v12090_v0  ;;  %v1016_v51 = vpop.f32.mrb[35].mxu0  ;;  %v1627_v4 = vld [vmem:[#allocation2 + $0xe0] ss:$2 sm:$0xff]  ;;  %v1631_v5 = vld [vmem:[#allocation2 + $0xe1] ss:$2 sm:$0xff] }
 0x158   : > { %v1622_v53 = vmax.f32 %v1618_v41, %v1620_v46  ;;  %v1623_v54 = vmax.f32 %v1619_v45, %v1621_v47  ;;  %1465 = vst [vmem:[#allocation2 + $0x100] sm:$0xff] %v1367_v48  ;;  %v1017_v55 = vadd.f32 %v12090_v0, %v1016_v51  ;;  %v1642_v14 = vmax.f32 %v1627_v4, %v1631_v5 }
 0x159   : > { %v1370_v57 = vmax.f32 %v1022_v50, 0.0  ;;  %v12135_v41 = vpack.c.bf16 %v2395_v37, %v2394_v36 }
 0x15a   : > { %1624 = vst [vmem:[#allocation3 + $0x41] sm:$0xff] %v1622_v53  ;;  %1625 = vst [vmem:[#allocation3 + $0x49] sm:$0x3f] %v1623_v54  ;;  %v1369_v59 = vmax.f32 %v1017_v55, 0.0  ;;  %v9419_v60 = vpop.f32.mrb[36].mxu0  ;;  %9554 = vmatprep.mubr.f32.mxu1 %v1622_v53 }
 0x15b   : > { %1468 = vst [vmem:[#allocation2 + $0x118] sm:$0xff] %v1370_v57  ;;  %v1032_v61 = vadd.f32 %v9419_v60, %v12090_v0  ;;  %v1026_v62 = vpop.f32.mrb[37].mxu0  ;;  %v1629_v15 = vld [vmem:[#allocation2 + $0xf0] ss:$2 sm:$0x3f]  ;;  %10315 = vmatprep.subr.bf16.mxu1 %v12135_v41 }
 0x15c   : > { %1467 = vst [vmem:[#allocation2 + $0x110] sm:$0xff] %v1369_v59  ;;  %v1027_v2 = vadd.f32 %v12090_v0, %v1026_v62  ;;  %v1633_v19 = vld [vmem:[#allocation2 + $0xf1] ss:$2 sm:$0x3f] }
 0x15d   : > { %v1372_v6 = vmax.f32 %v1032_v61, 0.0  ;;  %v1643_v29 = vmax.f32 %v1629_v15, %v1633_v19 }
 0x15e   : > { %v1371_v7 = vmax.f32 %v1027_v2, 0.0  ;;  %v9422_v8 = vpop.f32.mrb[38].mxu0 }
 0x15f   : > { %v1635_v9 = vld [vmem:[#allocation2 + $0xfc] ss:$2 sm:$0xff]  ;;  %v1639_v10 = vld [vmem:[#allocation2 + $0xfd] ss:$2 sm:$0xff]  ;;  %1470 = vst [vmem:[#allocation2 + $0x128] sm:$0xff] %v1372_v6  ;;  %v1042_v11 = vadd.f32 %v9422_v8, %v12090_v0  ;;  %v1036_v12 = vpop.f32.mrb[39].mxu0 }
 0x160   : > { %v1644_v16 = vmax.f32 %v1635_v9, %v1639_v10  ;;  %1469 = vst [vmem:[#allocation2 + $0x120] sm:$0xff] %v1371_v7  ;;  %v1037_v17 = vadd.f32 %v12090_v0, %v1036_v12 }
 0x161   : > { %v1374_v20 = vmax.f32 %v1042_v11, 0.0  ;;  %v1919_v21 = vld [vmem:[#allocation3 + $0x49] sm:$0xff] }
 0x162   : > { %v1646_v23 = vmax.f32 %v1642_v14, %v1644_v16  ;;  %v1373_v24 = vmax.f32 %v1037_v17, 0.0  ;;  %9555 = vmatmul.mubr.f32.gmra.mrb[8].mxu1 %v1919_v21  ;;  %v9425_v25 = vpop.f32.mrb[40].mxu0 }
 0x163   : > { %v1637_v26 = vld [vmem:[#allocation2 + $0x10c] ss:$2 sm:$0x3f]  ;;  %v1641_v27 = vld [vmem:[#allocation2 + $0x10d] ss:$2 sm:$0x3f]  ;;  %v1052_v28 = vadd.f32 %v9425_v25, %v12090_v0 }
 0x164   : > { %1472 = vst [vmem:[#allocation2 + $0x138] sm:$0xff] %v1374_v20  ;;  %1648 = vst [vmem:[#allocation3 + $0x51] sm:$0xff] %v1646_v23  ;;  %v1645_v30 = vmax.f32 %v1637_v26, %v1641_v27  ;;  %v1046_v31 = vpop.f32.mrb[41].mxu0  ;;  %9557 = vmatprep.mubr.f32.mxu1 %v1646_v23 }
 0x165   : > { %1471 = vst [vmem:[#allocation2 + $0x130] sm:$0xff] %v1373_v24  ;;  %v1376_v32 = vmax.f32 %v1052_v28, 0.0  ;;  %v1047_v33 = vadd.f32 %v12090_v0, %v1046_v31 }
 0x166   : > { %v1647_v34 = vmax.f32 %v1643_v29, %v1645_v30  ;;  %v9428_v35 = vpop.f32.mrb[42].mxu0 }
 0x167   : > { %1474 = vst [vmem:[#allocation2 + $0x148] sm:$0xff] %v1376_v32  ;;  %v1375_v38 = vmax.f32 %v1047_v33, 0.0  ;;  %v1062_v39 = vadd.f32 %v9428_v35, %v12090_v0  ;;  %v1056_v40 = vpop.f32.mrb[43].mxu0  ;;  %v1651_v48 = vld [vmem:[#allocation2 + $0x118] ss:$2 sm:$0xff] }
 0x168   : > { %1649 = vst [vmem:[#allocation3 + $0x59] sm:$0x3f] %v1647_v34  ;;  %v1057_v42 = vadd.f32 %v12090_v0, %v1056_v40  ;;  %v1655_v51 = vld [vmem:[#allocation2 + $0x119] ss:$2 sm:$0xff] }
 0x169   : > { %1473 = vst [vmem:[#allocation2 + $0x140] sm:$0xff] %v1375_v38  ;;  %v1378_v43 = vmax.f32 %v1062_v39, 0.0  ;;  %v1666_v62 = vmax.f32 %v1651_v48, %v1655_v51 }
 0x16a   : > { %v1377_v44 = vmax.f32 %v1057_v42, 0.0  ;;  %v9431_v45 = vpop.f32.mrb[44].mxu0 }
 0x16b   : > { %1476 = vst [vmem:[#allocation2 + $0x158] sm:$0xff] %v1378_v43  ;;  %v1072_v46 = vadd.f32 %v9431_v45, %v12090_v0  ;;  %v1066_v47 = vpop.f32.mrb[45].mxu0 }
 0x16c   : > { %1475 = vst [vmem:[#allocation2 + $0x150] sm:$0xff] %v1377_v44  ;;  %v1067_v50 = vadd.f32 %v12090_v0, %v1066_v47  ;;  %v1653_v52 = vld [vmem:[#allocation2 + $0x128] ss:$2 sm:$0x3f] }
 0x16d   : > { %v1380_v49 = vmax.f32 %v1072_v46, 0.0  ;;  %v1657_v54 = vld [vmem:[#allocation2 + $0x129] ss:$2 sm:$0x3f] }
 0x16e   : > { %v9434_v53 = vpop.f32.mrb[46].mxu0  ;;  %v1379_v55 = vmax.f32 %v1067_v50, 0.0  ;;  %v1667_v3 = vmax.f32 %v1653_v52, %v1657_v54 }
 0x16f   : > { %1478 = vst [vmem:[#allocation2 + $0x168] sm:$0xff] %v1380_v49  ;;  %v1082_v56 = vadd.f32 %v9434_v53, %v12090_v0  ;;  %v1076_v57 = vpop.f32.mrb[47].mxu0  ;;  %v1921_v58 = vld [vmem:[#allocation3 + $0x59] sm:$0xff] }
 0x170   : > { %v1659_v59 = vld [vmem:[#allocation2 + $0x134] ss:$2 sm:$0xff]  ;;  %v1661_v60 = vld [vmem:[#allocation2 + $0x144] ss:$2 sm:$0x3f]  ;;  %v1077_v61 = vadd.f32 %v12090_v0, %v1076_v57  ;;  %9558 = vmatmul.mubr.f32.gmra.mrb[10].mxu1 %v1921_v58  ;;  %1477 = vst [vmem:[#allocation2 + $0x160] sm:$0xff] %v1379_v55 }
 0x171   : > { %v1663_v63 = vld [vmem:[#allocation2 + $0x135] ss:$2 sm:$0xff]  ;;  %v1665_v1 = vld [vmem:[#allocation2 + $0x145] ss:$2 sm:$0x3f]  ;;  %v1382_v2 = vmax.f32 %v1082_v56, 0.0 }
 0x172   : > { %v1668_v4 = vmax.f32 %v1659_v59, %v1663_v63  ;;  %v1669_v5 = vmax.f32 %v1661_v60, %v1665_v1  ;;  %v1381_v6 = vmax.f32 %v1077_v61, 0.0  ;;  %v9437_v7 = vpop.f32.mrb[48].mxu0 }
 0x173   : > { %1480 = vst [vmem:[#allocation2 + $0x178] sm:$0xff] %v1382_v2  ;;  %v1092_v8 = vadd.f32 %v9437_v7, %v12090_v0  ;;  %v1086_v9 = vpop.f32.mrb[49].mxu0  ;;  %v1675_v19 = vld [vmem:[#allocation2 + $0x150] ss:$2 sm:$0xff]  ;;  %v1679_v20 = vld [vmem:[#allocation2 + $0x151] ss:$2 sm:$0xff] }
 0x174   : > { %v1670_v10 = vmax.f32 %v1666_v62, %v1668_v4  ;;  %v1671_v11 = vmax.f32 %v1667_v3, %v1669_v5  ;;  %1479 = vst [vmem:[#allocation2 + $0x170] sm:$0xff] %v1381_v6  ;;  %v1087_v12 = vadd.f32 %v12090_v0, %v1086_v9  ;;  %v1690_v28 = vmax.f32 %v1675_v19, %v1679_v20 }
 0x175   : > { %v1384_v13 = vmax.f32 %v1092_v8, 0.0 }
 0x176   : > { %1672 = vst [vmem:[#allocation3 + $0x61] sm:$0xff] %v1670_v10  ;;  %1673 = vst [vmem:[#allocation3 + $0x69] sm:$0x3f] %v1671_v11  ;;  %v1383_v14 = vmax.f32 %v1087_v12, 0.0  ;;  %v9440_v15 = vpop.f32.mrb[50].mxu0  ;;  %9560 = vmatprep.mubr.f32.mxu1 %v1670_v10 }
 0x177   : > { %1482 = vst [vmem:[#allocation2 + $0x188] sm:$0xff] %v1384_v13  ;;  %v1102_v16 = vadd.f32 %v9440_v15, %v12090_v0  ;;  %v1096_v17 = vpop.f32.mrb[51].mxu0  ;;  %v1677_v29 = vld [vmem:[#allocation2 + $0x160] ss:$2 sm:$0x3f] }
 0x178   : > { %1481 = vst [vmem:[#allocation2 + $0x180] sm:$0xff] %v1383_v14  ;;  %v1097_v18 = vadd.f32 %v12090_v0, %v1096_v17  ;;  %v1681_v32 = vld [vmem:[#allocation2 + $0x161] ss:$2 sm:$0x3f] }
 0x179   : > { %v1386_v21 = vmax.f32 %v1102_v16, 0.0  ;;  %v1691_v42 = vmax.f32 %v1677_v29, %v1681_v32 }
 0x17a   : > { %v1385_v22 = vmax.f32 %v1097_v18, 0.0  ;;  %v9443_v23 = vpop.f32.mrb[52].mxu0 }
 0x17b   : > { %v1683_v24 = vld [vmem:[#allocation2 + $0x16c] ss:$2 sm:$0xff]  ;;  %v1687_v25 = vld [vmem:[#allocation2 + $0x16d] ss:$2 sm:$0xff]  ;;  %1484 = vst [vmem:[#allocation2 + $0x198] sm:$0xff] %v1386_v21  ;;  %v1112_v26 = vadd.f32 %v9443_v23, %v12090_v0  ;;  %v1106_v27 = vpop.f32.mrb[53].mxu0 }
 0x17c   : > { %v1692_v30 = vmax.f32 %v1683_v24, %v1687_v25  ;;  %1483 = vst [vmem:[#allocation2 + $0x190] sm:$0xff] %v1385_v22  ;;  %v1107_v31 = vadd.f32 %v12090_v0, %v1106_v27 }
 0x17d   : > { %v1388_v33 = vmax.f32 %v1112_v26, 0.0  ;;  %v1923_v34 = vld [vmem:[#allocation3 + $0x69] sm:$0xff] }
 0x17e   : > { %v1694_v35 = vmax.f32 %v1690_v28, %v1692_v30  ;;  %v1387_v36 = vmax.f32 %v1107_v31, 0.0  ;;  %9561 = vmatmul.mubr.f32.gmra.mrb[12].mxu1 %v1923_v34  ;;  %v9446_v37 = vpop.f32.mrb[54].mxu0 }
 0x17f   : > { %v1685_v38 = vld [vmem:[#allocation2 + $0x17c] ss:$2 sm:$0x3f]  ;;  %v1689_v39 = vld [vmem:[#allocation2 + $0x17d] ss:$2 sm:$0x3f]  ;;  %v1122_v40 = vadd.f32 %v9446_v37, %v12090_v0 }
 0x180   : > { %1486 = vst [vmem:[#allocation2 + $0x1a8] sm:$0xff] %v1388_v33  ;;  %1696 = vst [vmem:[#allocation3 + $0x71] sm:$0xff] %v1694_v35  ;;  %v1693_v43 = vmax.f32 %v1685_v38, %v1689_v39  ;;  %v1116_v44 = vpop.f32.mrb[55].mxu0  ;;  %9563 = vmatprep.mubr.f32.mxu1 %v1694_v35 }
 0x181   : > { %1485 = vst [vmem:[#allocation2 + $0x1a0] sm:$0xff] %v1387_v36  ;;  %v1390_v45 = vmax.f32 %v1122_v40, 0.0  ;;  %v1117_v46 = vadd.f32 %v12090_v0, %v1116_v44 }
 0x182   : > { %v1695_v47 = vmax.f32 %v1691_v42, %v1693_v43  ;;  %v9449_v48 = vpop.f32.mrb[56].mxu0 }
 0x183   : > { %1488 = vst [vmem:[#allocation2 + $0x1b8] sm:$0xff] %v1390_v45  ;;  %v1389_v49 = vmax.f32 %v1117_v46, 0.0  ;;  %v1132_v50 = vadd.f32 %v9449_v48, %v12090_v0  ;;  %v1126_v51 = vpop.f32.mrb[57].mxu0  ;;  %v1699_v58 = vld [vmem:[#allocation2 + $0x188] ss:$2 sm:$0xff] }
 0x184   : > { %1697 = vst [vmem:[#allocation3 + $0x79] sm:$0x3f] %v1695_v47  ;;  %v1127_v52 = vadd.f32 %v12090_v0, %v1126_v51  ;;  %v1703_v61 = vld [vmem:[#allocation2 + $0x189] ss:$2 sm:$0xff] }
 0x185   : > { %1487 = vst [vmem:[#allocation2 + $0x1b0] sm:$0xff] %v1389_v49  ;;  %v1392_v53 = vmax.f32 %v1132_v50, 0.0  ;;  %v1714_v9 = vmax.f32 %v1699_v58, %v1703_v61 }
 0x186   : > { %v1391_v54 = vmax.f32 %v1127_v52, 0.0  ;;  %v9452_v55 = vpop.f32.mrb[58].mxu0 }
 0x187   : > { %1490 = vst [vmem:[#allocation2 + $0x1c8] sm:$0xff] %v1392_v53  ;;  %v1142_v56 = vadd.f32 %v9452_v55, %v12090_v0  ;;  %v1136_v57 = vpop.f32.mrb[59].mxu0 }
 0x188   : > { %1489 = vst [vmem:[#allocation2 + $0x1c0] sm:$0xff] %v1391_v54  ;;  %v1137_v60 = vadd.f32 %v12090_v0, %v1136_v57  ;;  %v1701_v62 = vld [vmem:[#allocation2 + $0x198] ss:$2 sm:$0x3f] }
 0x189   : > { %v1394_v59 = vmax.f32 %v1142_v56, 0.0  ;;  %v1705_v1 = vld [vmem:[#allocation2 + $0x199] ss:$2 sm:$0x3f] }
 0x18a   : > { %v9455_v63 = vpop.f32.mrb[60].mxu0  ;;  %v1393_v2 = vmax.f32 %v1137_v60, 0.0  ;;  %v1715_v13 = vmax.f32 %v1701_v62, %v1705_v1 }
 0x18b   : > { %1492 = vst [vmem:[#allocation2 + $0x1d8] sm:$0xff] %v1394_v59  ;;  %v1152_v3 = vadd.f32 %v9455_v63, %v12090_v0  ;;  %v1146_v4 = vpop.f32.mrb[61].mxu0  ;;  %v1925_v5 = vld [vmem:[#allocation3 + $0x79] sm:$0xff] }
 0x18c   : > { %v1707_v6 = vld [vmem:[#allocation2 + $0x1a4] ss:$2 sm:$0xff]  ;;  %v1709_v7 = vld [vmem:[#allocation2 + $0x1b4] ss:$2 sm:$0x3f]  ;;  %v1147_v8 = vadd.f32 %v12090_v0, %v1146_v4  ;;  %9564 = vmatmul.mubr.f32.gmra.mrb[14].mxu1 %v1925_v5  ;;  %1491 = vst [vmem:[#allocation2 + $0x1d0] sm:$0xff] %v1393_v2 }
 0x18d   : > { %v1711_v10 = vld [vmem:[#allocation2 + $0x1a5] ss:$2 sm:$0xff]  ;;  %v1713_v11 = vld [vmem:[#allocation2 + $0x1b5] ss:$2 sm:$0x3f]  ;;  %v1396_v12 = vmax.f32 %v1152_v3, 0.0 }
 0x18e   : > { %v1716_v14 = vmax.f32 %v1707_v6, %v1711_v10  ;;  %v1717_v15 = vmax.f32 %v1709_v7, %v1713_v11  ;;  %v1395_v16 = vmax.f32 %v1147_v8, 0.0  ;;  %v9458_v17 = vpop.f32.mrb[62].mxu0 }
 0x18f   : > { %1494 = vst [vmem:[#allocation2 + $0x1e8] sm:$0xff] %v1396_v12  ;;  %v1162_v18 = vadd.f32 %v9458_v17, %v12090_v0  ;;  %v1156_v19 = vpop.f32.mrb[63].mxu0  ;;  %v1723_v29 = vld [vmem:[#allocation2 + $0x1c0] ss:$2 sm:$0xff]  ;;  %v1727_v30 = vld [vmem:[#allocation2 + $0x1c1] ss:$2 sm:$0xff] }
 0x190   : > { %v1718_v20 = vmax.f32 %v1714_v9, %v1716_v14  ;;  %v1719_v21 = vmax.f32 %v1715_v13, %v1717_v15  ;;  %1493 = vst [vmem:[#allocation2 + $0x1e0] sm:$0xff] %v1395_v16  ;;  %v1157_v22 = vadd.f32 %v12090_v0, %v1156_v19  ;;  %v1738_v38 = vmax.f32 %v1723_v29, %v1727_v30  ;;  %v12172_v13 = vld [vmem:[%s15539_s2] ss:$0 sm:$0xff] }
 0x191   : > { %v1398_v23 = vmax.f32 %v1162_v18, 0.0 }
 0x192   : > { %1720 = vst [vmem:[#allocation3 + $0x81] sm:$0xff] %v1718_v20  ;;  %1721 = vst [vmem:[#allocation3 + $0x89] sm:$0x3f] %v1719_v21  ;;  %v1397_v24 = vmax.f32 %v1157_v22, 0.0  ;;  %v9461_v25 = vpop.f32.mrb[64].mxu0  ;;  %9566 = vmatprep.mubr.f32.mxu1 %v1718_v20 }
 0x193   : > { %1496 = vst [vmem:[#allocation2 + $0x1f8] sm:$0xff] %v1398_v23  ;;  %v1172_v26 = vadd.f32 %v9461_v25, %v12090_v0  ;;  %v1166_v27 = vpop.f32.mrb[65].mxu0  ;;  %v1725_v39 = vld [vmem:[#allocation2 + $0x1d0] ss:$2 sm:$0x3f] }
 0x194   : > { %1495 = vst [vmem:[#allocation2 + $0x1f0] sm:$0xff] %v1397_v24  ;;  %v1167_v28 = vadd.f32 %v12090_v0, %v1166_v27  ;;  %v1729_v43 = vld [vmem:[#allocation2 + $0x1d1] ss:$2 sm:$0x3f] }
 0x195   : > { %v1400_v31 = vmax.f32 %v1172_v26, 0.0  ;;  %v1739_v52 = vmax.f32 %v1725_v39, %v1729_v43 }
 0x196   : > { %v1399_v32 = vmax.f32 %v1167_v28, 0.0  ;;  %v9464_v33 = vpop.f32.mrb[66].mxu0 }
 0x197   : > { %v1731_v34 = vld [vmem:[#allocation2 + $0x1dc] ss:$2 sm:$0xff]  ;;  %v1735_v35 = vld [vmem:[#allocation2 + $0x1dd] ss:$2 sm:$0xff]  ;;  %1498 = vst [vmem:[#allocation2 + $0x208] sm:$0xff] %v1400_v31  ;;  %v1182_v36 = vadd.f32 %v9464_v33, %v12090_v0  ;;  %v1176_v37 = vpop.f32.mrb[67].mxu0 }
 0x198   : > { %v1740_v40 = vmax.f32 %v1731_v34, %v1735_v35  ;;  %1497 = vst [vmem:[#allocation2 + $0x200] sm:$0xff] %v1399_v32  ;;  %v1177_v42 = vadd.f32 %v12090_v0, %v1176_v37 }
 0x199   : > { %v1402_v44 = vmax.f32 %v1182_v36, 0.0  ;;  %v1927_v45 = vld [vmem:[#allocation3 + $0x89] sm:$0xff] }
 0x19a   : > { %v1742_v46 = vmax.f32 %v1738_v38, %v1740_v40  ;;  %v1401_v47 = vmax.f32 %v1177_v42, 0.0  ;;  %9567 = vmatmul.mubr.f32.gmra.mrb[16].mxu1 %v1927_v45  ;;  %v9467_v48 = vpop.f32.mrb[68].mxu0 }
 0x19b   : > { %v1733_v49 = vld [vmem:[#allocation2 + $0x1ec] ss:$2 sm:$0x3f]  ;;  %v1737_v50 = vld [vmem:[#allocation2 + $0x1ed] ss:$2 sm:$0x3f]  ;;  %v1192_v51 = vadd.f32 %v9467_v48, %v12090_v0 }
 0x19c   : > { %1500 = vst [vmem:[#allocation2 + $0x218] sm:$0xff] %v1402_v44  ;;  %1744 = vst [vmem:[#allocation3 + $0x91] sm:$0xff] %v1742_v46  ;;  %v1741_v53 = vmax.f32 %v1733_v49, %v1737_v50  ;;  %v1186_v54 = vpop.f32.mrb[69].mxu0  ;;  %9569 = vmatprep.mubr.f32.mxu1 %v1742_v46 }
 0x19d   : > { %1499 = vst [vmem:[#allocation2 + $0x210] sm:$0xff] %v1401_v47  ;;  %v1404_v55 = vmax.f32 %v1192_v51, 0.0  ;;  %v1187_v56 = vadd.f32 %v12090_v0, %v1186_v54 }
 0x19e   : > { %v1743_v57 = vmax.f32 %v1739_v52, %v1741_v53  ;;  %v9470_v58 = vpop.f32.mrb[70].mxu0 }
 0x19f   : > { %1502 = vst [vmem:[#allocation2 + $0x228] sm:$0xff] %v1404_v55  ;;  %v1403_v59 = vmax.f32 %v1187_v56, 0.0  ;;  %v1202_v60 = vadd.f32 %v9470_v58, %v12090_v0  ;;  %v1196_v61 = vpop.f32.mrb[71].mxu0  ;;  %v1747_v5 = vld [vmem:[#allocation2 + $0x1f8] ss:$2 sm:$0xff] }
 0x1a0   : > { %1745 = vst [vmem:[#allocation3 + $0x99] sm:$0x3f] %v1743_v57  ;;  %v1197_v62 = vadd.f32 %v12090_v0, %v1196_v61  ;;  %v1751_v8 = vld [vmem:[#allocation2 + $0x1f9] ss:$2 sm:$0xff] }
 0x1a1   : > { %1501 = vst [vmem:[#allocation2 + $0x220] sm:$0xff] %v1403_v59  ;;  %v1406_v63 = vmax.f32 %v1202_v60, 0.0 }
 0x1a2   : > { %v1405_v1 = vmax.f32 %v1197_v62, 0.0  ;;  %v9473_v2 = vpop.f32.mrb[72].mxu0 }
 0x1a3   : > { %1504 = vst [vmem:[#allocation2 + $0x238] sm:$0xff] %v1406_v63  ;;  %v1212_v3 = vadd.f32 %v9473_v2, %v12090_v0  ;;  %v1206_v4 = vpop.f32.mrb[73].mxu0 }
 0x1a4   : > { %1503 = vst [vmem:[#allocation2 + $0x230] sm:$0xff] %v1405_v1  ;;  %v1207_v7 = vadd.f32 %v12090_v0, %v1206_v4  ;;  %v1749_v9 = vld [vmem:[#allocation2 + $0x208] ss:$2 sm:$0x3f]  ;;  %v1762_v0 = vmax.f32 %v1747_v5, %v1751_v8 }
 0x1a5   : > { %v1408_v6 = vmax.f32 %v1212_v3, 0.0  ;;  %v1753_v11 = vld [vmem:[#allocation2 + $0x209] ss:$2 sm:$0x3f] }
 0x1a6   : > { %v9476_v10 = vpop.f32.mrb[74].mxu0  ;;  %v1407_v12 = vmax.f32 %v1207_v7, 0.0  ;;  %v1763_v23 = vmax.f32 %v1749_v9, %v1753_v11 }
 0x1a7   : > { %1506 = vst [vmem:[#allocation2 + $0x248] sm:$0xff] %v1408_v6  ;;  %v1222_v14 = vadd.f32 %v12172_v13, %v9476_v10  ;;  %v1216_v15 = vpop.f32.mrb[75].mxu0  ;;  %v1929_v16 = vld [vmem:[#allocation3 + $0x99] sm:$0xff] }
 0x1a8   : > { %v1755_v17 = vld [vmem:[#allocation2 + $0x214] ss:$2 sm:$0xff]  ;;  %v1757_v18 = vld [vmem:[#allocation2 + $0x224] ss:$2 sm:$0x3f]  ;;  %v1217_v19 = vadd.f32 %v12172_v13, %v1216_v15  ;;  %9570 = vmatmul.mubr.f32.gmra.mrb[18].mxu1 %v1929_v16  ;;  %1505 = vst [vmem:[#allocation2 + $0x240] sm:$0xff] %v1407_v12 }
 0x1a9   : > { %v1759_v20 = vld [vmem:[#allocation2 + $0x215] ss:$2 sm:$0xff]  ;;  %v1761_v21 = vld [vmem:[#allocation2 + $0x225] ss:$2 sm:$0x3f]  ;;  %v1410_v22 = vmax.f32 %v1222_v14, 0.0 }
 0x1aa   : > { %v1764_v24 = vmax.f32 %v1755_v17, %v1759_v20  ;;  %v1765_v25 = vmax.f32 %v1757_v18, %v1761_v21  ;;  %v1409_v26 = vmax.f32 %v1217_v19, 0.0  ;;  %v9479_v27 = vpop.f32.mrb[76].mxu0 }
 0x1ab   : > { %1508 = vst [vmem:[#allocation2 + $0x258] sm:$0xff] %v1410_v22  ;;  %v1232_v28 = vadd.f32 %v12172_v13, %v9479_v27  ;;  %v1226_v29 = vpop.f32.mrb[77].mxu0  ;;  %v1771_v39 = vld [vmem:[#allocation2 + $0x230] ss:$2 sm:$0xff]  ;;  %v1775_v40 = vld [vmem:[#allocation2 + $0x231] ss:$2 sm:$0xff] }
 0x1ac   : > { %v1766_v30 = vmax.f32 %v1762_v0, %v1764_v24  ;;  %v1767_v31 = vmax.f32 %v1763_v23, %v1765_v25  ;;  %1507 = vst [vmem:[#allocation2 + $0x250] sm:$0xff] %v1409_v26  ;;  %v1227_v32 = vadd.f32 %v12172_v13, %v1226_v29  ;;  %v1786_v49 = vmax.f32 %v1771_v39, %v1775_v40 }
 0x1ad   : > { %v1412_v33 = vmax.f32 %v1232_v28, 0.0 }
 0x1ae   : > { %1768 = vst [vmem:[#allocation3 + $0xa1] sm:$0xff] %v1766_v30  ;;  %1769 = vst [vmem:[#allocation3 + $0xa9] sm:$0x3f] %v1767_v31  ;;  %v1411_v34 = vmax.f32 %v1227_v32, 0.0  ;;  %v9482_v35 = vpop.f32.mrb[78].mxu0  ;;  %9572 = vmatprep.mubr.f32.mxu1 %v1766_v30 }
 0x1af   : > { %1510 = vst [vmem:[#allocation2 + $0x268] sm:$0xff] %v1412_v33  ;;  %v1242_v36 = vadd.f32 %v12172_v13, %v9482_v35  ;;  %v1236_v37 = vpop.f32.mrb[79].mxu0  ;;  %v1773_v50 = vld [vmem:[#allocation2 + $0x240] ss:$2 sm:$0x3f] }
 0x1b0   : > { %1509 = vst [vmem:[#allocation2 + $0x260] sm:$0xff] %v1411_v34  ;;  %v1237_v38 = vadd.f32 %v12172_v13, %v1236_v37  ;;  %v1777_v53 = vld [vmem:[#allocation2 + $0x241] ss:$2 sm:$0x3f] }
 0x1b1   : > { %v1414_v42 = vmax.f32 %v1242_v36, 0.0  ;;  %v1787_v62 = vmax.f32 %v1773_v50, %v1777_v53 }
 0x1b2   : > { %v1413_v43 = vmax.f32 %v1237_v38, 0.0  ;;  %v9485_v44 = vpop.f32.mrb[80].mxu0 }
 0x1b3   : > { %v1779_v45 = vld [vmem:[#allocation2 + $0x24c] ss:$2 sm:$0xff]  ;;  %v1783_v46 = vld [vmem:[#allocation2 + $0x24d] ss:$2 sm:$0xff]  ;;  %1512 = vst [vmem:[#allocation2 + $0x278] sm:$0xff] %v1414_v42  ;;  %v1252_v47 = vadd.f32 %v12172_v13, %v9485_v44  ;;  %v1246_v48 = vpop.f32.mrb[81].mxu0 }
 0x1b4   : > { %v1788_v51 = vmax.f32 %v1779_v45, %v1783_v46  ;;  %1511 = vst [vmem:[#allocation2 + $0x270] sm:$0xff] %v1413_v43  ;;  %v1247_v52 = vadd.f32 %v12172_v13, %v1246_v48 }
 0x1b5   : > { %v1416_v54 = vmax.f32 %v1252_v47, 0.0  ;;  %v12182_v55 = vld [vmem:[#allocation3 + $0xa9] sm:$0xff] }
 0x1b6   : > { %v1790_v56 = vmax.f32 %v1786_v49, %v1788_v51  ;;  %v1415_v57 = vmax.f32 %v1247_v52, 0.0  ;;  %9573 = vmatmul.mubr.f32.gmra.mrb[20].mxu1 %v12182_v55  ;;  %v9488_v58 = vpop.f32.mrb[82].mxu0 }
 0x1b7   : > { %v1781_v59 = vld [vmem:[#allocation2 + $0x25c] ss:$2 sm:$0x3f]  ;;  %v1785_v60 = vld [vmem:[#allocation2 + $0x25d] ss:$2 sm:$0x3f]  ;;  %v1262_v61 = vadd.f32 %v12172_v13, %v9488_v58 }
 0x1b8   : > { %1514 = vst [vmem:[#allocation2 + $0x288] sm:$0xff] %v1416_v54  ;;  %1792 = vst [vmem:[#allocation3 + $0xb1] sm:$0xff] %v1790_v56  ;;  %v1789_v63 = vmax.f32 %v1781_v59, %v1785_v60  ;;  %v1256_v1 = vpop.f32.mrb[83].mxu0  ;;  %9575 = vmatprep.mubr.f32.mxu1 %v1790_v56 }
 0x1b9   : > { %1513 = vst [vmem:[#allocation2 + $0x280] sm:$0xff] %v1415_v57  ;;  %v1418_v2 = vmax.f32 %v1262_v61, 0.0  ;;  %v1257_v3 = vadd.f32 %v12172_v13, %v1256_v1 }
 0x1ba   : > { %v1791_v4 = vmax.f32 %v1787_v62, %v1789_v63  ;;  %v9491_v5 = vpop.f32.mrb[84].mxu0 }
 0x1bb   : > { %1516 = vst [vmem:[#allocation2 + $0x298] sm:$0xff] %v1418_v2  ;;  %v1417_v6 = vmax.f32 %v1257_v3, 0.0  ;;  %v1272_v7 = vadd.f32 %v12172_v13, %v9491_v5  ;;  %v1266_v8 = vpop.f32.mrb[85].mxu0  ;;  %v1795_v16 = vld [vmem:[#allocation2 + $0x268] ss:$2 sm:$0xff] }
 0x1bc   : > { %1793 = vst [vmem:[#allocation3 + $0xb9] sm:$0x3f] %v1791_v4  ;;  %v1267_v9 = vadd.f32 %v12172_v13, %v1266_v8  ;;  %v1799_v19 = vld [vmem:[#allocation2 + $0x269] ss:$2 sm:$0xff] }
 0x1bd   : > { %1515 = vst [vmem:[#allocation2 + $0x290] sm:$0xff] %v1417_v6  ;;  %v1420_v10 = vmax.f32 %v1272_v7, 0.0  ;;  %v1810_v29 = vmax.f32 %v1795_v16, %v1799_v19 }
 0x1be   : > { %v1419_v11 = vmax.f32 %v1267_v9, 0.0  ;;  %v9494_v12 = vpop.f32.mrb[86].mxu0 }
 0x1bf   : > { %1518 = vst [vmem:[#allocation2 + $0x2a8] sm:$0xff] %v1420_v10  ;;  %v1282_v14 = vadd.f32 %v12172_v13, %v9494_v12  ;;  %v1276_v15 = vpop.f32.mrb[87].mxu0 }
 0x1c0   : > { %1517 = vst [vmem:[#allocation2 + $0x2a0] sm:$0xff] %v1419_v11  ;;  %v1277_v18 = vadd.f32 %v12172_v13, %v1276_v15  ;;  %v1797_v0 = vld [vmem:[#allocation2 + $0x278] ss:$2 sm:$0x3f] }
 0x1c1   : > { %v1422_v17 = vmax.f32 %v1282_v14, 0.0  ;;  %v1801_v21 = vld [vmem:[#allocation2 + $0x279] ss:$2 sm:$0x3f] }
 0x1c2   : > { %v9497_v20 = vpop.f32.mrb[88].mxu0  ;;  %v1421_v22 = vmax.f32 %v1277_v18, 0.0  ;;  %v1811_v33 = vmax.f32 %v1797_v0, %v1801_v21  ;;  %v2396_v0 = vld [vmem:[#allocation6 + $0x110] sm:$0xff] }
 0x1c3   : > { %1520 = vst [vmem:[#allocation2 + $0x2b8] sm:$0xff] %v1422_v17  ;;  %v1292_v23 = vadd.f32 %v12172_v13, %v9497_v20  ;;  %v1286_v24 = vpop.f32.mrb[89].mxu0  ;;  %v12192_v25 = vld [vmem:[#allocation3 + $0xb9] sm:$0xff]  ;;  %v2397_v20 = vld [vmem:[#allocation6 + $0x118] sm:$0xff] }
 0x1c4   : > { %v1803_v26 = vld [vmem:[#allocation2 + $0x284] ss:$2 sm:$0xff]  ;;  %v1805_v27 = vld [vmem:[#allocation2 + $0x294] ss:$2 sm:$0x3f]  ;;  %v1287_v28 = vadd.f32 %v12172_v13, %v1286_v24  ;;  %9576 = vmatmul.mubr.f32.gmra.mrb[22].mxu1 %v12192_v25  ;;  %1519 = vst [vmem:[#allocation2 + $0x2b0] sm:$0xff] %v1421_v22 }
 0x1c5   : > { %v1807_v30 = vld [vmem:[#allocation2 + $0x285] ss:$2 sm:$0xff]  ;;  %v1809_v31 = vld [vmem:[#allocation2 + $0x295] ss:$2 sm:$0x3f]  ;;  %v1424_v32 = vmax.f32 %v1292_v23, 0.0 }
 0x1c6   : > { %v1812_v34 = vmax.f32 %v1803_v26, %v1807_v30  ;;  %v1813_v35 = vmax.f32 %v1805_v27, %v1809_v31  ;;  %v1423_v36 = vmax.f32 %v1287_v28, 0.0  ;;  %v9500_v37 = vpop.f32.mrb[90].mxu0  ;;  %v11636_v30 = vld [vmem:[#allocation3] sm:$0xff] }
 0x1c7   : > { %1522 = vst [vmem:[#allocation2 + $0x2c8] sm:$0xff] %v1424_v32  ;;  %v1302_v38 = vadd.f32 %v12172_v13, %v9500_v37  ;;  %v1296_v39 = vpop.f32.mrb[91].mxu0  ;;  %v1819_v50 = vld [vmem:[#allocation2 + $0x2a0] ss:$2 sm:$0xff]  ;;  %v1823_v51 = vld [vmem:[#allocation2 + $0x2a1] ss:$2 sm:$0xff] }
 0x1c8   : > { %v12197_v40 = vmax.f32 %v1810_v29, %v1812_v34  ;;  %v1815_v42 = vmax.f32 %v1811_v33, %v1813_v35  ;;  %1521 = vst [vmem:[#allocation2 + $0x2c0] sm:$0xff] %v1423_v36  ;;  %v1297_v43 = vadd.f32 %v12172_v13, %v1296_v39  ;;  %v1834_v60 = vmax.f32 %v1819_v50, %v1823_v51  ;;  %v2398_v34 = vld [vmem:[#allocation6 + $0x120] sm:$0xff]  ;;  %v2399_v35 = vld [vmem:[#allocation6 + $0x128] sm:$0xff] }
 0x1c9   : > { %v1426_v44 = vmax.f32 %v1302_v38, 0.0  ;;  %v10318_v33 = vpack.c.bf16 %v2397_v20, %v2396_v0  ;;  %v12217_v38 = vld [vmem:[#allocation3 + $0x10] sm:$0xff]  ;;  %v10322_v39 = vpack.c.bf16 %v2399_v35, %v2398_v34  ;;  %v12234_v51 = vld [vmem:[#allocation3 + $0x38] sm:$0xff]  ;;  %v2678_v34 = vld [vmem:[#allocation6 + $0x1b0] sm:$0xff] }
 0x1ca   : > { %1816 = vst [vmem:[#allocation3 + $0xc1] sm:$0xff] %v12197_v40  ;;  %1817 = vst [vmem:[#allocation3 + $0xc9] sm:$0x3f] %v1815_v42  ;;  %v1425_v45 = vmax.f32 %v1297_v43, 0.0  ;;  %v9503_v46 = vpop.f32.mrb[92].mxu0  ;;  %9578 = vmatprep.mubr.f32.mxu1 %v12197_v40  ;;  %v12222_v42 = vld [vmem:[#allocation3 + $0x18] sm:$0xff] }
 0x1cb   : > { %1524 = vst [vmem:[#allocation2 + $0x2d8] sm:$0xff] %v1426_v44  ;;  %v1312_v47 = vadd.f32 %v12172_v13, %v9503_v46  ;;  %v1306_v48 = vpop.f32.mrb[93].mxu0  ;;  %v1821_v61 = vld [vmem:[#allocation2 + $0x2b0] ss:$2 sm:$0x3f]  ;;  %v12282_v0 = vld [vmem:[#allocation3 + $0xb8] sm:$0xff] }
 0x1cc   : > { %1523 = vst [vmem:[#allocation2 + $0x2d0] sm:$0xff] %v1425_v45  ;;  %v1307_v49 = vadd.f32 %v12172_v13, %v1306_v48  ;;  %v1825_v1 = vld [vmem:[#allocation2 + $0x2b1] ss:$2 sm:$0x3f]  ;;  %v2403_v48 = vld [vmem:[#allocation6 + $0x148] sm:$0xff] }
 0x1cd   : > { %v1428_v52 = vmax.f32 %v1312_v47, 0.0  ;;  %v1835_v10 = vmax.f32 %v1821_v61, %v1825_v1  ;;  %v2400_v43 = vld [vmem:[#allocation6 + $0x130] sm:$0xff]  ;;  %v2401_v44 = vld [vmem:[#allocation6 + $0x138] sm:$0xff]  ;;  %v2402_v47 = vld [vmem:[#allocation6 + $0x140] sm:$0xff] }
 0x1ce   : > { %v1427_v53 = vmax.f32 %v1307_v49, 0.0  ;;  %v9506_v54 = vpop.f32.mrb[94].mxu0  ;;  %v12225_v45 = vld [vmem:[#allocation3 + $0x20] sm:$0xff]  ;;  %v12228_v46 = vld [vmem:[#allocation3 + $0x28] sm:$0xff]  ;;  %v12231_v49 = vld [vmem:[#allocation3 + $0x30] sm:$0xff]  ;;  %v10330_v50 = vpack.c.bf16 %v2403_v48, %v2402_v47 }
 0x1cf   : > { %v1827_v56 = vld [vmem:[#allocation2 + $0x2bc] ss:$2 sm:$0xff]  ;;  %v1831_v57 = vld [vmem:[#allocation2 + $0x2bd] ss:$2 sm:$0xff]  ;;  %1526 = vst [vmem:[#allocation2 + $0x2e8] sm:$0xff] %v1428_v52  ;;  %v1322_v58 = vadd.f32 %v12172_v13, %v9506_v54  ;;  %v1316_v59 = vpop.f32.mrb[95].mxu0 }
 0x1d0   : > { %v1836_v62 = vmax.f32 %v1827_v56, %v1831_v57  ;;  %1525 = vst [vmem:[#allocation2 + $0x2e0] sm:$0xff] %v1427_v53  ;;  %v1317_v63 = vadd.f32 %v12172_v13, %v1316_v59  ;;  %v2404_v52 = vld [vmem:[#allocation6 + $0x150] sm:$0xff]  ;;  %v2405_v53 = vld [vmem:[#allocation6 + $0x158] sm:$0xff]  ;;  %v2407_v59 = vld [vmem:[#allocation6 + $0x168] sm:$0xff] }
 0x1d1   : > { %v1430_v2 = vmax.f32 %v1322_v58, 0.0  ;;  %v12206_v3 = vld [vmem:[#allocation3 + $0xc9] sm:$0xff]  ;;  %v12237_v54 = vld [vmem:[#allocation3 + $0x40] sm:$0xff]  ;;  %v10334_v56 = vpack.c.bf16 %v2405_v53, %v2404_v52  ;;  %v2406_v58 = vld [vmem:[#allocation6 + $0x160] sm:$0xff] }
 0x1d2   : > { %v12208_v4 = vmax.f32 %v1834_v60, %v1836_v62  ;;  %v1429_v5 = vmax.f32 %v1317_v63, 0.0  ;;  %9579 = vmatmul.mubr.f32.gmra.mrb[24].mxu1 %v12206_v3  ;;  %v9509_v6 = vpop.f32.mrb[96].mxu0  ;;  %v12240_v57 = vld [vmem:[#allocation3 + $0x48] sm:$0xff]  ;;  %v12243_v60 = vld [vmem:[#allocation3 + $0x50] sm:$0xff]  ;;  %v10338_v61 = vpack.c.bf16 %v2407_v59, %v2406_v58  ;;  %v12246_v62 = vld [vmem:[#allocation3 + $0x58] sm:$0xff] }
 0x1d3   : > { %v1829_v7 = vld [vmem:[#allocation2 + $0x2cc] ss:$2 sm:$0x3f]  ;;  %v1833_v8 = vld [vmem:[#allocation2 + $0x2cd] ss:$2 sm:$0x3f]  ;;  %v1332_v9 = vadd.f32 %v12172_v13, %v9509_v6 }
 0x1d4   : > { %1528 = vst [vmem:[#allocation2 + $0x2f8] sm:$0xff] %v1430_v2  ;;  %1840 = vst [vmem:[#allocation3 + $0xd1] sm:$0xff] %v12208_v4  ;;  %v1837_v11 = vmax.f32 %v1829_v7, %v1833_v8  ;;  %v1326_v12 = vpop.f32.mrb[97].mxu0  ;;  %9581 = vmatprep.mubr.f32.mxu1 %v12208_v4  ;;  %v2408_v63 = vld [vmem:[#allocation6 + $0x170] sm:$0xff]  ;;  %v2409_v1 = vld [vmem:[#allocation6 + $0x178] sm:$0xff] }
 0x1d5   : > { %1527 = vst [vmem:[#allocation2 + $0x2f0] sm:$0xff] %v1429_v5  ;;  %v1432_v14 = vmax.f32 %v1332_v9, 0.0  ;;  %v1327_v15 = vadd.f32 %v12172_v13, %v1326_v12  ;;  %v12249_v2 = vld [vmem:[#allocation3 + $0x60] sm:$0xff]  ;;  %v10342_v5 = vpack.c.bf16 %v2409_v1, %v2408_v63  ;;  %v12252_v6 = vld [vmem:[#allocation3 + $0x68] sm:$0xff]  ;;  %v2672_v7 = vld [vmem:[#allocation6 + $0x180] sm:$0xff] }
 0x1d6   : > { %v1839_v16 = vmax.f32 %v1835_v10, %v1837_v11  ;;  %v2673_v8 = vld [vmem:[#allocation6 + $0x188] sm:$0xff]  ;;  %v12255_v9 = vld [vmem:[#allocation3 + $0x70] sm:$0xff]  ;;  %v2682_v52 = vld [vmem:[#allocation6 + $0x1d0] sm:$0xff] }
 0x1d7   : > { %1530 = vst [vmem:[#allocation2 + $0x308] sm:$0xff] %v1432_v14  ;;  %v1431_v17 = vmax.f32 %v1327_v15, 0.0  ;;  %v1843_v21 = vld [vmem:[#allocation2 + $0x2d8] ss:$2 sm:$0xff]  ;;  %v1847_v22 = vld [vmem:[#allocation2 + $0x2d9] ss:$2 sm:$0xff]  ;;  %v10346_v10 = vpack.c.bf16 %v2673_v8, %v2672_v7 }
 0x1d8   : > { %1841 = vst [vmem:[#allocation3 + $0xd9] sm:$0x3f] %v1839_v16  ;;  %v1858_v13 = vmax.f32 %v1843_v21, %v1847_v22  ;;  %v12258_v11 = vld [vmem:[#allocation3 + $0x78] sm:$0xff]  ;;  %v12261_v12 = vld [vmem:[#allocation3 + $0x80] sm:$0xff]  ;;  %v12264_v14 = vld [vmem:[#allocation3 + $0x88] sm:$0xff] }
 0x1d9   : > { %1529 = vst [vmem:[#allocation2 + $0x300] sm:$0xff] %v1431_v17  ;;  %v12267_v15 = vld [vmem:[#allocation3 + $0x90] sm:$0xff]  ;;  %v12270_v16 = vld [vmem:[#allocation3 + $0x98] sm:$0xff]  ;;  %v12273_v17 = vld [vmem:[#allocation3 + $0xa0] sm:$0xff] }
 0x1da   : > { %v12285_v20 = vld [vmem:[#allocation3 + $0xc0] sm:$0xff]  ;;  %v12288_v21 = vld [vmem:[#allocation3 + $0xc8] sm:$0xff]  ;;  %v12306_v47 = vld [vmem:[#allocation3 + $0x32] sm:$0xff] }
 0x1db   : > { %15573 = vst [vmem:[#allocation12_spill] sm:$0xff] %v12288_v21  ;;  %v12291_v22 = vld [vmem:[#allocation3 + $0xd0] sm:$0xff]  ;;  %v2685_v63 = vld [vmem:[#allocation6 + $0x1e8] sm:$0xff]  ;;  %v2686_v8 = vld [vmem:[#allocation6 + $0x1f0] sm:$0xff] }
 0x1dc   : > { %v1845_v18 = vld [vmem:[#allocation2 + $0x2e8] ss:$2 sm:$0x3f]  ;;  %v1849_v19 = vld [vmem:[#allocation2 + $0x2e9] ss:$2 sm:$0x3f] }
 0x1dd   : > { %v1859_v24 = vmax.f32 %v1845_v18, %v1849_v19  ;;  %v12276_v18 = vld [vmem:[#allocation3 + $0xa8] sm:$0xff]  ;;  %v12279_v19 = vld [vmem:[#allocation3 + $0xb0] sm:$0xff]  ;;  %15574 = vst [vmem:[#allocation13_spill] sm:$0xff] %v12291_v22  ;;  %v12321_v7 = vld [vmem:[#allocation3 + $0x5a] sm:$0xff] }
 0x1de   : > { %v2679_v35 = vld [vmem:[#allocation6 + $0x1b8] sm:$0xff]  ;;  %v12318_v1 = vld [vmem:[#allocation3 + $0x52] sm:$0xff] }
 0x1df   : > { %v1937_v23 = vld [vmem:[#allocation3 + $0xd9] sm:$0x3f]  ;;  %v2683_v53 = vld [vmem:[#allocation6 + $0x1d8] sm:$0xff] }
 0x1e0   : > { %v1851_v26 = vld [vmem:[#allocation2 + $0x2f4] ss:$2 sm:$0xff]  ;;  %v1853_v27 = vld [vmem:[#allocation2 + $0x304] ss:$2 sm:$0x3f]  ;;  %9582 = vmatmul.mubr.f32.gmra.mrb[26].mxu1 %v1937_v23  ;;  %v10366_v58 = vpack.c.bf16 %v2683_v53, %v2682_v52 }
 0x1e1   : > { %v1855_v28 = vld [vmem:[#allocation2 + $0x2f5] ss:$2 sm:$0xff]  ;;  %v1857_v29 = vld [vmem:[#allocation2 + $0x305] ss:$2 sm:$0x3f]  ;;  %9616 = vmatprep.mubr.f32.mxu1 %v11636_v30 }
 0x1e2   : > { %v1860_v31 = vmax.f32 %v1851_v26, %v1855_v28  ;;  %v1861_v32 = vmax.f32 %v1853_v27, %v1857_v29  ;;  %v2365_v23 = vld [vmem:[#allocation3 + $0x2] sm:$0xff]  ;;  %v2366_v29 = vld [vmem:[#allocation3 + $0xa] sm:$0xff]  ;;  %v12357_v52 = vld [vmem:[#allocation3 + $0xba] sm:$0xff] }
 0x1e3   : > { %v2674_v26 = vld [vmem:[#allocation6 + $0x190] sm:$0xff]  ;;  %v2675_v27 = vld [vmem:[#allocation6 + $0x198] sm:$0xff] }
 0x1e4   : > { %v12215_v36 = vmax.f32 %v1858_v13, %v1860_v31  ;;  %v1863_v37 = vmax.f32 %v1859_v24, %v1861_v32  ;;  %9617 = vmatmul.mubr.f32.vlgmr.msra.gmra.mrb[0].mxu1 %v11636_v30  ;;  %v1893_v24 = vld [vmem:[#allocation3 + $0xd8] sm:$0x3f]  ;;  %v10350_v28 = vpack.c.bf16 %v2675_v27, %v2674_v26  ;;  %v12315_v59 = vld [vmem:[#allocation3 + $0x4a] sm:$0xff]  ;;  %v12360_v53 = vld [vmem:[#allocation3 + $0xc2] sm:$0xff] }
 0x1e5   : > { %10317 = vmatpush3.bf16.msra.mxu1 %v12135_v41  ;;  %9619 = vmatprep.mubr.f32.mxu1 %v12217_v38  ;;  %v10326_v41 = vpack.c.bf16 %v2401_v44, %v2400_v43  ;;  %v2676_v30 = vld [vmem:[#allocation6 + $0x1a0] sm:$0xff]  ;;  %v2677_v13 = vld [vmem:[#allocation6 + $0x1a8] sm:$0xff]  ;;  %15575 = vst [vmem:[#allocation14_spill] sm:$0xff] %v12360_v53 }
 0x1e6   : > { %1864 = vst [vmem:[#allocation3 + $0xe1] sm:$0xff] %v12215_v36  ;;  %1865 = vst [vmem:[#allocation3 + $0xe9] sm:$0x3f] %v1863_v37  ;;  %10319 = vmatprep.subr.bf16.mxu1 %v10318_v33  ;;  %v12294_v31 = vld [vmem:[#allocation3 + $0x12] sm:$0xff]  ;;  %v10354_v32 = vpack.c.bf16 %v2677_v13, %v2676_v30  ;;  %v12300_v37 = vld [vmem:[#allocation3 + $0x22] sm:$0xff] }
 0x1e7   : > { %v12303_v43 = vld [vmem:[#allocation3 + $0x2a] sm:$0xff]  ;;  %v12333_v13 = vld [vmem:[#allocation3 + $0x7a] sm:$0xff] }
 0x1e8   : > { %9620 = vmatmul.mubr.f32.gmra.mrb[2].mxu1 %v12222_v42  ;;  %v2680_v44 = vld [vmem:[#allocation6 + $0x1c0] sm:$0xff] }
 0x1e9   : > { %9622 = vmatprep.mubr.f32.mxu1 %v12225_v45  ;;  %10321 = vmatpush3.bf16.msra.mxu1 %v10318_v33  ;;  %v12297_v33 = vld [vmem:[#allocation3 + $0x1a] sm:$0xff]  ;;  %v12327_v26 = vld [vmem:[#allocation3 + $0x6a] sm:$0xff] }
 0x1ea   : > { %10323 = vmatprep.subr.bf16.mxu1 %v10322_v39  ;;  %v2950_v27 = vld [vmem:[#allocation6 + $0x200] sm:$0xff] }
 0x1ec   : > { %9623 = vmatmul.mubr.f32.gmra.mrb[4].mxu1 %v12228_v46 }
 0x1ed   : > { %9625 = vmatprep.mubr.f32.mxu1 %v12231_v49  ;;  %10325 = vmatpush3.bf16.msra.mxu1 %v10322_v39  ;;  %v10358_v39 = vpack.c.bf16 %v2679_v35, %v2678_v34  ;;  %v12339_v34 = vld [vmem:[#allocation3 + $0x8a] sm:$0xff]  ;;  %v12342_v35 = vld [vmem:[#allocation3 + $0x92] sm:$0xff] }
 0x1ee   : > { %10327 = vmatprep.subr.bf16.mxu1 %v10326_v41 }
 0x1f0   : > { %9626 = vmatmul.mubr.f32.gmra.mrb[6].mxu1 %v12234_v51 }
 0x1f1   : > { %9628 = vmatprep.mubr.f32.mxu1 %v12237_v54  ;;  %10329 = vmatpush3.bf16.msra.mxu1 %v10326_v41  ;;  %v2681_v41 = vld [vmem:[#allocation6 + $0x1c8] sm:$0xff] }
 0x1f2   : > { %10331 = vmatprep.subr.bf16.mxu1 %v10330_v50  ;;  %v10362_v48 = vpack.c.bf16 %v2681_v41, %v2680_v44  ;;  %v12348_v44 = vld [vmem:[#allocation3 + $0xa2] sm:$0xff]  ;;  %v12351_v41 = vld [vmem:[#allocation3 + $0xaa] sm:$0xff] }
 0x1f4   : > { %9629 = vmatmul.mubr.f32.gmra.mrb[8].mxu1 %v12240_v57 }
 0x1f5   : > { %9631 = vmatprep.mubr.f32.mxu1 %v12243_v60  ;;  %10333 = vmatpush3.bf16.msra.mxu1 %v10330_v50  ;;  %v12309_v50 = vld [vmem:[#allocation3 + $0x3a] sm:$0xff] }
 0x1f6   : > { %10335 = vmatprep.subr.bf16.mxu1 %v10334_v56 }
 0x1f8   : > { %9632 = vmatmul.mubr.f32.gmra.mrb[10].mxu1 %v12246_v62 }
 0x1f9   : > { %9634 = vmatprep.mubr.f32.mxu1 %v12249_v2  ;;  %10337 = vmatpush3.bf16.msra.mxu1 %v10334_v56  ;;  %v12312_v56 = vld [vmem:[#allocation3 + $0x42] sm:$0xff] }
 0x1fa   : > { %10339 = vmatprep.subr.bf16.mxu1 %v10338_v61 }
 0x1fc   : > { %9635 = vmatmul.mubr.f32.gmra.mrb[12].mxu1 %v12252_v6 }
 0x1fd   : > { %9637 = vmatprep.mubr.f32.mxu1 %v12255_v9  ;;  %10341 = vmatpush3.bf16.msra.mxu1 %v10338_v61  ;;  %v2684_v61 = vld [vmem:[#allocation6 + $0x1e0] sm:$0xff] }
 0x1fe   : > { %10343 = vmatprep.subr.bf16.mxu1 %v10342_v5 }
 0x200   : > { %9638 = vmatmul.mubr.f32.gmra.mrb[14].mxu1 %v12258_v11 }
 0x201   : > { %9640 = vmatprep.mubr.f32.mxu1 %v12261_v12  ;;  %10345 = vmatpush3.bf16.msra.mxu1 %v10342_v5  ;;  %v10370_v5 = vpack.c.bf16 %v2685_v63, %v2684_v61  ;;  %v12366_v61 = vld [vmem:[#allocation3 + $0xd2] sm:$0xff]  ;;  %v2392_v63 = vld [vmem:[#allocation3 + $0xda] sm:$0x3f] }
 0x202   : > { %10347 = vmatprep.subr.bf16.mxu1 %v10346_v10 }
 0x204   : > { %9641 = vmatmul.mubr.f32.gmra.mrb[16].mxu1 %v12264_v14 }
 0x205   : > { %9643 = vmatprep.mubr.f32.mxu1 %v12267_v15 }
 0x208   : > { %9644 = vmatmul.mubr.f32.gmra.mrb[18].mxu1 %v12270_v16 }
 0x209   : > { %9646 = vmatprep.mubr.f32.mxu1 %v12273_v17 }
 0x20c   : > { %9647 = vmatmul.mubr.f32.gmra.mrb[20].mxu1 %v12276_v18 }
 0x20d   : > { %9649 = vmatprep.mubr.f32.mxu1 %v12279_v19 }
 0x210   : > { %9650 = vmatmul.mubr.f32.gmra.mrb[22].mxu1 %v12282_v0 }
 0x211   : > { %9652 = vmatprep.mubr.f32.mxu1 %v12285_v20 }
 0x214   : > { %9653 = vmatmul.mubr.f32.gmra.mrb[24].mxu1 %v12288_v21 }
 0x215   : > { %9655 = vmatprep.mubr.f32.mxu1 %v12291_v22 }
 0x218   : > { %9656 = vmatmul.mubr.f32.gmra.mrb[26].mxu1 %v1893_v24 }
 0x219   : > { %9690 = vmatprep.mubr.f32.mxu1 %v2365_v23  ;;  %v12324_v23 = vld [vmem:[#allocation3 + $0x62] sm:$0xff] }
 0x21c   : > { %9691 = vmatmul.mubr.f32.vlgmr.msra.gmra.mrb[0].mxu1 %v2366_v29  ;;  %v12330_v29 = vld [vmem:[#allocation3 + $0x72] sm:$0xff] }
 0x21d   : > { %10349 = vmatpush3.bf16.msra.mxu1 %v10346_v10  ;;  %9693 = vmatprep.mubr.f32.mxu1 %v12294_v31  ;;  %v2687_v10 = vld [vmem:[#allocation6 + $0x1f8] sm:$0xff] }
 0x21e   : > { %10351 = vmatprep.subr.bf16.mxu1 %v10350_v28  ;;  %v10374_v24 = vpack.c.bf16 %v2687_v10, %v2686_v8  ;;  %v2953_v8 = vld [vmem:[#allocation6 + $0x218] sm:$0xff] }
 0x220   : > { %9694 = vmatmul.mubr.f32.gmra.mrb[2].mxu1 %v12297_v33 }
 0x221   : > { %9696 = vmatprep.mubr.f32.mxu1 %v12300_v37  ;;  %10353 = vmatpush3.bf16.msra.mxu1 %v10350_v28  ;;  %v2951_v28 = vld [vmem:[#allocation6 + $0x208] sm:$0xff] }
 0x222   : > { %10355 = vmatprep.subr.bf16.mxu1 %v10354_v32  ;;  %v10378_v30 = vpack.c.bf16 %v2951_v28, %v2950_v27  ;;  %v2955_v27 = vld [vmem:[#allocation6 + $0x228] sm:$0xff] }
 0x224   : > { %9697 = vmatmul.mubr.f32.gmra.mrb[4].mxu1 %v12303_v43 }
 0x225   : > { %9699 = vmatprep.mubr.f32.mxu1 %v12306_v47  ;;  %10357 = vmatpush3.bf16.msra.mxu1 %v10354_v32  ;;  %v12336_v32 = vld [vmem:[#allocation3 + $0x82] sm:$0xff] }
 0x226   : > { %10359 = vmatprep.subr.bf16.mxu1 %v10358_v39 }
 0x228   : > { %9700 = vmatmul.mubr.f32.gmra.mrb[6].mxu1 %v12309_v50 }
 0x229   : > { %9702 = vmatprep.mubr.f32.mxu1 %v12312_v56  ;;  %10361 = vmatpush3.bf16.msra.mxu1 %v10358_v39  ;;  %v12345_v39 = vld [vmem:[#allocation3 + $0x9a] sm:$0xff] }
 0x22a   : > { %10363 = vmatprep.subr.bf16.mxu1 %v10362_v48 }
 0x22c   : > { %9703 = vmatmul.mubr.f32.gmra.mrb[8].mxu1 %v12315_v59 }
 0x22d   : > { %9705 = vmatprep.mubr.f32.mxu1 %v12318_v1  ;;  %10365 = vmatpush3.bf16.msra.mxu1 %v10362_v48  ;;  %v12354_v48 = vld [vmem:[#allocation3 + $0xb2] sm:$0xff] }
 0x22e   : > { %10367 = vmatprep.subr.bf16.mxu1 %v10366_v58 }
 0x230   : > { %9706 = vmatmul.mubr.f32.gmra.mrb[10].mxu1 %v12321_v7 }
 0x231   : > { %9708 = vmatprep.mubr.f32.mxu1 %v12324_v23  ;;  %10369 = vmatpush3.bf16.msra.mxu1 %v10366_v58  ;;  %v12363_v58 = vld [vmem:[#allocation3 + $0xca] sm:$0xff] }
 0x232   : > { %10371 = vmatprep.subr.bf16.mxu1 %v10370_v5  ;;  %15576 = vst [vmem:[#allocation15_spill] sm:$0xff] %v12363_v58 }
 0x234   : > { %9709 = vmatmul.mubr.f32.gmra.mrb[12].mxu1 %v12327_v26 }
 0x235   : > { %9711 = vmatprep.mubr.f32.mxu1 %v12330_v29  ;;  %10373 = vmatpush3.bf16.msra.mxu1 %v10370_v5  ;;  %v2952_v5 = vld [vmem:[#allocation6 + $0x210] sm:$0xff] }
 0x236   : > { %10375 = vmatprep.subr.bf16.mxu1 %v10374_v24  ;;  %v10382_v10 = vpack.c.bf16 %v2953_v8, %v2952_v5  ;;  %v2959_v5 = vld [vmem:[#allocation6 + $0x248] sm:$0xff]  ;;  %v2961_v8 = vld [vmem:[#allocation6 + $0x258] sm:$0xff] }
 0x238   : > { %9712 = vmatmul.mubr.f32.gmra.mrb[14].mxu1 %v12333_v13 }
 0x239   : > { %9714 = vmatprep.mubr.f32.mxu1 %v12336_v32  ;;  %10377 = vmatpush3.bf16.msra.mxu1 %v10374_v24  ;;  %v2954_v24 = vld [vmem:[#allocation6 + $0x220] sm:$0xff] }
 0x23a   : > { %10379 = vmatprep.subr.bf16.mxu1 %v10378_v30  ;;  %v10386_v28 = vpack.c.bf16 %v2955_v27, %v2954_v24  ;;  %v2962_v24 = vld [vmem:[#allocation6 + $0x260] sm:$0xff]  ;;  %v2964_v27 = vld [vmem:[#allocation6 + $0x270] sm:$0xff] }
 0x23c   : > { %9715 = vmatmul.mubr.f32.gmra.mrb[16].mxu1 %v12339_v34 }
 0x23d   : > { %9717 = vmatprep.mubr.f32.mxu1 %v12342_v35 }
 0x240   : > { %9718 = vmatmul.mubr.f32.gmra.mrb[18].mxu1 %v12345_v39 }
 0x241   : > { %9720 = vmatprep.mubr.f32.mxu1 %v12348_v44 }
 0x244   : > { %9721 = vmatmul.mubr.f32.gmra.mrb[20].mxu1 %v12351_v41 }
 0x245   : > { %9723 = vmatprep.mubr.f32.mxu1 %v12354_v48 }
 0x248   : > { %9724 = vmatmul.mubr.f32.gmra.mrb[22].mxu1 %v12357_v52 }
 0x249   : > { %9726 = vmatprep.mubr.f32.mxu1 %v12360_v53  ;;  %v2957_v53 = vld [vmem:[#allocation6 + $0x238] sm:$0xff] }
 0x24c   : > { %9727 = vmatmul.mubr.f32.gmra.mrb[24].mxu1 %v12363_v58  ;;  %v2956_v58 = vld [vmem:[#allocation6 + $0x230] sm:$0xff] }
 0x24d   : > { %9729 = vmatprep.mubr.f32.mxu1 %v12366_v61 }
 0x250   : > { %9730 = vmatmul.mubr.f32.gmra.mrb[26].mxu1 %v2392_v63  ;;  %v10390_v63 = vpack.c.bf16 %v2957_v53, %v2956_v58  ;;  %v2963_v53 = vld [vmem:[#allocation6 + $0x268] sm:$0xff] }
 0x251   : > { %9764 = vmatprep.mubr.f32.mxu1 %v12217_v38  ;;  %v2958_v38 = vld [vmem:[#allocation6 + $0x240] sm:$0xff]  ;;  %v10402_v58 = vpack.c.bf16 %v2963_v53, %v2962_v24  ;;  %v3230_v24 = vld [vmem:[#allocation6 + $0x290] sm:$0xff]  ;;  %v3231_v53 = vld [vmem:[#allocation6 + $0x298] sm:$0xff] }
 0x254   : > { %9765 = vmatmul.mubr.f32.vlgmr.msra.gmra.mrb[0].mxu1 %v12222_v42  ;;  %v10394_v42 = vpack.c.bf16 %v2959_v5, %v2958_v38  ;;  %v3228_v38 = vld [vmem:[#allocation6 + $0x280] sm:$0xff]  ;;  %v3229_v5 = vld [vmem:[#allocation6 + $0x288] sm:$0xff] }
 0x255   : > { %10381 = vmatpush3.bf16.msra.mxu1 %v10378_v30  ;;  %9767 = vmatprep.mubr.f32.mxu1 %v12225_v45  ;;  %v2960_v30 = vld [vmem:[#allocation6 + $0x250] sm:$0xff] }
 0x256   : > { %10383 = vmatprep.subr.bf16.mxu1 %v10382_v10 }
 0x258   : > { %9768 = vmatmul.mubr.f32.gmra.mrb[2].mxu1 %v12228_v46 }
 0x259   : > { %9770 = vmatprep.mubr.f32.mxu1 %v12231_v49  ;;  %10385 = vmatpush3.bf16.msra.mxu1 %v10382_v10  ;;  %v10398_v10 = vpack.c.bf16 %v2961_v8, %v2960_v30  ;;  %v12394_v30 = vld [vmem:[#allocation3 + $0xd8] sm:$0xff]  ;;  %v12397_v8 = vld [vmem:[#allocation3 + $0xe0] sm:$0xff] }
 0x25a   : > { %10387 = vmatprep.subr.bf16.mxu1 %v10386_v28  ;;  %15577 = vst [vmem:[#allocation16_spill] sm:$0xff] %v12394_v30  ;;  %15578 = vst [vmem:[#allocation17_spill] sm:$0xff] %v12397_v8 }
 0x25c   : > { %9771 = vmatmul.mubr.f32.gmra.mrb[4].mxu1 %v12234_v51 }
 0x25d   : > { %9773 = vmatprep.mubr.f32.mxu1 %v12237_v54  ;;  %10389 = vmatpush3.bf16.msra.mxu1 %v10386_v28  ;;  %v2965_v28 = vld [vmem:[#allocation6 + $0x278] sm:$0xff] }
 0x25e   : > { %10391 = vmatprep.subr.bf16.mxu1 %v10390_v63 }
 0x260   : > { %9774 = vmatmul.mubr.f32.gmra.mrb[6].mxu1 %v12240_v57 }
 0x261   : > { %9776 = vmatprep.mubr.f32.mxu1 %v12243_v60  ;;  %10393 = vmatpush3.bf16.msra.mxu1 %v10390_v63  ;;  %v10406_v63 = vpack.c.bf16 %v2965_v28, %v2964_v27  ;;  %v10414_v27 = vpack.c.bf16 %v3231_v53, %v3230_v24  ;;  %v2922_v28 = vld [vmem:[#allocation3 + $0x19] sm:$0xff] }
 0x262   : > { %10395 = vmatprep.subr.bf16.mxu1 %v10394_v42  ;;  %v12409_v53 = vld [vmem:[#allocation3 + $0x39] sm:$0xff] }
 0x263   : > { %15581 = vst [vmem:[#allocation20_spill] sm:$0xff] %v12409_v53 }
 0x264   : > { %9777 = vmatmul.mubr.f32.gmra.mrb[8].mxu1 %v12246_v62 }
 0x265   : > { %9779 = vmatprep.mubr.f32.mxu1 %v12249_v2  ;;  %10397 = vmatpush3.bf16.msra.mxu1 %v10394_v42  ;;  %v10410_v42 = vpack.c.bf16 %v3229_v5, %v3228_v38  ;;  %v3233_v38 = vld [vmem:[#allocation6 + $0x2a8] sm:$0xff]  ;;  %v12400_v5 = vld [vmem:[#allocation3 + $0x21] sm:$0xff] }
 0x266   : > { %10399 = vmatprep.subr.bf16.mxu1 %v10398_v10 }
 0x268   : > { %9780 = vmatmul.mubr.f32.gmra.mrb[10].mxu1 %v12252_v6 }
 0x269   : > { %9782 = vmatprep.mubr.f32.mxu1 %v12255_v9  ;;  %10401 = vmatpush3.bf16.msra.mxu1 %v10398_v10  ;;  %v2670_v10 = vld [vmem:[#allocation3 + $0xe8] sm:$0x3f] }
 0x26a   : > { %10403 = vmatprep.subr.bf16.mxu1 %v10402_v58 }
 0x26c   : > { %9783 = vmatmul.mubr.f32.gmra.mrb[12].mxu1 %v12258_v11 }
 0x26d   : > { %9785 = vmatprep.mubr.f32.mxu1 %v12261_v12  ;;  %10405 = vmatpush3.bf16.msra.mxu1 %v10402_v58  ;;  %v2921_v58 = vld [vmem:[#allocation3 + $0x11] sm:$0xff] }
 0x26e   : > { %10407 = vmatprep.subr.bf16.mxu1 %v10406_v63 }
 0x270   : > { %9786 = vmatmul.mubr.f32.gmra.mrb[14].mxu1 %v12264_v14 }
 0x271   : > { %9788 = vmatprep.mubr.f32.mxu1 %v12267_v15  ;;  %10409 = vmatpush3.bf16.msra.mxu1 %v10406_v63  ;;  %v3232_v63 = vld [vmem:[#allocation6 + $0x2a0] sm:$0xff] }
 0x272   : > { %10411 = vmatprep.subr.bf16.mxu1 %v10410_v42 }
 0x274   : > { %9789 = vmatmul.mubr.f32.gmra.mrb[16].mxu1 %v12270_v16 }
 0x275   : > { %9791 = vmatprep.mubr.f32.mxu1 %v12273_v17 }
 0x278   : > { %9792 = vmatmul.mubr.f32.gmra.mrb[18].mxu1 %v12276_v18 }
 0x279   : > { %9794 = vmatprep.mubr.f32.mxu1 %v12279_v19 }
 0x27c   : > { %9795 = vmatmul.mubr.f32.gmra.mrb[20].mxu1 %v12282_v0 }
 0x27d   : > { %9797 = vmatprep.mubr.f32.mxu1 %v12285_v20 }
 0x280   : > { %9798 = vmatmul.mubr.f32.gmra.mrb[22].mxu1 %v12288_v21  ;;  %v3235_v21 = vld [vmem:[#allocation6 + $0x2b8] sm:$0xff] }
 0x281   : > { %9800 = vmatprep.mubr.f32.mxu1 %v12291_v22  ;;  %v12403_v22 = vld [vmem:[#allocation3 + $0x29] sm:$0xff] }
 0x282   : > { %15579 = vst [vmem:[#allocation18_spill] sm:$0xff] %v12403_v22 }
 0x284   : > { %9801 = vmatmul.mubr.f32.gmra.mrb[24].mxu1 %v12394_v30  ;;  %v10418_v30 = vpack.c.bf16 %v3233_v38, %v3232_v63  ;;  %v12415_v38 = vld [vmem:[#allocation3 + $0x49] sm:$0xff] }
 0x285   : > { %9803 = vmatprep.mubr.f32.mxu1 %v12397_v8  ;;  %v3234_v8 = vld [vmem:[#allocation6 + $0x2b0] sm:$0xff]  ;;  %15583 = vst [vmem:[#allocation22_spill] sm:$0xff] %v12415_v38 }
 0x286   : > { %v10422_v24 = vpack.c.bf16 %v3235_v21, %v3234_v8  ;;  %v12418_v21 = vld [vmem:[#allocation3 + $0x51] sm:$0xff] }
 0x287   : > { %15584 = vst [vmem:[#allocation23_spill] sm:$0xff] %v12418_v21 }
 0x288   : > { %9804 = vmatmul.mubr.f32.gmra.mrb[26].mxu1 %v2670_v10  ;;  %v12406_v10 = vld [vmem:[#allocation3 + $0x31] sm:$0xff] }
 0x289   : > { %9838 = vmatprep.mubr.f32.mxu1 %v2921_v58  ;;  %15580 = vst [vmem:[#allocation19_spill] sm:$0xff] %v12406_v10  ;;  %v3237_v58 = vld [vmem:[#allocation6 + $0x2c8] sm:$0xff] }
 0x28c   : > { %9839 = vmatmul.mubr.f32.vlgmr.msra.gmra.mrb[0].mxu1 %v2922_v28  ;;  %v12412_v28 = vld [vmem:[#allocation3 + $0x41] sm:$0xff] }
 0x28d   : > { %10413 = vmatpush3.bf16.msra.mxu1 %v10410_v42  ;;  %9841 = vmatprep.mubr.f32.mxu1 %v12400_v5  ;;  %v3236_v42 = vld [vmem:[#allocation6 + $0x2c0] sm:$0xff]  ;;  %15582 = vst [vmem:[#allocation21_spill] sm:$0xff] %v12412_v28 }
 0x28e   : > { %10415 = vmatprep.subr.bf16.mxu1 %v10414_v27  ;;  %v10426_v63 = vpack.c.bf16 %v3237_v58, %v3236_v42  ;;  %v12427_v58 = vld [vmem:[#allocation3 + $0x69] sm:$0xff] }
 0x290   : > { %9842 = vmatmul.mubr.f32.gmra.mrb[2].mxu1 %v12403_v22  ;;  %v3238_v22 = vld [vmem:[#allocation6 + $0x2d0] sm:$0xff] }
 0x291   : > { %9844 = vmatprep.mubr.f32.mxu1 %v12406_v10  ;;  %10417 = vmatpush3.bf16.msra.mxu1 %v10414_v27  ;;  %v3239_v10 = vld [vmem:[#allocation6 + $0x2d8] sm:$0xff]  ;;  %v12421_v27 = vld [vmem:[#allocation3 + $0x59] sm:$0xff] }
 0x292   : > { %10419 = vmatprep.subr.bf16.mxu1 %v10418_v30  ;;  %v10430_v8 = vpack.c.bf16 %v3239_v10, %v3238_v22  ;;  %15585 = vst [vmem:[#allocation24_spill] sm:$0xff] %v12421_v27  ;;  %v12430_v22 = vld [vmem:[#allocation3 + $0x71] sm:$0xff] }
 0x294   : > { %9845 = vmatmul.mubr.f32.gmra.mrb[4].mxu1 %v12409_v53  ;;  %v3240_v53 = vld [vmem:[#allocation6 + $0x2e0] sm:$0xff] }
 0x295   : > { %9847 = vmatprep.mubr.f32.mxu1 %v12412_v28  ;;  %10421 = vmatpush3.bf16.msra.mxu1 %v10418_v30  ;;  %v3241_v28 = vld [vmem:[#allocation6 + $0x2e8] sm:$0xff]  ;;  %v12424_v30 = vld [vmem:[#allocation3 + $0x61] sm:$0xff] }
 0x296   : > { %10423 = vmatprep.subr.bf16.mxu1 %v10422_v24  ;;  %15586 = vst [vmem:[#allocation25_spill] sm:$0xff] %v12424_v30  ;;  %v10434_v42 = vpack.c.bf16 %v3241_v28, %v3240_v53  ;;  %v12436_v53 = vld [vmem:[#allocation3 + $0x81] sm:$0xff] }
 0x298   : > { %9848 = vmatmul.mubr.f32.gmra.mrb[6].mxu1 %v12415_v38  ;;  %v3242_v38 = vld [vmem:[#allocation6 + $0x2f0] sm:$0xff] }
 0x299   : > { %9850 = vmatprep.mubr.f32.mxu1 %v12418_v21  ;;  %10425 = vmatpush3.bf16.msra.mxu1 %v10422_v24  ;;  %v3243_v21 = vld [vmem:[#allocation6 + $0x2f8] sm:$0xff]  ;;  %v12433_v24 = vld [vmem:[#allocation3 + $0x79] sm:$0xff] }
 0x29a   : > { %10427 = vmatprep.subr.bf16.mxu1 %v10426_v63  ;;  %v10438_v10 = vpack.c.bf16 %v3243_v21, %v3242_v38  ;;  %v12445_v38 = vld [vmem:[#allocation3 + $0x99] sm:$0xff]  ;;  %v12448_v21 = vld [vmem:[#allocation3 + $0xa1] sm:$0xff] }
 0x29b   : > { %15587 = vst [vmem:[#allocation26_spill] sm:$0xff] %v12448_v21 }
 0x29c   : > { %9851 = vmatmul.mubr.f32.gmra.mrb[8].mxu1 %v12421_v27  ;;  %v3506_v27 = vld [vmem:[#allocation6 + $0x300] sm:$0xff] }
 0x29d   : > { %9853 = vmatprep.mubr.f32.mxu1 %v12424_v30  ;;  %10429 = vmatpush3.bf16.msra.mxu1 %v10426_v63  ;;  %v3507_v30 = vld [vmem:[#allocation6 + $0x308] sm:$0xff]  ;;  %v12439_v63 = vld [vmem:[#allocation3 + $0x89] sm:$0xff] }
 0x29e   : > { %10431 = vmatprep.subr.bf16.mxu1 %v10430_v8  ;;  %v10442_v28 = vpack.c.bf16 %v3507_v30, %v3506_v27  ;;  %v12452_v27 = vld [vmem:[#allocation3 + $0xb1] sm:$0xff]  ;;  %v12459_v30 = vld [vmem:[#allocation3 + $0xd9] sm:$0xff] }
 0x29f   : > { %15588 = vst [vmem:[#allocation27_spill] sm:$0xff] %v12452_v27 }
 0x2a0   : > { %9854 = vmatmul.mubr.f32.gmra.mrb[10].mxu1 %v12427_v58 }
 0x2a1   : > { %9856 = vmatprep.mubr.f32.mxu1 %v12430_v22  ;;  %10433 = vmatpush3.bf16.msra.mxu1 %v10430_v8  ;;  %v12442_v8 = vld [vmem:[#allocation3 + $0x91] sm:$0xff] }
 0x2a2   : > { %10435 = vmatprep.subr.bf16.mxu1 %v10434_v42 }
 0x2a4   : > { %9857 = vmatmul.mubr.f32.gmra.mrb[12].mxu1 %v12433_v24 }
 0x2a5   : > { %9859 = vmatprep.mubr.f32.mxu1 %v12436_v53  ;;  %10437 = vmatpush3.bf16.msra.mxu1 %v10434_v42  ;;  %v2948_v42 = vld [vmem:[#allocation3 + $0xe9] sm:$0x3f] }
 0x2a6   : > { %10439 = vmatprep.subr.bf16.mxu1 %v10438_v10 }
 0x2a8   : > { %9860 = vmatmul.mubr.f32.gmra.mrb[14].mxu1 %v12439_v63 }
 0x2a9   : > { %9862 = vmatprep.mubr.f32.mxu1 %v12442_v8  ;;  %10441 = vmatpush3.bf16.msra.mxu1 %v10438_v10  ;;  %v3509_v10 = vld [vmem:[#allocation6 + $0x318] sm:$0xff] }
 0x2aa   : > { %10443 = vmatprep.subr.bf16.mxu1 %v10442_v28 }
 0x2ac   : > { %9863 = vmatmul.mubr.f32.gmra.mrb[16].mxu1 %v12445_v38 }
 0x2ad   : > { %9865 = vmatprep.mubr.f32.mxu1 %v12448_v21  ;;  %v3511_v21 = vld [vmem:[#allocation6 + $0x328] sm:$0xff] }
 0x2b0   : > { %9866 = vmatmul.mubr.f32.gmra.mrb[18].mxu1 %v12182_v55  ;;  %v3508_v55 = vld [vmem:[#allocation6 + $0x310] sm:$0xff] }
 0x2b1   : > { %9868 = vmatprep.mubr.f32.mxu1 %v12452_v27  ;;  %v10446_v27 = vpack.c.bf16 %v3509_v10, %v3508_v55  ;;  %v3785_v55 = vld [vmem:[#allocation6 + $0x388] sm:$0xff] }
 0x2b4   : > { %9869 = vmatmul.mubr.f32.gmra.mrb[20].mxu1 %v12192_v25  ;;  %v3510_v25 = vld [vmem:[#allocation6 + $0x320] sm:$0xff] }
 0x2b5   : > { %9871 = vmatprep.mubr.f32.mxu1 %v12197_v40  ;;  %v10450_v40 = vpack.c.bf16 %v3511_v21, %v3510_v25  ;;  %v3519_v21 = vld [vmem:[#allocation6 + $0x368] sm:$0xff] }
 0x2b6   : > { %v3793_v25 = vld [vmem:[#allocation6 + $0x3c8] sm:$0xff] }
 0x2b8   : > { %9872 = vmatmul.mubr.f32.gmra.mrb[22].mxu1 %v12206_v3  ;;  %v3512_v3 = vld [vmem:[#allocation6 + $0x330] sm:$0xff] }
 0x2b9   : > { %9874 = vmatprep.mubr.f32.mxu1 %v12208_v4  ;;  %v3513_v4 = vld [vmem:[#allocation6 + $0x338] sm:$0xff] }
 0x2bc   : > { %9875 = vmatmul.mubr.f32.gmra.mrb[24].mxu1 %v12459_v30 }
 0x2bd   : > { %9877 = vmatprep.mubr.f32.mxu1 %v12215_v36  ;;  %v10454_v36 = vpack.c.bf16 %v3513_v4, %v3512_v3  ;;  %v3797_v3 = vld [vmem:[#allocation6 + $0x3e8] sm:$0xff]  ;;  %v3799_v4 = vld [vmem:[#allocation6 + $0x3f8] sm:$0xff] }
 0x2c0   : > { %9878 = vmatmul.mubr.f32.gmra.mrb[26].mxu1 %v2948_v42  ;;  %v3515_v42 = vld [vmem:[#allocation6 + $0x348] sm:$0xff] }
 0x2c1   : > { %9912 = vmatprep.mubr.f32.mxu1 %v12294_v31  ;;  %v3514_v31 = vld [vmem:[#allocation6 + $0x340] sm:$0xff] }
 0x2c4   : > { %9913 = vmatmul.mubr.f32.vlgmr.msra.gmra.mrb[0].mxu1 %v12297_v33  ;;  %v10458_v33 = vpack.c.bf16 %v3515_v42, %v3514_v31  ;;  %v4942_v31 = vld [vmem:[%s15542_s5 + $0xa0] sm:$0xff]  ;;  %v4943_v42 = vld [vmem:[%s15542_s5 + $0xa8] sm:$0xff] }
 0x2c5   : > { %10445 = vmatpush3.bf16.msra.mxu1 %v10442_v28  ;;  %9915 = vmatprep.mubr.f32.mxu1 %v12300_v37  ;;  %v3516_v37 = vld [vmem:[#allocation6 + $0x350] sm:$0xff]  ;;  %v3517_v28 = vld [vmem:[#allocation6 + $0x358] sm:$0xff] }
 0x2c6   : > { %10447 = vmatprep.subr.bf16.mxu1 %v10446_v27 }
 0x2c8   : > { %9916 = vmatmul.mubr.f32.gmra.mrb[2].mxu1 %v12303_v43  ;;  %v10462_v43 = vpack.c.bf16 %v3517_v28, %v3516_v37  ;;  %v15592_v28 = vld [vmem:[#allocation13_spill] sm:$0xff] }
 0x2c9   : > { %9918 = vmatprep.mubr.f32.mxu1 %v12306_v47  ;;  %10449 = vmatpush3.bf16.msra.mxu1 %v10446_v27  ;;  %v3518_v47 = vld [vmem:[#allocation6 + $0x360] sm:$0xff]  ;;  %v3521_v27 = vld [vmem:[#allocation6 + $0x378] sm:$0xff] }
 0x2ca   : > { %10451 = vmatprep.subr.bf16.mxu1 %v10450_v40 }
 0x2cc   : > { %9919 = vmatmul.mubr.f32.gmra.mrb[4].mxu1 %v12309_v50  ;;  %v10466_v50 = vpack.c.bf16 %v3519_v21, %v3518_v47  ;;  %v4926_v47 = vld [vmem:[%s15542_s5 + $0x20] sm:$0xff]  ;;  %v4927_v21 = vld [vmem:[%s15542_s5 + $0x28] sm:$0xff] }
 0x2cd   : > { %9921 = vmatprep.mubr.f32.mxu1 %v12312_v56  ;;  %10453 = vmatpush3.bf16.msra.mxu1 %v10450_v40  ;;  %v3520_v56 = vld [vmem:[#allocation6 + $0x370] sm:$0xff]  ;;  %v3795_v40 = vld [vmem:[#allocation6 + $0x3d8] sm:$0xff] }
 0x2ce   : > { %10455 = vmatprep.subr.bf16.mxu1 %v10454_v36 }
 0x2d0   : > { %9922 = vmatmul.mubr.f32.gmra.mrb[6].mxu1 %v12315_v59  ;;  %v10470_v59 = vpack.c.bf16 %v3521_v27, %v3520_v56  ;;  %v4945_v56 = vld [vmem:[%s15542_s5 + $0xb8] sm:$0xff]  ;;  %v15593_v27 = vld [vmem:[#allocation16_spill] sm:$0xff] }
 0x2d1   : > { %9924 = vmatprep.mubr.f32.mxu1 %v12318_v1  ;;  %10457 = vmatpush3.bf16.msra.mxu1 %v10454_v36  ;;  %v3784_v1 = vld [vmem:[#allocation6 + $0x380] sm:$0xff]  ;;  %v4063_v36 = vld [vmem:[#allocation6 + $0x408] sm:$0xff] }
 0x2d2   : > { %10459 = vmatprep.subr.bf16.mxu1 %v10458_v33 }
 0x2d4   : > { %9925 = vmatmul.mubr.f32.gmra.mrb[8].mxu1 %v12321_v7  ;;  %v10474_v7 = vpack.c.bf16 %v3785_v55, %v3784_v1  ;;  %v15594_v1 = vld [vmem:[#allocation17_spill] sm:$0xff] }
 0x2d5   : > { %9927 = vmatprep.mubr.f32.mxu1 %v12324_v23  ;;  %10461 = vmatpush3.bf16.msra.mxu1 %v10458_v33  ;;  %v15589_v23 = vld [vmem:[#allocation14_spill] sm:$0xff]  ;;  %v15591_v33 = vld [vmem:[#allocation12_spill] sm:$0xff] }
 0x2d6   : > { %10463 = vmatprep.subr.bf16.mxu1 %v10462_v43 }
 0x2d8   : > { %9928 = vmatmul.mubr.f32.gmra.mrb[10].mxu1 %v12327_v26  ;;  %v15590_v26 = vld [vmem:[#allocation15_spill] sm:$0xff] }
 0x2d9   : > { %9930 = vmatprep.mubr.f32.mxu1 %v12330_v29  ;;  %10465 = vmatpush3.bf16.msra.mxu1 %v10462_v43  ;;  %v12488_v29 = vld [vmem:[#allocation3 + $0xda] sm:$0xff]  ;;  %v10546_v43 = vpack.c.bf16 %v4943_v42, %v4942_v31  ;;  %v15600_v31 = vld [vmem:[#allocation23_spill] sm:$0xff] }
 0x2da   : > { %10467 = vmatprep.subr.bf16.mxu1 %v10466_v50 }
 0x2dc   : > { %9931 = vmatmul.mubr.f32.gmra.mrb[12].mxu1 %v12333_v13  ;;  %v12491_v13 = vld [vmem:[#allocation3 + $0xe2] sm:$0xff] }
 0x2dd   : > { %9933 = vmatprep.mubr.f32.mxu1 %v12336_v32  ;;  %10469 = vmatpush3.bf16.msra.mxu1 %v10466_v50  ;;  %v3226_v32 = vld [vmem:[#allocation3 + $0xea] sm:$0x3f]  ;;  %v4944_v50 = vld [vmem:[%s15542_s5 + $0xb0] sm:$0xff] }
 0x2de   : > { %10471 = vmatprep.subr.bf16.mxu1 %v10470_v59  ;;  %v10550_v55 = vpack.c.bf16 %v4945_v56, %v4944_v50  ;;  %v4075_v50 = vld [vmem:[#allocation6 + $0x468] sm:$0xff] }
 0x2e0   : > { %9934 = vmatmul.mubr.f32.gmra.mrb[14].mxu1 %v12339_v34  ;;  %v3786_v34 = vld [vmem:[#allocation6 + $0x390] sm:$0xff] }
 0x2e1   : > { %9936 = vmatprep.mubr.f32.mxu1 %v12342_v35  ;;  %10473 = vmatpush3.bf16.msra.mxu1 %v10470_v59  ;;  %v3787_v35 = vld [vmem:[#allocation6 + $0x398] sm:$0xff]  ;;  %v10548_v59 = vpack.c.bf16 %v4927_v21, %v4926_v47  ;;  %v4074_v21 = vld [vmem:[#allocation6 + $0x460] sm:$0xff] }
 0x2e2   : > { %10475 = vmatprep.subr.bf16.mxu1 %v10474_v7  ;;  %v10530_v56 = vpack.c.bf16 %v4075_v50, %v4074_v21  ;;  %v5278_v21 = vld [vmem:[%s15542_s5 + $0xb20] sm:$0xff]  ;;  %v5279_v50 = vld [vmem:[%s15542_s5 + $0xb28] sm:$0xff] }
 0x2e4   : > { %9937 = vmatmul.mubr.f32.gmra.mrb[16].mxu1 %v12345_v39  ;;  %v10478_v39 = vpack.c.bf16 %v3787_v35, %v3786_v34  ;;  %v3502_v34 = vld [vmem:[#allocation3 + $0xe8] sm:$0xff] }
 0x2e5   : > { %9939 = vmatprep.mubr.f32.mxu1 %v12348_v44  ;;  %v3788_v44 = vld [vmem:[#allocation6 + $0x3a0] sm:$0xff] }
 0x2e8   : > { %9940 = vmatmul.mubr.f32.gmra.mrb[18].mxu1 %v12351_v41  ;;  %v3789_v41 = vld [vmem:[#allocation6 + $0x3a8] sm:$0xff] }
 0x2e9   : > { %9942 = vmatprep.mubr.f32.mxu1 %v12354_v48  ;;  %v10482_v48 = vpack.c.bf16 %v3789_v41, %v3788_v44  ;;  %v3504_v44 = vld [vmem:[#allocation3 + $0xf8] sm:$0x3f] }
 0x2ec   : > { %9943 = vmatmul.mubr.f32.gmra.mrb[20].mxu1 %v12357_v52  ;;  %v3790_v52 = vld [vmem:[#allocation6 + $0x3b0] sm:$0xff] }
 0x2ed   : > { %9945 = vmatprep.mubr.f32.mxu1 %v15589_v23  ;;  %v4929_v23 = vld [vmem:[%s15542_s5 + $0x38] sm:$0xff] }
 0x2f0   : > { %9946 = vmatmul.mubr.f32.gmra.mrb[22].mxu1 %v15590_v26  ;;  %v4946_v26 = vld [vmem:[%s15542_s5 + $0xc0] sm:$0xff] }
 0x2f1   : > { %9948 = vmatprep.mubr.f32.mxu1 %v12366_v61  ;;  %v3791_v61 = vld [vmem:[#allocation6 + $0x3b8] sm:$0xff] }
 0x2f2   : > { %v10486_v10 = vpack.c.bf16 %v3791_v61, %v3790_v52  ;;  %v4931_v52 = vld [vmem:[%s15542_s5 + $0x48] sm:$0xff]  ;;  %v4064_v61 = vld [vmem:[#allocation6 + $0x410] sm:$0xff] }
 0x2f4   : > { %9949 = vmatmul.mubr.f32.gmra.mrb[24].mxu1 %v12488_v29 }
 0x2f5   : > { %9951 = vmatprep.mubr.f32.mxu1 %v12491_v13 }
 0x2f8   : > { %9952 = vmatmul.mubr.f32.gmra.mrb[26].mxu1 %v3226_v32  ;;  %v4947_v32 = vld [vmem:[%s15542_s5 + $0xc8] sm:$0xff] }
 0x2f9   : > { %9986 = vmatprep.mubr.f32.mxu1 %v12225_v45  ;;  %v3792_v45 = vld [vmem:[#allocation6 + $0x3c0] sm:$0xff]  ;;  %v10554_v41 = vpack.c.bf16 %v4947_v32, %v4946_v26  ;;  %v3782_v26 = vld [vmem:[#allocation3 + $0xf9] sm:$0x3f]  ;;  %v4033_v32 = vld [vmem:[#allocation3 + $0x22] sm:$0xff] }
 0x2fc   : > { %9987 = vmatmul.mubr.f32.vlgmr.msra.gmra.mrb[0].mxu1 %v12228_v46  ;;  %v10490_v46 = vpack.c.bf16 %v3793_v25, %v3792_v45  ;;  %v4948_v45 = vld [vmem:[%s15542_s5 + $0xd0] sm:$0xff]  ;;  %v4949_v25 = vld [vmem:[%s15542_s5 + $0xd8] sm:$0xff] }
 0x2fd   : > { %10477 = vmatpush3.bf16.msra.mxu1 %v10474_v7  ;;  %9989 = vmatprep.mubr.f32.mxu1 %v12231_v49  ;;  %v3794_v49 = vld [vmem:[#allocation6 + $0x3d0] sm:$0xff] }
 0x2fe   : > { %10479 = vmatprep.subr.bf16.mxu1 %v10478_v39  ;;  %v4928_v7 = vld [vmem:[%s15542_s5 + $0x30] sm:$0xff] }
 0x2ff   : > { %v10552_v35 = vpack.c.bf16 %v4929_v23, %v4928_v7  ;;  %v3776_v7 = vld [vmem:[#allocation3 + $0xc9] sm:$0xff] }
 0x300   : > { %9990 = vmatmul.mubr.f32.gmra.mrb[2].mxu1 %v12234_v51  ;;  %v10494_v51 = vpack.c.bf16 %v3795_v40, %v3794_v49  ;;  %v4932_v49 = vld [vmem:[%s15542_s5 + $0x50] sm:$0xff]  ;;  %v4933_v40 = vld [vmem:[%s15542_s5 + $0x58] sm:$0xff] }
 0x301   : > { %9992 = vmatprep.mubr.f32.mxu1 %v12237_v54  ;;  %10481 = vmatpush3.bf16.msra.mxu1 %v10478_v39  ;;  %v3796_v54 = vld [vmem:[#allocation6 + $0x3e0] sm:$0xff]  ;;  %v11637_v39 = vld [vmem:[#allocation3] sm:$0xff]  ;;  %v3780_v23 = vld [vmem:[#allocation3 + $0xe9] sm:$0xff] }
 0x302   : > { %10483 = vmatprep.subr.bf16.mxu1 %v10482_v48 }
 0x304   : > { %9993 = vmatmul.mubr.f32.gmra.mrb[4].mxu1 %v12240_v57  ;;  %v10498_v57 = vpack.c.bf16 %v3797_v3, %v3796_v54  ;;  %v4066_v54 = vld [vmem:[#allocation6 + $0x420] sm:$0xff]  ;;  %v10558_v3 = vpack.c.bf16 %v4949_v25, %v4948_v45  ;;  %v4044_v45 = vld [vmem:[#allocation3 + $0x7a] sm:$0xff]  ;;  %v4045_v25 = vld [vmem:[#allocation3 + $0x82] sm:$0xff] }
 0x305   : > { %9995 = vmatprep.mubr.f32.mxu1 %v12243_v60  ;;  %10485 = vmatpush3.bf16.msra.mxu1 %v10482_v48  ;;  %v3798_v60 = vld [vmem:[#allocation6 + $0x3f0] sm:$0xff]  ;;  %v4930_v48 = vld [vmem:[%s15542_s5 + $0x40] sm:$0xff] }
 0x306   : > { %10487 = vmatprep.subr.bf16.mxu1 %v10486_v10 }
 0x308   : > { %9996 = vmatmul.mubr.f32.gmra.mrb[6].mxu1 %v12246_v62  ;;  %v10502_v62 = vpack.c.bf16 %v3799_v4, %v3798_v60  ;;  %v4950_v60 = vld [vmem:[%s15542_s5 + $0xe0] sm:$0xff]  ;;  %v15595_v4 = vld [vmem:[#allocation18_spill] sm:$0xff] }
 0x309   : > { %9998 = vmatprep.mubr.f32.mxu1 %v12249_v2  ;;  %10489 = vmatpush3.bf16.msra.mxu1 %v10486_v10  ;;  %v4062_v2 = vld [vmem:[#allocation6 + $0x400] sm:$0xff]  ;;  %v4065_v10 = vld [vmem:[#allocation6 + $0x418] sm:$0xff] }
 0x30a   : > { %10491 = vmatprep.subr.bf16.mxu1 %v10490_v46 }
 0x30c   : > { %9999 = vmatmul.mubr.f32.gmra.mrb[8].mxu1 %v12252_v6  ;;  %v12509_v6 = vpack.c.bf16 %v4063_v36, %v4062_v2  ;;  %v15596_v2 = vld [vmem:[#allocation19_spill] sm:$0xff] }
 0x30d   : > { %10001 = vmatprep.mubr.f32.mxu1 %v12255_v9  ;;  %10493 = vmatpush3.bf16.msra.mxu1 %v10490_v46  ;;  %v4938_v9 = vld [vmem:[%s15542_s5 + $0x80] sm:$0xff]  ;;  %v10556_v46 = vpack.c.bf16 %v4931_v52, %v4930_v48  ;;  %v4040_v48 = vld [vmem:[#allocation3 + $0x5a] sm:$0xff]  ;;  %v4041_v52 = vld [vmem:[#allocation3 + $0x62] sm:$0xff] }
 0x30e   : > { %10495 = vmatprep.subr.bf16.mxu1 %v10494_v51  ;;  %v4934_v36 = vld [vmem:[%s15542_s5 + $0x60] sm:$0xff] }
 0x310   : > { %10002 = vmatmul.mubr.f32.gmra.mrb[10].mxu1 %v12258_v11  ;;  %v4939_v11 = vld [vmem:[%s15542_s5 + $0x88] sm:$0xff] }
 0x311   : > { %10004 = vmatprep.mubr.f32.mxu1 %v12261_v12  ;;  %10497 = vmatpush3.bf16.msra.mxu1 %v10494_v51  ;;  %v4922_v12 = vld [vmem:[%s15542_s5] sm:$0xff]  ;;  %v10510_v51 = vpack.c.bf16 %v4065_v10, %v4064_v61 }
 0x312   : > { %10499 = vmatprep.subr.bf16.mxu1 %v10498_v57  ;;  %v4042_v61 = vld [vmem:[#allocation3 + $0x6a] sm:$0xff]  ;;  %v4043_v10 = vld [vmem:[#allocation3 + $0x72] sm:$0xff] }
 0x314   : > { %10005 = vmatmul.mubr.f32.gmra.mrb[12].mxu1 %v12264_v14  ;;  %v10538_v14 = vpack.c.bf16 %v4939_v11, %v4938_v9  ;;  %v4935_v9 = vld [vmem:[%s15542_s5 + $0x68] sm:$0xff] }
 0x315   : > { %10007 = vmatprep.mubr.f32.mxu1 %v12267_v15  ;;  %10501 = vmatpush3.bf16.msra.mxu1 %v10498_v57  ;;  %v4923_v15 = vld [vmem:[%s15542_s5 + $0x8] sm:$0xff] }
 0x316   : > { %10503 = vmatprep.subr.bf16.mxu1 %v10502_v62  ;;  %10539 = vmatprep.subr.bf16.mxu0 %v10538_v14  ;;  %v4067_v57 = vld [vmem:[#allocation6 + $0x428] sm:$0xff]  ;;  %v4068_v14 = vld [vmem:[#allocation6 + $0x430] sm:$0xff] }
 0x317   : > { %v10514_v11 = vpack.c.bf16 %v4067_v57, %v4066_v54  ;;  %v4050_v54 = vld [vmem:[#allocation3 + $0xaa] sm:$0xff]  ;;  %v4052_v57 = vld [vmem:[#allocation3 + $0xba] sm:$0xff] }
 0x318   : > { %10008 = vmatmul.mubr.f32.gmra.mrb[14].mxu1 %v12270_v16  ;;  %v4940_v16 = vld [vmem:[%s15542_s5 + $0x90] sm:$0xff] }
 0x319   : > { %10010 = vmatprep.mubr.f32.mxu1 %v12273_v17  ;;  %10505 = vmatpush3.bf16.msra.mxu1 %v10502_v62  ;;  %v4941_v17 = vld [vmem:[%s15542_s5 + $0x98] sm:$0xff]  ;;  %v10560_v62 = vpack.c.bf16 %v4933_v40, %v4932_v49  ;;  %v4047_v49 = vld [vmem:[#allocation3 + $0x92] sm:$0xff]  ;;  %v4048_v40 = vld [vmem:[#allocation3 + $0x9a] sm:$0xff] }
 0x31a   : > { %10507 = vmatprep.subr.bf16.mxu1 %v12509_v6 }
 0x31c   : > { %10011 = vmatmul.mubr.f32.gmra.mrb[16].mxu1 %v12276_v18  ;;  %v10540_v18 = vpack.c.bf16 %v4923_v15, %v4922_v12  ;;  %v4069_v15 = vld [vmem:[#allocation6 + $0x438] sm:$0xff] }
 0x31d   : > { %10013 = vmatprep.mubr.f32.mxu1 %v12279_v19  ;;  %v10542_v19 = vpack.c.bf16 %v4941_v17, %v4940_v16  ;;  %v15597_v16 = vld [vmem:[#allocation20_spill] sm:$0xff]  ;;  %v15598_v17 = vld [vmem:[#allocation21_spill] sm:$0xff] }
 0x31e   : > { %10541 = vmatpush3.bf16.msra.mxu0 %v10540_v18  ;;  %v10518_v18 = vpack.c.bf16 %v4069_v15, %v4068_v14  ;;  %v5292_v15 = vld [vmem:[%s15542_s5 + $0xb90] sm:$0xff] }
 0x31f   : > { %10543 = vmatprep.subr.bf16.mxu0 %v10542_v19  ;;  %v4070_v19 = vld [vmem:[#allocation6 + $0x440] sm:$0xff] }
 0x320   : > { %10014 = vmatmul.mubr.f32.gmra.mrb[18].mxu1 %v12282_v0  ;;  %v4924_v0 = vld [vmem:[%s15542_s5 + $0x10] sm:$0xff] }
 0x321   : > { %10016 = vmatprep.mubr.f32.mxu1 %v12285_v20  ;;  %v4925_v20 = vld [vmem:[%s15542_s5 + $0x18] sm:$0xff] }
 0x322   : > { %v10544_v37 = vpack.c.bf16 %v4925_v20, %v4924_v0  ;;  %v4071_v0 = vld [vmem:[#allocation6 + $0x448] sm:$0xff]  ;;  %v15599_v20 = vld [vmem:[#allocation22_spill] sm:$0xff] }
 0x323   : > { %v10522_v42 = vpack.c.bf16 %v4071_v0, %v4070_v19  ;;  %v4952_v19 = vld [vmem:[%s15542_s5 + $0xf0] sm:$0xff]  ;;  %v4953_v0 = vld [vmem:[%s15542_s5 + $0xf8] sm:$0xff] }
 0x324   : > { %10017 = vmatmul.mubr.f32.gmra.mrb[20].mxu1 %v15591_v33  ;;  %10545 = vmatpush3.bf16.msra.mxu0 %v10544_v37  ;;  %v4072_v33 = vld [vmem:[#allocation6 + $0x450] sm:$0xff]  ;;  %v4073_v37 = vld [vmem:[#allocation6 + $0x458] sm:$0xff] }
 0x325   : > { %10019 = vmatprep.mubr.f32.mxu1 %v15592_v28  ;;  %10547 = vmatprep.subr.bf16.mxu0 %v10546_v43  ;;  %v15601_v28 = vld [vmem:[#allocation24_spill] sm:$0xff]  ;;  %v15602_v43 = vld [vmem:[#allocation25_spill] sm:$0xff]  ;;  %v10526_v47 = vpack.c.bf16 %v4073_v37, %v4072_v33  ;;  %v4937_v33 = vld [vmem:[%s15542_s5 + $0x78] sm:$0xff] }
 0x328   : > { %10020 = vmatmul.mubr.f32.gmra.mrb[22].mxu1 %v15593_v27  ;;  %10549 = vmatpush3.bf16.msra.mxu0 %v10548_v59  ;;  %v4076_v27 = vld [vmem:[#allocation6 + $0x470] sm:$0xff]  ;;  %v4077_v59 = vld [vmem:[#allocation6 + $0x478] sm:$0xff] }
 0x329   : > { %10022 = vmatprep.mubr.f32.mxu1 %v15594_v1  ;;  %10551 = vmatprep.subr.bf16.mxu0 %v10550_v55  ;;  %v10534_v1 = vpack.c.bf16 %v4077_v59, %v4076_v27  ;;  %v15604_v55 = vld [vmem:[#allocation27_spill] sm:$0xff]  ;;  %v4971_v59 = vld [vmem:[%s15542_s5 + $0x188] sm:$0xff] }
 0x32a   : > { %v4970_v27 = vld [vmem:[%s15542_s5 + $0x180] sm:$0xff] }
 0x32c   : > { %10023 = vmatmul.mubr.f32.gmra.mrb[24].mxu1 %v3502_v34  ;;  %10553 = vmatpush3.bf16.msra.mxu0 %v10552_v35  ;;  %v4034_v34 = vld [vmem:[#allocation3 + $0x2a] sm:$0xff]  ;;  %v4035_v35 = vld [vmem:[#allocation3 + $0x32] sm:$0xff] }
 0x32d   : > { %10025 = vmatprep.mubr.f32.mxu1 %v11637_v39  ;;  %10555 = vmatprep.subr.bf16.mxu0 %v10554_v41  ;;  %v4036_v39 = vld [vmem:[#allocation3 + $0x3a] sm:$0xff]  ;;  %v4038_v41 = vld [vmem:[#allocation3 + $0x4a] sm:$0xff] }
 0x330   : > { %10026 = vmatmul.mubr.f32.gmra.mrb[26].mxu1 %v3504_v44  ;;  %10557 = vmatpush3.bf16.msra.mxu0 %v10556_v46  ;;  %v4037_v44 = vld [vmem:[#allocation3 + $0x42] sm:$0xff]  ;;  %v4046_v46 = vld [vmem:[#allocation3 + $0x8a] sm:$0xff] }
 0x331   : > { %10060 = vmatprep.mubr.f32.mxu1 %v12400_v5  ;;  %v4951_v5 = vld [vmem:[%s15542_s5 + $0xe8] sm:$0xff]  ;;  %10559 = vmatprep.subr.bf16.mxu0 %v10558_v3 }
 0x332   : > { %v10562_v12 = vpack.c.bf16 %v4951_v5, %v4950_v60  ;;  %v4051_v3 = vld [vmem:[#allocation3 + $0xb2] sm:$0xff]  ;;  %v4053_v60 = vld [vmem:[#allocation3 + $0xc2] sm:$0xff]  ;;  %v4054_v5 = vld [vmem:[#allocation3 + $0xca] sm:$0xff] }
 0x334   : > { %10061 = vmatmul.mubr.f32.vlgmr.msra.gmra.mrb[0].mxu1 %v15595_v4  ;;  %10561 = vmatpush3.bf16.msra.mxu0 %v10560_v62  ;;  %v4055_v4 = vld [vmem:[#allocation3 + $0xd2] sm:$0xff] }
 0x335   : > { %10509 = vmatpush3.bf16.msra.mxu1 %v12509_v6  ;;  %10063 = vmatprep.mubr.f32.mxu1 %v15596_v2  ;;  %v10564_v6 = vpack.c.bf16 %v4935_v9, %v4934_v36  ;;  %v4059_v62 = vld [vmem:[#allocation3 + $0xf2] sm:$0xff]  ;;  %v4058_v2 = vld [vmem:[#allocation3 + $0xea] sm:$0xff]  ;;  %v4060_v36 = vld [vmem:[#allocation3 + $0xfa] sm:$0x3f] }
 0x336   : > { %10511 = vmatprep.subr.bf16.mxu1 %v10510_v51  ;;  %10563 = vmatprep.subr.bf16.mxu0 %v10562_v12  ;;  %v5290_v9 = vld [vmem:[%s15542_s5 + $0xb80] sm:$0xff] }
 0x338   : > { %10064 = vmatmul.mubr.f32.gmra.mrb[2].mxu1 %v15597_v16  ;;  %10565 = vmatpush3.bf16.msra.mxu0 %v10564_v6  ;;  %v5293_v16 = vld [vmem:[%s15542_s5 + $0xb98] sm:$0xff] }
 0x339   : > { %10066 = vmatprep.mubr.f32.mxu1 %v15598_v17  ;;  %10513 = vmatpush3.bf16.msra.mxu1 %v10510_v51  ;;  %v4049_v51 = vld [vmem:[#allocation3 + $0xa2] sm:$0xff]  ;;  %v10894_v6 = vpack.c.bf16 %v5293_v16, %v5292_v15 }
 0x33a   : > { %10515 = vmatprep.subr.bf16.mxu1 %v10514_v11  ;;  %v5276_v17 = vld [vmem:[%s15542_s5 + $0xb10] sm:$0xff] }
 0x33c   : > { %10067 = vmatmul.mubr.f32.gmra.mrb[4].mxu1 %v15599_v20 }
 0x33d   : > { %10069 = vmatprep.mubr.f32.mxu1 %v15600_v31  ;;  %10517 = vmatpush3.bf16.msra.mxu1 %v10514_v11  ;;  %v5291_v11 = vld [vmem:[%s15542_s5 + $0xb88] sm:$0xff]  ;;  %v10566_v31 = vpack.c.bf16 %v4953_v0, %v4952_v19  ;;  %v4411_v0 = vlaneseq }
 0x33e   : > { %10519 = vmatprep.subr.bf16.mxu1 %v10518_v18  ;;  %v10890_v12 = vpack.c.bf16 %v5291_v11, %v5290_v9 }
 0x33f   : > { %10567 = vmatprep.subr.bf16.mxu0 %v10566_v31  ;;  %vm12767_vm1 = vcmp.lt.s32.totalorder %v4411_v0, 128 }
 0x340   : > { %10070 = vmatmul.mubr.f32.gmra.mrb[6].mxu1 %v15601_v28  ;;  %v5294_v28 = vld [vmem:[%s15542_s5 + $0xba0] sm:$0xff] }
 0x341   : > { %10072 = vmatprep.mubr.f32.mxu1 %v15602_v43  ;;  %10521 = vmatpush3.bf16.msra.mxu1 %v10518_v18  ;;  %v5277_v18 = vld [vmem:[%s15542_s5 + $0xb18] sm:$0xff]  ;;  %v5295_v43 = vld [vmem:[%s15542_s5 + $0xba8] sm:$0xff] }
 0x342   : > { %10523 = vmatprep.subr.bf16.mxu1 %v10522_v42  ;;  %v10896_v20 = vpack.c.bf16 %v5277_v18, %v5276_v17 }
 0x344   : > { %10073 = vmatmul.mubr.f32.gmra.mrb[8].mxu1 %v12427_v58  ;;  %v15603_v58 = vld [vmem:[#allocation26_spill] sm:$0xff] }
 0x345   : > { %10075 = vmatprep.mubr.f32.mxu1 %v12430_v22  ;;  %10525 = vmatpush3.bf16.msra.mxu1 %v10522_v42  ;;  %v3772_v22 = vld [vmem:[#allocation3 + $0xa9] sm:$0xff]  ;;  %v4936_v42 = vld [vmem:[%s15542_s5 + $0x70] sm:$0xff] }
 0x346   : > { %10527 = vmatprep.subr.bf16.mxu1 %v10526_v47  ;;  %v10568_v37 = vpack.c.bf16 %v4937_v33, %v4936_v42 }
 0x348   : > { %10076 = vmatmul.mubr.f32.gmra.mrb[10].mxu1 %v12433_v24  ;;  %v3774_v24 = vld [vmem:[#allocation3 + $0xb9] sm:$0xff]  ;;  %10569 = vmatpush3.bf16.msra.mxu0 %v10568_v37 }
 0x349   : > { %10078 = vmatprep.mubr.f32.mxu1 %v12436_v53  ;;  %10529 = vmatpush3.bf16.msra.mxu1 %v10526_v47  ;;  %v3775_v53 = vld [vmem:[#allocation3 + $0xc1] sm:$0xff]  ;;  %v10898_v47 = vpack.c.bf16 %v5295_v43, %v5294_v28 }
 0x34a   : > { %10531 = vmatprep.subr.bf16.mxu1 %v10530_v56 }
 0x34c   : > { %10079 = vmatmul.mubr.f32.gmra.mrb[12].mxu1 %v12439_v63  ;;  %v3777_v63 = vld [vmem:[#allocation3 + $0xd1] sm:$0xff] }
 0x34d   : > { %10081 = vmatprep.mubr.f32.mxu1 %v12442_v8  ;;  %10533 = vmatpush3.bf16.msra.mxu1 %v10530_v56  ;;  %v3779_v8 = vld [vmem:[#allocation3 + $0xe1] sm:$0xff]  ;;  %v10900_v56 = vpack.c.bf16 %v5279_v50, %v5278_v21  ;;  %v12760_v50 = vshrl.u32 %v4411_v0, 7 }
 0x34e   : > { %10535 = vmatprep.subr.bf16.mxu1 %v10534_v1 }
 0x350   : > { %10082 = vmatmul.mubr.f32.gmra.mrb[14].mxu1 %v12445_v38  ;;  %v3781_v38 = vld [vmem:[#allocation3 + $0xf1] sm:$0xff] }
 0x351   : > { %10084 = vmatprep.mubr.f32.mxu1 %v15603_v58  ;;  %10537 = vmatpush3.bf16.msra.mxu1 %v10534_v1  ;;  %v10570_v1 = vpack.c.bf16 %v4971_v59, %v4970_v27  ;;  %v5296_v58 = vld [vmem:[%s15542_s5 + $0xbb0] sm:$0xff] }
 0x352   : > { %10891 = vmatprep.subr.bf16.mxu1 %v10890_v12 }
 0x353   : > { %10571 = vmatprep.subr.bf16.mxu0 %v10570_v1 }
 0x354   : > { %10085 = vmatmul.mubr.f32.gmra.mrb[16].mxu1 %v3772_v22  ;;  %v5297_v22 = vld [vmem:[%s15542_s5 + $0xbb8] sm:$0xff] }
 0x355   : > { %10087 = vmatprep.mubr.f32.mxu1 %v15604_v55  ;;  %v10902_v55 = vpack.c.bf16 %v5297_v22, %v5296_v58 }
 0x358   : > { %10088 = vmatmul.mubr.f32.gmra.mrb[18].mxu1 %v3774_v24  ;;  %v5280_v24 = vld [vmem:[%s15542_s5 + $0xb30] sm:$0xff] }
 0x359   : > { %10090 = vmatprep.mubr.f32.mxu1 %v3775_v53  ;;  %v5281_v53 = vld [vmem:[%s15542_s5 + $0xb38] sm:$0xff] }
 0x35c   : > { %10091 = vmatmul.mubr.f32.gmra.mrb[20].mxu1 %v3776_v7  ;;  %v10904_v7 = vpack.c.bf16 %v5281_v53, %v5280_v24 }
 0x35d   : > { %10093 = vmatprep.mubr.f32.mxu1 %v3777_v63  ;;  %v5298_v63 = vld [vmem:[%s15542_s5 + $0xbc0] sm:$0xff] }
 0x360   : > { %10094 = vmatmul.mubr.f32.gmra.mrb[22].mxu1 %v12459_v30  ;;  %v4039_v30 = vld [vmem:[#allocation3 + $0x52] sm:$0xff] }
 0x361   : > { %10096 = vmatprep.mubr.f32.mxu1 %v3779_v8  ;;  %v5299_v8 = vld [vmem:[%s15542_s5 + $0xbc8] sm:$0xff] }
 0x364   : > { %10097 = vmatmul.mubr.f32.gmra.mrb[24].mxu1 %v3780_v23  ;;  %v5282_v23 = vld [vmem:[%s15542_s5 + $0xb40] sm:$0xff] }
 0x365   : > { %10099 = vmatprep.mubr.f32.mxu1 %v3781_v38  ;;  %v10906_v38 = vpack.c.bf16 %v5299_v8, %v5298_v63 }
 0x368   : > { %10100 = vmatmul.mubr.f32.gmra.mrb[26].mxu1 %v3782_v26  ;;  %v5283_v26 = vld [vmem:[%s15542_s5 + $0xb48] sm:$0xff] }
 0x369   : > { %10134 = vmatprep.mubr.f32.mxu1 %v4033_v32  ;;  %v10908_v32 = vpack.c.bf16 %v5283_v26, %v5282_v23  ;;  %v4997_v23 = vld [vmem:[%s15542_s5 + $0x258] sm:$0xff] }
 0x36c   : > { %10135 = vmatmul.mubr.f32.vlgmr.msra.gmra.mrb[0].mxu1 %v4034_v34  ;;  %v5300_v34 = vld [vmem:[%s15542_s5 + $0xbd0] sm:$0xff] }
 0x36d   : > { %10137 = vmatprep.mubr.f32.mxu1 %v4035_v35  ;;  %v5301_v35 = vld [vmem:[%s15542_s5 + $0xbd8] sm:$0xff] }
 0x370   : > { %10138 = vmatmul.mubr.f32.gmra.mrb[2].mxu1 %v4036_v39  ;;  %v10910_v39 = vpack.c.bf16 %v5301_v35, %v5300_v34 }
 0x371   : > { %10140 = vmatprep.mubr.f32.mxu1 %v4037_v44  ;;  %v5284_v44 = vld [vmem:[%s15542_s5 + $0xb50] sm:$0xff] }
 0x374   : > { %10141 = vmatmul.mubr.f32.gmra.mrb[4].mxu1 %v4038_v41  ;;  %v5285_v41 = vld [vmem:[%s15542_s5 + $0xb58] sm:$0xff] }
 0x375   : > { %10143 = vmatprep.mubr.f32.mxu1 %v4039_v30  ;;  %v10912_v30 = vpack.c.bf16 %v5285_v41, %v5284_v44 }
 0x378   : > { %10144 = vmatmul.mubr.f32.gmra.mrb[6].mxu1 %v4040_v48  ;;  %v5302_v48 = vld [vmem:[%s15542_s5 + $0xbe0] sm:$0xff] }
 0x379   : > { %10146 = vmatprep.mubr.f32.mxu1 %v4041_v52  ;;  %v5303_v52 = vld [vmem:[%s15542_s5 + $0xbe8] sm:$0xff] }
 0x37c   : > { %10147 = vmatmul.mubr.f32.gmra.mrb[8].mxu1 %v4042_v61  ;;  %v10914_v61 = vpack.c.bf16 %v5303_v52, %v5302_v48 }
 0x37d   : > { %10149 = vmatprep.mubr.f32.mxu1 %v4043_v10  ;;  %v5286_v10 = vld [vmem:[%s15542_s5 + $0xb60] sm:$0xff] }
 0x380   : > { %10150 = vmatmul.mubr.f32.gmra.mrb[10].mxu1 %v4044_v45  ;;  %v5287_v45 = vld [vmem:[%s15542_s5 + $0xb68] sm:$0xff] }
 0x381   : > { %10152 = vmatprep.mubr.f32.mxu1 %v4045_v25  ;;  %v10916_v25 = vpack.c.bf16 %v5287_v45, %v5286_v10 }
 0x384   : > { %10153 = vmatmul.mubr.f32.gmra.mrb[12].mxu1 %v4046_v46  ;;  %v5304_v46 = vld [vmem:[%s15542_s5 + $0xbf0] sm:$0xff] }
 0x385   : > { %10155 = vmatprep.mubr.f32.mxu1 %v4047_v49  ;;  %v5305_v49 = vld [vmem:[%s15542_s5 + $0xbf8] sm:$0xff] }
 0x388   : > { %10156 = vmatmul.mubr.f32.gmra.mrb[14].mxu1 %v4048_v40  ;;  %v10918_v40 = vpack.c.bf16 %v5305_v49, %v5304_v46 }
 0x389   : > { %10158 = vmatprep.mubr.f32.mxu1 %v4049_v51  ;;  %v5288_v51 = vld [vmem:[%s15542_s5 + $0xb70] sm:$0xff] }
 0x38c   : > { %10159 = vmatmul.mubr.f32.gmra.mrb[16].mxu1 %v4050_v54  ;;  %v5289_v54 = vld [vmem:[%s15542_s5 + $0xb78] sm:$0xff] }
 0x38d   : > { %10161 = vmatprep.mubr.f32.mxu1 %v4051_v3  ;;  %v10920_v3 = vpack.c.bf16 %v5289_v54, %v5288_v51 }
 0x390   : > { %10162 = vmatmul.mubr.f32.gmra.mrb[18].mxu1 %v4052_v57  ;;  %v5354_v57 = vld [vmem:[%s15542_s5 + $0xd80] sm:$0xff] }
 0x391   : > { %10164 = vmatprep.mubr.f32.mxu1 %v4053_v60  ;;  %v5355_v60 = vld [vmem:[%s15542_s5 + $0xd88] sm:$0xff] }
 0x394   : > { %10165 = vmatmul.mubr.f32.gmra.mrb[20].mxu1 %v4054_v5  ;;  %v10954_v5 = vpack.c.bf16 %v5355_v60, %v5354_v57 }
 0x395   : > { %10167 = vmatprep.mubr.f32.mxu1 %v4055_v4  ;;  %v12751_v4 = vld [vmem:[%s15541_s4] ss:$0 sm:$0xff] }
 0x398   : > { %10168 = vmatmul.mubr.f32.gmra.mrb[22].mxu1 %v12488_v29  ;;  %v5274_v29 = vld [vmem:[%s15542_s5 + $0xb00] sm:$0xff] }
 0x399   : > { %10170 = vmatprep.mubr.f32.mxu1 %v12491_v13  ;;  %v5275_v13 = vld [vmem:[%s15542_s5 + $0xb08] sm:$0xff] }
 0x39a   : > { %v10892_v14 = vpack.c.bf16 %v5275_v13, %v5274_v29 }
 0x39c   : > { %10171 = vmatmul.mubr.f32.gmra.mrb[24].mxu1 %v4058_v2 }
 0x39d   : > { %10173 = vmatprep.mubr.f32.mxu1 %v4059_v62  ;;  %10893 = vmatpush3.bf16.msra.mxu1 %v10892_v14 }
 0x39e   : > { %10895 = vmatprep.subr.bf16.mxu1 %v10894_v6 }
 0x3a0   : > { %10174 = vmatmul.mubr.f32.gmra.mrb[26].mxu1 %v4060_v36 }
 0x3a1   : > { %10897 = vmatpush3.bf16.msra.mxu1 %v10896_v20  ;;  %v11741_v20 = vmov 1966171168  }
 0x3a2   : > { %10899 = vmatprep.subr.bf16.mxu1 %v10898_v47  ;;  %v4418_v31 = vunpack.c.l.s4 %v11741_v20 }
 0x3a4   : > { %v4419_v21 = vunpack.c.0.s8 %v4418_v31  ;;  %v12799_v31 = vsub.s32 1, %v12760_v50 }
 0x3a5   : > { %10901 = vmatpush3.bf16.msra.mxu1 %v10900_v56 }
 0x3a6   : > { %10903 = vmatprep.subr.bf16.mxu1 %v10902_v55  ;;  %v12765_v63 = vsub.s32 %v4419_v21, %v12760_v50 }
 0x3a9   : > { %10905 = vmatpush3.bf16.msra.mxu1 %v10904_v7 }
 0x3aa   : > { %10907 = vmatprep.subr.bf16.mxu1 %v10906_v38 }
 0x3ad   : > { %10909 = vmatpush3.bf16.msra.mxu1 %v10908_v32 }
 0x3ae   : > { %10911 = vmatprep.subr.bf16.mxu1 %v10910_v39 }
 0x3b1   : > { %10913 = vmatpush3.bf16.msra.mxu1 %v10912_v30 }
 0x3b2   : > { %10915 = vmatprep.subr.bf16.mxu1 %v10914_v61 }
 0x3b5   : > { %10917 = vmatpush3.bf16.msra.mxu1 %v10916_v25 }
 0x3b6   : > { %10919 = vmatprep.subr.bf16.mxu1 %v10918_v40 }
 0x3b9   : > { %10921 = vmatpush3.bf16.msra.mxu1 %v10920_v3 }
 0x3ba   : > { %10955 = vmatprep.subr.bf16.mxu1 %v10954_v5 }
 0x43f   : > { %v10136_v62 = vpop.f32.mrb[0].mxu1 }
 0x440   : > { %v4318_v2 = vadd.f32 %v10136_v62, %v12751_v4  ;;  %v4144_v36 = vpop.f32.mrb[1].mxu1 }
 0x441   : > { %v4317_v9 = vadd.f32 %v12751_v4, %v4144_v36 }
 0x442   : > { %v4346_v11 = vmax.f32 %v4318_v2, 0.0 }
 0x443   : > { %v4345_v12 = vmax.f32 %v4317_v9, 0.0  ;;  %v10139_v29 = vpop.f32.mrb[2].mxu1 }
 0x444   : > { %4374 = vst [vmem:[#allocation4 + $0x8] sm:$0xff] %v4346_v11  ;;  %v4320_v13 = vadd.f32 %v10139_v29, %v12751_v4  ;;  %v4154_v14 = vpop.f32.mrb[3].mxu1 }
 0x445   : > { %4373 = vst [vmem:[#allocation4] sm:$0xff] %v4345_v12  ;;  %v4319_v15 = vadd.f32 %v12751_v4, %v4154_v14 }
 0x446   : > { %v4348_v16 = vmax.f32 %v4320_v13, 0.0 }
 0x447   : > { %v4347_v6 = vmax.f32 %v4319_v15, 0.0  ;;  %v10142_v17 = vpop.f32.mrb[4].mxu1 }
 0x448   : > { %4376 = vst [vmem:[#allocation4 + $0x18] sm:$0xff] %v4348_v16  ;;  %v4322_v18 = vadd.f32 %v10142_v17, %v12751_v4  ;;  %v4164_v19 = vpop.f32.mrb[5].mxu1 }
 0x449   : > { %4375 = vst [vmem:[#allocation4 + $0x10] sm:$0xff] %v4347_v6  ;;  %v4321_v42 = vadd.f32 %v12751_v4, %v4164_v19 }
 0x44a   : > { %v4350_v33 = vmax.f32 %v4322_v18, 0.0 }
 0x44b   : > { %v4349_v37 = vmax.f32 %v4321_v42, 0.0  ;;  %v10145_v28 = vpop.f32.mrb[6].mxu1 }
 0x44c   : > { %4378 = vst [vmem:[#allocation4 + $0x28] sm:$0xff] %v4350_v33  ;;  %v4324_v43 = vadd.f32 %v10145_v28, %v12751_v4  ;;  %v4401_v47 = vld [vmem:[#allocation4] ss:$2 sm:$0x7f]  ;;  %v4174_v56 = vpop.f32.mrb[7].mxu1 }
 0x44d   : > { %4377 = vst [vmem:[#allocation4 + $0x20] sm:$0xff] %v4349_v37  ;;  %v4403_v27 = vld [vmem:[#allocation4 + $0x1] ss:$2 sm:$0x7f]  ;;  %v4323_v1 = vadd.f32 %v12751_v4, %v4174_v56 }
 0x44e   : > { %v4352_v59 = vmax.f32 %v4324_v43, 0.0  ;;  %v4408_v53 = vmax.f32 %v4401_v47, %v4403_v27  ;;  %v12805_v47 = vsub.s32 0, %v12760_v50 }
 0x44f   : > { %v10148_v58 = vpop.f32.mrb[8].mxu1  ;;  %v4351_v8 = vmax.f32 %v4323_v1, 0.0  ;;  %v12816_v1 = vld [vmem:[%s15542_s5 + $0x108] sm:$0xff] }
 0x450   : > { %v4405_v22 = vld [vmem:[#allocation4 + $0x10] ss:$2 sm:$0x7f]  ;;  %v4407_v55 = vld [vmem:[#allocation4 + $0x11] ss:$2 sm:$0x7f]  ;;  %v4326_v24 = vadd.f32 %v10148_v58, %v12751_v4 }
 0x451   : > { %4380 = vst [vmem:[#allocation4 + $0x38] sm:$0xff] %v4352_v59  ;;  %v4409_v7 = vmax.f32 %v4405_v22, %v4407_v55  ;;  %v4184_v38 = vpop.f32.mrb[9].mxu1  ;;  %4379 = vst [vmem:[#allocation4 + $0x30] sm:$0xff] %v4351_v8  ;;  %v12811_v59 = vld [vmem:[%s15542_s5 + $0x100] sm:$0xff]  ;;  %v12819_v58 = vsub.s32 3, %v12760_v50  ;;  %v12822_v22 = vsub.s32 6, %v12760_v50 }
 0x452   : > { %v4354_v26 = vmax.f32 %v4326_v24, 0.0  ;;  %v4325_v32 = vadd.f32 %v12751_v4, %v4184_v38 }
 0x453   : > { %v4410_v34 = vmax.f32 %v4408_v53, %v4409_v7  ;;  %v10151_v35 = vpop.f32.mrb[10].mxu1 }
 0x454   : > { %4382 = vst [vmem:[#allocation4 + $0x48] sm:$0xff] %v4354_v26  ;;  %v4328_v39 = vadd.f32 %v10151_v35, %v12751_v4  ;;  %v4353_v30 = vmax.f32 %v4325_v32, 0.0  ;;  %v4194_v48 = vpop.f32.mrb[11].mxu1  ;;  %v4478_v52 = vld [vmem:[#allocation4 + $0x20] ss:$2 sm:$0x7f] }
 0x455   : > { %4415 = vst.msk [vmem:[#allocation5] sm:$0x1] %vm12767_vm1, %v4410_v34  ;;  %v4423_v44 = vrot.slane %v4410_v34, %v12765_v63  ;;  %v4447_v41 = vcombine.high %v4410_v34, %v4410_v34  ;;  %v4327_v10 = vadd.f32 %v12751_v4, %v4194_v48  ;;  %v4480_v49 = vld [vmem:[#allocation4 + $0x21] ss:$2 sm:$0x7f]  ;;  %v12828_v35 = vsub.s32 4, %v12760_v50 }
 0x456   : > { %v4356_v61 = vmax.f32 %v4328_v39, 0.0  ;;  %4381 = vst [vmem:[#allocation4 + $0x40] sm:$0xff] %v4353_v30  ;;  %v4485_v2 = vmax.f32 %v4478_v52, %v4480_v49  ;;  %v12835_v52 = vld [vmem:[%s15542_s5 + $0x190] sm:$0xff]  ;;  %v10572_v49 = vpack.c.bf16 %v12816_v1, %v12811_v59 }
 0x457   : > { %v4424_v45 = vcombine.high %v4423_v44, %v4423_v44  ;;  %v4431_v25 = vrot.slane %v4423_v44, %v12765_v63  ;;  %v4454_v46 = vrot.slane %v4447_v41, %v12765_v63  ;;  %v10154_v40 = vpop.f32.mrb[12].mxu1  ;;  %v4355_v51 = vmax.f32 %v4327_v10, 0.0 }
 0x458   : > { %4384 = vst [vmem:[#allocation4 + $0x58] sm:$0xff] %v4356_v61  ;;  %v4330_v54 = vadd.f32 %v10154_v40, %v12751_v4  ;;  %v4204_v3 = vpop.f32.mrb[13].mxu1  ;;  %v4482_v36 = vld [vmem:[#allocation4 + $0x30] ss:$2 sm:$0x7f]  ;;  %v12840_v61 = vld [vmem:[%s15542_s5 + $0x198] sm:$0xff] }
 0x459   : > { %v4438_v57 = vrot.slane %v4424_v45, %v12765_v63  ;;  %v4441_v60 = vcombine.high %v4431_v25, %v4431_v25  ;;  %v4461_v5 = vrot.slane %v4454_v46, %v12765_v63  ;;  %v4464_v62 = vcombine.high %v4454_v46, %v4454_v46  ;;  %v4484_v9 = vld [vmem:[#allocation4 + $0x31] ss:$2 sm:$0x7f]  ;;  %4383 = vst [vmem:[#allocation4 + $0x50] sm:$0xff] %v4355_v51  ;;  %v12848_v40 = vld [vmem:[%s15542_s5 + $0x110] sm:$0xff]  ;;  %v12853_v51 = vld [vmem:[%s15542_s5 + $0x118] sm:$0xff] }
 0x45a   : > { %v4329_v11 = vadd.f32 %v12751_v4, %v4204_v3  ;;  %v4486_v14 = vmax.f32 %v4482_v36, %v4484_v9  ;;  %v4358_v16 = vmax.f32 %v4330_v54, 0.0  ;;  %v10574_v9 = vpack.c.bf16 %v12840_v61, %v12835_v52  ;;  %v4976_v61 = vld [vmem:[%s15542_s5 + $0x1b0] sm:$0xff] }
 0x45b   : > { %4440 = vst.msk [vmem:[#allocation5 + $0x1] sm:$0x1] %vm12767_vm1, %v4438_v57  ;;  %4443 = vst.msk [vmem:[#allocation5 + $0x2] sm:$0x1] %vm12767_vm1, %v4441_v60  ;;  %v4444_v12 = vcombine.high %v4438_v57, %v4438_v57  ;;  %v4471_v29 = vrot.slane %v4464_v62, %v12765_v63  ;;  %v4474_v13 = vcombine.high %v4461_v5, %v4461_v5  ;;  %v10157_v15 = vpop.f32.mrb[14].mxu1 }
 0x45c   : > { %4463 = vst.msk [vmem:[#allocation5 + $0x4] sm:$0x1] %vm12767_vm1, %v4461_v5  ;;  %v4357_v6 = vmax.f32 %v4329_v11, 0.0  ;;  %v4332_v17 = vadd.f32 %v10157_v15, %v12751_v4  ;;  %v4214_v18 = vpop.f32.mrb[15].mxu1  ;;  %v4487_v19 = vmax.f32 %v4485_v2, %v4486_v14  ;;  %4386 = vst [vmem:[#allocation4 + $0x68] sm:$0xff] %v4358_v16  ;;  %v12873_v11 = vld [vmem:[%s15542_s5 + $0x1a0] sm:$0xff] }
 0x45d   : > { %4446 = vst.msk [vmem:[#allocation5 + $0x3] sm:$0x1] %vm12767_vm1, %v4444_v12  ;;  %4473 = vst.msk [vmem:[#allocation5 + $0x5] sm:$0x1] %vm12767_vm1, %v4471_v29  ;;  %v4331_v0 = vadd.f32 %v12751_v4, %v4214_v18  ;;  %v12878_v12 = vld [vmem:[%s15542_s5 + $0x1a8] sm:$0xff] }
 0x45e   : > { %4476 = vst.msk [vmem:[#allocation5 + $0x6] sm:$0x1] %vm12767_vm1, %v4474_v13  ;;  %v4551_v20 = vld [vmem:[#allocation4 + $0x40] ss:$2 sm:$0x7f]  ;;  %4385 = vst [vmem:[#allocation4 + $0x60] sm:$0xff] %v4357_v6  ;;  %v4496_v42 = vrot.slane %v4487_v19, %v12765_v63  ;;  %v4520_v33 = vcombine.high %v4487_v19, %v4487_v19  ;;  %v10576_v6 = vpack.c.bf16 %v12853_v51, %v12848_v40 }
 0x45f   : > { %4488 = vst.msk [vmem:[#allocation5 + $0x7] sm:$0x1] %vm12767_vm1, %v4487_v19  ;;  %v4553_v37 = vld [vmem:[#allocation4 + $0x41] ss:$2 sm:$0x7f]  ;;  %v4360_v28 = vmax.f32 %v4332_v17, 0.0 }
 0x460   : > { %v10160_v43 = vpop.f32.mrb[16].mxu1  ;;  %v4359_v21 = vmax.f32 %v4331_v0, 0.0  ;;  %v4497_v55 = vcombine.high %v4496_v42, %v4496_v42  ;;  %v4504_v24 = vrot.slane %v4496_v42, %v12765_v63  ;;  %v4527_v53 = vrot.slane %v4520_v33, %v12765_v63  ;;  %v4555_v7 = vld [vmem:[#allocation4 + $0x50] ss:$2 sm:$0x7f] }
 0x461   : > { %v4334_v56 = vadd.f32 %v10160_v43, %v12751_v4  ;;  %v4224_v27 = vpop.f32.mrb[17].mxu1  ;;  %v4557_v8 = vld [vmem:[#allocation4 + $0x51] ss:$2 sm:$0x7f]  ;;  %4388 = vst [vmem:[#allocation4 + $0x78] sm:$0xff] %v4360_v28  ;;  %v4558_v26 = vmax.f32 %v4551_v20, %v4553_v37 }
 0x462   : > { %v4333_v38 = vadd.f32 %v12751_v4, %v4224_v27  ;;  %v4559_v32 = vmax.f32 %v4555_v7, %v4557_v8  ;;  %4387 = vst [vmem:[#allocation4 + $0x70] sm:$0xff] %v4359_v21  ;;  %v4511_v39 = vrot.slane %v4497_v55, %v12765_v63  ;;  %v4514_v44 = vcombine.high %v4504_v24, %v4504_v24 }
 0x463   : > { %v4362_v34 = vmax.f32 %v4334_v56, 0.0  ;;  %v4534_v41 = vrot.slane %v4527_v53, %v12765_v63  ;;  %v4537_v30 = vcombine.high %v4527_v53, %v4527_v53  ;;  %v10163_v48 = vpop.f32.mrb[18].mxu1  ;;  %v10578_v21 = vpack.c.bf16 %v12878_v12, %v12873_v11 }
 0x464   : > { %v4560_v10 = vmax.f32 %v4558_v26, %v4559_v32  ;;  %v4361_v45 = vmax.f32 %v4333_v38, 0.0  ;;  %v4336_v25 = vadd.f32 %v10163_v48, %v12751_v4  ;;  %v4234_v46 = vpop.f32.mrb[19].mxu1  ;;  %4513 = vst.msk [vmem:[#allocation5 + $0x8] sm:$0x1] %vm12767_vm1, %v4511_v39  ;;  %4516 = vst.msk [vmem:[#allocation5 + $0x9] sm:$0x1] %vm12767_vm1, %v4514_v44  ;;  %v4517_v54 = vcombine.high %v4511_v39, %v4511_v39 }
 0x465   : > { %4390 = vst [vmem:[#allocation4 + $0x88] sm:$0xff] %v4362_v34  ;;  %4536 = vst.msk [vmem:[#allocation5 + $0xb] sm:$0x1] %vm12767_vm1, %v4534_v41  ;;  %v4544_v3 = vrot.slane %v4537_v30, %v12765_v63  ;;  %v4547_v57 = vcombine.high %v4534_v41, %v4534_v41  ;;  %v4335_v60 = vadd.f32 %v12751_v4, %v4234_v46  ;;  %v4624_v29 = vld [vmem:[#allocation4 + $0x60] ss:$2 sm:$0x7f] }
 0x466   : > { %4561 = vst.msk [vmem:[#allocation5 + $0xe] sm:$0x1] %vm12767_vm1, %v4560_v10  ;;  %v4569_v5 = vrot.slane %v4560_v10, %v12765_v63  ;;  %v4593_v62 = vcombine.high %v4560_v10, %v4560_v10  ;;  %4389 = vst [vmem:[#allocation4 + $0x80] sm:$0xff] %v4361_v45  ;;  %v4364_v2 = vmax.f32 %v4336_v25, 0.0  ;;  %v12866_v36 = vld [vmem:[#allocation5] sm:$0xff]  ;;  %v4958_v41 = vld [vmem:[%s15542_s5 + $0x120] sm:$0xff] }
 0x467   : > { %4519 = vst.msk [vmem:[#allocation5 + $0xa] sm:$0x1] %vm12767_vm1, %v4517_v54  ;;  %4546 = vst.msk [vmem:[#allocation5 + $0xc] sm:$0x1] %vm12767_vm1, %v4544_v3  ;;  %v4363_v13 = vmax.f32 %v4335_v60, 0.0  ;;  %v10166_v14 = vpop.f32.mrb[20].mxu1  ;;  %v5721_v15 = vrot.slane %v12866_v36, %v12799_v31  ;;  %v5717_v16 = vrot.slane %v12866_v36, %v12805_v47  ;;  %v5729_v43 = vrot.slane %v12866_v36, %v12819_v58 }
 0x468   : > { %4549 = vst.msk [vmem:[#allocation5 + $0xd] sm:$0x1] %vm12767_vm1, %v4547_v57  ;;  %v4570_v17 = vcombine.high %v4569_v5, %v4569_v5  ;;  %v4577_v18 = vrot.slane %v4569_v5, %v12765_v63  ;;  %v4600_v19 = vrot.slane %v4593_v62, %v12765_v63  ;;  %v4626_v0 = vld [vmem:[#allocation4 + $0x61] ss:$2 sm:$0x7f]  ;;  %4392 = vst [vmem:[#allocation4 + $0x98] sm:$0xff] %v4364_v2 }
 0x469   : > { %v4338_v20 = vadd.f32 %v10166_v14, %v12751_v4  ;;  %v4244_v42 = vpop.f32.mrb[21].mxu1  ;;  %v4628_v33 = vld [vmem:[#allocation4 + $0x70] ss:$2 sm:$0x7f]  ;;  %4391 = vst [vmem:[#allocation4 + $0x90] sm:$0xff] %v4363_v13  ;;  %6023 = vmatprep.mubr.f32.mxu0 %v5721_v15  ;;  %v5733_v56 = vrot.slane %v12866_v36, %v12828_v35  ;;  %v4631_v24 = vmax.f32 %v4624_v29, %v4626_v0  ;;  %v4977_v10 = vld [vmem:[%s15542_s5 + $0x1b8] sm:$0xff] }
 0x46a   : > { %v4630_v37 = vld [vmem:[#allocation4 + $0x71] ss:$2 sm:$0x7f]  ;;  %v4337_v28 = vadd.f32 %v12751_v4, %v4244_v42  ;;  %v4584_v27 = vrot.slane %v4570_v17, %v12765_v63  ;;  %v4587_v59 = vcombine.high %v4577_v18, %v4577_v18  ;;  %v4607_v1 = vrot.slane %v4600_v19, %v12765_v63  ;;  %6024 = vmatmul.mubr.f32.vlgmr.msra.gmra.mrb[98].mxu0 %v5717_v16  ;;  %v4961_v5 = vld [vmem:[%s15542_s5 + $0x138] sm:$0xff] }
 0x46b   : > { %v4610_v55 = vcombine.high %v4600_v19, %v4600_v19  ;;  %v4632_v53 = vmax.f32 %v4628_v33, %v4630_v37  ;;  %v4366_v7 = vmax.f32 %v4338_v20, 0.0  ;;  %10573 = vmatpush3.bf16.msra.mxu0 %v10572_v49  ;;  %6093 = vmatprep.mubr.f32.mxu0 %v5729_v43  ;;  %v10169_v38 = vpop.f32.mrb[22].mxu1  ;;  %v4959_v30 = vld [vmem:[%s15542_s5 + $0x128] sm:$0xff]  ;;  %v5741_v45 = vrot.slane %v12866_v36, %v12822_v22  ;;  %v4960_v49 = vld [vmem:[%s15542_s5 + $0x130] sm:$0xff]  ;;  %v4978_v16 = vld [vmem:[%s15542_s5 + $0x1c0] sm:$0xff] }
 0x46c   : > { %v4365_v8 = vmax.f32 %v4337_v28, 0.0  ;;  %4586 = vst.msk [vmem:[#allocation5 + $0xf] sm:$0x1] %vm12767_vm1, %v4584_v27  ;;  %4589 = vst.msk [vmem:[#allocation5 + $0x10] sm:$0x1] %vm12767_vm1, %v4587_v59  ;;  %v4590_v26 = vcombine.high %v4584_v27, %v4584_v27  ;;  %v4620_v34 = vcombine.high %v4607_v1, %v4607_v1  ;;  %v4340_v39 = vadd.f32 %v10169_v38, %v12751_v4  ;;  %v4254_v44 = vpop.f32.mrb[23].mxu1 }
 0x46d   : > { %4609 = vst.msk [vmem:[#allocation5 + $0x12] sm:$0x1] %vm12767_vm1, %v4607_v1  ;;  %v4617_v32 = vrot.slane %v4610_v55, %v12765_v63  ;;  %10575 = vmatprep.subr.bf16.mxu0 %v10574_v9  ;;  %v4633_v48 = vmax.f32 %v4631_v24, %v4632_v53  ;;  %4394 = vst [vmem:[#allocation4 + $0xa8] sm:$0xff] %v4366_v7  ;;  %v4339_v52 = vadd.f32 %v12751_v4, %v4254_v44  ;;  %v4697_v25 = vld [vmem:[#allocation4 + $0x80] ss:$2 sm:$0x7f] }
 0x46e   : > { %4393 = vst [vmem:[#allocation4 + $0xa0] sm:$0xff] %v4365_v8  ;;  %4592 = vst.msk [vmem:[#allocation5 + $0x11] sm:$0x1] %vm12767_vm1, %v4590_v26  ;;  %v4368_v46 = vmax.f32 %v4340_v39, 0.0  ;;  %v10580_v60 = vpack.c.bf16 %v4959_v30, %v4958_v41  ;;  %v10582_v11 = vpack.c.bf16 %v4977_v10, %v4976_v61  ;;  %v10584_v0 = vpack.c.bf16 %v4961_v5, %v4960_v49  ;;  %v4962_v59 = vld [vmem:[%s15542_s5 + $0x140] sm:$0xff]  ;;  %v4963_v1 = vld [vmem:[%s15542_s5 + $0x148] sm:$0xff] }
 0x46f   : > { %4619 = vst.msk [vmem:[#allocation5 + $0x13] sm:$0x1] %vm12767_vm1, %v4617_v32  ;;  %4622 = vst.msk [vmem:[#allocation5 + $0x14] sm:$0x1] %vm12767_vm1, %v4620_v34  ;;  %v4642_v40 = vrot.slane %v4633_v48, %v12765_v63  ;;  %v4666_v51 = vcombine.high %v4633_v48, %v4633_v48  ;;  %v4367_v3 = vmax.f32 %v4339_v52, 0.0  ;;  %10577 = vmatpush3.bf16.msra.mxu0 %v10576_v6  ;;  %v10172_v57 = vpop.f32.mrb[24].mxu1 }
 0x470   : > { %4634 = vst.msk [vmem:[#allocation5 + $0x15] sm:$0x1] %vm12767_vm1, %v4633_v48  ;;  %v4699_v54 = vld [vmem:[#allocation4 + $0x81] ss:$2 sm:$0x7f]  ;;  %4396 = vst [vmem:[#allocation4 + $0xb8] sm:$0xff] %v4368_v46  ;;  %v4342_v9 = vadd.f32 %v10172_v57, %v12751_v4  ;;  %10579 = vmatprep.subr.bf16.mxu0 %v10578_v21  ;;  %v10588_v52 = vpack.c.bf16 %v4963_v1, %v4962_v59 }
 0x471   : > { %v4701_v62 = vld [vmem:[#allocation4 + $0x90] ss:$2 sm:$0x7f]  ;;  %v4703_v2 = vld [vmem:[#allocation4 + $0x91] ss:$2 sm:$0x7f]  ;;  %v4643_v12 = vcombine.high %v4642_v40, %v4642_v40  ;;  %v4650_v29 = vrot.slane %v4642_v40, %v12765_v63  ;;  %v4673_v13 = vrot.slane %v4666_v51, %v12765_v63  ;;  %v4704_v17 = vmax.f32 %v4697_v25, %v4699_v54 }
 0x472   : > { %v4705_v14 = vmax.f32 %v4701_v62, %v4703_v2  ;;  %4395 = vst [vmem:[#allocation4 + $0xb0] sm:$0xff] %v4367_v3  ;;  %v4264_v15 = vpop.f32.mrb[25].mxu1  ;;  %v4979_v6 = vld [vmem:[%s15542_s5 + $0x1c8] sm:$0xff]  ;;  %v4370_v18 = vmax.f32 %v4342_v9, 0.0  ;;  %v4980_v38 = vld [vmem:[%s15542_s5 + $0x1d0] sm:$0xff]  ;;  %v4981_v26 = vld [vmem:[%s15542_s5 + $0x1d8] sm:$0xff] }
 0x473   : > { %v4341_v19 = vadd.f32 %v12751_v4, %v4264_v15  ;;  %v4657_v20 = vrot.slane %v4643_v12, %v12765_v63  ;;  %v4660_v42 = vcombine.high %v4650_v29, %v4650_v29  ;;  %v4680_v33 = vrot.slane %v4673_v13, %v12765_v63  ;;  %10581 = vmatpush3.bf16.msra.mxu0 %v10580_v60  ;;  %v10175_v28 = vpop.f32.mrb[26].mxu1  ;;  %v12980_v30 = vld [vmem:[%s15542_s5 + $0x150] sm:$0xff]  ;;  %v12992_v61 = vld [vmem:[%s15542_s5 + $0x158] sm:$0xff]  ;;  %v12997_v10 = vld [vmem:[%s15542_s5 + $0xd00] sm:$0xff] }
 0x474   : > { %v4683_v37 = vcombine.high %v4673_v13, %v4673_v13  ;;  %v4706_v43 = vmax.f32 %v4704_v17, %v4705_v14  ;;  %4398 = vst [vmem:[#allocation4 + $0xc8] sm:$0xff] %v4370_v18  ;;  %v4344_v21 = vadd.f32 %v10175_v28, %v12751_v4  ;;  %10583 = vmatprep.subr.bf16.mxu0 %v10582_v11  ;;  %v4274_v8 = vpop.f32.mrb[27].mxu1  ;;  %v13002_v25 = vld [vmem:[%s15542_s5 + $0xd08] sm:$0xff]  ;;  %v4982_v5 = vld [vmem:[%s15542_s5 + $0x1e0] sm:$0xff]  ;;  %v13022_v15 = vsub.s32 7, %v12760_v50  ;;  %v5356_v17 = vld [vmem:[%s15542_s5 + $0xd90] sm:$0xff] }
 0x475   : > { %v10586_v27 = vpack.c.bf16 %v4979_v6, %v4978_v16  ;;  %4659 = vst.msk [vmem:[#allocation5 + $0x16] sm:$0x1] %vm12767_vm1, %v4657_v20  ;;  %4662 = vst.msk [vmem:[#allocation5 + $0x17] sm:$0x1] %vm12767_vm1, %v4660_v42  ;;  %v4663_v55 = vcombine.high %v4657_v20, %v4657_v20  ;;  %v4693_v53 = vcombine.high %v4680_v33, %v4680_v33  ;;  %v4369_v44 = vmax.f32 %v4341_v19, 0.0  ;;  %v4983_v62 = vld [vmem:[%s15542_s5 + $0x1e8] sm:$0xff] }
 0x476   : > { %4682 = vst.msk [vmem:[#allocation5 + $0x19] sm:$0x1] %vm12767_vm1, %v4680_v33  ;;  %v4690_v24 = vrot.slane %v4683_v37, %v12765_v63  ;;  %v4770_v7 = vld [vmem:[#allocation4 + $0xa0] ss:$2 sm:$0x7f]  ;;  %v4715_v32 = vrot.slane %v4706_v43, %v12765_v63  ;;  %v4739_v34 = vcombine.high %v4706_v43, %v4706_v43  ;;  %v4372_v41 = vmax.f32 %v4344_v21, 0.0 }
 0x477   : > { %4707 = vst.msk [vmem:[#allocation5 + $0x1c] sm:$0x1] %vm12767_vm1, %v4706_v43  ;;  %v4772_v39 = vld [vmem:[#allocation4 + $0xa1] ss:$2 sm:$0x7f]  ;;  %v4343_v48 = vadd.f32 %v12751_v4, %v4274_v8  ;;  %10585 = vmatpush3.bf16.msra.mxu0 %v10584_v0  ;;  %4397 = vst [vmem:[#allocation4 + $0xc0] sm:$0xff] %v4369_v44  ;;  %v10590_v54 = vpack.c.bf16 %v4981_v26, %v4980_v38  ;;  %v10592_v14 = vpack.c.bf16 %v12992_v61, %v12980_v30 }
 0x478   : > { %4665 = vst.msk [vmem:[#allocation5 + $0x18] sm:$0x1] %vm12767_vm1, %v4663_v55  ;;  %4692 = vst.msk [vmem:[#allocation5 + $0x1a] sm:$0x1] %vm12767_vm1, %v4690_v24  ;;  %v4716_v46 = vcombine.high %v4715_v32, %v4715_v32  ;;  %v4723_v4 = vrot.slane %v4715_v32, %v12765_v63  ;;  %v4746_v49 = vrot.slane %v4739_v34, %v12765_v63  ;;  %10587 = vmatprep.subr.bf16.mxu0 %v10586_v27  ;;  %v13017_v29 = vld [vmem:[%s15542_s5 + $0x160] sm:$0xff]  ;;  %v13029_v6 = vld [vmem:[%s15542_s5 + $0x168] sm:$0xff] }
 0x479   : > { %4695 = vst.msk [vmem:[#allocation5 + $0x1b] sm:$0x1] %vm12767_vm1, %v4693_v53  ;;  %v4774_v40 = vld [vmem:[#allocation4 + $0xb0] ss:$2 sm:$0x7f]  ;;  %v4777_v3 = vmax.f32 %v4770_v7, %v4772_v39  ;;  %v4371_v60 = vmax.f32 %v4343_v48, 0.0  ;;  %v10956_v16 = vpack.c.bf16 %v13002_v25, %v12997_v10  ;;  %v10594_v33 = vpack.c.bf16 %v4983_v62, %v4982_v5 }
 0x47a   : > { %v4776_v51 = vld [vmem:[#allocation4 + $0xb1] ss:$2 sm:$0x7f]  ;;  %4400 = vst [vmem:[#allocation4 + $0xd8] sm:$0x3f] %v4372_v41  ;;  %v4730_v2 = vrot.slane %v4716_v46, %v12765_v63  ;;  %v4733_v9 = vcombine.high %v4723_v4, %v4723_v4  ;;  %v4753_v11 = vrot.slane %v4746_v49, %v12765_v63  ;;  %v4756_v12 = vcombine.high %v4746_v49, %v4746_v49  ;;  %v5357_v18 = vld [vmem:[%s15542_s5 + $0xd98] sm:$0xff] }
 0x47b   : > { %v4778_v57 = vmax.f32 %v4774_v40, %v4776_v51  ;;  %4399 = vst [vmem:[#allocation4 + $0xd0] sm:$0xff] %v4371_v60  ;;  %10589 = vmatpush3.bf16.msra.mxu0 %v10588_v52  ;;  %v13049_v37 = vld [vmem:[%s15542_s5 + $0xd10] sm:$0xff]  ;;  %v13054_v28 = vld [vmem:[%s15542_s5 + $0xd18] sm:$0xff]  ;;  %v10596_v53 = vpack.c.bf16 %v13029_v6, %v13017_v29  ;;  %v10958_v7 = vpack.c.bf16 %v5357_v18, %v5356_v17  ;;  %v5358_v38 = vld [vmem:[%s15542_s5 + $0xda0] sm:$0xff]  ;;  %v13154_v17 = vsub.s32 2, %v12760_v50 }
 0x47c   : > { %4732 = vst.msk [vmem:[#allocation5 + $0x1d] sm:$0x1] %vm12767_vm1, %v4730_v2  ;;  %4735 = vst.msk [vmem:[#allocation5 + $0x1e] sm:$0x1] %vm12767_vm1, %v4733_v9  ;;  %v4736_v19 = vcombine.high %v4730_v2, %v4730_v2  ;;  %v4763_v0 = vrot.slane %v4756_v12, %v12765_v63  ;;  %v4766_v20 = vcombine.high %v4753_v11, %v4753_v11  ;;  %10591 = vmatprep.subr.bf16.mxu0 %v10590_v54  ;;  %v13044_v42 = vld [vmem:[#allocation5 + $0x10] sm:$0xff]  ;;  %v4984_v1 = vld [vmem:[%s15542_s5 + $0x1f0] sm:$0xff] }
 0x47d   : > { %v4779_v13 = vmax.f32 %v4777_v3, %v4778_v57  ;;  %4755 = vst.msk [vmem:[#allocation5 + $0x20] sm:$0x1] %vm12767_vm1, %v4753_v11  ;;  %v5809_v27 = vrot.slane %v13044_v42, %v13022_v15  ;;  %v5805_v59 = vrot.slane %v13044_v42, %v12822_v22  ;;  %v4985_v55 = vld [vmem:[%s15542_s5 + $0x1f8] sm:$0xff]  ;;  %v13072_v24 = vld [vmem:[%s15542_s5 + $0x170] sm:$0xff]  ;;  %v5359_v26 = vld [vmem:[%s15542_s5 + $0xda8] sm:$0xff]  ;;  %v10960_v30 = vpack.c.bf16 %v13054_v28, %v13049_v37 }
 0x47e   : > { %4738 = vst.msk [vmem:[#allocation5 + $0x1f] sm:$0x1] %vm12767_vm1, %v4736_v19  ;;  %4765 = vst.msk [vmem:[#allocation5 + $0x21] sm:$0x1] %vm12767_vm1, %v4763_v0  ;;  %v13085_v8 = vld [vmem:[%s15542_s5 + $0x178] sm:$0xff]  ;;  %v10598_v48 = vpack.c.bf16 %v4985_v55, %v4984_v1  ;;  %v13100_v52 = vld [vmem:[%s15542_s5 + $0xd20] sm:$0xff]  ;;  %v10962_v9 = vpack.c.bf16 %v5359_v26, %v5358_v38  ;;  %v5725_v38 = vrot.slane %v12866_v36, %v13154_v17 }
 0x47f   : > { %4780 = vst.msk [vmem:[#allocation5 + $0x23] sm:$0x1] %vm12767_vm1, %v4779_v13  ;;  %v4788_v43 = vrot.slane %v4779_v13, %v12765_v63  ;;  %v4812_v21 = vcombine.high %v4779_v13, %v4779_v13  ;;  %4768 = vst.msk [vmem:[#allocation5 + $0x22] sm:$0x1] %vm12767_vm1, %v4766_v20  ;;  %10593 = vmatpush3.bf16.msra.mxu0 %v10592_v14  ;;  %6793 = vmatprep.mubr.f32.mxu1 %v5809_v27  ;;  %v13105_v61 = vld [vmem:[%s15542_s5 + $0xd28] sm:$0xff]  ;;  %v5002_v10 = vld [vmem:[%s15542_s5 + $0x280] sm:$0xff] }
 0x480   : > { %v4843_v44 = vld [vmem:[#allocation4 + $0xc0] ss:$2 sm:$0x7f]  ;;  %v4845_v41 = vld [vmem:[#allocation4 + $0xc1] ss:$2 sm:$0x7f]  ;;  %6794 = vmatmul.mubr.f32.vlgmr.msra.gmra.mrb[28].mxu1 %v5805_v59  ;;  %10595 = vmatprep.subr.bf16.mxu0 %v10594_v33  ;;  %v10600_v2 = vpack.c.bf16 %v13085_v8, %v13072_v24  ;;  %v10964_v37 = vpack.c.bf16 %v13105_v61, %v13100_v52 }
 0x481   : > { %v4789_v32 = vcombine.high %v4788_v43, %v4788_v43  ;;  %v4796_v34 = vrot.slane %v4788_v43, %v12765_v63  ;;  %v4819_v39 = vrot.slane %v4812_v21, %v12765_v63  ;;  %v5003_v25 = vld [vmem:[%s15542_s5 + $0x288] sm:$0xff]  ;;  %10957 = vmatpush3.bf16.msra.mxu1 %v10956_v16  ;;  %v13118_v51 = vld [vmem:[%s15542_s5 + $0x200] sm:$0xff]  ;;  %v5360_v3 = vld [vmem:[%s15542_s5 + $0xdb0] sm:$0xff]  ;;  %v4850_v60 = vmax.f32 %v4843_v44, %v4845_v41 }
 0x482   : > { %v13123_v54 = vld [vmem:[%s15542_s5 + $0x208] sm:$0xff]  ;;  %v5361_v57 = vld [vmem:[%s15542_s5 + $0xdb8] sm:$0xff]  ;;  %10959 = vmatprep.subr.bf16.mxu1 %v10958_v7  ;;  %v13143_v14 = vld [vmem:[%s15542_s5 + $0xd30] sm:$0xff]  ;;  %v10602_v18 = vpack.c.bf16 %v5003_v25, %v5002_v10  ;;  %v13180_v43 = vsub.s32 5, %v12760_v50 }
 0x483   : > { %v4803_v46 = vrot.slane %v4789_v32, %v12765_v63  ;;  %v4806_v4 = vcombine.high %v4796_v34, %v4796_v34  ;;  %v4826_v49 = vrot.slane %v4819_v39, %v12765_v63  ;;  %v4829_v40 = vcombine.high %v4819_v39, %v4819_v39  ;;  %v4847_v5 = vld [vmem:[#allocation4 + $0xd0] ss:$2 sm:$0x7f]  ;;  %v4849_v62 = vld [vmem:[#allocation4 + $0xd1] ss:$2 sm:$0x7f]  ;;  %10597 = vmatpush3.bf16.msra.mxu0 %v10596_v53 }
 0x484   : > { %v4851_v13 = vmax.f32 %v4847_v5, %v4849_v62  ;;  %v13148_v16 = vld [vmem:[%s15542_s5 + $0xd38] sm:$0xff]  ;;  %v5004_v6 = vld [vmem:[%s15542_s5 + $0x290] sm:$0xff]  ;;  %10599 = vmatprep.subr.bf16.mxu0 %v10598_v48  ;;  %v5362_v21 = vld [vmem:[%s15542_s5 + $0xdc0] sm:$0xff]  ;;  %v10604_v1 = vpack.c.bf16 %v13123_v54, %v13118_v51  ;;  %v10966_v55 = vpack.c.bf16 %v5361_v57, %v5360_v3  ;;  %v5737_v41 = vrot.slane %v12866_v36, %v13180_v43 }
 0x485   : > { %4805 = vst.msk [vmem:[#allocation5 + $0x24] sm:$0x1] %vm12767_vm1, %v4803_v46  ;;  %4808 = vst.msk [vmem:[#allocation5 + $0x25] sm:$0x1] %vm12767_vm1, %v4806_v4  ;;  %v4809_v11 = vcombine.high %v4803_v46, %v4803_v46  ;;  %v4836_v12 = vrot.slane %v4829_v40, %v12765_v63  ;;  %v4839_v29 = vcombine.high %v4826_v49, %v4826_v49  ;;  %v5005_v19 = vld [vmem:[%s15542_s5 + $0x298] sm:$0xff]  ;;  %v13162_v0 = vld [vmem:[%s15542_s5 + $0x210] sm:$0xff]  ;;  %10961 = vmatpush3.bf16.msra.mxu1 %v10960_v30 }
 0x486   : > { %4828 = vst.msk [vmem:[#allocation5 + $0x27] sm:$0x1] %vm12767_vm1, %v4826_v49  ;;  %v13167_v20 = vld [vmem:[%s15542_s5 + $0x218] sm:$0xff]  ;;  %v4852_v33 = vmax.f32 %v4850_v60, %v4851_v13  ;;  %v13177_v28 = vld [vmem:[#allocation5 + $0x18] sm:$0xff]  ;;  %10963 = vmatprep.subr.bf16.mxu1 %v10962_v9  ;;  %v10968_v53 = vpack.c.bf16 %v13148_v16, %v13143_v14  ;;  %v10606_v7 = vpack.c.bf16 %v5005_v19, %v5004_v6  ;;  %v5006_v30 = vld [vmem:[%s15542_s5 + $0x2a0] sm:$0xff] }
 0x487   : > { %4811 = vst.msk [vmem:[#allocation5 + $0x26] sm:$0x1] %vm12767_vm1, %v4809_v11  ;;  %4838 = vst.msk [vmem:[#allocation5 + $0x28] sm:$0x1] %vm12767_vm1, %v4836_v12  ;;  %v5363_v27 = vld [vmem:[%s15542_s5 + $0xdc8] sm:$0xff]  ;;  %v5825_v59 = vrot.slane %v13177_v28, %v12819_v58  ;;  %10601 = vmatpush3.bf16.msra.mxu0 %v10600_v2  ;;  %v13197_v8 = vld [vmem:[#allocation5 + $0x8] sm:$0xff]  ;;  %v10608_v26 = vpack.c.bf16 %v13167_v20, %v13162_v0  ;;  %v5785_v0 = vrot.slane %v13044_v42, %v12799_v31 }
 0x488   : > { %4841 = vst.msk [vmem:[#allocation5 + $0x29] sm:$0x1] %vm12767_vm1, %v4839_v29  ;;  %4853 = vst.msk [vmem:[#allocation5 + $0x2a] sm:$0x1] %vm12767_vm1, %v4852_v33  ;;  %v4861_v50 = vrot.slane %v4852_v33, %v12765_v63  ;;  %v4885_v24 = vcombine.high %v4852_v33, %v4852_v33  ;;  %10603 = vmatprep.subr.bf16.mxu0 %v10602_v18  ;;  %v10970_v32 = vpack.c.bf16 %v5363_v27, %v5362_v21  ;;  %v5007_v48 = vld [vmem:[%s15542_s5 + $0x2a8] sm:$0xff]  ;;  %v5346_v52 = vld [vmem:[%s15542_s5 + $0xd40] sm:$0xff] }
 0x489   : > { %6933 = vmatprep.mubr.f32.mxu1 %v5825_v59  ;;  %10965 = vmatpush3.bf16.msra.mxu1 %v10964_v37  ;;  %v5347_v61 = vld [vmem:[%s15542_s5 + $0xd48] sm:$0xff]  ;;  %v5769_v10 = vrot.slane %v13197_v8, %v13180_v43  ;;  %v5765_v25 = vrot.slane %v13197_v8, %v12828_v35  ;;  %v5777_v46 = vrot.slane %v13197_v8, %v13022_v15  ;;  %v5364_v54 = vld [vmem:[%s15542_s5 + $0xdd0] sm:$0xff]  ;;  %v5365_v3 = vld [vmem:[%s15542_s5 + $0xdd8] sm:$0xff] }
 0x48a   : > { %v4862_v34 = vcombine.high %v4861_v50, %v4861_v50  ;;  %v4869_v39 = vrot.slane %v4861_v50, %v12765_v63  ;;  %v4892_v44 = vrot.slane %v4885_v24, %v12765_v63  ;;  %6094 = vmatmul.mubr.f32.vlgmr.msra.gmra.mrb[100].mxu0 %v5725_v38  ;;  %10967 = vmatprep.subr.bf16.mxu1 %v10966_v55  ;;  %v4990_v60 = vld [vmem:[%s15542_s5 + $0x220] sm:$0xff]  ;;  %v4991_v5 = vld [vmem:[%s15542_s5 + $0x228] sm:$0xff]  ;;  %v5008_v11 = vld [vmem:[%s15542_s5 + $0x2b0] sm:$0xff] }
 0x48b   : > { %10605 = vmatpush3.bf16.msra.mxu0 %v10604_v1  ;;  %6163 = vmatprep.mubr.f32.mxu0 %v5737_v41  ;;  %v10610_v57 = vpack.c.bf16 %v5007_v48, %v5006_v30  ;;  %v10972_v9 = vpack.c.bf16 %v5347_v61, %v5346_v52  ;;  %v5009_v12 = vld [vmem:[%s15542_s5 + $0x2b8] sm:$0xff]  ;;  %v10974_v29 = vpack.c.bf16 %v5365_v3, %v5364_v54  ;;  %v5348_v13 = vld [vmem:[%s15542_s5 + $0xd50] sm:$0xff]  ;;  %v5366_v16 = vld [vmem:[%s15542_s5 + $0xde0] sm:$0xff] }
 0x48c   : > { %v4876_v4 = vrot.slane %v4862_v34, %v12765_v63  ;;  %v4879_v49 = vcombine.high %v4869_v39, %v4869_v39  ;;  %v13227_v40 = vrot.slane %v4892_v44, %v12765_v63  ;;  %v4902_v51 = vcombine.high %v4892_v44, %v4892_v44  ;;  %10607 = vmatprep.subr.bf16.mxu0 %v10606_v7  ;;  %v5367_v6 = vld [vmem:[%s15542_s5 + $0xde8] sm:$0xff]  ;;  %v4992_v37 = vld [vmem:[%s15542_s5 + $0x230] sm:$0xff]  ;;  %v4993_v21 = vld [vmem:[%s15542_s5 + $0x238] sm:$0xff] }
 0x48d   : > { %10969 = vmatpush3.bf16.msra.mxu1 %v10968_v53  ;;  %v10612_v14 = vpack.c.bf16 %v4991_v5, %v4990_v60  ;;  %v5773_v19 = vrot.slane %v13197_v8, %v12822_v22  ;;  %v5781_v20 = vrot.slane %v13044_v42, %v12805_v47  ;;  %v10614_v33 = vpack.c.bf16 %v5009_v12, %v5008_v11  ;;  %v5010_v50 = vld [vmem:[%s15542_s5 + $0x2c0] sm:$0xff]  ;;  %v5011_v24 = vld [vmem:[%s15542_s5 + $0x2c8] sm:$0xff]  ;;  %v5368_v48 = vld [vmem:[%s15542_s5 + $0xdf0] sm:$0xff] }
 0x48e   : > { %4878 = vst.msk [vmem:[#allocation5 + $0x2b] sm:$0x1] %vm12767_vm1, %v4876_v4  ;;  %4881 = vst.msk [vmem:[#allocation5 + $0x2c] sm:$0x1] %vm12767_vm1, %v4879_v49  ;;  %v4882_v62 = vcombine.high %v4876_v4, %v4876_v4  ;;  %v4909_v2 = vrot.slane %v4902_v51, %v12765_v63  ;;  %10971 = vmatprep.subr.bf16.mxu1 %v10970_v32  ;;  %v5349_v63 = vld [vmem:[%s15542_s5 + $0xd58] sm:$0xff]  ;;  %v13271_v18 = vld [vmem:[#allocation5 + $0x20] sm:$0xff]  ;;  %v5793_v27 = vrot.slane %v13044_v42, %v12819_v58 }
 0x48f   : > { %4901 = vst.msk [vmem:[#allocation5 + $0x2e] sm:$0x1] %vm12767_vm1, %v13227_v40  ;;  %10609 = vmatpush3.bf16.msra.mxu0 %v10608_v26  ;;  %v5789_v59 = vrot.slane %v13044_v42, %v13154_v17  ;;  %v5801_v1 = vrot.slane %v13044_v42, %v13180_v43  ;;  %v10976_v55 = vpack.c.bf16 %v5349_v63, %v5348_v13  ;;  %v5350_v32 = vld [vmem:[%s15542_s5 + $0xd60] sm:$0xff]  ;;  %v5351_v34 = vld [vmem:[%s15542_s5 + $0xd68] sm:$0xff]  ;;  %v5369_v52 = vld [vmem:[%s15542_s5 + $0xdf8] sm:$0xff] }
 0x490   : > { %4884 = vst.msk [vmem:[#allocation5 + $0x2d] sm:$0x1] %vm12767_vm1, %v4882_v62  ;;  %4911 = vst.msk [vmem:[#allocation5 + $0x2f] sm:$0x1] %vm12767_vm1, %v4909_v2  ;;  %10611 = vmatprep.subr.bf16.mxu0 %v10610_v57  ;;  %v5797_v53 = vrot.slane %v13044_v42, %v12828_v35  ;;  %v5817_v7 = vrot.slane %v13177_v28, %v12799_v31  ;;  %v5813_v38 = vrot.slane %v13177_v28, %v12805_v47  ;;  %v4994_v54 = vld [vmem:[%s15542_s5 + $0x240] sm:$0xff]  ;;  %v4995_v3 = vld [vmem:[%s15542_s5 + $0x248] sm:$0xff] }
 0x491   : > { %10973 = vmatpush3.bf16.msra.mxu1 %v10972_v9  ;;  %v10978_v26 = vpack.c.bf16 %v5367_v6, %v5366_v16  ;;  %v5833_v39 = vrot.slane %v13177_v28, %v13180_v43  ;;  %v5829_v44 = vrot.slane %v13177_v28, %v12828_v35  ;;  %v5849_v41 = vrot.slane %v13271_v18, %v12799_v31  ;;  %v5012_v5 = vld [vmem:[%s15542_s5 + $0x2d0] sm:$0xff]  ;;  %v5013_v62 = vld [vmem:[%s15542_s5 + $0x2d8] sm:$0xff]  ;;  %v5419_v13 = vld [vmem:[%s15542_s5 + $0xf88] sm:$0xff] }
 0x492   : > { %10975 = vmatprep.subr.bf16.mxu1 %v10974_v29  ;;  %v10616_v30 = vpack.c.bf16 %v4993_v21, %v4992_v37  ;;  %v5845_v61 = vrot.slane %v13271_v18, %v12805_v47  ;;  %v5865_v4 = vrot.slane %v13271_v18, %v13180_v43  ;;  %v5861_v49 = vrot.slane %v13271_v18, %v12828_v35  ;;  %v5352_v9 = vld [vmem:[%s15542_s5 + $0xd70] sm:$0xff]  ;;  %v5418_v29 = vld [vmem:[%s15542_s5 + $0xf80] sm:$0xff]  ;;  %v5015_v21 = vld [vmem:[%s15542_s5 + $0x2e8] sm:$0xff] }
 0x493   : > { %10613 = vmatpush3.bf16.msra.mxu0 %v10612_v14  ;;  %v10618_v51 = vpack.c.bf16 %v5011_v24, %v5010_v50  ;;  %v4912_v57 = vcombine.high %v13227_v40, %v13227_v40  ;;  %v10980_v60 = vpack.c.bf16 %v5351_v34, %v5350_v32  ;;  %v10982_v2 = vpack.c.bf16 %v5369_v52, %v5368_v48  ;;  %v5353_v40 = vld [vmem:[%s15542_s5 + $0xd78] sm:$0xff]  ;;  %v4996_v14 = vld [vmem:[%s15542_s5 + $0x250] sm:$0xff]  ;;  %v5014_v37 = vld [vmem:[%s15542_s5 + $0x2e0] sm:$0xff] }
 0x494   : > { %10615 = vmatprep.subr.bf16.mxu0 %v10614_v33  ;;  %v10620_v12 = vpack.c.bf16 %v4995_v3, %v4994_v54  ;;  %v10622_v63 = vpack.c.bf16 %v5013_v62, %v5012_v5  ;;  %v10984_v33 = vpack.c.bf16 %v5353_v40, %v5352_v9  ;;  %v11018_v24 = vpack.c.bf16 %v5419_v13, %v5418_v29  ;;  %v5403_v32 = vld [vmem:[%s15542_s5 + $0xf08] sm:$0xff]  ;;  %v5421_v48 = vld [vmem:[%s15542_s5 + $0xf98] sm:$0xff]  ;;  %v5422_v29 = vld [vmem:[%s15542_s5 + $0xfa0] sm:$0xff] }
 0x495   : > { %10977 = vmatpush3.bf16.msra.mxu1 %v10976_v55  ;;  %4914 = vst.msk [vmem:[#allocation5 + $0x30] sm:$0x1] %vm12767_vm1, %v4912_v57  ;;  %v10624_v34 = vpack.c.bf16 %v4997_v23, %v4996_v14  ;;  %v10626_v52 = vpack.c.bf16 %v5015_v21, %v5014_v37  ;;  %v4999_v54 = vld [vmem:[%s15542_s5 + $0x268] sm:$0xff]  ;;  %v5016_v57 = vld [vmem:[%s15542_s5 + $0x2f0] sm:$0xff]  ;;  %v5821_v5 = vrot.slane %v13177_v28, %v13154_v17  ;;  %v5405_v9 = vld [vmem:[%s15542_s5 + $0xf18] sm:$0xff] }
 0x496   : > { %10979 = vmatprep.subr.bf16.mxu1 %v10978_v26  ;;  %v5402_v26 = vld [vmem:[%s15542_s5 + $0xf00] sm:$0xff]  ;;  %v5841_v40 = vrot.slane %v13177_v28, %v13022_v15  ;;  %v5423_v13 = vld [vmem:[%s15542_s5 + $0xfa8] sm:$0xff]  ;;  %v5000_v14 = vld [vmem:[%s15542_s5 + $0x270] sm:$0xff] }
 0x497   : > { %v13347_v11 = vld [vmem:[#allocation5 + $0x28] sm:$0xff]  ;;  %10617 = vmatpush3.bf16.msra.mxu0 %v10616_v30  ;;  %v5420_v30 = vld [vmem:[%s15542_s5 + $0xf90] sm:$0xff]  ;;  %v11020_v3 = vpack.c.bf16 %v5403_v32, %v5402_v26  ;;  %v5034_v37 = vld [vmem:[%s15542_s5 + $0x380] sm:$0xff] }
 0x498   : > { %10619 = vmatprep.subr.bf16.mxu0 %v10618_v51  ;;  %v5881_v16 = vrot.slane %v13347_v11, %v12799_v31  ;;  %v5877_v6 = vrot.slane %v13347_v11, %v12805_v47  ;;  %v5897_v55 = vrot.slane %v13347_v11, %v13180_v43  ;;  %v5893_v50 = vrot.slane %v13347_v11, %v12828_v35  ;;  %v4998_v51 = vld [vmem:[%s15542_s5 + $0x260] sm:$0xff]  ;;  %v5001_v23 = vld [vmem:[%s15542_s5 + $0x278] sm:$0xff]  ;;  %v5035_v21 = vld [vmem:[%s15542_s5 + $0x388] sm:$0xff] }
 0x499   : > { %10981 = vmatpush3.bf16.msra.mxu1 %v10980_v60  ;;  %v5017_v60 = vld [vmem:[%s15542_s5 + $0x2f8] sm:$0xff]  ;;  %v11022_v62 = vpack.c.bf16 %v5421_v48, %v5420_v30  ;;  %v5406_v26 = vld [vmem:[%s15542_s5 + $0xf20] sm:$0xff]  ;;  %v5407_v32 = vld [vmem:[%s15542_s5 + $0xf28] sm:$0xff] }
 0x49a   : > { %10983 = vmatprep.subr.bf16.mxu1 %v10982_v2  ;;  %v5404_v2 = vld [vmem:[%s15542_s5 + $0xf10] sm:$0xff]  ;;  %v5425_v48 = vld [vmem:[%s15542_s5 + $0xfb8] sm:$0xff] }
 0x49b   : > { %10621 = vmatpush3.bf16.msra.mxu0 %v10620_v12  ;;  %v10628_v12 = vpack.c.bf16 %v4999_v54, %v4998_v51  ;;  %v5424_v30 = vld [vmem:[%s15542_s5 + $0xfb0] sm:$0xff]  ;;  %v5018_v51 = vld [vmem:[%s15542_s5 + $0x300] sm:$0xff]  ;;  %v5019_v54 = vld [vmem:[%s15542_s5 + $0x308] sm:$0xff] }
 0x49c   : > { %10623 = vmatprep.subr.bf16.mxu0 %v10622_v63  ;;  %v10630_v63 = vpack.c.bf16 %v5017_v60, %v5016_v57  ;;  %v5036_v57 = vld [vmem:[%s15542_s5 + $0x390] sm:$0xff]  ;;  %v5037_v60 = vld [vmem:[%s15542_s5 + $0x398] sm:$0xff] }
 0x49d   : > { %10985 = vmatpush3.bf16.msra.mxu1 %v10984_v33  ;;  %v11024_v33 = vpack.c.bf16 %v5405_v9, %v5404_v2  ;;  %v5409_v2 = vld [vmem:[%s15542_s5 + $0xf38] sm:$0xff]  ;;  %v10636_v9 = vpack.c.bf16 %v5019_v54, %v5018_v51  ;;  %v5040_v54 = vld [vmem:[%s15542_s5 + $0x3b0] sm:$0xff] }
 0x49e   : > { %11019 = vmatprep.subr.bf16.mxu1 %v11018_v24  ;;  %v11026_v24 = vpack.c.bf16 %v5423_v13, %v5422_v29  ;;  %v10638_v29 = vpack.c.bf16 %v5037_v60, %v5036_v57  ;;  %v5020_v13 = vld [vmem:[%s15542_s5 + $0x310] sm:$0xff]  ;;  %v5649_v43 = vld [vmem:[%s15542_s5 + $0x16b8] sm:$0xff] }
 0x49f   : > { %10625 = vmatpush3.bf16.msra.mxu0 %v10624_v34  ;;  %v10632_v34 = vpack.c.bf16 %v5001_v23, %v5000_v14  ;;  %v5745_v14 = vrot.slane %v12866_v36, %v13022_v15  ;;  %v5412_v60 = vld [vmem:[%s15542_s5 + $0xf50] sm:$0xff]  ;;  %v5493_v36 = vld [vmem:[%s15542_s5 + $0x11d8] sm:$0xff] }
 0x4a0   : > { %6934 = vmatmul.mubr.f32.vlgmr.msra.gmra.mrb[30].mxu1 %v5821_v5  ;;  %10627 = vmatprep.subr.bf16.mxu0 %v10626_v52  ;;  %v10634_v52 = vpack.c.bf16 %v5035_v21, %v5034_v37  ;;  %v11030_v5 = vpack.c.bf16 %v5425_v48, %v5424_v30  ;;  %v5039_v37 = vld [vmem:[%s15542_s5 + $0x3a8] sm:$0xff]  ;;  %v5022_v48 = vld [vmem:[%s15542_s5 + $0x320] sm:$0xff]  ;;  %v5328_v42 = vld [vmem:[%s15542_s5 + $0xcb0] sm:$0xff] }
 0x4a1   : > { %11021 = vmatpush3.bf16.msra.mxu1 %v11020_v3  ;;  %7073 = vmatprep.mubr.f32.mxu1 %v5841_v40  ;;  %v11028_v3 = vpack.c.bf16 %v5407_v32, %v5406_v26  ;;  %v5426_v40 = vld [vmem:[%s15542_s5 + $0xfc0] sm:$0xff]  ;;  %v5411_v26 = vld [vmem:[%s15542_s5 + $0xf48] sm:$0xff]  ;;  %v5696_v35 = vld [vmem:[%s15542_s5 + $0x1830] sm:$0xff] }
 0x4a2   : > { %11023 = vmatprep.subr.bf16.mxu1 %v11022_v62  ;;  %v5408_v62 = vld [vmem:[%s15542_s5 + $0xf30] sm:$0xff] }
 0x4a3   : > { %10629 = vmatpush3.bf16.msra.mxu0 %v10628_v12  ;;  %v5427_v12 = vld [vmem:[%s15542_s5 + $0xfc8] sm:$0xff]  ;;  %v11032_v23 = vpack.c.bf16 %v5409_v2, %v5408_v62  ;;  %v5430_v2 = vld [vmem:[%s15542_s5 + $0xfe0] sm:$0xff] }
 0x4a4   : > { %10631 = vmatprep.subr.bf16.mxu0 %v10630_v63  ;;  %v5021_v63 = vld [vmem:[%s15542_s5 + $0x318] sm:$0xff]  ;;  %v11034_v21 = vpack.c.bf16 %v5427_v12, %v5426_v40  ;;  %v5024_v12 = vld [vmem:[%s15542_s5 + $0x330] sm:$0xff] }
 0x4a5   : > { %11025 = vmatpush3.bf16.msra.mxu1 %v11024_v33  ;;  %v5038_v33 = vld [vmem:[%s15542_s5 + $0x3a0] sm:$0xff]  ;;  %v10640_v32 = vpack.c.bf16 %v5021_v63, %v5020_v13 }
 0x4a6   : > { %11027 = vmatprep.subr.bf16.mxu1 %v11026_v24  ;;  %v5410_v24 = vld [vmem:[%s15542_s5 + $0xf40] sm:$0xff]  ;;  %v10642_v30 = vpack.c.bf16 %v5039_v37, %v5038_v33  ;;  %v5415_v37 = vld [vmem:[%s15542_s5 + $0xf68] sm:$0xff] }
 0x4a7   : > { %10633 = vmatpush3.bf16.msra.mxu0 %v10632_v34  ;;  %v5428_v34 = vld [vmem:[%s15542_s5 + $0xfd0] sm:$0xff]  ;;  %v11036_v51 = vpack.c.bf16 %v5411_v26, %v5410_v24  ;;  %v5042_v63 = vld [vmem:[%s15542_s5 + $0x3c0] sm:$0xff]  ;;  %v5433_v26 = vld [vmem:[%s15542_s5 + $0xff8] sm:$0xff] }
 0x4a8   : > { %10635 = vmatprep.subr.bf16.mxu0 %v10634_v52  ;;  %v5023_v52 = vld [vmem:[%s15542_s5 + $0x328] sm:$0xff]  ;;  %v5414_v33 = vld [vmem:[%s15542_s5 + $0xf60] sm:$0xff]  ;;  %v5432_v24 = vld [vmem:[%s15542_s5 + $0xff0] sm:$0xff] }
 0x4a9   : > { %11029 = vmatpush3.bf16.msra.mxu1 %v11028_v3  ;;  %v5041_v3 = vld [vmem:[%s15542_s5 + $0x3b8] sm:$0xff]  ;;  %v10644_v62 = vpack.c.bf16 %v5023_v52, %v5022_v48  ;;  %v5044_v48 = vld [vmem:[%s15542_s5 + $0x3d0] sm:$0xff] }
 0x4aa   : > { %6164 = vmatmul.mubr.f32.vlgmr.msra.gmra.mrb[102].mxu0 %v5733_v56  ;;  %11031 = vmatprep.subr.bf16.mxu1 %v11030_v5  ;;  %v5429_v56 = vld [vmem:[%s15542_s5 + $0xfd8] sm:$0xff]  ;;  %v10646_v40 = vpack.c.bf16 %v5041_v3, %v5040_v54  ;;  %v5416_v54 = vld [vmem:[%s15542_s5 + $0xf70] sm:$0xff] }
 0x4ab   : > { %10637 = vmatpush3.bf16.msra.mxu0 %v10636_v9  ;;  %6233 = vmatprep.mubr.f32.mxu0 %v5745_v14  ;;  %v11038_v57 = vpack.c.bf16 %v5429_v56, %v5428_v34  ;;  %v5413_v5 = vld [vmem:[%s15542_s5 + $0xf58] sm:$0xff]  ;;  %v5431_v9 = vld [vmem:[%s15542_s5 + $0xfe8] sm:$0xff]  ;;  %v5026_v34 = vld [vmem:[%s15542_s5 + $0x340] sm:$0xff] }
 0x4ac   : > { %10639 = vmatprep.subr.bf16.mxu0 %v10638_v29  ;;  %v5025_v29 = vld [vmem:[%s15542_s5 + $0x338] sm:$0xff]  ;;  %v11040_v13 = vpack.c.bf16 %v5413_v5, %v5412_v60  ;;  %v5043_v14 = vld [vmem:[%s15542_s5 + $0x3c8] sm:$0xff]  ;;  %v5482_v60 = vld [vmem:[%s15542_s5 + $0x1180] sm:$0xff] }
 0x4ad   : > { %11033 = vmatpush3.bf16.msra.mxu1 %v11032_v23  ;;  %v11042_v23 = vpack.c.bf16 %v5431_v9, %v5430_v2  ;;  %v5027_v56 = vld [vmem:[%s15542_s5 + $0x348] sm:$0xff]  ;;  %v5045_v52 = vld [vmem:[%s15542_s5 + $0x3d8] sm:$0xff]  ;;  %v5028_v2 = vld [vmem:[%s15542_s5 + $0x350] sm:$0xff] }
 0x4ae   : > { %11035 = vmatprep.subr.bf16.mxu1 %v11034_v21  ;;  %v10648_v21 = vpack.c.bf16 %v5025_v29, %v5024_v12  ;;  %v5417_v3 = vld [vmem:[%s15542_s5 + $0xf78] sm:$0xff]  ;;  %v5483_v5 = vld [vmem:[%s15542_s5 + $0x1188] sm:$0xff]  ;;  %v5046_v12 = vld [vmem:[%s15542_s5 + $0x3e0] sm:$0xff] }
 0x4af   : > { %10641 = vmatpush3.bf16.msra.mxu0 %v10640_v32  ;;  %v10650_v32 = vpack.c.bf16 %v5043_v14, %v5042_v63  ;;  %v5029_v9 = vld [vmem:[%s15542_s5 + $0x358] sm:$0xff]  ;;  %v5047_v29 = vld [vmem:[%s15542_s5 + $0x3e8] sm:$0xff]  ;;  %v5466_v63 = vld [vmem:[%s15542_s5 + $0x1100] sm:$0xff] }
 0x4b0   : > { %10643 = vmatprep.subr.bf16.mxu0 %v10642_v30  ;;  %v11044_v30 = vpack.c.bf16 %v5415_v37, %v5414_v33  ;;  %v5467_v14 = vld [vmem:[%s15542_s5 + $0x1108] sm:$0xff]  ;;  %v5484_v33 = vld [vmem:[%s15542_s5 + $0x1190] sm:$0xff]  ;;  %v5485_v37 = vld [vmem:[%s15542_s5 + $0x1198] sm:$0xff] }
 0x4b1   : > { %11037 = vmatpush3.bf16.msra.mxu1 %v11036_v51  ;;  %v11046_v51 = vpack.c.bf16 %v5433_v26, %v5432_v24  ;;  %v5030_v24 = vld [vmem:[%s15542_s5 + $0x360] sm:$0xff]  ;;  %v5031_v26 = vld [vmem:[%s15542_s5 + $0x368] sm:$0xff] }
 0x4b2   : > { %11039 = vmatprep.subr.bf16.mxu1 %v11038_v57  ;;  %v10652_v57 = vpack.c.bf16 %v5027_v56, %v5026_v34  ;;  %v5048_v34 = vld [vmem:[%s15542_s5 + $0x3f0] sm:$0xff]  ;;  %v5049_v56 = vld [vmem:[%s15542_s5 + $0x3f8] sm:$0xff] }
 0x4b3   : > { %10645 = vmatpush3.bf16.msra.mxu0 %v10644_v62  ;;  %v10654_v62 = vpack.c.bf16 %v5045_v52, %v5044_v48  ;;  %v11086_v48 = vpack.c.bf16 %v5485_v37, %v5484_v33  ;;  %v5468_v52 = vld [vmem:[%s15542_s5 + $0x1110] sm:$0xff]  ;;  %v5489_v33 = vld [vmem:[%s15542_s5 + $0x11b8] sm:$0xff] }
 0x4b4   : > { %10647 = vmatprep.subr.bf16.mxu0 %v10646_v40  ;;  %v11048_v40 = vpack.c.bf16 %v5417_v3, %v5416_v54  ;;  %v5857_v54 = vrot.slane %v13271_v18, %v12819_v58  ;;  %v10660_v3 = vpack.c.bf16 %v5031_v26, %v5030_v24  ;;  %v5051_v24 = vld [vmem:[%s15542_s5 + $0x408] sm:$0xff] }
 0x4b5   : > { %11041 = vmatpush3.bf16.msra.mxu1 %v11040_v13  ;;  %v11082_v13 = vpack.c.bf16 %v5483_v5, %v5482_v60  ;;  %v5487_v60 = vld [vmem:[%s15542_s5 + $0x11a8] sm:$0xff]  ;;  %v10662_v5 = vpack.c.bf16 %v5049_v56, %v5048_v34  ;;  %v5069_v34 = vld [vmem:[%s15542_s5 + $0x498] sm:$0xff] }
 0x4b6   : > { %11043 = vmatprep.subr.bf16.mxu1 %v11042_v23  ;;  %v10656_v23 = vpack.c.bf16 %v5029_v9, %v5028_v2  ;;  %v5033_v2 = vld [vmem:[%s15542_s5 + $0x378] sm:$0xff] }
 0x4b7   : > { %10649 = vmatpush3.bf16.msra.mxu0 %v10648_v21  ;;  %v10658_v21 = vpack.c.bf16 %v5047_v29, %v5046_v12  ;;  %v5067_v12 = vld [vmem:[%s15542_s5 + $0x488] sm:$0xff] }
 0x4b8   : > { %10651 = vmatprep.subr.bf16.mxu0 %v10650_v32  ;;  %v11084_v32 = vpack.c.bf16 %v5467_v14, %v5466_v63  ;;  %v5471_v63 = vld [vmem:[%s15542_s5 + $0x1128] sm:$0xff] }
 0x4b9   : > { %11045 = vmatpush3.bf16.msra.mxu1 %v11044_v30  ;;  %v5837_v30 = vrot.slane %v13177_v28, %v12822_v22  ;;  %v5456_v28 = vld [vmem:[%s15542_s5 + $0x10b0] sm:$0xff] }
 0x4ba   : > { %11047 = vmatprep.subr.bf16.mxu1 %v11046_v51  ;;  %v5469_v51 = vld [vmem:[%s15542_s5 + $0x1118] sm:$0xff] }
 0x4bb   : > { %10653 = vmatpush3.bf16.msra.mxu0 %v10652_v57  ;;  %v5486_v57 = vld [vmem:[%s15542_s5 + $0x11a0] sm:$0xff]  ;;  %v11088_v9 = vpack.c.bf16 %v5469_v51, %v5468_v52 }
 0x4bc   : > { %10655 = vmatprep.subr.bf16.mxu0 %v10654_v62  ;;  %v5032_v62 = vld [vmem:[%s15542_s5 + $0x370] sm:$0xff]  ;;  %v11090_v29 = vpack.c.bf16 %v5487_v60, %v5486_v57  ;;  %v5490_v51 = vld [vmem:[%s15542_s5 + $0x11c0] sm:$0xff]  ;;  %v5053_v60 = vld [vmem:[%s15542_s5 + $0x418] sm:$0xff] }
 0x4bd   : > { %11049 = vmatpush3.bf16.msra.mxu1 %v11048_v40  ;;  %v5066_v40 = vld [vmem:[%s15542_s5 + $0x480] sm:$0xff]  ;;  %v10664_v14 = vpack.c.bf16 %v5033_v2, %v5032_v62  ;;  %v5052_v57 = vld [vmem:[%s15542_s5 + $0x410] sm:$0xff] }
 0x4be   : > { %11083 = vmatprep.subr.bf16.mxu1 %v11082_v13  ;;  %v5470_v13 = vld [vmem:[%s15542_s5 + $0x1120] sm:$0xff]  ;;  %v10666_v37 = vpack.c.bf16 %v5067_v12, %v5066_v40 }
 0x4bf   : > { %10657 = vmatpush3.bf16.msra.mxu0 %v10656_v23  ;;  %v5488_v23 = vld [vmem:[%s15542_s5 + $0x11b0] sm:$0xff]  ;;  %v11092_v26 = vpack.c.bf16 %v5471_v63, %v5470_v13  ;;  %v5070_v2 = vld [vmem:[%s15542_s5 + $0x4a0] sm:$0xff]  ;;  %v10672_v13 = vpack.c.bf16 %v5053_v60, %v5052_v57  ;;  %v5075_v57 = vld [vmem:[%s15542_s5 + $0x4c8] sm:$0xff] }
 0x4c0   : > { %7074 = vmatmul.mubr.f32.vlgmr.msra.gmra.mrb[32].mxu1 %v5837_v30  ;;  %10659 = vmatprep.subr.bf16.mxu0 %v10658_v21  ;;  %v5050_v21 = vld [vmem:[%s15542_s5 + $0x400] sm:$0xff]  ;;  %v11094_v56 = vpack.c.bf16 %v5489_v33, %v5488_v23  ;;  %v5472_v30 = vld [vmem:[%s15542_s5 + $0x1130] sm:$0xff]  ;;  %v5055_v23 = vld [vmem:[%s15542_s5 + $0x428] sm:$0xff] }
 0x4c1   : > { %11085 = vmatpush3.bf16.msra.mxu1 %v11084_v32  ;;  %7213 = vmatprep.mubr.f32.mxu1 %v5857_v54  ;;  %v5068_v32 = vld [vmem:[%s15542_s5 + $0x490] sm:$0xff]  ;;  %v10668_v52 = vpack.c.bf16 %v5051_v24, %v5050_v21  ;;  %v5491_v54 = vld [vmem:[%s15542_s5 + $0x11c8] sm:$0xff]  ;;  %v5474_v12 = vld [vmem:[%s15542_s5 + $0x1140] sm:$0xff] }
 0x4c2   : > { %11087 = vmatprep.subr.bf16.mxu1 %v11086_v48  ;;  %v5473_v48 = vld [vmem:[%s15542_s5 + $0x1138] sm:$0xff]  ;;  %v11098_v40 = vpack.c.bf16 %v5491_v54, %v5490_v51  ;;  %v5492_v63 = vld [vmem:[%s15542_s5 + $0x11d0] sm:$0xff] }
 0x4c3   : > { %10661 = vmatpush3.bf16.msra.mxu0 %v10660_v3  ;;  %v10670_v3 = vpack.c.bf16 %v5069_v34, %v5068_v32  ;;  %v11096_v62 = vpack.c.bf16 %v5473_v48, %v5472_v30  ;;  %v5073_v21 = vld [vmem:[%s15542_s5 + $0x4b8] sm:$0xff]  ;;  %v11102_v24 = vpack.c.bf16 %v5493_v36, %v5492_v63  ;;  %v5495_v30 = vld [vmem:[%s15542_s5 + $0x11e8] sm:$0xff]  ;;  %v5076_v36 = vld [vmem:[%s15542_s5 + $0x4d0] sm:$0xff] }
 0x4c4   : > { %10663 = vmatprep.subr.bf16.mxu0 %v10662_v5  ;;  %v5753_v5 = vrot.slane %v13197_v8, %v12799_v31  ;;  %v5477_v32 = vld [vmem:[%s15542_s5 + $0x1158] sm:$0xff] }
 0x4c5   : > { %11089 = vmatpush3.bf16.msra.mxu1 %v11088_v9  ;;  %v5071_v9 = vld [vmem:[%s15542_s5 + $0x4a8] sm:$0xff]  ;;  %v5057_v51 = vld [vmem:[%s15542_s5 + $0x438] sm:$0xff] }
 0x4c6   : > { %11091 = vmatprep.subr.bf16.mxu1 %v11090_v29  ;;  %v5475_v29 = vld [vmem:[%s15542_s5 + $0x1148] sm:$0xff]  ;;  %v5585_v31 = vld [vmem:[%s15542_s5 + $0x14b8] sm:$0xff] }
 0x4c7   : > { %10665 = vmatpush3.bf16.msra.mxu0 %v10664_v14  ;;  %v5054_v14 = vld [vmem:[%s15542_s5 + $0x420] sm:$0xff]  ;;  %v11100_v33 = vpack.c.bf16 %v5475_v29, %v5474_v12 }
 0x4c8   : > { %10667 = vmatprep.subr.bf16.mxu0 %v10666_v37  ;;  %v5072_v37 = vld [vmem:[%s15542_s5 + $0x4b0] sm:$0xff]  ;;  %v10676_v34 = vpack.c.bf16 %v5055_v23, %v5054_v14  ;;  %v5058_v29 = vld [vmem:[%s15542_s5 + $0x440] sm:$0xff] }
 0x4c9   : > { %11093 = vmatpush3.bf16.msra.mxu1 %v11092_v26  ;;  %v5476_v26 = vld [vmem:[%s15542_s5 + $0x1150] sm:$0xff]  ;;  %v10678_v48 = vpack.c.bf16 %v5073_v21, %v5072_v37  ;;  %v5546_v21 = vld [vmem:[%s15542_s5 + $0x1380] sm:$0xff] }
 0x4ca   : > { %6234 = vmatmul.mubr.f32.vlgmr.msra.gmra.mrb[104].mxu0 %v5741_v45  ;;  %11095 = vmatprep.subr.bf16.mxu1 %v11094_v56  ;;  %v10674_v45 = vpack.c.bf16 %v5071_v9, %v5070_v2  ;;  %v5494_v56 = vld [vmem:[%s15542_s5 + $0x11e0] sm:$0xff]  ;;  %v11104_v54 = vpack.c.bf16 %v5477_v32, %v5476_v26  ;;  %v5496_v9 = vld [vmem:[%s15542_s5 + $0x11f0] sm:$0xff] }
 0x4cb   : > { %10669 = vmatpush3.bf16.msra.mxu0 %v10668_v52  ;;  %6303 = vmatprep.mubr.f32.mxu0 %v5753_v5  ;;  %v5056_v52 = vld [vmem:[%s15542_s5 + $0x430] sm:$0xff]  ;;  %v11106_v60 = vpack.c.bf16 %v5495_v30, %v5494_v56  ;;  %v5478_v5 = vld [vmem:[%s15542_s5 + $0x1160] sm:$0xff] }
 0x4cc   : > { %10671 = vmatprep.subr.bf16.mxu0 %v10670_v3  ;;  %v5074_v3 = vld [vmem:[%s15542_s5 + $0x4c0] sm:$0xff]  ;;  %v10680_v2 = vpack.c.bf16 %v5057_v51, %v5056_v52  ;;  %v5480_v23 = vld [vmem:[%s15542_s5 + $0x1170] sm:$0xff] }
 0x4cd   : > { %11097 = vmatpush3.bf16.msra.mxu1 %v11096_v62  ;;  %v5479_v62 = vld [vmem:[%s15542_s5 + $0x1168] sm:$0xff]  ;;  %v10682_v12 = vpack.c.bf16 %v5075_v57, %v5074_v3  ;;  %v5060_v32 = vld [vmem:[%s15542_s5 + $0x450] sm:$0xff]  ;;  %v5078_v30 = vld [vmem:[%s15542_s5 + $0x4e0] sm:$0xff] }
 0x4ce   : > { %11099 = vmatprep.subr.bf16.mxu1 %v11098_v40  ;;  %v5497_v40 = vld [vmem:[%s15542_s5 + $0x11f8] sm:$0xff]  ;;  %v11108_v63 = vpack.c.bf16 %v5479_v62, %v5478_v5  ;;  %v5530_v51 = vld [vmem:[%s15542_s5 + $0x1300] sm:$0xff]  ;;  %v5548_v57 = vld [vmem:[%s15542_s5 + $0x1390] sm:$0xff] }
 0x4cf   : > { %10673 = vmatpush3.bf16.msra.mxu0 %v10672_v13  ;;  %v5059_v13 = vld [vmem:[%s15542_s5 + $0x448] sm:$0xff]  ;;  %v11110_v14 = vpack.c.bf16 %v5497_v40, %v5496_v9  ;;  %v5062_v62 = vld [vmem:[%s15542_s5 + $0x460] sm:$0xff]  ;;  %v5080_v40 = vld [vmem:[%s15542_s5 + $0x4f0] sm:$0xff] }
 0x4d0   : > { %10675 = vmatprep.subr.bf16.mxu0 %v10674_v45  ;;  %v5077_v45 = vld [vmem:[%s15542_s5 + $0x4d8] sm:$0xff]  ;;  %v10684_v37 = vpack.c.bf16 %v5059_v13, %v5058_v29  ;;  %v5853_v29 = vrot.slane %v13271_v18, %v13154_v17 }
 0x4d1   : > { %11101 = vmatpush3.bf16.msra.mxu1 %v11100_v33  ;;  %v5481_v33 = vld [vmem:[%s15542_s5 + $0x1178] sm:$0xff]  ;;  %v10686_v26 = vpack.c.bf16 %v5077_v45, %v5076_v36  ;;  %v5873_v45 = vrot.slane %v13271_v18, %v13022_v15 }
 0x4d2   : > { %11103 = vmatprep.subr.bf16.mxu1 %v11102_v24  ;;  %v5547_v24 = vld [vmem:[%s15542_s5 + $0x1388] sm:$0xff]  ;;  %v11112_v56 = vpack.c.bf16 %v5481_v33, %v5480_v23  ;;  %v5533_v36 = vld [vmem:[%s15542_s5 + $0x1318] sm:$0xff]  ;;  %v5550_v23 = vld [vmem:[%s15542_s5 + $0x13a0] sm:$0xff] }
 0x4d3   : > { %10677 = vmatpush3.bf16.msra.mxu0 %v10676_v34  ;;  %v5061_v34 = vld [vmem:[%s15542_s5 + $0x458] sm:$0xff]  ;;  %v11146_v52 = vpack.c.bf16 %v5547_v24, %v5546_v21  ;;  %v5551_v33 = vld [vmem:[%s15542_s5 + $0x13a8] sm:$0xff]  ;;  %v5064_v21 = vld [vmem:[%s15542_s5 + $0x470] sm:$0xff] }
 0x4d4   : > { %10679 = vmatprep.subr.bf16.mxu0 %v10678_v48  ;;  %v5079_v48 = vld [vmem:[%s15542_s5 + $0x4e8] sm:$0xff]  ;;  %v10688_v3 = vpack.c.bf16 %v5061_v34, %v5060_v32  ;;  %v5065_v24 = vld [vmem:[%s15542_s5 + $0x478] sm:$0xff]  ;;  %v5098_v32 = vld [vmem:[%s15542_s5 + $0x580] sm:$0xff] }
 0x4d5   : > { %11105 = vmatpush3.bf16.msra.mxu1 %v11104_v54  ;;  %v5531_v54 = vld [vmem:[%s15542_s5 + $0x1308] sm:$0xff]  ;;  %v10690_v5 = vpack.c.bf16 %v5079_v48, %v5078_v30  ;;  %v5534_v30 = vld [vmem:[%s15542_s5 + $0x1320] sm:$0xff] }
 0x4d6   : > { %11107 = vmatprep.subr.bf16.mxu1 %v11106_v60  ;;  %v5549_v60 = vld [vmem:[%s15542_s5 + $0x1398] sm:$0xff]  ;;  %v11148_v9 = vpack.c.bf16 %v5531_v54, %v5530_v51  ;;  %v5099_v34 = vld [vmem:[%s15542_s5 + $0x588] sm:$0xff]  ;;  %v5552_v51 = vld [vmem:[%s15542_s5 + $0x13b0] sm:$0xff] }
 0x4d7   : > { %10681 = vmatpush3.bf16.msra.mxu0 %v10680_v2  ;;  %v5063_v2 = vld [vmem:[%s15542_s5 + $0x468] sm:$0xff]  ;;  %v11150_v13 = vpack.c.bf16 %v5549_v60, %v5548_v57  ;;  %v5553_v54 = vld [vmem:[%s15542_s5 + $0x13b8] sm:$0xff]  ;;  %v5082_v57 = vld [vmem:[%s15542_s5 + $0x500] sm:$0xff] }
 0x4d8   : > { %10683 = vmatprep.subr.bf16.mxu0 %v10682_v12  ;;  %v5081_v12 = vld [vmem:[%s15542_s5 + $0x4f8] sm:$0xff]  ;;  %v5535_v48 = vld [vmem:[%s15542_s5 + $0x1328] sm:$0xff] }
 0x4d9   : > { %11109 = vmatpush3.bf16.msra.mxu1 %v11108_v63  ;;  %v5532_v63 = vld [vmem:[%s15542_s5 + $0x1310] sm:$0xff]  ;;  %v5083_v60 = vld [vmem:[%s15542_s5 + $0x508] sm:$0xff] }
 0x4da   : > { %11111 = vmatprep.subr.bf16.mxu1 %v11110_v14  ;;  %v10692_v14 = vpack.c.bf16 %v5063_v2, %v5062_v62  ;;  %v5100_v62 = vld [vmem:[%s15542_s5 + $0x590] sm:$0xff]  ;;  %v5101_v2 = vld [vmem:[%s15542_s5 + $0x598] sm:$0xff] }
 0x4db   : > { %10685 = vmatpush3.bf16.msra.mxu0 %v10684_v37  ;;  %v10694_v37 = vpack.c.bf16 %v5081_v12, %v5080_v40  ;;  %v5536_v40 = vld [vmem:[%s15542_s5 + $0x1330] sm:$0xff]  ;;  %v5537_v12 = vld [vmem:[%s15542_s5 + $0x1338] sm:$0xff] }
 0x4dc   : > { %10687 = vmatprep.subr.bf16.mxu0 %v10686_v26  ;;  %v11152_v26 = vpack.c.bf16 %v5533_v36, %v5532_v63  ;;  %v5555_v63 = vld [vmem:[%s15542_s5 + $0x13c8] sm:$0xff]  ;;  %v5749_v36 = vrot.slane %v13197_v8, %v12805_v47  ;;  %v5648_v47 = vld [vmem:[%s15542_s5 + $0x16b0] sm:$0xff] }
 0x4dd   : > { %11113 = vmatpush3.bf16.msra.mxu1 %v11112_v56  ;;  %v11154_v56 = vpack.c.bf16 %v5551_v33, %v5550_v23  ;;  %v5085_v23 = vld [vmem:[%s15542_s5 + $0x518] sm:$0xff]  ;;  %v5761_v33 = vrot.slane %v13197_v8, %v12819_v58 }
 0x4de   : > { %11147 = vmatprep.subr.bf16.mxu1 %v11146_v52  ;;  %v10696_v52 = vpack.c.bf16 %v5065_v24, %v5064_v21  ;;  %v5102_v21 = vld [vmem:[%s15542_s5 + $0x5a0] sm:$0xff]  ;;  %v5103_v24 = vld [vmem:[%s15542_s5 + $0x5a8] sm:$0xff]  ;;  %v5201_v8 = vld [vmem:[%s15542_s5 + $0x8b8] sm:$0xff] }
 0x4df   : > { %10689 = vmatpush3.bf16.msra.mxu0 %v10688_v3  ;;  %v10698_v3 = vpack.c.bf16 %v5099_v34, %v5098_v32  ;;  %v5538_v32 = vld [vmem:[%s15542_s5 + $0x1340] sm:$0xff]  ;;  %v5539_v34 = vld [vmem:[%s15542_s5 + $0x1348] sm:$0xff] }
 0x4e0   : > { %7214 = vmatmul.mubr.f32.vlgmr.msra.gmra.mrb[34].mxu1 %v5853_v29  ;;  %10691 = vmatprep.subr.bf16.mxu0 %v10690_v5  ;;  %v11156_v5 = vpack.c.bf16 %v5535_v48, %v5534_v30  ;;  %v10700_v29 = vpack.c.bf16 %v5083_v60, %v5082_v57  ;;  %v5556_v30 = vld [vmem:[%s15542_s5 + $0x13d0] sm:$0xff]  ;;  %v5557_v48 = vld [vmem:[%s15542_s5 + $0x13d8] sm:$0xff] }
 0x4e1   : > { %11149 = vmatpush3.bf16.msra.mxu1 %v11148_v9  ;;  %7353 = vmatprep.mubr.f32.mxu1 %v5873_v45  ;;  %v11158_v9 = vpack.c.bf16 %v5553_v54, %v5552_v51  ;;  %v10702_v45 = vpack.c.bf16 %v5101_v2, %v5100_v62  ;;  %v5086_v51 = vld [vmem:[%s15542_s5 + $0x520] sm:$0xff]  ;;  %v5087_v54 = vld [vmem:[%s15542_s5 + $0x528] sm:$0xff]  ;;  %v5104_v57 = vld [vmem:[%s15542_s5 + $0x5b0] sm:$0xff] }
 0x4e2   : > { %11151 = vmatprep.subr.bf16.mxu1 %v11150_v13  ;;  %v5554_v13 = vld [vmem:[%s15542_s5 + $0x13c0] sm:$0xff]  ;;  %v5105_v60 = vld [vmem:[%s15542_s5 + $0x5b8] sm:$0xff]  ;;  %v5540_v62 = vld [vmem:[%s15542_s5 + $0x1350] sm:$0xff] }
 0x4e3   : > { %10693 = vmatpush3.bf16.msra.mxu0 %v10692_v14  ;;  %v5084_v14 = vld [vmem:[%s15542_s5 + $0x510] sm:$0xff]  ;;  %v5541_v2 = vld [vmem:[%s15542_s5 + $0x1358] sm:$0xff] }
 0x4e4   : > { %10695 = vmatprep.subr.bf16.mxu0 %v10694_v37  ;;  %v11160_v37 = vpack.c.bf16 %v5537_v12, %v5536_v40  ;;  %v5558_v40 = vld [vmem:[%s15542_s5 + $0x13e0] sm:$0xff]  ;;  %v5559_v12 = vld [vmem:[%s15542_s5 + $0x13e8] sm:$0xff] }
 0x4e5   : > { %11153 = vmatpush3.bf16.msra.mxu1 %v11152_v26  ;;  %v11162_v26 = vpack.c.bf16 %v5555_v63, %v5554_v13  ;;  %v5088_v13 = vld [vmem:[%s15542_s5 + $0x530] sm:$0xff]  ;;  %v5089_v63 = vld [vmem:[%s15542_s5 + $0x538] sm:$0xff] }
 0x4e6   : > { %11155 = vmatprep.subr.bf16.mxu1 %v11154_v56  ;;  %v10704_v56 = vpack.c.bf16 %v5085_v23, %v5084_v14  ;;  %v5107_v14 = vld [vmem:[%s15542_s5 + $0x5c8] sm:$0xff]  ;;  %v11170_v23 = vpack.c.bf16 %v5559_v12, %v5558_v40  ;;  %v5110_v12 = vld [vmem:[%s15542_s5 + $0x5e0] sm:$0xff] }
 0x4e7   : > { %10697 = vmatpush3.bf16.msra.mxu0 %v10696_v52  ;;  %v10706_v52 = vpack.c.bf16 %v5103_v24, %v5102_v21  ;;  %v10712_v21 = vpack.c.bf16 %v5089_v63, %v5088_v13  ;;  %v5560_v24 = vld [vmem:[%s15542_s5 + $0x13f0] sm:$0xff]  ;;  %v5594_v63 = vld [vmem:[%s15542_s5 + $0x1500] sm:$0xff] }
 0x4e8   : > { %10699 = vmatprep.subr.bf16.mxu0 %v10698_v3  ;;  %v11164_v3 = vpack.c.bf16 %v5539_v34, %v5538_v32  ;;  %v5090_v34 = vld [vmem:[%s15542_s5 + $0x540] sm:$0xff] }
 0x4e9   : > { %11157 = vmatpush3.bf16.msra.mxu1 %v11156_v5  ;;  %v11166_v5 = vpack.c.bf16 %v5557_v48, %v5556_v30  ;;  %v5108_v48 = vld [vmem:[%s15542_s5 + $0x5d0] sm:$0xff] }
 0x4ea   : > { %6304 = vmatmul.mubr.f32.vlgmr.msra.gmra.mrb[106].mxu0 %v5749_v36  ;;  %11159 = vmatprep.subr.bf16.mxu1 %v11158_v9  ;;  %v10708_v9 = vpack.c.bf16 %v5087_v54, %v5086_v51  ;;  %v11168_v36 = vpack.c.bf16 %v5541_v2, %v5540_v62  ;;  %v5544_v54 = vld [vmem:[%s15542_s5 + $0x1370] sm:$0xff] }
 0x4eb   : > { %10701 = vmatpush3.bf16.msra.mxu0 %v10700_v29  ;;  %6373 = vmatprep.mubr.f32.mxu0 %v5761_v33  ;;  %v10710_v29 = vpack.c.bf16 %v5105_v60, %v5104_v57  ;;  %v5542_v33 = vld [vmem:[%s15542_s5 + $0x1360] sm:$0xff]  ;;  %v5092_v2 = vld [vmem:[%s15542_s5 + $0x550] sm:$0xff] }
 0x4ec   : > { %10703 = vmatprep.subr.bf16.mxu0 %v10702_v45  ;;  %v5106_v45 = vld [vmem:[%s15542_s5 + $0x5c0] sm:$0xff] }
 0x4ed   : > { %11161 = vmatpush3.bf16.msra.mxu1 %v11160_v37  ;;  %v5543_v37 = vld [vmem:[%s15542_s5 + $0x1368] sm:$0xff]  ;;  %v10714_v32 = vpack.c.bf16 %v5107_v14, %v5106_v45  ;;  %v5610_v60 = vld [vmem:[%s15542_s5 + $0x1580] sm:$0xff]  ;;  %v5612_v14 = vld [vmem:[%s15542_s5 + $0x1590] sm:$0xff] }
 0x4ee   : > { %11163 = vmatprep.subr.bf16.mxu1 %v11162_v26  ;;  %v5561_v26 = vld [vmem:[%s15542_s5 + $0x13f8] sm:$0xff]  ;;  %v11172_v30 = vpack.c.bf16 %v5543_v37, %v5542_v33  ;;  %v5094_v37 = vld [vmem:[%s15542_s5 + $0x560] sm:$0xff] }
 0x4ef   : > { %10705 = vmatpush3.bf16.msra.mxu0 %v10704_v56  ;;  %v5091_v56 = vld [vmem:[%s15542_s5 + $0x548] sm:$0xff]  ;;  %v11174_v51 = vpack.c.bf16 %v5561_v26, %v5560_v24  ;;  %v5112_v26 = vld [vmem:[%s15542_s5 + $0x5f0] sm:$0xff] }
 0x4f0   : > { %10707 = vmatprep.subr.bf16.mxu0 %v10706_v52  ;;  %v5109_v52 = vld [vmem:[%s15542_s5 + $0x5d8] sm:$0xff]  ;;  %v10716_v57 = vpack.c.bf16 %v5091_v56, %v5090_v34  ;;  %v5869_v34 = vrot.slane %v13271_v18, %v12822_v22  ;;  %v5584_v18 = vld [vmem:[%s15542_s5 + $0x14b0] sm:$0xff] }
 0x4f1   : > { %11165 = vmatpush3.bf16.msra.mxu1 %v11164_v3  ;;  %v5545_v3 = vld [vmem:[%s15542_s5 + $0x1378] sm:$0xff]  ;;  %v10718_v62 = vpack.c.bf16 %v5109_v52, %v5108_v48  ;;  %v5889_v52 = vrot.slane %v13347_v11, %v12819_v58 }
 0x4f2   : > { %11167 = vmatprep.subr.bf16.mxu1 %v11166_v5  ;;  %v5611_v5 = vld [vmem:[%s15542_s5 + $0x1588] sm:$0xff]  ;;  %v11176_v40 = vpack.c.bf16 %v5545_v3, %v5544_v54  ;;  %v5597_v48 = vld [vmem:[%s15542_s5 + $0x1518] sm:$0xff]  ;;  %v5614_v54 = vld [vmem:[%s15542_s5 + $0x15a0] sm:$0xff] }
 0x4f3   : > { %10709 = vmatpush3.bf16.msra.mxu0 %v10708_v9  ;;  %v5093_v9 = vld [vmem:[%s15542_s5 + $0x558] sm:$0xff]  ;;  %v11210_v13 = vpack.c.bf16 %v5611_v5, %v5610_v60  ;;  %v5615_v3 = vld [vmem:[%s15542_s5 + $0x15a8] sm:$0xff]  ;;  %v5096_v60 = vld [vmem:[%s15542_s5 + $0x570] sm:$0xff] }
 0x4f4   : > { %10711 = vmatprep.subr.bf16.mxu0 %v10710_v29  ;;  %v5111_v29 = vld [vmem:[%s15542_s5 + $0x5e8] sm:$0xff]  ;;  %v10720_v45 = vpack.c.bf16 %v5093_v9, %v5092_v2  ;;  %v5097_v5 = vld [vmem:[%s15542_s5 + $0x578] sm:$0xff]  ;;  %v5130_v2 = vld [vmem:[%s15542_s5 + $0x680] sm:$0xff] }
 0x4f5   : > { %11169 = vmatpush3.bf16.msra.mxu1 %v11168_v36  ;;  %v5595_v36 = vld [vmem:[%s15542_s5 + $0x1508] sm:$0xff]  ;;  %v10722_v33 = vpack.c.bf16 %v5111_v29, %v5110_v12  ;;  %v5598_v12 = vld [vmem:[%s15542_s5 + $0x1520] sm:$0xff]  ;;  %v5233_v58 = vld [vmem:[%s15542_s5 + $0x9b8] sm:$0xff] }
 0x4f6   : > { %11171 = vmatprep.subr.bf16.mxu1 %v11170_v23  ;;  %v5613_v23 = vld [vmem:[%s15542_s5 + $0x1598] sm:$0xff]  ;;  %v11212_v24 = vpack.c.bf16 %v5595_v36, %v5594_v63  ;;  %v5131_v9 = vld [vmem:[%s15542_s5 + $0x688] sm:$0xff]  ;;  %v5616_v63 = vld [vmem:[%s15542_s5 + $0x15b0] sm:$0xff] }
 0x4f7   : > { %10713 = vmatpush3.bf16.msra.mxu0 %v10712_v21  ;;  %v5095_v21 = vld [vmem:[%s15542_s5 + $0x568] sm:$0xff]  ;;  %v11214_v56 = vpack.c.bf16 %v5613_v23, %v5612_v14  ;;  %v5617_v36 = vld [vmem:[%s15542_s5 + $0x15b8] sm:$0xff]  ;;  %v5114_v14 = vld [vmem:[%s15542_s5 + $0x600] sm:$0xff] }
 0x4f8   : > { %10715 = vmatprep.subr.bf16.mxu0 %v10714_v32  ;;  %v5113_v32 = vld [vmem:[%s15542_s5 + $0x5f8] sm:$0xff]  ;;  %v5599_v29 = vld [vmem:[%s15542_s5 + $0x1528] sm:$0xff] }
 0x4f9   : > { %11173 = vmatpush3.bf16.msra.mxu1 %v11172_v30  ;;  %v5596_v30 = vld [vmem:[%s15542_s5 + $0x1510] sm:$0xff]  ;;  %v5115_v23 = vld [vmem:[%s15542_s5 + $0x608] sm:$0xff]  ;;  %v5697_v11 = vld [vmem:[%s15542_s5 + $0x1838] sm:$0xff] }
 0x4fa   : > { %11175 = vmatprep.subr.bf16.mxu1 %v11174_v51  ;;  %v10724_v51 = vpack.c.bf16 %v5095_v21, %v5094_v37  ;;  %v5132_v37 = vld [vmem:[%s15542_s5 + $0x690] sm:$0xff]  ;;  %v5133_v21 = vld [vmem:[%s15542_s5 + $0x698] sm:$0xff] }
 0x4fb   : > { %10717 = vmatpush3.bf16.msra.mxu0 %v10716_v57  ;;  %v10726_v57 = vpack.c.bf16 %v5113_v32, %v5112_v26  ;;  %v5600_v26 = vld [vmem:[%s15542_s5 + $0x1530] sm:$0xff]  ;;  %v5601_v32 = vld [vmem:[%s15542_s5 + $0x1538] sm:$0xff] }
 0x4fc   : > { %10719 = vmatprep.subr.bf16.mxu0 %v10718_v62  ;;  %v11216_v62 = vpack.c.bf16 %v5597_v48, %v5596_v30  ;;  %v5619_v30 = vld [vmem:[%s15542_s5 + $0x15c8] sm:$0xff]  ;;  %v11638_v48 = vld [vmem:[#allocation5 + $0x8] sm:$0xff] }
 0x4fd   : > { %11177 = vmatpush3.bf16.msra.mxu1 %v11176_v40  ;;  %v11218_v40 = vpack.c.bf16 %v5615_v3, %v5614_v54  ;;  %v5116_v54 = vld [vmem:[%s15542_s5 + $0x610] sm:$0xff]  ;;  %v5117_v3 = vld [vmem:[%s15542_s5 + $0x618] sm:$0xff] }
 0x4fe   : > { %11211 = vmatprep.subr.bf16.mxu1 %v11210_v13  ;;  %v10728_v13 = vpack.c.bf16 %v5097_v5, %v5096_v60  ;;  %v5134_v60 = vld [vmem:[%s15542_s5 + $0x6a0] sm:$0xff]  ;;  %v5135_v5 = vld [vmem:[%s15542_s5 + $0x6a8] sm:$0xff] }
 0x4ff   : > { %10721 = vmatpush3.bf16.msra.mxu0 %v10720_v45  ;;  %v10730_v45 = vpack.c.bf16 %v5131_v9, %v5130_v2  ;;  %v5602_v2 = vld [vmem:[%s15542_s5 + $0x1540] sm:$0xff]  ;;  %v5603_v9 = vld [vmem:[%s15542_s5 + $0x1548] sm:$0xff] }
 0x500   : > { %7354 = vmatmul.mubr.f32.vlgmr.msra.gmra.mrb[36].mxu1 %v5869_v34  ;;  %10723 = vmatprep.subr.bf16.mxu0 %v10722_v33  ;;  %v11220_v33 = vpack.c.bf16 %v5599_v29, %v5598_v12  ;;  %v10732_v34 = vpack.c.bf16 %v5115_v23, %v5114_v14  ;;  %v5620_v12 = vld [vmem:[%s15542_s5 + $0x15d0] sm:$0xff]  ;;  %v5621_v29 = vld [vmem:[%s15542_s5 + $0x15d8] sm:$0xff] }
 0x501   : > { %11213 = vmatpush3.bf16.msra.mxu1 %v11212_v24  ;;  %7493 = vmatprep.mubr.f32.mxu1 %v5889_v52  ;;  %v11222_v24 = vpack.c.bf16 %v5617_v36, %v5616_v63  ;;  %v5757_v52 = vrot.slane %v11638_v48, %v13154_v17  ;;  %v5118_v63 = vld [vmem:[%s15542_s5 + $0x620] sm:$0xff]  ;;  %v5119_v36 = vld [vmem:[%s15542_s5 + $0x628] sm:$0xff]  ;;  %v5137_v14 = vld [vmem:[%s15542_s5 + $0x6b8] sm:$0xff]  ;;  %v11230_v23 = vpack.c.bf16 %v5621_v29, %v5620_v12 }
 0x502   : > { %11215 = vmatprep.subr.bf16.mxu1 %v11214_v56  ;;  %v5618_v56 = vld [vmem:[%s15542_s5 + $0x15c0] sm:$0xff]  ;;  %v5140_v12 = vld [vmem:[%s15542_s5 + $0x6d0] sm:$0xff]  ;;  %v5141_v29 = vld [vmem:[%s15542_s5 + $0x6d8] sm:$0xff] }
 0x503   : > { %10725 = vmatpush3.bf16.msra.mxu0 %v10724_v51  ;;  %v10734_v51 = vpack.c.bf16 %v5133_v21, %v5132_v37  ;;  %v5605_v37 = vld [vmem:[%s15542_s5 + $0x1558] sm:$0xff]  ;;  %v10740_v21 = vpack.c.bf16 %v5119_v36, %v5118_v63  ;;  %v5138_v48 = vld [vmem:[%s15542_s5 + $0x6c0] sm:$0xff]  ;;  %v5608_v63 = vld [vmem:[%s15542_s5 + $0x1570] sm:$0xff] }
 0x504   : > { %10727 = vmatprep.subr.bf16.mxu0 %v10726_v57  ;;  %v11224_v57 = vpack.c.bf16 %v5601_v32, %v5600_v26  ;;  %v5623_v26 = vld [vmem:[%s15542_s5 + $0x15e8] sm:$0xff]  ;;  %v5609_v36 = vld [vmem:[%s15542_s5 + $0x1578] sm:$0xff] }
 0x505   : > { %11217 = vmatpush3.bf16.msra.mxu1 %v11216_v62  ;;  %v11226_v62 = vpack.c.bf16 %v5619_v30, %v5618_v56  ;;  %v5121_v56 = vld [vmem:[%s15542_s5 + $0x638] sm:$0xff] }
 0x506   : > { %11219 = vmatprep.subr.bf16.mxu1 %v11218_v40  ;;  %v10736_v40 = vpack.c.bf16 %v5117_v3, %v5116_v54  ;;  %v5606_v54 = vld [vmem:[%s15542_s5 + $0x1560] sm:$0xff]  ;;  %v5607_v3 = vld [vmem:[%s15542_s5 + $0x1568] sm:$0xff] }
 0x507   : > { %10729 = vmatpush3.bf16.msra.mxu0 %v10728_v13  ;;  %v10738_v13 = vpack.c.bf16 %v5135_v5, %v5134_v60  ;;  %v5624_v60 = vld [vmem:[%s15542_s5 + $0x15f0] sm:$0xff]  ;;  %v5625_v5 = vld [vmem:[%s15542_s5 + $0x15f8] sm:$0xff] }
 0x508   : > { %10731 = vmatprep.subr.bf16.mxu0 %v10730_v45  ;;  %v5136_v45 = vld [vmem:[%s15542_s5 + $0x6b0] sm:$0xff] }
 0x509   : > { %11221 = vmatpush3.bf16.msra.mxu1 %v11220_v33  ;;  %v5604_v33 = vld [vmem:[%s15542_s5 + $0x1550] sm:$0xff]  ;;  %v10742_v32 = vpack.c.bf16 %v5137_v14, %v5136_v45  ;;  %v5674_v45 = vld [vmem:[%s15542_s5 + $0x1780] sm:$0xff]  ;;  %v5675_v14 = vld [vmem:[%s15542_s5 + $0x1788] sm:$0xff] }
 0x50a   : > { %6374 = vmatmul.mubr.f32.vlgmr.msra.gmra.mrb[108].mxu0 %v5757_v52  ;;  %11223 = vmatprep.subr.bf16.mxu1 %v11222_v24  ;;  %v5622_v24 = vld [vmem:[%s15542_s5 + $0x15e0] sm:$0xff]  ;;  %v11232_v30 = vpack.c.bf16 %v5605_v37, %v5604_v33  ;;  %v5139_v52 = vld [vmem:[%s15542_s5 + $0x6c8] sm:$0xff]  ;;  %v5124_v33 = vld [vmem:[%s15542_s5 + $0x650] sm:$0xff] }
 0x50b   : > { %10733 = vmatpush3.bf16.msra.mxu0 %v10732_v34  ;;  %6443 = vmatprep.mubr.f32.mxu0 %v5769_v10  ;;  %v11228_v10 = vpack.c.bf16 %v5603_v9, %v5602_v2  ;;  %v5120_v34 = vld [vmem:[%s15542_s5 + $0x630] sm:$0xff]  ;;  %v5122_v2 = vld [vmem:[%s15542_s5 + $0x640] sm:$0xff]  ;;  %v5123_v9 = vld [vmem:[%s15542_s5 + $0x648] sm:$0xff] }
 0x50c   : > { %10735 = vmatprep.subr.bf16.mxu0 %v10734_v51  ;;  %v11234_v51 = vpack.c.bf16 %v5623_v26, %v5622_v24  ;;  %v5125_v37 = vld [vmem:[%s15542_s5 + $0x658] sm:$0xff]  ;;  %v5142_v24 = vld [vmem:[%s15542_s5 + $0x6e0] sm:$0xff]  ;;  %v5143_v26 = vld [vmem:[%s15542_s5 + $0x6e8] sm:$0xff] }
 0x50d   : > { %11225 = vmatpush3.bf16.msra.mxu1 %v11224_v57  ;;  %v10744_v57 = vpack.c.bf16 %v5121_v56, %v5120_v34  ;;  %v5658_v34 = vld [vmem:[%s15542_s5 + $0x1700] sm:$0xff]  ;;  %v5659_v56 = vld [vmem:[%s15542_s5 + $0x1708] sm:$0xff] }
 0x50e   : > { %11227 = vmatprep.subr.bf16.mxu1 %v11226_v62  ;;  %v10746_v62 = vpack.c.bf16 %v5139_v52, %v5138_v48  ;;  %v5676_v48 = vld [vmem:[%s15542_s5 + $0x1790] sm:$0xff]  ;;  %v5677_v52 = vld [vmem:[%s15542_s5 + $0x1798] sm:$0xff] }
 0x50f   : > { %10737 = vmatpush3.bf16.msra.mxu0 %v10736_v40  ;;  %v11236_v40 = vpack.c.bf16 %v5607_v3, %v5606_v54  ;;  %v5126_v54 = vld [vmem:[%s15542_s5 + $0x660] sm:$0xff]  ;;  %v5127_v3 = vld [vmem:[%s15542_s5 + $0x668] sm:$0xff] }
 0x510   : > { %10739 = vmatprep.subr.bf16.mxu0 %v10738_v13  ;;  %v11238_v13 = vpack.c.bf16 %v5625_v5, %v5624_v60  ;;  %v5144_v60 = vld [vmem:[%s15542_s5 + $0x6f0] sm:$0xff]  ;;  %v5145_v5 = vld [vmem:[%s15542_s5 + $0x6f8] sm:$0xff] }
 0x511   : > { %11229 = vmatpush3.bf16.msra.mxu1 %v11228_v10  ;;  %v10748_v10 = vpack.c.bf16 %v5123_v9, %v5122_v2  ;;  %v11278_v9 = vpack.c.bf16 %v5677_v52, %v5676_v48  ;;  %v5146_v48 = vld [vmem:[%s15542_s5 + $0x700] sm:$0xff]  ;;  %v5147_v52 = vld [vmem:[%s15542_s5 + $0x708] sm:$0xff] }
 0x512   : > { %11231 = vmatprep.subr.bf16.mxu1 %v11230_v23  ;;  %v10750_v23 = vpack.c.bf16 %v5141_v29, %v5140_v12  ;;  %v5661_v12 = vld [vmem:[%s15542_s5 + $0x1718] sm:$0xff] }
 0x513   : > { %10741 = vmatpush3.bf16.msra.mxu0 %v10740_v21  ;;  %v11240_v21 = vpack.c.bf16 %v5609_v36, %v5608_v63  ;;  %v5678_v63 = vld [vmem:[%s15542_s5 + $0x17a0] sm:$0xff]  ;;  %v5679_v36 = vld [vmem:[%s15542_s5 + $0x17a8] sm:$0xff] }
 0x514   : > { %10743 = vmatprep.subr.bf16.mxu0 %v10742_v32  ;;  %v11274_v32 = vpack.c.bf16 %v5675_v14, %v5674_v45  ;;  %v5128_v45 = vld [vmem:[%s15542_s5 + $0x670] sm:$0xff]  ;;  %v5129_v14 = vld [vmem:[%s15542_s5 + $0x678] sm:$0xff] }
 0x515   : > { %11233 = vmatpush3.bf16.msra.mxu1 %v11232_v30  ;;  %v10752_v30 = vpack.c.bf16 %v5125_v37, %v5124_v33  ;;  %v5162_v33 = vld [vmem:[%s15542_s5 + $0x780] sm:$0xff]  ;;  %v5163_v37 = vld [vmem:[%s15542_s5 + $0x788] sm:$0xff] }
 0x516   : > { %11235 = vmatprep.subr.bf16.mxu1 %v11234_v51  ;;  %v10754_v51 = vpack.c.bf16 %v5143_v26, %v5142_v24  ;;  %v5662_v24 = vld [vmem:[%s15542_s5 + $0x1720] sm:$0xff]  ;;  %v5663_v26 = vld [vmem:[%s15542_s5 + $0x1728] sm:$0xff] }
 0x517   : > { %10745 = vmatpush3.bf16.msra.mxu0 %v10744_v57  ;;  %v11276_v57 = vpack.c.bf16 %v5659_v56, %v5658_v34  ;;  %v5680_v34 = vld [vmem:[%s15542_s5 + $0x17b0] sm:$0xff]  ;;  %v5681_v56 = vld [vmem:[%s15542_s5 + $0x17b8] sm:$0xff] }
 0x518   : > { %10747 = vmatprep.subr.bf16.mxu0 %v10746_v62  ;;  %v14203_v62 = vld [vmem:[#allocation5 + $0x28] sm:$0xff] }
 0x519   : > { %11237 = vmatpush3.bf16.msra.mxu1 %v11236_v40  ;;  %v5885_v2 = vrot.slane %v14203_v62, %v13154_v17  ;;  %v5660_v40 = vld [vmem:[%s15542_s5 + $0x1710] sm:$0xff]  ;;  %v5905_v29 = vrot.slane %v14203_v62, %v13022_v15  ;;  %v5151_v15 = vld [vmem:[%s15542_s5 + $0x728] sm:$0xff] }
 0x51a   : > { %11239 = vmatprep.subr.bf16.mxu1 %v11238_v13  ;;  %v10756_v13 = vpack.c.bf16 %v5127_v3, %v5126_v54  ;;  %v5164_v54 = vld [vmem:[%s15542_s5 + $0x790] sm:$0xff]  ;;  %v5165_v3 = vld [vmem:[%s15542_s5 + $0x798] sm:$0xff] }
 0x51b   : > { %10749 = vmatpush3.bf16.msra.mxu0 %v10748_v10  ;;  %v10758_v10 = vpack.c.bf16 %v5145_v5, %v5144_v60  ;;  %v5664_v60 = vld [vmem:[%s15542_s5 + $0x1730] sm:$0xff]  ;;  %v5665_v5 = vld [vmem:[%s15542_s5 + $0x1738] sm:$0xff] }
 0x51c   : > { %10751 = vmatprep.subr.bf16.mxu0 %v10750_v23  ;;  %v11280_v23 = vpack.c.bf16 %v5661_v12, %v5660_v40  ;;  %v5683_v40 = vld [vmem:[%s15542_s5 + $0x17c8] sm:$0xff]  ;;  %v10766_v12 = vpack.c.bf16 %v5165_v3, %v5164_v54  ;;  %v5152_v3 = vld [vmem:[%s15542_s5 + $0x730] sm:$0xff] }
 0x51d   : > { %11241 = vmatpush3.bf16.msra.mxu1 %v11240_v21  ;;  %v11282_v21 = vpack.c.bf16 %v5679_v36, %v5678_v63  ;;  %v11288_v63 = vpack.c.bf16 %v5665_v5, %v5664_v60  ;;  %v5166_v36 = vld [vmem:[%s15542_s5 + $0x7a0] sm:$0xff]  ;;  %v5264_v17 = vld [vmem:[%s15542_s5 + $0xab0] sm:$0xff] }
 0x51e   : > { %11275 = vmatprep.subr.bf16.mxu1 %v11274_v32  ;;  %v10760_v32 = vpack.c.bf16 %v5129_v14, %v5128_v45  ;;  %v5666_v14 = vld [vmem:[%s15542_s5 + $0x1740] sm:$0xff] }
 0x51f   : > { %10753 = vmatpush3.bf16.msra.mxu0 %v10752_v30  ;;  %v10762_v30 = vpack.c.bf16 %v5163_v37, %v5162_v33  ;;  %v5685_v37 = vld [vmem:[%s15542_s5 + $0x17d8] sm:$0xff]  ;;  %v5170_v5 = vld [vmem:[%s15542_s5 + $0x7c0] sm:$0xff] }
 0x520   : > { %7494 = vmatmul.mubr.f32.vlgmr.msra.gmra.mrb[38].mxu1 %v5885_v2  ;;  %10755 = vmatprep.subr.bf16.mxu0 %v10754_v51  ;;  %v11284_v51 = vpack.c.bf16 %v5663_v26, %v5662_v24  ;;  %v10764_v2 = vpack.c.bf16 %v5147_v52, %v5146_v48  ;;  %v5150_v24 = vld [vmem:[%s15542_s5 + $0x720] sm:$0xff]  ;;  %v5168_v26 = vld [vmem:[%s15542_s5 + $0x7b0] sm:$0xff] }
 0x521   : > { %11277 = vmatpush3.bf16.msra.mxu1 %v11276_v57  ;;  %7633 = vmatprep.mubr.f32.mxu1 %v5905_v29  ;;  %v11286_v57 = vpack.c.bf16 %v5681_v56, %v5680_v34  ;;  %v5148_v29 = vld [vmem:[%s15542_s5 + $0x710] sm:$0xff]  ;;  %v10772_v48 = vpack.c.bf16 %v5151_v15, %v5150_v24  ;;  %v5686_v52 = vld [vmem:[%s15542_s5 + $0x17e0] sm:$0xff] }
 0x522   : > { %11279 = vmatprep.subr.bf16.mxu1 %v11278_v9  ;;  %v5682_v9 = vld [vmem:[%s15542_s5 + $0x17c0] sm:$0xff]  ;;  %v5668_v56 = vld [vmem:[%s15542_s5 + $0x1750] sm:$0xff] }
 0x523   : > { %10757 = vmatpush3.bf16.msra.mxu0 %v10756_v13  ;;  %v5149_v13 = vld [vmem:[%s15542_s5 + $0x718] sm:$0xff]  ;;  %v11290_v45 = vpack.c.bf16 %v5683_v40, %v5682_v9  ;;  %v5670_v40 = vld [vmem:[%s15542_s5 + $0x1760] sm:$0xff] }
 0x524   : > { %10759 = vmatprep.subr.bf16.mxu0 %v10758_v10  ;;  %v5167_v10 = vld [vmem:[%s15542_s5 + $0x7a8] sm:$0xff]  ;;  %v10768_v33 = vpack.c.bf16 %v5149_v13, %v5148_v29  ;;  %v5688_v13 = vld [vmem:[%s15542_s5 + $0x17f0] sm:$0xff] }
 0x525   : > { %11281 = vmatpush3.bf16.msra.mxu1 %v11280_v23  ;;  %v5667_v23 = vld [vmem:[%s15542_s5 + $0x1748] sm:$0xff] }
 0x526   : > { %11283 = vmatprep.subr.bf16.mxu1 %v11282_v21  ;;  %v10770_v21 = vpack.c.bf16 %v5167_v10, %v5166_v36  ;;  %v5154_v10 = vld [vmem:[%s15542_s5 + $0x740] sm:$0xff] }
 0x527   : > { %10761 = vmatpush3.bf16.msra.mxu0 %v10760_v32  ;;  %v5169_v32 = vld [vmem:[%s15542_s5 + $0x7b8] sm:$0xff] }
 0x528   : > { %10763 = vmatprep.subr.bf16.mxu0 %v10762_v30  ;;  %v5669_v30 = vld [vmem:[%s15542_s5 + $0x1758] sm:$0xff]  ;;  %v10774_v54 = vpack.c.bf16 %v5169_v32, %v5168_v26 }
 0x529   : > { %11285 = vmatpush3.bf16.msra.mxu1 %v11284_v51  ;;  %v5687_v51 = vld [vmem:[%s15542_s5 + $0x17e8] sm:$0xff]  ;;  %v11296_v60 = vpack.c.bf16 %v5669_v30, %v5668_v56  ;;  %v5157_v26 = vld [vmem:[%s15542_s5 + $0x758] sm:$0xff] }
 0x52a   : > { %6444 = vmatmul.mubr.f32.vlgmr.msra.gmra.mrb[110].mxu0 %v5765_v25  ;;  %11287 = vmatprep.subr.bf16.mxu1 %v11286_v57  ;;  %v5684_v25 = vld [vmem:[%s15542_s5 + $0x17d0] sm:$0xff]  ;;  %v5153_v57 = vld [vmem:[%s15542_s5 + $0x738] sm:$0xff]  ;;  %v11298_v9 = vpack.c.bf16 %v5687_v51, %v5686_v52  ;;  %v5175_v56 = vld [vmem:[%s15542_s5 + $0x7e8] sm:$0xff] }
 0x52b   : > { %10765 = vmatpush3.bf16.msra.mxu0 %v10764_v2  ;;  %6513 = vmatprep.mubr.f32.mxu0 %v5777_v46  ;;  %v11292_v46 = vpack.c.bf16 %v5667_v23, %v5666_v14  ;;  %v11294_v34 = vpack.c.bf16 %v5685_v37, %v5684_v25  ;;  %v5171_v2 = vld [vmem:[%s15542_s5 + $0x7c8] sm:$0xff]  ;;  %v10776_v29 = vpack.c.bf16 %v5153_v57, %v5152_v3  ;;  %v5172_v23 = vld [vmem:[%s15542_s5 + $0x7d0] sm:$0xff]  ;;  %v5158_v52 = vld [vmem:[%s15542_s5 + $0x760] sm:$0xff] }
 0x52c   : > { %10767 = vmatprep.subr.bf16.mxu0 %v10766_v12  ;;  %v5671_v12 = vld [vmem:[%s15542_s5 + $0x1768] sm:$0xff]  ;;  %v10778_v36 = vpack.c.bf16 %v5171_v2, %v5170_v5  ;;  %v5672_v37 = vld [vmem:[%s15542_s5 + $0x1770] sm:$0xff]  ;;  %v5177_v57 = vld [vmem:[%s15542_s5 + $0x7f8] sm:$0xff]  ;;  %v5901_v5 = vrot.slane %v14203_v62, %v12822_v22 }
 0x52d   : > { %11289 = vmatpush3.bf16.msra.mxu1 %v11288_v63  ;;  %v5689_v63 = vld [vmem:[%s15542_s5 + $0x17f8] sm:$0xff]  ;;  %v11300_v14 = vpack.c.bf16 %v5671_v12, %v5670_v40  ;;  %v5159_v51 = vld [vmem:[%s15542_s5 + $0x768] sm:$0xff]  ;;  %v5176_v3 = vld [vmem:[%s15542_s5 + $0x7f0] sm:$0xff] }
 0x52e   : > { %11291 = vmatprep.subr.bf16.mxu1 %v11290_v45  ;;  %v5155_v45 = vld [vmem:[%s15542_s5 + $0x748] sm:$0xff]  ;;  %v11302_v25 = vpack.c.bf16 %v5689_v63, %v5688_v13  ;;  %v10790_v40 = vpack.c.bf16 %v5177_v57, %v5176_v3  ;;  %v5160_v12 = vld [vmem:[%s15542_s5 + $0x770] sm:$0xff]  ;;  %v5194_v13 = vld [vmem:[%s15542_s5 + $0x880] sm:$0xff] }
 0x52f   : > { %10769 = vmatpush3.bf16.msra.mxu0 %v10768_v33  ;;  %v5173_v33 = vld [vmem:[%s15542_s5 + $0x7d8] sm:$0xff]  ;;  %v10780_v24 = vpack.c.bf16 %v5155_v45, %v5154_v10  ;;  %v5195_v62 = vld [vmem:[%s15542_s5 + $0x888] sm:$0xff]  ;;  %v5178_v10 = vld [vmem:[%s15542_s5 + $0x800] sm:$0xff] }
 0x530   : > { %10771 = vmatprep.subr.bf16.mxu0 %v10770_v21  ;;  %v5673_v21 = vld [vmem:[%s15542_s5 + $0x1778] sm:$0xff]  ;;  %v10782_v15 = vpack.c.bf16 %v5173_v33, %v5172_v23  ;;  %v5179_v45 = vld [vmem:[%s15542_s5 + $0x808] sm:$0xff]  ;;  %v5200_v22 = vld [vmem:[%s15542_s5 + $0x8b0] sm:$0xff] }
 0x531   : > { %11293 = vmatpush3.bf16.msra.mxu1 %v11292_v46  ;;  %v5156_v46 = vld [vmem:[%s15542_s5 + $0x750] sm:$0xff]  ;;  %v11304_v32 = vpack.c.bf16 %v5673_v21, %v5672_v37  ;;  %v5197_v23 = vld [vmem:[%s15542_s5 + $0x898] sm:$0xff]  ;;  %v10796_v33 = vpack.c.bf16 %v5179_v45, %v5178_v10  ;;  %v5207_v10 = vld [vmem:[%s15542_s5 + $0x8e8] sm:$0xff] }
 0x532   : > { %11295 = vmatprep.subr.bf16.mxu1 %v11294_v34  ;;  %v5174_v34 = vld [vmem:[%s15542_s5 + $0x7e0] sm:$0xff]  ;;  %v10784_v30 = vpack.c.bf16 %v5157_v26, %v5156_v46  ;;  %v5180_v37 = vld [vmem:[%s15542_s5 + $0x810] sm:$0xff]  ;;  %v5181_v21 = vld [vmem:[%s15542_s5 + $0x818] sm:$0xff] }
 0x533   : > { %10773 = vmatpush3.bf16.msra.mxu0 %v10772_v48  ;;  %v10786_v48 = vpack.c.bf16 %v5175_v56, %v5174_v34  ;;  %v10800_v46 = vpack.c.bf16 %v5181_v21, %v5180_v37  ;;  %v5183_v34 = vld [vmem:[%s15542_s5 + $0x828] sm:$0xff]  ;;  %v5184_v56 = vld [vmem:[%s15542_s5 + $0x830] sm:$0xff] }
 0x534   : > { %10775 = vmatprep.subr.bf16.mxu0 %v10774_v54  ;;  %v5208_v21 = vld [vmem:[%s15542_s5 + $0x8f0] sm:$0xff] }
 0x535   : > { %11297 = vmatpush3.bf16.msra.mxu1 %v11296_v60 }
 0x536   : > { %11299 = vmatprep.subr.bf16.mxu1 %v11298_v9  ;;  %v10788_v9 = vpack.c.bf16 %v5159_v51, %v5158_v52  ;;  %v5203_v52 = vld [vmem:[%s15542_s5 + $0x8c8] sm:$0xff] }
 0x537   : > { %10777 = vmatpush3.bf16.msra.mxu0 %v10776_v29  ;;  %v5161_v29 = vld [vmem:[%s15542_s5 + $0x778] sm:$0xff] }
 0x538   : > { %10779 = vmatprep.subr.bf16.mxu0 %v10778_v36  ;;  %v10792_v63 = vpack.c.bf16 %v5161_v29, %v5160_v12  ;;  %v10794_v36 = vpack.c.bf16 %v5195_v62, %v5194_v13  ;;  %v5205_v12 = vld [vmem:[%s15542_s5 + $0x8d8] sm:$0xff]  ;;  %v5188_v62 = vld [vmem:[%s15542_s5 + $0x850] sm:$0xff] }
 0x539   : > { %11301 = vmatpush3.bf16.msra.mxu1 %v11300_v14  ;;  %v5196_v14 = vld [vmem:[%s15542_s5 + $0x890] sm:$0xff] }
 0x53a   : > { %11303 = vmatprep.subr.bf16.mxu1 %v11302_v25  ;;  %v10798_v25 = vpack.c.bf16 %v5197_v23, %v5196_v14  ;;  %v5706_v14 = vld [vmem:[%s15543_s6] sm:$0x1] }
 0x53b   : > { %10781 = vmatpush3.bf16.msra.mxu0 %v10780_v24  ;;  %v5198_v24 = vld [vmem:[%s15542_s5 + $0x8a0] sm:$0xff] }
 0x53c   : > { %10783 = vmatprep.subr.bf16.mxu0 %v10782_v15  ;;  %v5199_v15 = vld [vmem:[%s15542_s5 + $0x8a8] sm:$0xff] }
 0x53d   : > { %11305 = vmatpush3.bf16.msra.mxu1 %v11304_v32  ;;  %v8517_v54 = vpop.f32.mrb[98].mxu0  ;;  %v10802_v26 = vpack.c.bf16 %v5199_v15, %v5198_v24  ;;  %v5182_v32 = vld [vmem:[%s15542_s5 + $0x820] sm:$0xff]  ;;  %v5209_v24 = vld [vmem:[%s15542_s5 + $0x8f8] sm:$0xff] }
 0x53e   : > { %v8518_v60 = vpop.f32.mrb[99].mxu0 }
 0x53f   : > { %v14391_v2 = vadd.f32 %v8518_v60, %v8517_v54  ;;  %10785 = vmatpush3.bf16.msra.mxu0 %v10784_v30  ;;  %v5185_v30 = vld [vmem:[%s15542_s5 + $0x838] sm:$0xff]  ;;  %v5186_v60 = vld [vmem:[%s15542_s5 + $0x840] sm:$0xff] }
 0x540   : > { %7634 = vmatmul.mubr.f32.vlgmr.msra.gmra.mrb[40].mxu1 %v5901_v5  ;;  %10787 = vmatprep.subr.bf16.mxu0 %v10786_v48  ;;  %v5202_v48 = vld [vmem:[%s15542_s5 + $0x8c0] sm:$0xff]  ;;  %v10808_v54 = vpack.c.bf16 %v5185_v30, %v5184_v56  ;;  %v5187_v5 = vld [vmem:[%s15542_s5 + $0x848] sm:$0xff] }
 0x541   : > { %v10810_v57 = vpack.c.bf16 %v5203_v52, %v5202_v48  ;;  %v10812_v29 = vpack.c.bf16 %v5187_v5, %v5186_v60  ;;  %v5210_v48 = vld [vmem:[%s15542_s5 + $0x900] sm:$0xff]  ;;  %v5211_v52 = vld [vmem:[%s15542_s5 + $0x908] sm:$0xff]  ;;  %v5212_v60 = vld [vmem:[%s15542_s5 + $0x910] sm:$0xff] }
 0x542   : > { %v5213_v5 = vld [vmem:[%s15542_s5 + $0x918] sm:$0xff] }
 0x543   : > { %10789 = vmatpush3.bf16.msra.mxu0 %v10788_v9 }
 0x544   : > { %10791 = vmatprep.subr.bf16.mxu0 %v10790_v40  ;;  %v5204_v40 = vld [vmem:[%s15542_s5 + $0x8d0] sm:$0xff] }
 0x545   : > { %v10814_v13 = vpack.c.bf16 %v5205_v12, %v5204_v40  ;;  %v5230_v40 = vld [vmem:[%s15542_s5 + $0x9a0] sm:$0xff]  ;;  %v5231_v12 = vld [vmem:[%s15542_s5 + $0x9a8] sm:$0xff] }
 0x547   : > { %10793 = vmatpush3.bf16.msra.mxu0 %v10792_v63  ;;  %v5189_v63 = vld [vmem:[%s15542_s5 + $0x858] sm:$0xff] }
 0x548   : > { %10795 = vmatprep.subr.bf16.mxu0 %v10794_v36  ;;  %v5206_v36 = vld [vmem:[%s15542_s5 + $0x8e0] sm:$0xff]  ;;  %v10816_v45 = vpack.c.bf16 %v5189_v63, %v5188_v62  ;;  %v5215_v63 = vld [vmem:[%s15542_s5 + $0x928] sm:$0xff] }
 0x549   : > { %v10818_v23 = vpack.c.bf16 %v5207_v10, %v5206_v36  ;;  %v5214_v62 = vld [vmem:[%s15542_s5 + $0x920] sm:$0xff]  ;;  %v5216_v10 = vld [vmem:[%s15542_s5 + $0x930] sm:$0xff] }
 0x54a   : > { %6514 = vmatmul.mubr.f32.vlgmr.msra.gmra.mrb[112].mxu0 %v5773_v19  ;;  %v10804_v19 = vpack.c.bf16 %v5183_v34, %v5182_v32  ;;  %v10822_v34 = vpack.c.bf16 %v5209_v24, %v5208_v21  ;;  %v5218_v24 = vld [vmem:[%s15542_s5 + $0x940] sm:$0xff] }
 0x54b   : > { %10797 = vmatpush3.bf16.msra.mxu0 %v10796_v33  ;;  %6583 = vmatprep.mubr.f32.mxu0 %v5785_v0  ;;  %v10806_v0 = vpack.c.bf16 %v5201_v8, %v5200_v22  ;;  %v5190_v33 = vld [vmem:[%s15542_s5 + $0x860] sm:$0xff]  ;;  %v5192_v22 = vld [vmem:[%s15542_s5 + $0x870] sm:$0xff]  ;;  %v5193_v8 = vld [vmem:[%s15542_s5 + $0x878] sm:$0xff] }
 0x54c   : > { %10799 = vmatprep.subr.bf16.mxu0 %v10798_v25  ;;  %v5191_v25 = vld [vmem:[%s15542_s5 + $0x868] sm:$0xff]  ;;  %v10824_v56 = vpack.c.bf16 %v5193_v8, %v5192_v22  ;;  %v5220_v8 = vld [vmem:[%s15542_s5 + $0x950] sm:$0xff] }
 0x54d   : > { %v10820_v32 = vpack.c.bf16 %v5191_v25, %v5190_v33 }
 0x54f   : > { %10801 = vmatpush3.bf16.msra.mxu0 %v10800_v46  ;;  %v6026_v46 = vadd.f32 %v14391_v2, %v5706_v14  ;;  %v5227_v2 = vld [vmem:[%s15542_s5 + $0x988] sm:$0xff]  ;;  %v5234_v14 = vld [vmem:[%s15542_s5 + $0x9c0] sm:$0xff] }
 0x550   : > { %10803 = vmatprep.subr.bf16.mxu0 %v10802_v26 }
 0x553   : > { %10805 = vmatpush3.bf16.msra.mxu0 %v10804_v19  ;;  %v8902_v51 = vpop.f32.mrb[28].mxu1 }
 0x554   : > { %v8903_v3 = vpop.f32.mrb[29].mxu1  ;;  %10807 = vmatprep.subr.bf16.mxu0 %v10806_v0  ;;  %v5226_v0 = vld [vmem:[%s15542_s5 + $0x980] sm:$0xff] }
 0x555   : > { %v14465_v9 = vadd.f32 %v8903_v3, %v8902_v51  ;;  %v10826_v30 = vpack.c.bf16 %v5227_v2, %v5226_v0  ;;  %v5228_v51 = vld [vmem:[%s15542_s5 + $0x990] sm:$0xff]  ;;  %v10828_v3 = vpack.c.bf16 %v5211_v52, %v5210_v48  ;;  %v5221_v0 = vld [vmem:[%s15542_s5 + $0x958] sm:$0xff]  ;;  %v5238_v2 = vld [vmem:[%s15542_s5 + $0x9e0] sm:$0xff] }
 0x556   : > { %v5222_v52 = vld [vmem:[%s15542_s5 + $0x960] sm:$0xff] }
 0x557   : > { %10809 = vmatpush3.bf16.msra.mxu0 %v10808_v54  ;;  %v5229_v54 = vld [vmem:[%s15542_s5 + $0x998] sm:$0xff] }
 0x558   : > { %10811 = vmatprep.subr.bf16.mxu0 %v10810_v57  ;;  %v10830_v57 = vpack.c.bf16 %v5229_v54, %v5228_v51  ;;  %v5223_v51 = vld [vmem:[%s15542_s5 + $0x968] sm:$0xff] }
 0x55b   : > { %10813 = vmatpush3.bf16.msra.mxu0 %v10812_v29  ;;  %v10832_v29 = vpack.c.bf16 %v5213_v5, %v5212_v60 }
 0x55c   : > { %10815 = vmatprep.subr.bf16.mxu0 %v10814_v13  ;;  %v10834_v13 = vpack.c.bf16 %v5231_v12, %v5230_v40  ;;  %v10852_v40 = vpack.c.bf16 %v5223_v51, %v5222_v52  ;;  %v5250_v51 = vld [vmem:[%s15542_s5 + $0xa40] sm:$0xff] }
 0x55d   : > { %v8552_v37 = vpop.f32.mrb[100].mxu0 }
 0x55e   : > { %v8553_v15 = vpop.f32.mrb[101].mxu0 }
 0x55f   : > { %v8554_v26 = vadd.f32 %v8553_v15, %v8552_v37  ;;  %10817 = vmatpush3.bf16.msra.mxu0 %v10816_v45  ;;  %v5217_v45 = vld [vmem:[%s15542_s5 + $0x938] sm:$0xff]  ;;  %v5219_v15 = vld [vmem:[%s15542_s5 + $0x948] sm:$0xff] }
 0x560   : > { %10819 = vmatprep.subr.bf16.mxu0 %v10818_v23  ;;  %v5235_v23 = vld [vmem:[%s15542_s5 + $0x9c8] sm:$0xff]  ;;  %v10840_v25 = vpack.c.bf16 %v5217_v45, %v5216_v10  ;;  %v5260_v10 = vld [vmem:[%s15542_s5 + $0xa90] sm:$0xff]  ;;  %v5261_v45 = vld [vmem:[%s15542_s5 + $0xa98] sm:$0xff] }
 0x561   : > { %v14507_v19 = vadd.f32 %v8554_v26, %v6026_v46  ;;  %v10842_v21 = vpack.c.bf16 %v5235_v23, %v5234_v14  ;;  %v5236_v26 = vld [vmem:[%s15542_s5 + $0x9d0] sm:$0xff]  ;;  %v10862_v23 = vpack.c.bf16 %v5261_v45, %v5260_v10  ;;  %v5273_v45 = vld [vmem:[%s15542_s5 + $0xaf8] sm:$0xff] }
 0x562   : > { %v5272_v10 = vld [vmem:[%s15542_s5 + $0xaf0] sm:$0xff] }
 0x563   : > { %10821 = vmatpush3.bf16.msra.mxu0 %v10820_v32  ;;  %v5237_v32 = vld [vmem:[%s15542_s5 + $0x9d8] sm:$0xff] }
 0x564   : > { %10823 = vmatprep.subr.bf16.mxu0 %v10822_v34  ;;  %v10844_v34 = vpack.c.bf16 %v5219_v15, %v5218_v24  ;;  %v10846_v22 = vpack.c.bf16 %v5237_v32, %v5236_v26  ;;  %v5246_v26 = vld [vmem:[%s15542_s5 + $0xa20] sm:$0xff]  ;;  %v5247_v32 = vld [vmem:[%s15542_s5 + $0xa28] sm:$0xff] }
 0x567   : > { %10825 = vmatpush3.bf16.msra.mxu0 %v10824_v56  ;;  %v5239_v56 = vld [vmem:[%s15542_s5 + $0x9e8] sm:$0xff] }
 0x568   : > { %10827 = vmatprep.subr.bf16.mxu0 %v10826_v30  ;;  %v10848_v30 = vpack.c.bf16 %v5221_v0, %v5220_v8  ;;  %v10850_v48 = vpack.c.bf16 %v5239_v56, %v5238_v2  ;;  %v5249_v8 = vld [vmem:[%s15542_s5 + $0xa38] sm:$0xff]  ;;  %v5266_v0 = vld [vmem:[%s15542_s5 + $0xac0] sm:$0xff]  ;;  %v5267_v2 = vld [vmem:[%s15542_s5 + $0xac8] sm:$0xff] }
 0x569   : > { %v10874_v52 = vpack.c.bf16 %v5267_v2, %v5266_v0  ;;  %v5308_v0 = vld [vmem:[%s15542_s5 + $0xc10] sm:$0xff]  ;;  %v5309_v2 = vld [vmem:[%s15542_s5 + $0xc18] sm:$0xff] }
 0x56a   : > { %6584 = vmatmul.mubr.f32.vlgmr.msra.gmra.mrb[114].mxu0 %v5781_v20  ;;  %v5232_v20 = vld [vmem:[%s15542_s5 + $0x9b0] sm:$0xff] }
 0x56b   : > { %10829 = vmatpush3.bf16.msra.mxu0 %v10828_v3  ;;  %6653 = vmatprep.mubr.f32.mxu0 %v5793_v27  ;;  %v10836_v27 = vpack.c.bf16 %v5215_v63, %v5214_v62  ;;  %v10838_v36 = vpack.c.bf16 %v5233_v58, %v5232_v20  ;;  %v5240_v3 = vld [vmem:[%s15542_s5 + $0x9f0] sm:$0xff]  ;;  %v5258_v63 = vld [vmem:[%s15542_s5 + $0xa80] sm:$0xff]  ;;  %v5259_v20 = vld [vmem:[%s15542_s5 + $0xa88] sm:$0xff] }
 0x56c   : > { %10831 = vmatprep.subr.bf16.mxu0 %v10830_v57  ;;  %v5241_v57 = vld [vmem:[%s15542_s5 + $0x9f8] sm:$0xff] }
 0x56d   : > { %v10854_v12 = vpack.c.bf16 %v5241_v57, %v5240_v3  ;;  %v5268_v57 = vld [vmem:[%s15542_s5 + $0xad0] sm:$0xff] }
 0x56f   : > { %10833 = vmatpush3.bf16.msra.mxu0 %v10832_v29  ;;  %v5224_v29 = vld [vmem:[%s15542_s5 + $0x970] sm:$0xff] }
 0x570   : > { %10835 = vmatprep.subr.bf16.mxu0 %v10834_v13  ;;  %v5225_v13 = vld [vmem:[%s15542_s5 + $0x978] sm:$0xff] }
 0x571   : > { %v10856_v58 = vpack.c.bf16 %v5225_v13, %v5224_v29  ;;  %v5253_v29 = vld [vmem:[%s15542_s5 + $0xa58] sm:$0xff]  ;;  %v5270_v13 = vld [vmem:[%s15542_s5 + $0xae0] sm:$0xff] }
 0x573   : > { %10837 = vmatpush3.bf16.msra.mxu0 %v10836_v27  ;;  %v8972_v33 = vpop.f32.mrb[30].mxu1  ;;  %v10858_v27 = vpack.c.bf16 %v5259_v20, %v5258_v63  ;;  %v5271_v63 = vld [vmem:[%s15542_s5 + $0xae8] sm:$0xff] }
 0x574   : > { %v8973_v37 = vpop.f32.mrb[31].mxu1  ;;  %10839 = vmatprep.subr.bf16.mxu0 %v10838_v36  ;;  %v5242_v36 = vld [vmem:[%s15542_s5 + $0xa00] sm:$0xff] }
 0x575   : > { %v14575_v46 = vadd.f32 %v8973_v37, %v8972_v33  ;;  %v5244_v33 = vld [vmem:[%s15542_s5 + $0xa10] sm:$0xff]  ;;  %v5262_v37 = vld [vmem:[%s15542_s5 + $0xaa0] sm:$0xff] }
 0x577   : > { %10841 = vmatpush3.bf16.msra.mxu0 %v10840_v25  ;;  %v5245_v25 = vld [vmem:[%s15542_s5 + $0xa18] sm:$0xff] }
 0x578   : > { %10843 = vmatprep.subr.bf16.mxu0 %v10842_v21  ;;  %v5263_v21 = vld [vmem:[%s15542_s5 + $0xaa8] sm:$0xff]  ;;  %v10864_v24 = vpack.c.bf16 %v5245_v25, %v5244_v33  ;;  %v10886_v25 = vpack.c.bf16 %v5273_v45, %v5272_v10  ;;  %v5333_v10 = vld [vmem:[%s15542_s5 + $0xcd8] sm:$0xff] }
 0x579   : > { %v10866_v15 = vpack.c.bf16 %v5263_v21, %v5262_v37  ;;  %v5256_v37 = vld [vmem:[%s15542_s5 + $0xa70] sm:$0xff]  ;;  %v5257_v21 = vld [vmem:[%s15542_s5 + $0xa78] sm:$0xff] }
 0x57b   : > { %10845 = vmatpush3.bf16.msra.mxu0 %v10844_v34 }
 0x57c   : > { %10847 = vmatprep.subr.bf16.mxu0 %v10846_v22  ;;  %v5248_v22 = vld [vmem:[%s15542_s5 + $0xa30] sm:$0xff] }
 0x57d   : > { %v8587_v54 = vpop.f32.mrb[102].mxu0 }
 0x57e   : > { %v8588_v60 = vpop.f32.mrb[103].mxu0 }
 0x57f   : > { %v8589_v5 = vadd.f32 %v8588_v60, %v8587_v54  ;;  %10849 = vmatpush3.bf16.msra.mxu0 %v10848_v30  ;;  %v10872_v30 = vpack.c.bf16 %v5249_v8, %v5248_v22  ;;  %v5251_v54 = vld [vmem:[%s15542_s5 + $0xa48] sm:$0xff]  ;;  %v5269_v60 = vld [vmem:[%s15542_s5 + $0xad8] sm:$0xff] }
 0x580   : > { %10851 = vmatprep.subr.bf16.mxu0 %v10850_v48 }
 0x581   : > { %v14614_v62 = vadd.f32 %v8589_v5, %v14507_v19  ;;  %v5243_v19 = vld [vmem:[%s15542_s5 + $0xa08] sm:$0xff]  ;;  %v10876_v5 = vpack.c.bf16 %v5251_v54, %v5250_v51  ;;  %v5310_v51 = vld [vmem:[%s15542_s5 + $0xc20] sm:$0xff] }
 0x582   : > { %v10860_v14 = vpack.c.bf16 %v5243_v19, %v5242_v36  ;;  %v5255_v36 = vld [vmem:[%s15542_s5 + $0xa68] sm:$0xff] }
 0x583   : > { %10853 = vmatpush3.bf16.msra.mxu0 %v10852_v40  ;;  %v10878_v40 = vpack.c.bf16 %v5269_v60, %v5268_v57  ;;  %v5311_v54 = vld [vmem:[%s15542_s5 + $0xc28] sm:$0xff]  ;;  %v5312_v60 = vld [vmem:[%s15542_s5 + $0xc30] sm:$0xff] }
 0x584   : > { %10855 = vmatprep.subr.bf16.mxu0 %v10854_v12  ;;  %v5252_v12 = vld [vmem:[%s15542_s5 + $0xa50] sm:$0xff] }
 0x585   : > { %v10880_v20 = vpack.c.bf16 %v5253_v29, %v5252_v12  ;;  %v5331_v12 = vld [vmem:[%s15542_s5 + $0xcc8] sm:$0xff] }
 0x587   : > { %10857 = vmatpush3.bf16.msra.mxu0 %v10856_v58  ;;  %v10882_v58 = vpack.c.bf16 %v5271_v63, %v5270_v13 }
 0x588   : > { %10859 = vmatprep.subr.bf16.mxu0 %v10858_v27  ;;  %v5254_v27 = vld [vmem:[%s15542_s5 + $0xa60] sm:$0xff] }
 0x589   : > { %v10884_v33 = vpack.c.bf16 %v5255_v36, %v5254_v27  ;;  %v5315_v27 = vld [vmem:[%s15542_s5 + $0xc48] sm:$0xff] }
 0x58a   : > { %6654 = vmatmul.mubr.f32.vlgmr.msra.gmra.mrb[116].mxu0 %v5789_v59  ;;  %v5265_v59 = vld [vmem:[%s15542_s5 + $0xab8] sm:$0xff] }
 0x58b   : > { %10861 = vmatpush3.bf16.msra.mxu0 %v10860_v14  ;;  %6723 = vmatprep.mubr.f32.mxu0 %v5801_v1  ;;  %v10868_v1 = vpack.c.bf16 %v5247_v32, %v5246_v26  ;;  %v10870_v34 = vpack.c.bf16 %v5265_v59, %v5264_v17  ;;  %v5323_v26 = vld [vmem:[%s15542_s5 + $0xc88] sm:$0xff]  ;;  %v10888_v32 = vpack.c.bf16 %v5257_v21, %v5256_v37  ;;  %v5306_v59 = vld [vmem:[%s15542_s5 + $0xc00] sm:$0xff] }
 0x58c   : > { %10863 = vmatprep.subr.bf16.mxu0 %v10862_v23  ;;  %v5335_v37 = vld [vmem:[%s15542_s5 + $0xce8] sm:$0xff] }
 0x58f   : > { %10865 = vmatpush3.bf16.msra.mxu0 %v10864_v24 }
 0x590   : > { %10867 = vmatprep.subr.bf16.mxu0 %v10866_v15  ;;  %v5322_v15 = vld [vmem:[%s15542_s5 + $0xc80] sm:$0xff] }
 0x591   : > { %v10922_v17 = vpack.c.bf16 %v5323_v26, %v5322_v15  ;;  %v5318_v26 = vld [vmem:[%s15542_s5 + $0xc60] sm:$0xff] }
 0x593   : > { %10869 = vmatpush3.bf16.msra.mxu0 %v10868_v1  ;;  %v9042_v56 = vpop.f32.mrb[32].mxu1  ;;  %v5324_v1 = vld [vmem:[%s15542_s5 + $0xc90] sm:$0xff] }
 0x594   : > { %v9043_v48 = vpop.f32.mrb[33].mxu1  ;;  %10871 = vmatprep.subr.bf16.mxu0 %v10870_v34  ;;  %v5325_v34 = vld [vmem:[%s15542_s5 + $0xc98] sm:$0xff] }
 0x595   : > { %v14682_v3 = vadd.f32 %v9043_v48, %v9042_v56  ;;  %v10926_v8 = vpack.c.bf16 %v5325_v34, %v5324_v1  ;;  %v5326_v56 = vld [vmem:[%s15542_s5 + $0xca0] sm:$0xff]  ;;  %v10928_v48 = vpack.c.bf16 %v5309_v2, %v5308_v0  ;;  %v5320_v0 = vld [vmem:[%s15542_s5 + $0xc70] sm:$0xff]  ;;  %v5321_v2 = vld [vmem:[%s15542_s5 + $0xc78] sm:$0xff] }
 0x597   : > { %10873 = vmatpush3.bf16.msra.mxu0 %v10872_v30  ;;  %v5327_v30 = vld [vmem:[%s15542_s5 + $0xca8] sm:$0xff] }
 0x598   : > { %10875 = vmatprep.subr.bf16.mxu0 %v10874_v52  ;;  %v10930_v52 = vpack.c.bf16 %v5327_v30, %v5326_v56  ;;  %v5386_v30 = vld [vmem:[%s15542_s5 + $0xe80] sm:$0xff] }
 0x59b   : > { %10877 = vmatpush3.bf16.msra.mxu0 %v10876_v5  ;;  %v5313_v5 = vld [vmem:[%s15542_s5 + $0xc38] sm:$0xff] }
 0x59c   : > { %10879 = vmatprep.subr.bf16.mxu0 %v10878_v40  ;;  %v5330_v40 = vld [vmem:[%s15542_s5 + $0xcc0] sm:$0xff]  ;;  %v10936_v13 = vpack.c.bf16 %v5313_v5, %v5312_v60  ;;  %v5372_v60 = vld [vmem:[%s15542_s5 + $0xe10] sm:$0xff]  ;;  %v5373_v5 = vld [vmem:[%s15542_s5 + $0xe18] sm:$0xff] }
 0x59d   : > { %v8622_v19 = vpop.f32.mrb[104].mxu0 }
 0x59e   : > { %v8623_v14 = vpop.f32.mrb[105].mxu0 }
 0x59f   : > { %v8624_v23 = vadd.f32 %v8623_v14, %v8622_v19  ;;  %10881 = vmatpush3.bf16.msra.mxu0 %v10880_v20  ;;  %v10938_v20 = vpack.c.bf16 %v5331_v12, %v5330_v40  ;;  %v5332_v19 = vld [vmem:[%s15542_s5 + $0xcd0] sm:$0xff]  ;;  %v5390_v40 = vld [vmem:[%s15542_s5 + $0xea0] sm:$0xff]  ;;  %v5391_v12 = vld [vmem:[%s15542_s5 + $0xea8] sm:$0xff] }
 0x5a0   : > { %10883 = vmatprep.subr.bf16.mxu0 %v10882_v58  ;;  %v5314_v58 = vld [vmem:[%s15542_s5 + $0xc40] sm:$0xff]  ;;  %v10942_v14 = vpack.c.bf16 %v5333_v10, %v5332_v19  ;;  %v5376_v19 = vld [vmem:[%s15542_s5 + $0xe30] sm:$0xff]  ;;  %v5377_v10 = vld [vmem:[%s15542_s5 + $0xe38] sm:$0xff] }
 0x5a1   : > { %v14721_v24 = vadd.f32 %v8624_v23, %v14614_v62  ;;  %v5307_v62 = vld [vmem:[%s15542_s5 + $0xc08] sm:$0xff]  ;;  %v10940_v45 = vpack.c.bf16 %v5315_v27, %v5314_v58  ;;  %v5316_v23 = vld [vmem:[%s15542_s5 + $0xc50] sm:$0xff]  ;;  %v5393_v58 = vld [vmem:[%s15542_s5 + $0xeb8] sm:$0xff] }
 0x5a2   : > { %v10924_v22 = vpack.c.bf16 %v5307_v62, %v5306_v59  ;;  %v5336_v59 = vld [vmem:[%s15542_s5 + $0xcf0] sm:$0xff]  ;;  %v5337_v62 = vld [vmem:[%s15542_s5 + $0xcf8] sm:$0xff] }
 0x5a3   : > { %10885 = vmatpush3.bf16.msra.mxu0 %v10884_v33  ;;  %v5317_v33 = vld [vmem:[%s15542_s5 + $0xc58] sm:$0xff] }
 0x5a4   : > { %10887 = vmatprep.subr.bf16.mxu0 %v10886_v25  ;;  %v5334_v25 = vld [vmem:[%s15542_s5 + $0xce0] sm:$0xff]  ;;  %v10944_v21 = vpack.c.bf16 %v5317_v33, %v5316_v23  ;;  %v11000_v33 = vpack.c.bf16 %v5377_v10, %v5376_v19  ;;  %v5437_v19 = vld [vmem:[%s15542_s5 + $0x1018] sm:$0xff] }
 0x5a5   : > { %v10946_v15 = vpack.c.bf16 %v5335_v37, %v5334_v25  ;;  %v5454_v10 = vld [vmem:[%s15542_s5 + $0x10a0] sm:$0xff] }
 0x5a7   : > { %10889 = vmatpush3.bf16.msra.mxu0 %v10888_v32  ;;  %v5319_v32 = vld [vmem:[%s15542_s5 + $0xc68] sm:$0xff] }
 0x5a8   : > { %10923 = vmatprep.subr.bf16.mxu0 %v10922_v17 }
 0x5aa   : > { %6724 = vmatmul.mubr.f32.vlgmr.msra.gmra.mrb[118].mxu0 %v5797_v53  ;;  %v5329_v53 = vld [vmem:[%s15542_s5 + $0xcb8] sm:$0xff] }
 0x5ab   : > { %10925 = vmatpush3.bf16.msra.mxu0 %v10924_v22  ;;  %6863 = vmatprep.mubr.f32.mxu0 %v5817_v7  ;;  %v10932_v7 = vpack.c.bf16 %v5311_v54, %v5310_v51  ;;  %v10934_v57 = vpack.c.bf16 %v5329_v53, %v5328_v42  ;;  %v10948_v22 = vpack.c.bf16 %v5319_v32, %v5318_v26  ;;  %v5370_v54 = vld [vmem:[%s15542_s5 + $0xe00] sm:$0xff]  ;;  %v5388_v42 = vld [vmem:[%s15542_s5 + $0xe90] sm:$0xff]  ;;  %v5389_v53 = vld [vmem:[%s15542_s5 + $0xe98] sm:$0xff] }
 0x5ac   : > { %10927 = vmatprep.subr.bf16.mxu0 %v10926_v8  ;;  %v10950_v8 = vpack.c.bf16 %v5337_v62, %v5336_v59  ;;  %v5396_v32 = vld [vmem:[%s15542_s5 + $0xed0] sm:$0xff] }
 0x5af   : > { %10929 = vmatpush3.bf16.msra.mxu0 %v10928_v48  ;;  %v5387_v48 = vld [vmem:[%s15542_s5 + $0xe88] sm:$0xff] }
 0x5b0   : > { %10931 = vmatprep.subr.bf16.mxu0 %v10930_v52  ;;  %v10952_v52 = vpack.c.bf16 %v5321_v2, %v5320_v0  ;;  %v10986_v51 = vpack.c.bf16 %v5387_v48, %v5386_v30  ;;  %v5382_v30 = vld [vmem:[%s15542_s5 + $0xe60] sm:$0xff]  ;;  %v5383_v48 = vld [vmem:[%s15542_s5 + $0xe68] sm:$0xff] }
 0x5b3   : > { %10933 = vmatpush3.bf16.msra.mxu0 %v10932_v7  ;;  %v9112_v29 = vpop.f32.mrb[34].mxu1 }
 0x5b4   : > { %v9113_v63 = vpop.f32.mrb[35].mxu1  ;;  %10935 = vmatprep.subr.bf16.mxu0 %v10934_v57  ;;  %v10990_v57 = vpack.c.bf16 %v5389_v53, %v5388_v42  ;;  %v11012_v53 = vpack.c.bf16 %v5383_v48, %v5382_v30  ;;  %v5460_v30 = vld [vmem:[%s15542_s5 + $0x10d0] sm:$0xff]  ;;  %v5461_v48 = vld [vmem:[%s15542_s5 + $0x10d8] sm:$0xff] }
 0x5b5   : > { %v14789_v36 = vadd.f32 %v9113_v63, %v9112_v29  ;;  %v10992_v29 = vpack.c.bf16 %v5373_v5, %v5372_v60  ;;  %v5374_v63 = vld [vmem:[%s15542_s5 + $0xe20] sm:$0xff]  ;;  %v5385_v60 = vld [vmem:[%s15542_s5 + $0xe78] sm:$0xff] }
 0x5b7   : > { %10937 = vmatpush3.bf16.msra.mxu0 %v10936_v13  ;;  %v10994_v13 = vpack.c.bf16 %v5391_v12, %v5390_v40  ;;  %v5450_v40 = vld [vmem:[%s15542_s5 + $0x1080] sm:$0xff]  ;;  %v5451_v12 = vld [vmem:[%s15542_s5 + $0x1088] sm:$0xff] }
 0x5b8   : > { %10939 = vmatprep.subr.bf16.mxu0 %v10938_v20  ;;  %v5375_v20 = vld [vmem:[%s15542_s5 + $0xe28] sm:$0xff] }
 0x5bb   : > { %10941 = vmatpush3.bf16.msra.mxu0 %v10940_v45  ;;  %v5394_v45 = vld [vmem:[%s15542_s5 + $0xec0] sm:$0xff] }
 0x5bc   : > { %10943 = vmatprep.subr.bf16.mxu0 %v10942_v14  ;;  %v5395_v14 = vld [vmem:[%s15542_s5 + $0xec8] sm:$0xff] }
 0x5bd   : > { %v8657_v17 = vpop.f32.mrb[106].mxu0  ;;  %v11002_v37 = vpack.c.bf16 %v5395_v14, %v5394_v45  ;;  %v5455_v45 = vld [vmem:[%s15542_s5 + $0x10a8] sm:$0xff] }
 0x5be   : > { %v8658_v1 = vpop.f32.mrb[107].mxu0 }
 0x5bf   : > { %v8659_v34 = vadd.f32 %v8658_v1, %v8657_v17  ;;  %10945 = vmatpush3.bf16.msra.mxu0 %v10944_v21  ;;  %v5378_v21 = vld [vmem:[%s15542_s5 + $0xe40] sm:$0xff]  ;;  %v5397_v17 = vld [vmem:[%s15542_s5 + $0xed8] sm:$0xff]  ;;  %v5380_v1 = vld [vmem:[%s15542_s5 + $0xe50] sm:$0xff] }
 0x5c0   : > { %10947 = vmatprep.subr.bf16.mxu0 %v10946_v15  ;;  %v5379_v15 = vld [vmem:[%s15542_s5 + $0xe48] sm:$0xff]  ;;  %v11006_v62 = vpack.c.bf16 %v5397_v17, %v5396_v32  ;;  %v5441_v32 = vld [vmem:[%s15542_s5 + $0x1038] sm:$0xff]  ;;  %v5458_v17 = vld [vmem:[%s15542_s5 + $0x10c0] sm:$0xff] }
 0x5c1   : > { %v14828_v56 = vadd.f32 %v8659_v34, %v14721_v24  ;;  %v5371_v24 = vld [vmem:[%s15542_s5 + $0xe08] sm:$0xff]  ;;  %v11004_v59 = vpack.c.bf16 %v5379_v15, %v5378_v21  ;;  %v5381_v34 = vld [vmem:[%s15542_s5 + $0xe58] sm:$0xff]  ;;  %v5440_v15 = vld [vmem:[%s15542_s5 + $0x1030] sm:$0xff] }
 0x5c2   : > { %v10988_v7 = vpack.c.bf16 %v5371_v24, %v5370_v54  ;;  %v11008_v0 = vpack.c.bf16 %v5381_v34, %v5380_v1  ;;  %v5401_v54 = vld [vmem:[%s15542_s5 + $0xef8] sm:$0xff]  ;;  %v11064_v1 = vpack.c.bf16 %v5441_v32, %v5440_v15  ;;  %v15069_v15 = vld [vmem:[#allocation3] sm:$0xff]  ;;  %v5518_v32 = vld [vmem:[%s15542_s5 + $0x12a0] sm:$0xff] }
 0x5c3   : > { %10949 = vmatpush3.bf16.msra.mxu0 %v10948_v22  ;;  %v5398_v22 = vld [vmem:[%s15542_s5 + $0xee0] sm:$0xff]  ;;  %10243 = vmatprep.mubr.msk.f32.mxu1 %vm11743_vm2, %v15069_v15 }
 0x5c4   : > { %10951 = vmatprep.subr.bf16.mxu0 %v10950_v8  ;;  %v5399_v8 = vld [vmem:[%s15542_s5 + $0xee8] sm:$0xff] }
 0x5c5   : > { %v11010_v2 = vpack.c.bf16 %v5399_v8, %v5398_v22  ;;  %v5442_v8 = vld [vmem:[%s15542_s5 + $0x1040] sm:$0xff] }
 0x5c7   : > { %10953 = vmatpush3.bf16.msra.mxu0 %v10952_v52 }
 0x5c8   : > { %10987 = vmatprep.subr.bf16.mxu0 %v10986_v51  ;;  %v5400_v51 = vld [vmem:[%s15542_s5 + $0xef0] sm:$0xff] }
 0x5ca   : > { %6864 = vmatmul.mubr.f32.vlgmr.msra.gmra.mrb[120].mxu0 %v5813_v38  ;;  %v5392_v38 = vld [vmem:[%s15542_s5 + $0xeb0] sm:$0xff] }
 0x5cb   : > { %10989 = vmatpush3.bf16.msra.mxu0 %v10988_v7  ;;  %7003 = vmatprep.mubr.f32.mxu0 %v5833_v39  ;;  %v10996_v39 = vpack.c.bf16 %v5375_v20, %v5374_v63  ;;  %v10998_v27 = vpack.c.bf16 %v5393_v58, %v5392_v38  ;;  %v11014_v7 = vpack.c.bf16 %v5401_v54, %v5400_v51  ;;  %v5434_v63 = vld [vmem:[%s15542_s5 + $0x1000] sm:$0xff]  ;;  %v5452_v20 = vld [vmem:[%s15542_s5 + $0x1090] sm:$0xff]  ;;  %v5453_v38 = vld [vmem:[%s15542_s5 + $0x1098] sm:$0xff] }
 0x5cc   : > { %10991 = vmatprep.subr.bf16.mxu0 %v10990_v57  ;;  %v5384_v57 = vld [vmem:[%s15542_s5 + $0xe70] sm:$0xff]  ;;  %v11070_v51 = vpack.c.bf16 %v5461_v48, %v5460_v30  ;;  %v5505_v30 = vld [vmem:[%s15542_s5 + $0x1238] sm:$0xff]  ;;  %v5522_v48 = vld [vmem:[%s15542_s5 + $0x12c0] sm:$0xff] }
 0x5cd   : > { %v5444_v54 = vld [vmem:[%s15542_s5 + $0x1050] sm:$0xff] }
 0x5cf   : > { %10993 = vmatpush3.bf16.msra.mxu0 %v10992_v29  ;;  %v11016_v29 = vpack.c.bf16 %v5385_v60, %v5384_v57  ;;  %v5446_v60 = vld [vmem:[%s15542_s5 + $0x1060] sm:$0xff] }
 0x5d0   : > { %10995 = vmatprep.subr.bf16.mxu0 %v10994_v13  ;;  %v11050_v13 = vpack.c.bf16 %v5451_v12, %v5450_v40  ;;  %v5447_v40 = vld [vmem:[%s15542_s5 + $0x1068] sm:$0xff] }
 0x5d3   : > { %10997 = vmatpush3.bf16.msra.mxu0 %v10996_v39  ;;  %v9182_v23 = vpop.f32.mrb[36].mxu1  ;;  %v11054_v39 = vpack.c.bf16 %v5453_v38, %v5452_v20  ;;  %v11076_v20 = vpack.c.bf16 %v5447_v40, %v5446_v60  ;;  %v5524_v60 = vld [vmem:[%s15542_s5 + $0x12d0] sm:$0xff]  ;;  %v5525_v40 = vld [vmem:[%s15542_s5 + $0x12d8] sm:$0xff] }
 0x5d4   : > { %v9183_v25 = vpop.f32.mrb[37].mxu1  ;;  %10999 = vmatprep.subr.bf16.mxu0 %v10998_v27  ;;  %v5436_v27 = vld [vmem:[%s15542_s5 + $0x1010] sm:$0xff] }
 0x5d5   : > { %v14896_v26 = vadd.f32 %v9183_v25, %v9182_v23  ;;  %v11056_v14 = vpack.c.bf16 %v5437_v19, %v5436_v27  ;;  %v11058_v23 = vpack.c.bf16 %v5455_v45, %v5454_v10  ;;  %v5439_v25 = vld [vmem:[%s15542_s5 + $0x1028] sm:$0xff]  ;;  %v5514_v19 = vld [vmem:[%s15542_s5 + $0x1280] sm:$0xff] }
 0x5d6   : > { %v5515_v10 = vld [vmem:[%s15542_s5 + $0x1288] sm:$0xff] }
 0x5d7   : > { %11001 = vmatpush3.bf16.msra.mxu0 %v11000_v33  ;;  %v5438_v33 = vld [vmem:[%s15542_s5 + $0x1020] sm:$0xff] }
 0x5d8   : > { %11003 = vmatprep.subr.bf16.mxu0 %v11002_v37  ;;  %v11742_v37 = vmov 0.0|0.0  }
 0x5d9   : > { %11330 = vmatprep.subr.bf16.mxu1 %v11742_v37 }
 0x5db   : > { %11005 = vmatpush3.bf16.msra.mxu0 %v11004_v59  ;;  %v5459_v59 = vld [vmem:[%s15542_s5 + $0x10c8] sm:$0xff] }
 0x5dc   : > { %11007 = vmatprep.subr.bf16.mxu0 %v11006_v62  ;;  %v11066_v22 = vpack.c.bf16 %v5459_v59, %v5458_v17  ;;  %v5519_v17 = vld [vmem:[%s15542_s5 + $0x12a8] sm:$0xff] }
 0x5dd   : > { %v8692_v52 = vpop.f32.mrb[108].mxu0 }
 0x5de   : > { %v8693_v24 = vpop.f32.mrb[109].mxu0 }
 0x5df   : > { %v8694_v42 = vadd.f32 %v8693_v24, %v8692_v52  ;;  %11009 = vmatpush3.bf16.msra.mxu0 %v11008_v0  ;;  %v5443_v0 = vld [vmem:[%s15542_s5 + $0x1048] sm:$0xff]  ;;  %v5445_v24 = vld [vmem:[%s15542_s5 + $0x1058] sm:$0xff] }
 0x5e0   : > { %11011 = vmatprep.subr.bf16.mxu0 %v11010_v2  ;;  %v11068_v52 = vpack.c.bf16 %v5443_v0, %v5442_v8  ;;  %v5504_v0 = vld [vmem:[%s15542_s5 + $0x1230] sm:$0xff] }
 0x5e1   : > { %v14935_v5 = vadd.f32 %v8694_v42, %v14828_v56  ;;  %v5435_v56 = vld [vmem:[%s15542_s5 + $0x1008] sm:$0xff]  ;;  %v5462_v42 = vld [vmem:[%s15542_s5 + $0x10e0] sm:$0xff] }
 0x5e2   : > { %v11052_v58 = vpack.c.bf16 %v5435_v56, %v5434_v63 }
 0x5e3   : > { %11013 = vmatpush3.bf16.msra.mxu0 %v11012_v53  ;;  %v5463_v53 = vld [vmem:[%s15542_s5 + $0x10e8] sm:$0xff] }
 0x5e4   : > { %11015 = vmatprep.subr.bf16.mxu0 %v11014_v7  ;;  %v11072_v7 = vpack.c.bf16 %v5445_v24, %v5444_v54  ;;  %v11074_v57 = vpack.c.bf16 %v5463_v53, %v5462_v42  ;;  %v11128_v54 = vpack.c.bf16 %v5505_v30, %v5504_v0  ;;  %v5506_v53 = vld [vmem:[%s15542_s5 + $0x1240] sm:$0xff]  ;;  %v5583_v30 = vld [vmem:[%s15542_s5 + $0x14a8] sm:$0xff] }
 0x5e5   : > { %v5582_v0 = vld [vmem:[%s15542_s5 + $0x14a0] sm:$0xff] }
 0x5e7   : > { %11017 = vmatpush3.bf16.msra.mxu0 %v11016_v29  ;;  %v5464_v29 = vld [vmem:[%s15542_s5 + $0x10f0] sm:$0xff] }
 0x5e8   : > { %11051 = vmatprep.subr.bf16.mxu0 %v11050_v13  ;;  %v5465_v13 = vld [vmem:[%s15542_s5 + $0x10f8] sm:$0xff] }
 0x5e9   : > { %v11078_v38 = vpack.c.bf16 %v5465_v13, %v5464_v29  ;;  %v11134_v29 = vpack.c.bf16 %v5525_v40, %v5524_v60  ;;  %v5508_v13 = vld [vmem:[%s15542_s5 + $0x1250] sm:$0xff] }
 0x5ea   : > { %7004 = vmatmul.mubr.f32.vlgmr.msra.gmra.mrb[122].mxu0 %v5829_v44  ;;  %v5457_v44 = vld [vmem:[%s15542_s5 + $0x10b8] sm:$0xff] }
 0x5eb   : > { %11053 = vmatpush3.bf16.msra.mxu0 %v11052_v58  ;;  %7143 = vmatprep.mubr.f32.mxu0 %v5849_v41  ;;  %v11060_v41 = vpack.c.bf16 %v5439_v25, %v5438_v33  ;;  %v11062_v21 = vpack.c.bf16 %v5457_v44, %v5456_v28  ;;  %v5448_v58 = vld [vmem:[%s15542_s5 + $0x1070] sm:$0xff]  ;;  %v5517_v25 = vld [vmem:[%s15542_s5 + $0x1298] sm:$0xff] }
 0x5ec   : > { %11055 = vmatprep.subr.bf16.mxu0 %v11054_v39  ;;  %v5449_v39 = vld [vmem:[%s15542_s5 + $0x1078] sm:$0xff]  ;;  %v5516_v33 = vld [vmem:[%s15542_s5 + $0x1290] sm:$0xff] }
 0x5ed   : > { %v11080_v45 = vpack.c.bf16 %v5449_v39, %v5448_v58  ;;  %v11118_v44 = vpack.c.bf16 %v5517_v25, %v5516_v33  ;;  %v5510_v39 = vld [vmem:[%s15542_s5 + $0x1260] sm:$0xff] }
 0x5ef   : > { %11057 = vmatpush3.bf16.msra.mxu0 %v11056_v14  ;;  %v11114_v14 = vpack.c.bf16 %v5515_v10, %v5514_v19  ;;  %v5511_v19 = vld [vmem:[%s15542_s5 + $0x1268] sm:$0xff] }
 0x5f0   : > { %11059 = vmatprep.subr.bf16.mxu0 %v11058_v23  ;;  %v5498_v23 = vld [vmem:[%s15542_s5 + $0x1200] sm:$0xff]  ;;  %v11140_v33 = vpack.c.bf16 %v5511_v19, %v5510_v39  ;;  %v5591_v19 = vld [vmem:[%s15542_s5 + $0x14e8] sm:$0xff] }
 0x5f1   : > { %v5590_v39 = vld [vmem:[%s15542_s5 + $0x14e0] sm:$0xff] }
 0x5f3   : > { %11061 = vmatpush3.bf16.msra.mxu0 %v11060_v41  ;;  %v9252_v62 = vpop.f32.mrb[38].mxu1  ;;  %v5500_v41 = vld [vmem:[%s15542_s5 + $0x1210] sm:$0xff] }
 0x5f4   : > { %v9253_v34 = vpop.f32.mrb[39].mxu1  ;;  %11063 = vmatprep.subr.bf16.mxu0 %v11062_v21  ;;  %v5501_v21 = vld [vmem:[%s15542_s5 + $0x1218] sm:$0xff] }
 0x5f5   : > { %v15004_v2 = vadd.f32 %v9253_v34, %v9252_v62  ;;  %v11120_v59 = vpack.c.bf16 %v5501_v21, %v5500_v41  ;;  %v11122_v62 = vpack.c.bf16 %v5519_v17, %v5518_v32  ;;  %v5503_v34 = vld [vmem:[%s15542_s5 + $0x1228] sm:$0xff]  ;;  %v5578_v21 = vld [vmem:[%s15542_s5 + $0x1480] sm:$0xff] }
 0x5f6   : > { %v5579_v32 = vld [vmem:[%s15542_s5 + $0x1488] sm:$0xff] }
 0x5f7   : > { %11065 = vmatpush3.bf16.msra.mxu0 %v11064_v1  ;;  %v5502_v1 = vld [vmem:[%s15542_s5 + $0x1220] sm:$0xff] }
 0x5f8   : > { %11067 = vmatprep.subr.bf16.mxu0 %v11066_v22  ;;  %v5521_v22 = vld [vmem:[%s15542_s5 + $0x12b8] sm:$0xff] }
 0x5fb   : > { %11069 = vmatpush3.bf16.msra.mxu0 %v11068_v52  ;;  %v5523_v52 = vld [vmem:[%s15542_s5 + $0x12c8] sm:$0xff] }
 0x5fc   : > { %11071 = vmatprep.subr.bf16.mxu0 %v11070_v51  ;;  %v11130_v42 = vpack.c.bf16 %v5523_v52, %v5522_v48  ;;  %v11186_v52 = vpack.c.bf16 %v5583_v30, %v5582_v0 }
 0x5fd   : > { %v8727_v12 = vpop.f32.mrb[110].mxu0 }
 0x5fe   : > { %v8728_v63 = vpop.f32.mrb[111].mxu0 }
 0x5ff   : > { %v8729_v56 = vadd.f32 %v8728_v63, %v8727_v12  ;;  %11073 = vmatpush3.bf16.msra.mxu0 %v11072_v7  ;;  %v5507_v7 = vld [vmem:[%s15542_s5 + $0x1248] sm:$0xff]  ;;  %v5509_v63 = vld [vmem:[%s15542_s5 + $0x1258] sm:$0xff] }
 0x600   : > { %11075 = vmatprep.subr.bf16.mxu0 %v11074_v57  ;;  %v11132_v12 = vpack.c.bf16 %v5507_v7, %v5506_v53  ;;  %v5586_v53 = vld [vmem:[%s15542_s5 + $0x14c0] sm:$0xff]  ;;  %v5587_v7 = vld [vmem:[%s15542_s5 + $0x14c8] sm:$0xff] }
 0x601   : > { %v15043_v27 = vadd.f32 %v8729_v56, %v14935_v5  ;;  %v5499_v5 = vld [vmem:[%s15542_s5 + $0x1208] sm:$0xff]  ;;  %v5526_v56 = vld [vmem:[%s15542_s5 + $0x12e0] sm:$0xff]  ;;  %v11194_v40 = vpack.c.bf16 %v5587_v7, %v5586_v53 }
 0x602   : > { %v11116_v28 = vpack.c.bf16 %v5499_v5, %v5498_v23  ;;  %v5650_v53 = vld [vmem:[%s15542_s5 + $0x16c0] sm:$0xff]  ;;  %v5651_v7 = vld [vmem:[%s15542_s5 + $0x16c8] sm:$0xff] }
 0x603   : > { %11077 = vmatpush3.bf16.msra.mxu0 %v11076_v20  ;;  %v5527_v20 = vld [vmem:[%s15542_s5 + $0x12e8] sm:$0xff] }
 0x604   : > { %11079 = vmatprep.subr.bf16.mxu0 %v11078_v38  ;;  %v11136_v38 = vpack.c.bf16 %v5509_v63, %v5508_v13  ;;  %v11138_v58 = vpack.c.bf16 %v5527_v20, %v5526_v56  ;;  %v5588_v13 = vld [vmem:[%s15542_s5 + $0x14d0] sm:$0xff]  ;;  %v5589_v63 = vld [vmem:[%s15542_s5 + $0x14d8] sm:$0xff] }
 0x605   : > { %v11198_v20 = vpack.c.bf16 %v5589_v63, %v5588_v13  ;;  %v5652_v13 = vld [vmem:[%s15542_s5 + $0x16d0] sm:$0xff]  ;;  %v5653_v63 = vld [vmem:[%s15542_s5 + $0x16d8] sm:$0xff] }
 0x607   : > { %11081 = vmatpush3.bf16.msra.mxu0 %v11080_v45  ;;  %v5528_v45 = vld [vmem:[%s15542_s5 + $0x12f0] sm:$0xff] }
 0x608   : > { %11115 = vmatprep.subr.bf16.mxu0 %v11114_v14  ;;  %v5529_v14 = vld [vmem:[%s15542_s5 + $0x12f8] sm:$0xff] }
 0x609   : > { %v11142_v25 = vpack.c.bf16 %v5529_v14, %v5528_v45  ;;  %v11202_v45 = vpack.c.bf16 %v5591_v19, %v5590_v39  ;;  %v5574_v14 = vld [vmem:[%s15542_s5 + $0x1460] sm:$0xff]  ;;  %v5655_v19 = vld [vmem:[%s15542_s5 + $0x16e8] sm:$0xff] }
 0x60a   : > { %7144 = vmatmul.mubr.f32.vlgmr.msra.gmra.mrb[124].mxu0 %v5845_v61  ;;  %v5520_v61 = vld [vmem:[%s15542_s5 + $0x12b0] sm:$0xff]  ;;  %v5654_v39 = vld [vmem:[%s15542_s5 + $0x16e0] sm:$0xff] }
 0x60b   : > { %11117 = vmatpush3.bf16.msra.mxu0 %v11116_v28  ;;  %7283 = vmatprep.mubr.f32.mxu0 %v5865_v4  ;;  %v11124_v4 = vpack.c.bf16 %v5503_v34, %v5502_v1  ;;  %v11126_v8 = vpack.c.bf16 %v5521_v22, %v5520_v61  ;;  %v5512_v28 = vld [vmem:[%s15542_s5 + $0x1270] sm:$0xff]  ;;  %v5581_v34 = vld [vmem:[%s15542_s5 + $0x1498] sm:$0xff] }
 0x60c   : > { %11119 = vmatprep.subr.bf16.mxu0 %v11118_v44  ;;  %v5513_v44 = vld [vmem:[%s15542_s5 + $0x1278] sm:$0xff]  ;;  %v5580_v1 = vld [vmem:[%s15542_s5 + $0x1490] sm:$0xff] }
 0x60d   : > { %v11144_v17 = vpack.c.bf16 %v5513_v44, %v5512_v28  ;;  %v11182_v22 = vpack.c.bf16 %v5581_v34, %v5580_v1  ;;  %v5643_v1 = vld [vmem:[%s15542_s5 + $0x1688] sm:$0xff] }
 0x60f   : > { %11121 = vmatpush3.bf16.msra.mxu0 %v11120_v59  ;;  %v11178_v59 = vpack.c.bf16 %v5579_v32, %v5578_v21 }
 0x610   : > { %11123 = vmatprep.subr.bf16.mxu0 %v11122_v62  ;;  %v5562_v62 = vld [vmem:[%s15542_s5 + $0x1400] sm:$0xff] }
 0x613   : > { %11125 = vmatpush3.bf16.msra.mxu0 %v11124_v4  ;;  %v9322_v51 = vpop.f32.mrb[40].mxu1  ;;  %v5564_v4 = vld [vmem:[%s15542_s5 + $0x1410] sm:$0xff] }
 0x614   : > { %v9323_v24 = vpop.f32.mrb[41].mxu1  ;;  %11127 = vmatprep.subr.bf16.mxu0 %v11126_v8  ;;  %v5565_v8 = vld [vmem:[%s15542_s5 + $0x1418] sm:$0xff] }
 0x615   : > { %v15115_v57 = vadd.f32 %v9323_v24, %v9322_v51  ;;  %v11184_v48 = vpack.c.bf16 %v5565_v8, %v5564_v4  ;;  %v5566_v51 = vld [vmem:[%s15542_s5 + $0x1420] sm:$0xff]  ;;  %v5568_v24 = vld [vmem:[%s15542_s5 + $0x1430] sm:$0xff]  ;;  %v5645_v8 = vld [vmem:[%s15542_s5 + $0x1698] sm:$0xff] }
 0x616   : > { %v5644_v4 = vld [vmem:[%s15542_s5 + $0x1690] sm:$0xff] }
 0x617   : > { %11129 = vmatpush3.bf16.msra.mxu0 %v11128_v54  ;;  %v5567_v54 = vld [vmem:[%s15542_s5 + $0x1428] sm:$0xff]  ;;  %v11246_v30 = vpack.c.bf16 %v5645_v8, %v5644_v4  ;;  %v5694_v8 = vld [vmem:[%s15542_s5 + $0x1820] sm:$0xff] }
 0x618   : > { %11131 = vmatprep.subr.bf16.mxu0 %v11130_v42  ;;  %v5569_v42 = vld [vmem:[%s15542_s5 + $0x1438] sm:$0xff] }
 0x619   : > { %v11192_v60 = vpack.c.bf16 %v5569_v42, %v5568_v24  ;;  %v5632_v24 = vld [vmem:[%s15542_s5 + $0x1630] sm:$0xff]  ;;  %v5633_v42 = vld [vmem:[%s15542_s5 + $0x1638] sm:$0xff] }
 0x61b   : > { %11133 = vmatpush3.bf16.msra.mxu0 %v11132_v12  ;;  %v5570_v12 = vld [vmem:[%s15542_s5 + $0x1440] sm:$0xff] }
 0x61c   : > { %11135 = vmatprep.subr.bf16.mxu0 %v11134_v29  ;;  %v5571_v29 = vld [vmem:[%s15542_s5 + $0x1448] sm:$0xff] }
 0x61d   : > { %v8762_v10 = vpop.f32.mrb[112].mxu0  ;;  %v11196_v56 = vpack.c.bf16 %v5571_v29, %v5570_v12  ;;  %v5634_v12 = vld [vmem:[%s15542_s5 + $0x1640] sm:$0xff]  ;;  %v5635_v29 = vld [vmem:[%s15542_s5 + $0x1648] sm:$0xff] }
 0x61e   : > { %v8763_v23 = vpop.f32.mrb[113].mxu0 }
 0x61f   : > { %v8764_v5 = vadd.f32 %v8763_v23, %v8762_v10  ;;  %11137 = vmatpush3.bf16.msra.mxu0 %v11136_v38  ;;  %v5572_v38 = vld [vmem:[%s15542_s5 + $0x1450] sm:$0xff]  ;;  %v5575_v23 = vld [vmem:[%s15542_s5 + $0x1468] sm:$0xff] }
 0x620   : > { %11139 = vmatprep.subr.bf16.mxu0 %v11138_v58  ;;  %v5573_v58 = vld [vmem:[%s15542_s5 + $0x1458] sm:$0xff]  ;;  %v11204_v21 = vpack.c.bf16 %v5575_v23, %v5574_v14  ;;  %v5638_v14 = vld [vmem:[%s15542_s5 + $0x1660] sm:$0xff]  ;;  %v5639_v23 = vld [vmem:[%s15542_s5 + $0x1668] sm:$0xff] }
 0x621   : > { %v15154_v41 = vadd.f32 %v8764_v5, %v15043_v27  ;;  %v5563_v27 = vld [vmem:[%s15542_s5 + $0x1408] sm:$0xff]  ;;  %v11200_v10 = vpack.c.bf16 %v5573_v58, %v5572_v38  ;;  %v5636_v38 = vld [vmem:[%s15542_s5 + $0x1650] sm:$0xff]  ;;  %v5637_v58 = vld [vmem:[%s15542_s5 + $0x1658] sm:$0xff] }
 0x622   : > { %v11180_v61 = vpack.c.bf16 %v5563_v27, %v5562_v62  ;;  %v5642_v27 = vld [vmem:[%s15542_s5 + $0x1680] sm:$0xff] }
 0x623   : > { %11141 = vmatpush3.bf16.msra.mxu0 %v11140_v33  ;;  %v5592_v33 = vld [vmem:[%s15542_s5 + $0x14f0] sm:$0xff] }
 0x624   : > { %11143 = vmatprep.subr.bf16.mxu0 %v11142_v25  ;;  %v5593_v25 = vld [vmem:[%s15542_s5 + $0x14f8] sm:$0xff] }
 0x625   : > { %v11206_v32 = vpack.c.bf16 %v5593_v25, %v5592_v33  ;;  %v5656_v33 = vld [vmem:[%s15542_s5 + $0x16f0] sm:$0xff]  ;;  %v5657_v25 = vld [vmem:[%s15542_s5 + $0x16f8] sm:$0xff] }
 0x627   : > { %11145 = vmatpush3.bf16.msra.mxu0 %v11144_v17  ;;  %v5576_v17 = vld [vmem:[%s15542_s5 + $0x1470] sm:$0xff] }
 0x628   : > { %11179 = vmatprep.subr.bf16.mxu0 %v11178_v59  ;;  %v5577_v59 = vld [vmem:[%s15542_s5 + $0x1478] sm:$0xff] }
 0x629   : > { %v11208_v34 = vpack.c.bf16 %v5577_v59, %v5576_v17  ;;  %v5640_v17 = vld [vmem:[%s15542_s5 + $0x1670] sm:$0xff]  ;;  %v5641_v59 = vld [vmem:[%s15542_s5 + $0x1678] sm:$0xff] }
 0x62a   : > { %7284 = vmatmul.mubr.f32.vlgmr.msra.gmra.mrb[126].mxu0 %v5861_v49  ;;  %v11188_v49 = vpack.c.bf16 %v5567_v54, %v5566_v51  ;;  %v5646_v51 = vld [vmem:[%s15542_s5 + $0x16a0] sm:$0xff]  ;;  %v5647_v54 = vld [vmem:[%s15542_s5 + $0x16a8] sm:$0xff] }
 0x62b   : > { %11181 = vmatpush3.bf16.msra.mxu0 %v11180_v61  ;;  %7423 = vmatprep.mubr.f32.mxu0 %v5881_v16  ;;  %v11190_v16 = vpack.c.bf16 %v5585_v31, %v5584_v18  ;;  %v11242_v61 = vpack.c.bf16 %v5643_v1, %v5642_v27  ;;  %v11250_v31 = vpack.c.bf16 %v5647_v54, %v5646_v51  ;;  %v5700_v51 = vld [vmem:[%s15542_s5 + $0x1850] sm:$0xff]  ;;  %v5701_v54 = vld [vmem:[%s15542_s5 + $0x1858] sm:$0xff] }
 0x62c   : > { %11183 = vmatprep.subr.bf16.mxu0 %v11182_v22  ;;  %v5626_v22 = vld [vmem:[%s15542_s5 + $0x1600] sm:$0xff]  ;;  %v11272_v1 = vpack.c.bf16 %v5641_v59, %v5640_v17  ;;  %v7720_v17 = vld [vmem:[%s15544_s7 + $0x50] sm:$0xff]  ;;  %v7721_v59 = vld [vmem:[%s15544_s7 + $0x58] sm:$0xff] }
 0x62f   : > { %11185 = vmatpush3.bf16.msra.mxu0 %v11184_v48  ;;  %v5628_v48 = vld [vmem:[%s15542_s5 + $0x1610] sm:$0xff] }
 0x630   : > { %11187 = vmatprep.subr.bf16.mxu0 %v11186_v52  ;;  %v5629_v52 = vld [vmem:[%s15542_s5 + $0x1618] sm:$0xff] }
 0x631   : > { %v11248_v18 = vpack.c.bf16 %v5629_v52, %v5628_v48  ;;  %v5699_v48 = vld [vmem:[%s15542_s5 + $0x1848] sm:$0xff] }
 0x633   : > { %11189 = vmatpush3.bf16.msra.mxu0 %v11188_v49  ;;  %v5630_v49 = vld [vmem:[%s15542_s5 + $0x1620] sm:$0xff] }
 0x634   : > { %11191 = vmatprep.subr.bf16.mxu0 %v11190_v16  ;;  %v5631_v16 = vld [vmem:[%s15542_s5 + $0x1628] sm:$0xff] }
 0x637   : > { %11193 = vmatpush3.bf16.msra.mxu0 %v11192_v60  ;;  %v11256_v60 = vpack.c.bf16 %v5633_v42, %v5632_v24  ;;  %v5705_v24 = vld [vmem:[%s15542_s5 + $0x1878] sm:$0xff] }
 0x638   : > { %11195 = vmatprep.subr.bf16.mxu0 %v11194_v40  ;;  %v11258_v40 = vpack.c.bf16 %v5651_v7, %v5650_v53 }
 0x63b   : > { %11197 = vmatpush3.bf16.msra.mxu0 %v11196_v56  ;;  %v11260_v56 = vpack.c.bf16 %v5635_v29, %v5634_v12 }
 0x63c   : > { %11199 = vmatprep.subr.bf16.mxu0 %v11198_v20  ;;  %v11262_v20 = vpack.c.bf16 %v5653_v63, %v5652_v13 }
 0x63d   : > { %v8797_v5 = vpop.f32.mrb[114].mxu0 }
 0x63e   : > { %v8798_v28 = vpop.f32.mrb[115].mxu0 }
 0x63f   : > { %v8799_v44 = vadd.f32 %v8798_v28, %v8797_v5  ;;  %11201 = vmatpush3.bf16.msra.mxu0 %v11200_v10  ;;  %v11264_v10 = vpack.c.bf16 %v5637_v58, %v5636_v38 }
 0x640   : > { %11203 = vmatprep.subr.bf16.mxu0 %v11202_v45  ;;  %v11266_v45 = vpack.c.bf16 %v5655_v19, %v5654_v39  ;;  %v7710_v39 = vld [vmem:[%s15544_s7] sm:$0xff]  ;;  %v7712_v19 = vld [vmem:[%s15544_s7 + $0x10] sm:$0xff] }
 0x641   : > { %v15259_v62 = vadd.f32 %v8799_v44, %v15154_v41  ;;  %v5627_v41 = vld [vmem:[%s15542_s5 + $0x1608] sm:$0xff] }
 0x642   : > { %v11244_v0 = vpack.c.bf16 %v5627_v41, %v5626_v22  ;;  %v5692_v41 = vld [vmem:[%s15542_s5 + $0x1810] sm:$0xff] }
 0x643   : > { %11205 = vmatpush3.bf16.msra.mxu0 %v11204_v21  ;;  %v11268_v21 = vpack.c.bf16 %v5639_v23, %v5638_v14  ;;  %v7714_v23 = vld [vmem:[%s15544_s7 + $0x20] sm:$0xff] }
 0x644   : > { %11207 = vmatprep.subr.bf16.mxu0 %v11206_v32  ;;  %v11270_v32 = vpack.c.bf16 %v5657_v25, %v5656_v33  ;;  %v7717_v25 = vld [vmem:[%s15544_s7 + $0x38] sm:$0xff] }
 0x647   : > { %11209 = vmatpush3.bf16.msra.mxu0 %v11208_v34  ;;  %v5690_v34 = vld [vmem:[%s15542_s5 + $0x1800] sm:$0xff] }
 0x648   : > { %11243 = vmatprep.subr.bf16.mxu0 %v11242_v61  ;;  %v5691_v61 = vld [vmem:[%s15542_s5 + $0x1808] sm:$0xff] }
 0x649   : > { %v11307_v22 = vpack.c.bf16 %v5691_v61, %v5690_v34  ;;  %v7723_v34 = vld [vmem:[%s15544_s7 + $0x68] sm:$0xff] }
 0x64a   : > { %7424 = vmatmul.mubr.f32.vlgmr.msra.gmra.mrb[128].mxu0 %v5877_v6  ;;  %v11252_v6 = vpack.c.bf16 %v5631_v16, %v5630_v49  ;;  %v5703_v49 = vld [vmem:[%s15542_s5 + $0x1868] sm:$0xff] }
 0x64b   : > { %11245 = vmatpush3.bf16.msra.mxu0 %v11244_v0  ;;  %7563 = vmatprep.mubr.f32.mxu0 %v5897_v55  ;;  %v11254_v55 = vpack.c.bf16 %v5649_v43, %v5648_v47  ;;  %v5695_v0 = vld [vmem:[%s15542_s5 + $0x1828] sm:$0xff] }
 0x64c   : > { %11247 = vmatprep.subr.bf16.mxu0 %v11246_v30  ;;  %v11313_v30 = vpack.c.bf16 %v5695_v0, %v5694_v8  ;;  %v7725_v8 = vld [vmem:[%s15544_s7 + $0x78] sm:$0xff] }
 0x64f   : > { %11249 = vmatpush3.bf16.msra.mxu0 %v11248_v18  ;;  %v11322_v18 = vpack.c.bf16 %v5701_v54, %v5700_v51 }
 0x650   : > { %11251 = vmatprep.subr.bf16.mxu0 %v11250_v31  ;;  %v5702_v31 = vld [vmem:[%s15542_s5 + $0x1860] sm:$0xff] }
 0x653   : > { %11253 = vmatpush3.bf16.msra.mxu0 %v11252_v6  ;;  %v11325_v6 = vpack.c.bf16 %v5703_v49, %v5702_v31 }
 0x654   : > { %11255 = vmatprep.subr.bf16.mxu0 %v11254_v55  ;;  %v5704_v55 = vld [vmem:[%s15542_s5 + $0x1870] sm:$0xff] }
 0x655   : > { %v11328_v53 = vpack.c.bf16 %v5705_v24, %v5704_v55 }
 0x657   : > { %11257 = vmatpush3.bf16.msra.mxu0 %v11256_v60  ;;  %v7985_v60 = vld [vmem:[#allocation5 + $0x30] ss:$0 sm:$0xff] }
 0x658   : > { %11259 = vmatprep.subr.bf16.mxu0 %v11258_v40 }
 0x65b   : > { %11261 = vmatpush3.bf16.msra.mxu0 %v11260_v56 }
 0x65c   : > { %11263 = vmatprep.subr.bf16.mxu0 %v11262_v20 }
 0x65d   : > { %v8832_v5 = vpop.f32.mrb[116].mxu0 }
 0x65e   : > { %v8833_v28 = vpop.f32.mrb[117].mxu0 }
 0x65f   : > { %v8834_v44 = vadd.f32 %v8833_v28, %v8832_v5  ;;  %11265 = vmatpush3.bf16.msra.mxu0 %v11264_v10  ;;  %v7715_v5 = vld [vmem:[%s15544_s7 + $0x28] sm:$0xff] }
 0x660   : > { %11267 = vmatprep.subr.bf16.mxu0 %v11266_v45  ;;  %v11337_v33 = vpack.c.bf16 %v7715_v5, %v7714_v23 }
 0x661   : > { %v6656_v27 = vadd.f32 %v8834_v44, %v15259_v62  ;;  %v5693_v62 = vld [vmem:[%s15542_s5 + $0x1818] sm:$0xff]  ;;  %v7718_v44 = vld [vmem:[%s15544_s7 + $0x40] sm:$0xff] }
 0x662   : > { %v11310_v4 = vpack.c.bf16 %v5693_v62, %v5692_v41 }
 0x663   : > { %11269 = vmatpush3.bf16.msra.mxu0 %v11268_v21  ;;  %v7719_v21 = vld [vmem:[%s15544_s7 + $0x48] sm:$0xff] }
 0x664   : > { %11271 = vmatprep.subr.bf16.mxu0 %v11270_v32  ;;  %v11343_v32 = vpack.c.bf16 %v7719_v21, %v7718_v44 }
 0x667   : > { %11273 = vmatpush3.bf16.msra.mxu0 %v11272_v1  ;;  %v7722_v1 = vld [vmem:[%s15544_s7 + $0x60] sm:$0xff] }
 0x668   : > { %11306 = vmatprep.subr.bf16.mxu0 %v11742_v37  ;;  %v11349_v61 = vpack.c.bf16 %v7723_v34, %v7722_v1 }
 0x66a   : > { %7564 = vmatmul.mubr.f32.vlgmr.msra.gmra.mrb[130].mxu0 %v5893_v50  ;;  %v11316_v50 = vpack.c.bf16 %v5697_v11, %v5696_v35 }
 0x66b   : > { %11308 = vmatpush3.bf16.msra.mxu0 %v11307_v22  ;;  %10208 = vmatprep.mubr.msk.f32.mxu0 %vm11743_vm2, %v15069_v15  ;;  %v5698_v15 = vld [vmem:[%s15542_s5 + $0x1840] sm:$0xff] }
 0x66c   : > { %11309 = vmatprep.subr.bf16.mxu0 %v11742_v37  ;;  %v11319_v52 = vpack.c.bf16 %v5699_v48, %v5698_v15 }
 0x66f   : > { %11311 = vmatpush3.bf16.msra.mxu0 %v11310_v4  ;;  %v7724_v4 = vld [vmem:[%s15544_s7 + $0x70] sm:$0xff] }
 0x670   : > { %11312 = vmatprep.subr.bf16.mxu0 %v11742_v37 }
 0x673   : > { %11314 = vmatpush3.bf16.msra.mxu0 %v11313_v30  ;;  %v11352_v30 = vpack.c.bf16 %v7725_v8, %v7724_v4 }
 0x674   : > { %11315 = vmatprep.subr.bf16.mxu0 %v11742_v37 }
 0x677   : > { %11317 = vmatpush3.bf16.msra.mxu0 %v11316_v50 }
 0x678   : > { %11318 = vmatprep.subr.bf16.mxu0 %v11742_v37 }
 0x67b   : > { %11320 = vmatpush3.bf16.msra.mxu0 %v11319_v52 }
 0x67c   : > { %11321 = vmatprep.subr.bf16.mxu0 %v11742_v37 }
 0x67d   : > { %v8867_v16 = vpop.f32.mrb[118].mxu0 }
 0x67e   : > { %v8868_v47 = vpop.f32.mrb[119].mxu0 }
 0x67f   : > { %v8869_v43 = vadd.f32 %v8868_v47, %v8867_v16  ;;  %11323 = vmatpush3.bf16.msra.mxu0 %v11322_v18 }
 0x680   : > { %11324 = vmatprep.subr.bf16.mxu0 %v11742_v37 }
 0x681   : > { %v6726_v42 = vadd.f32 %v8869_v43, %v6656_v27  ;;  %v11346_v27 = vpack.c.bf16 %v7721_v59, %v7720_v17 }
 0x683   : > { %11326 = vmatpush3.bf16.msra.mxu0 %v11325_v6  ;;  %v6796_v7 = vadd.f32 %v14465_v9, %v6726_v42  ;;  %v7711_v9 = vld [vmem:[%s15544_s7 + $0x8] sm:$0xff] }
 0x684   : > { %11327 = vmatprep.subr.bf16.mxu0 %v11742_v37  ;;  %v11331_v10 = vpack.c.bf16 %v7711_v9, %v7710_v39 }
 0x686   : > { %11332 = vmatpush3.bf16.msra.mxu1 %v11331_v10 }
 0x687   : > { %11329 = vmatpush3.bf16.msra.mxu0 %v11328_v53  ;;  %11333 = vmatprep.subr.bf16.mxu1 %v11742_v37 }
 0x68a   : > { %10209 = vmatmul.mubr.f32.vlgmr.msra.gmra.mrb[132].mxu0 %v7985_v60 }
 0x69d   : > { %v8937_v40 = vpop.f32.mrb[120].mxu0 }
 0x69e   : > { %v8938_v12 = vpop.f32.mrb[121].mxu0 }
 0x69f   : > { %v8939_v29 = vadd.f32 %v8938_v12, %v8937_v40 }
 0x6a1   : > { %v6866_v13 = vadd.f32 %v8939_v29, %v6796_v7 }
 0x6a3   : > { %v6936_v63 = vadd.f32 %v14575_v46, %v6866_v13  ;;  %v7713_v46 = vld [vmem:[%s15544_s7 + $0x18] sm:$0xff] }
 0x6a4   : > { %v11334_v14 = vpack.c.bf16 %v7713_v46, %v7712_v19 }
 0x6a6   : > { %11335 = vmatpush3.bf16.msra.mxu1 %v11334_v14 }
 0x6a7   : > { %11336 = vmatprep.subr.bf16.mxu1 %v11742_v37 }
 0x6aa   : > { %11338 = vmatpush3.bf16.msra.mxu1 %v11337_v33 }
 0x6ab   : > { %11339 = vmatprep.subr.bf16.mxu1 %v11742_v37 }
 0x6bd   : > { %v9007_v56 = vpop.f32.mrb[122].mxu0 }
 0x6be   : > { %v9008_v20 = vpop.f32.mrb[123].mxu0 }
 0x6bf   : > { %v9009_v38 = vadd.f32 %v9008_v20, %v9007_v56 }
 0x6c1   : > { %v7006_v58 = vadd.f32 %v9009_v38, %v6936_v63 }
 0x6c3   : > { %v7076_v45 = vadd.f32 %v14682_v3, %v7006_v58  ;;  %v7716_v3 = vld [vmem:[%s15544_s7 + $0x30] sm:$0xff] }
 0x6c4   : > { %v11340_v28 = vpack.c.bf16 %v7717_v25, %v7716_v3 }
 0x6c6   : > { %11341 = vmatpush3.bf16.msra.mxu1 %v11340_v28 }
 0x6c7   : > { %11342 = vmatprep.subr.bf16.mxu1 %v11742_v37 }
 0x6ca   : > { %11344 = vmatpush3.bf16.msra.mxu1 %v11343_v32 }
 0x6cb   : > { %11345 = vmatprep.subr.bf16.mxu1 %v11742_v37 }
 0x6ce   : > { %11347 = vmatpush3.bf16.msra.mxu1 %v11346_v27 }
 0x6cf   : > { %11348 = vmatprep.subr.bf16.mxu1 %v11742_v37 }
 0x6d2   : > { %11350 = vmatpush3.bf16.msra.mxu1 %v11349_v61 }
 0x6d3   : > { %11351 = vmatprep.subr.bf16.mxu1 %v11742_v37 }
 0x6d6   : > { %11353 = vmatpush3.bf16.msra.mxu1 %v11352_v30 }
 0x6dd   : > { %v9077_v22 = vpop.f32.mrb[124].mxu0 }
 0x6de   : > { %v9078_v41 = vpop.f32.mrb[125].mxu0 }
 0x6df   : > { %v9079_v62 = vadd.f32 %v9078_v41, %v9077_v22 }
 0x6e1   : > { %v7146_v0 = vadd.f32 %v9079_v62, %v7076_v45 }
 0x6e3   : > { %v7216_v35 = vadd.f32 %v14789_v36, %v7146_v0 }
 0x6fd   : > { %v9147_v11 = vpop.f32.mrb[126].mxu0 }
 0x6fe   : > { %v9148_v50 = vpop.f32.mrb[127].mxu0 }
 0x6ff   : > { %v9149_v15 = vadd.f32 %v9148_v50, %v9147_v11 }
 0x701   : > { %v7286_v48 = vadd.f32 %v9149_v15, %v7216_v35 }
 0x703   : > { %v7356_v37 = vadd.f32 %v14896_v26, %v7286_v48  ;;  %v7726_v26 = vld [vmem:[%s15545_s8] sm:$0x1] }
 0x71d   : > { %v9217_v52 = vpop.f32.mrb[128].mxu0 }
 0x71e   : > { %v9218_v51 = vpop.f32.mrb[129].mxu0 }
 0x71f   : > { %v9219_v54 = vadd.f32 %v9218_v51, %v9217_v52 }
 0x721   : > { %v7426_v18 = vadd.f32 %v9219_v54, %v7356_v37 }
 0x723   : > { %v7496_v31 = vadd.f32 %v15004_v2, %v7426_v18 }
 0x73d   : > { %v9287_v49 = vpop.f32.mrb[130].mxu0 }
 0x73e   : > { %v9288_v16 = vpop.f32.mrb[131].mxu0 }
 0x73f   : > { %v9289_v47 = vadd.f32 %v9288_v16, %v9287_v49 }
 0x741   : > { %v7566_v43 = vadd.f32 %v9289_v47, %v7496_v31 }
 0x743   : > { %v7636_v36 = vadd.f32 %v15115_v57, %v7566_v43 }
 0x75d   : > { %v7705_v6 = vpop.f32.mrb[132].mxu0 }
 0x75e   : > { %v7706_v55 = vadd.f32 %v7705_v6, %v7636_v36  ;;  %v10210_v24 = vpop.f32.mrb[133].mxu0 }
 0x760   : > { %v7709_v42 = vmax.f32 %v7706_v55, 0.0 }
 0x762   : > { %10244 = vmatmul.mubr.f32.vlgmr.msra.gmra.mrb[42].mxu1 %v7709_v42 }
 0x835   : > { %v7793_v2 = vpop.f32.mrb[42].mxu1 }
 0x836   : > { %v7794_v53 = vadd.f32 %v7793_v2, %v7726_v26  ;;  %v10245_v7 = vpop.f32.mrb[43].mxu1 }
 0x838   : > { %7797 = vst [vmem:[%s339_s29] sm:$0x1] %v7794_v53 }
 0x839   : > { %11682 = shalt.err (!%p11679_p7)
}
 0x83a   : > { %s11683_s25 = scalar_lea.hbm %s15495_s23, 16  ;;  %s11687_s29 = scalar_lea.hbm %s15546_s9, 32 }
 0x83b   : > { %p11684_p8 = scmp.ne.s32.totalorder %s15495_s23, %s11683_s25  ;;  %p11688_p1 = scmp.lt.u32.totalorder %s15495_s23, %s15546_s9 }
 0x83c   : > { %p11689_p0 = scmp.lt.u32.totalorder %s11687_s29, %s11683_s25  ;;  %p11691_p6 = scmp.lt.u32.totalorder %s11683_s25, %s15495_s23 }
 0x83d   : > { %p11685_p11 = pnand %p11684_p8, %p15607_p9 }
 0x83e   : > { %p11690_p5 = por %p11689_p0, %p11688_p1 }
 0x83f   : > { %p11686_p13 = pneg %p11685_p11 }
 0x840   : > { %p11692_p10 = por %p11691_p6, %p11690_p5 }
 0x842   : > { %p11693_p12 = pnand %p11692_p10, %p11686_p13 }
 0x844   : > { %11696 = shalt.err (!%p11693_p12)
}
 0x845   : > { %11583 = dma.vmem_to_hbm [thread:$0]  (%p15607_p9), %s15497_s24, 16, %s15495_s23, %s7799_s21  }
 0x846 PF: > { %p11595_p2 = scmp.ge.s32.totalorder %s11735_s12, 2  ;;  %s7823_s17 = sand.u32 1, %s11723_s30  }
 0x847   : > { %p15608_p3 = scmp.ne.s32.totalorder %s15567_s20, 0  ;;  %s7824_s13 = scalar_lea.sflag [#allocation8], %s7823_s17 }
 0x849   : > { %p11590_p4 = pnand %p11595_p2, %p15608_p3 }
 0x84b   : > { %11718 = dma.done.wait (!%p11590_p4), %s7824_s13, 16  }
 0x84c   : > { %11720 = vsyncadd (!%p11590_p4), %s7824_s13, 4294967280  ;;  %p20_p7 = scmp.ge.s32.totalorder %s11820_s15, 4   ;;  %s15609_s30 = smov %s11727_s10 }
 0x84d   : > { %s15610_s10 = smov %s11731_s11  ;;  %s15611_s11 = smov %s11831_s18 }
 0x84e   : > { %s15612_s12 = smov %s11820_s15  ;;  %22 = sbr.rel (!%p20_p7) target bundleno = 4 (0x4), region = 242 }
 0x855   :  { %7828 = vsyncpa [#allocation7], 1 }
 0x856   :  { %7830 = vsyncpa [#allocation7 + $0x1], 1 }
 0x857   :  { %7831 = vsyncpa [#allocation8], 1 }
 0x858   :  { %7833 = vsyncpa [#allocation8 + $0x1], 1 }

</bundles_post_ra>
